<compile_context>
chip_gen: v6e
topology: v6e:2x2x1
jax: 0.10.0
libtpu: 0.0.40
codegen_flags: <defaults>
</compile_context>

<pallas_src>
import jax
import jax.numpy as jnp
from jax.experimental import pallas as pl
from jax.experimental.pallas import tpu as pltpu

# Static network geometry (input length 942 -> flatten size 325 = 25 ch x 13).
L_IN = 942
K1 = 100                     # conv1 kernel size
L1, L2, L3, L4, L5 = 843, 420, 139, 27, 13
NE = 424                     # rows per parity buffer inside h1 (>= 422, mult of 8)


# ----------------------------------------------------------------------------
# One fused kernel: conv1+ReLU+BN1 -> conv2+ReLU -> pool1+BN2 -> conv3+ReLU
#                   -> pool2 -> (flatten folded into wd1) -> 4x Linear+LeakyReLU
#                   -> Softmax
# ----------------------------------------------------------------------------
def _fused_convnet_kernel(
    x_ref,                                    # (848,128): rows 0..421 even-position
                                              # conv1 windows, rows 424..844 odd
    w1_ref, b1_ref, s1_ref, t1_ref,           # conv1 packed weight (128,128), bias, BN1
    w2_ref, b2_ref, s2_ref, t2_ref,           # conv2 taps (5,128,128), bias, BN2
    w3_ref, b3_ref,                           # conv3 taps (9,128,128), bias
    wd1_ref, bd1_ref, wd2_ref, bd2_ref,
    wd3_ref, bd3_ref, wd4_ref, bd4_ref,       # dense head (bf16 weights, f32 bias)
    out_ref,                                  # (1, 128) padded softmax output
    h1_ref, h2_ref, h3_ref, h4_ref,           # VMEM scratch activations (f32)
):
    f32 = jnp.float32

    def up(v):                                # bf16 weight tile -> f32 at the dot site
        return v.astype(f32)

    def lrelu(v):
        return jnp.where(v > 0, v, f32(0.01) * v)

    # Fragility guard: zero the (aligned) scratch tails that sit next to read
    # ranges.  Valid rows are overwritten below; tail rows stay finite zeros.
    zero8 = jnp.zeros((8, 128), f32)
    h2_ref[pl.ds(416, 8), :] = zero8          # h2 valid rows 0..419
    h3_ref[pl.ds(136, 8), :] = zero8          # h3 valid rows 0..138
    h4_ref[pl.ds(24, 8), :] = zero8           # h4 valid rows 0..26

    b1v, s1v, t1v = b1_ref[...], s1_ref[...], t1_ref[...]
    b2v, s2v, t2v = b2_ref[...], s2_ref[...], t2_ref[...]
    b3v = b3_ref[...]

    # ---- conv1: Conv1d(1,100,k=100,s=1) + ReLU + BN1 affine -----------------
    # K packed into the lane dim: one full-K matmul per row chunk.  All 848
    # rows (incl. the zero pad windows) are written, so h1 is fully defined.
    for t0, rows in ((0, 128), (128, 128), (256, 128), (384, 128),
                     (512, 128), (640, 128), (768, 80)):
        acc = jnp.dot(x_ref[pl.ds(t0, rows), :], up(w1_ref[...]),
                      preferred_element_type=f32)
        y = jnp.maximum(acc + b1v, 0.0)
        h1_ref[pl.ds(t0, rows), :] = y * s1v + t1v

    # ---- conv2: Conv1d(100,102,k=5,s=2) + ReLU ------------------------------
    # h1 is stored de-interleaved: h1[j] = conv1_out[2j], h1[NE+j] = conv1_out[2j+1]
    # so every tap read below is a contiguous (unit-stride) slice.
    for j0, rows in ((0, 128), (128, 128), (256, 128), (384, 36)):   # 420 rows
        acc = jnp.dot(h1_ref[pl.ds(j0, rows), :], up(w2_ref[0]),            # 2j
                      preferred_element_type=f32)
        acc = acc + jnp.dot(h1_ref[pl.ds(NE + j0, rows), :], up(w2_ref[1]), # 2j+1
                            preferred_element_type=f32)
        acc = acc + jnp.dot(h1_ref[pl.ds(j0 + 1, rows), :], up(w2_ref[2]),  # 2j+2
                            preferred_element_type=f32)
        acc = acc + jnp.dot(h1_ref[pl.ds(NE + j0 + 1, rows), :], up(w2_ref[3]),
                            preferred_element_type=f32)                     # 2j+3
        acc = acc + jnp.dot(h1_ref[pl.ds(j0 + 2, rows), :], up(w2_ref[4]),  # 2j+4
                            preferred_element_type=f32)
        h2_ref[pl.ds(j0, rows), :] = jnp.maximum(acc + b2v, 0.0)

    # ---- pool1: MaxPool1d(6, stride=3) + BN2 affine -------------------------
    # q[m] = max(h2[3m..3m+2]) via 3 strided reads; pool(6,3)[i] = max(q[i],q[i+1]).
    q = jnp.maximum(jnp.maximum(h2_ref[pl.ds(0, 140, stride=3), :],
                                h2_ref[pl.ds(1, 140, stride=3), :]),
                    h2_ref[pl.ds(2, 140, stride=3), :])          # (140,128)
    m6 = jnp.maximum(q[0:L3, :], q[1:L3 + 1, :])                 # (139,128)
    h3_ref[0:L3, :] = m6 * s2v + t2v

    # ---- conv3: Conv1d(102,25,k=9,s=5) + ReLU -------------------------------
    acc = jnp.dot(h3_ref[pl.ds(0, L4, stride=5), :], up(w3_ref[0]),
                  preferred_element_type=f32)
    for k in range(1, 9):
        acc = acc + jnp.dot(h3_ref[pl.ds(k, L4, stride=5), :], up(w3_ref[k]),
                            preferred_element_type=f32)
    h4_ref[0:L4, :] = jnp.maximum(acc + b3v, 0.0)

    # ---- pool2: MaxPool1d(3, stride=2) + dense1 with the flatten folded in --
    # flat[c*13 + l] = pooled[l, c]  ->  dense1 = sum_l pooled[l, 0:32] @ wd1p[l]
    dacc = bd1_ref[...]                                          # (1,768) f32
    for l in range(L5):
        row = jnp.maximum(jnp.maximum(h4_ref[pl.ds(2 * l, 1), :],
                                      h4_ref[pl.ds(2 * l + 1, 1), :]),
                          h4_ref[pl.ds(2 * l + 2, 1), :])        # (1,128)
        dacc = dacc + jnp.dot(row[:, 0:32], up(wd1_ref[l]),
                              preferred_element_type=f32)
    h = lrelu(dacc)

    # ---- dense head: 3 more (Linear + LeakyReLU/identity) + Softmax(dim=1) --
    h = lrelu(jnp.dot(h, up(wd2_ref[...]), preferred_element_type=f32) + bd2_ref[...])
    h = lrelu(jnp.dot(h, up(wd3_ref[...]), preferred_element_type=f32) + bd3_ref[...])
    logits = jnp.dot(h, up(wd4_ref[...]), preferred_element_type=f32) + bd4_ref[...]

    lane = jax.lax.broadcasted_iota(jnp.int32, (1, 128), 1)
    masked = jnp.where(lane < 3, logits, jnp.full((1, 128), -1e30, f32))
    mx = jnp.max(masked, axis=1, keepdims=True)
    e = jnp.exp(masked - mx)                                     # pad lanes -> 0
    denom = jnp.sum(e, axis=1, keepdims=True)
    out_ref[...] = e * pl.reciprocal(denom, approx=True)


# ----------------------------------------------------------------------------
# Wrapper: one pallas_call for the whole network
# ----------------------------------------------------------------------------
def convnet_forward(x, kp):
    B, L = x.shape
    assert L == L_IN, "this ConvNet requires input length 942 (flatten -> 325)"
    xf = x.astype(jnp.float32)

    # conv1 windows, K packed into the lane dim and pre-split by output parity:
    #   xcols[:,      i, k] = x[:, 2*i     + k]   (even positions, i = 0..421)
    #   xcols[:, NE + i, k] = x[:, 2*i + 1 + k]   (odd  positions, i = 0..420)
    win = jnp.stack([xf[:, k:k + L1] for k in range(K1)], axis=-1)   # (B, 843, 100)
    even = jnp.pad(win[:, 0::2, :], ((0, 0), (0, NE - 422), (0, 128 - K1)))
    odd = jnp.pad(win[:, 1::2, :], ((0, 0), (0, NE - 421), (0, 128 - K1)))
    xcols = jnp.concatenate([even, odd], axis=1)                     # (B, 848, 128)

    const2 = lambda b: (0, 0)
    const3 = lambda b: (0, 0, 0)

    out = pl.pallas_call(
        _fused_convnet_kernel,
        out_shape=jax.ShapeDtypeStruct((B, 1, 128), jnp.float32),
        grid=(B,),
        in_specs=[
            pl.BlockSpec((None, 2 * NE, 128), lambda b: (b, 0, 0)),  # shifted input
            pl.BlockSpec((128, 128), const2),      # conv1 packed weight (bf16)
            pl.BlockSpec((1, 128), const2),        # b1
            pl.BlockSpec((1, 128), const2),        # bn1 scale
            pl.BlockSpec((1, 128), const2),        # bn1 shift
            pl.BlockSpec((5, 128, 128), const3),   # conv2 taps (bf16)
            pl.BlockSpec((1, 128), const2),        # b2
            pl.BlockSpec((1, 128), const2),        # bn2 scale
            pl.BlockSpec((1, 128), const2),        # bn2 shift
            pl.BlockSpec((9, 128, 128), const3),   # conv3 taps (bf16)
            pl.BlockSpec((1, 128), const2),        # b3
            pl.BlockSpec((13, 32, 768), const3),   # wd1 (flatten perm folded, bf16)
            pl.BlockSpec((1, 768), const2),        # bd1
            pl.BlockSpec((768, 256), const2),      # wd2 (bf16)
            pl.BlockSpec((1, 256), const2),        # bd2
            pl.BlockSpec((256, 256), const2),      # wd3 (bf16)
            pl.BlockSpec((1, 256), const2),        # bd3
            pl.BlockSpec((256, 128), const2),      # wd4 (bf16)
            pl.BlockSpec((1, 128), const2),        # bd4
        ],
        out_specs=pl.BlockSpec((None, 1, 128), lambda b: (b, 0, 0)),
        scratch_shapes=[
            pltpu.VMEM((2 * NE, 128), jnp.float32),  # conv1 out, parity-split (843 valid)
            pltpu.VMEM((424, 128), jnp.float32),     # conv2 out (420 valid)
            pltpu.VMEM((144, 128), jnp.float32),     # pool1 + BN2 (139 valid)
            pltpu.VMEM((32, 128), jnp.float32),      # conv3 out (27 valid)
        ],
        compiler_params=pltpu.CompilerParams(
            dimension_semantics=("parallel",)),      # v7x: 2 TCs split the batch
    )(xcols, kp["w1p"], kp["b1p"], kp["s1p"], kp["t1p"],
      kp["w2p"], kp["b2p"], kp["s2p"], kp["t2p"],
      kp["w3p"], kp["b3p"],
      kp["wd1p"], kp["bd1p"], kp["wd2p"], kp["bd2p"],
      kp["wd3p"], kp["bd3p"], kp["wd4p"], kp["bd4p"])

    return out[:, 0, :3]                             # strip lane padding -> (B, 3)


# ----------------------------------------------------------------------------
# One-time parameter prep (hoisted OUT of the traced forward): transposes,
# lane padding, the channel-major flatten permutation, and bf16 weight cast.
# ----------------------------------------------------------------------------
def prepare_params(p):
    f32, bf16 = jnp.float32, jnp.bfloat16
    kp = {}

    # conv1 (Cout=100, Cin=1, K=100) -> K-packed (128, 128) [k, cout]
    kp["w1p"] = jnp.pad(p["w1"][:, 0, :].T, ((0, 28), (0, 28))).astype(bf16)
    kp["b1p"] = jnp.pad(p["b1"], (0, 28)).reshape(1, 128).astype(f32)
    kp["s1p"] = jnp.pad(p["bn1_scale"], (0, 28), constant_values=1.0).reshape(1, 128).astype(f32)
    kp["t1p"] = jnp.pad(p["bn1_shift"], (0, 28)).reshape(1, 128).astype(f32)

    # conv2 (102, 100, 5) -> (5, 128, 128) with [k, cin, cout]
    kp["w2p"] = jnp.pad(jnp.transpose(p["w2"], (2, 1, 0)),
                        ((0, 0), (0, 28), (0, 26))).astype(bf16)
    kp["b2p"] = jnp.pad(p["b2"], (0, 26)).reshape(1, 128).astype(f32)
    kp["s2p"] = jnp.pad(p["bn2_scale"], (0, 26), constant_values=1.0).reshape(1, 128).astype(f32)
    kp["t2p"] = jnp.pad(p["bn2_shift"], (0, 26)).reshape(1, 128).astype(f32)

    # conv3 (25, 102, 9) -> (9, 128, 128)
    kp["w3p"] = jnp.pad(jnp.transpose(p["w3"], (2, 1, 0)),
                        ((0, 0), (0, 26), (0, 103))).astype(bf16)
    kp["b3p"] = jnp.pad(p["b3"], (0, 103)).reshape(1, 128).astype(f32)

    # dense1: fold torch's channel-major flatten (index c*13 + l) into a
    # per-pool-row weight block: wd1p[l, c, :] = wd1.T[c*13 + l, :].
    wd1 = p["wd1"].T.reshape(25, 13, 732)                      # [c, l, out]
    wd1 = jnp.transpose(wd1, (1, 0, 2))                        # [l, c, out]
    kp["wd1p"] = jnp.pad(wd1, ((0, 0), (0, 7), (0, 36))).astype(bf16)   # (13,32,768)
    kp["bd1p"] = jnp.pad(p["bd1"], (0, 36)).reshape(1, 768).astype(f32)
    kp["wd2p"] = jnp.pad(p["wd2"].T, ((0, 36), (0, 104))).astype(bf16)  # (768,256)
    kp["bd2p"] = jnp.pad(p["bd2"], (0, 104)).reshape(1, 256).astype(f32)
    kp["wd3p"] = jnp.pad(p["wd3"].T, ((0, 104), (0, 67))).astype(bf16)  # (256,256)
    kp["bd3p"] = jnp.pad(p["bd3"], (0, 67)).reshape(1, 256).astype(f32)
    kp["wd4p"] = jnp.pad(p["wd4"].T, ((0, 67), (0, 125))).astype(bf16)  # (256,128)
    kp["bd4p"] = jnp.pad(p["bd4"], (0, 125)).reshape(1, 128).astype(f32)

    return kp


# ----------------------------------------------------------------------------
# Deterministic parameter initialization (synthetic, PyTorch layouts)
# ----------------------------------------------------------------------------
def init_params(key):
    ks = jax.random.split(key, 32)
    f32 = jnp.float32

    def w_init(k, shape, fan_in):
        return jax.random.normal(k, shape, f32) / jnp.sqrt(f32(fan_in))

    def bn_init(kg, kb, km, kv, c, eps=1e-3):
        gamma = 1.0 + 0.1 * jax.random.normal(kg, (c,), f32)
        beta = 0.1 * jax.random.normal(kb, (c,), f32)
        mean = 0.1 * jax.random.normal(km, (c,), f32)
        var = 1.0 + 0.1 * jax.random.uniform(kv, (c,), f32)
        scale = gamma / jnp.sqrt(var + eps)
        shift = beta - mean * scale
        return scale, shift

    p = {}
    p["w1"] = w_init(ks[0], (100, 1, 100), 1 * 100)
    p["b1"] = 0.01 * jax.random.normal(ks[1], (100,), f32)
    p["bn1_scale"], p["bn1_shift"] = bn_init(ks[2], ks[3], ks[4], ks[5], 100)

    p["w2"] = w_init(ks[6], (102, 100, 5), 100 * 5)
    p["b2"] = 0.01 * jax.random.normal(ks[7], (102,), f32)
    p["bn2_scale"], p["bn2_shift"] = bn_init(ks[8], ks[9], ks[10], ks[11], 102)

    p["w3"] = w_init(ks[12], (25, 102, 9), 102 * 9)
    p["b3"] = 0.01 * jax.random.normal(ks[13], (25,), f32)

    p["wd1"] = w_init(ks[14], (732, 325), 325)
    p["bd1"] = 0.01 * jax.random.normal(ks[15], (732,), f32)
    p["wd2"] = w_init(ks[16], (152, 732), 732)
    p["bd2"] = 0.01 * jax.random.normal(ks[17], (152,), f32)
    p["wd3"] = w_init(ks[18], (189, 152), 152)
    p["bd3"] = 0.01 * jax.random.normal(ks[19], (189,), f32)
    p["wd4"] = w_init(ks[20], (3, 189), 189)
    p["bd4"] = 0.01 * jax.random.normal(ks[21], (3,), f32)
    return p


def quantize_weights_like_kernel(p):
    """Weights rounded through bf16 (as stored in HBM by the kernel); f32 math."""
    q = dict(p)
    for k in ("w1", "w2", "w3", "wd1", "wd2", "wd3", "wd4"):
        q[k] = p[k].astype(jnp.bfloat16).astype(jnp.float32)
    return q


# ----------------------------------------------------------------------------
# Pure-JAX reference (mirrors the PyTorch module in eval mode)
# ----------------------------------------------------------------------------
def reference_forward(x, p):
    hi = jax.lax.Precision.HIGHEST

    def conv1d(h, w, b, stride):
        y = jax.lax.conv_general_dilated(
            h, w, window_strides=(stride,), padding="VALID",
            dimension_numbers=("NCH", "OIH", "NCH"), precision=hi)
        return y + b[None, :, None]

    def maxpool1d(h, k, s):
        return jax.lax.reduce_window(h, -jnp.inf, jax.lax.max,
                                     (1, 1, k), (1, 1, s), "VALID")

    def lrelu(h):
        return jnp.where(h > 0, h, 0.01 * h)

    B, L = x.shape
    h = x.astype(jnp.float32).reshape(B, 1, L)
    h = jnp.maximum(conv1d(h, p["w1"], p["b1"], 1), 0.0)
    h = h * p["bn1_scale"][None, :, None] + p["bn1_shift"][None, :, None]
    h = jnp.maximum(conv1d(h, p["w2"], p["b2"], 2), 0.0)
    h = maxpool1d(h, 6, 3)
    h = h * p["bn2_scale"][None, :, None] + p["bn2_shift"][None, :, None]
    h = jnp.maximum(conv1d(h, p["w3"], p["b3"], 5), 0.0)
    h = maxpool1d(h, 3, 2)
    h = h.reshape(B, -1)                                   # channel-major flatten
    h = lrelu(jnp.dot(h, p["wd1"].T, precision=hi) + p["bd1"])
    h = lrelu(jnp.dot(h, p["wd2"].T, precision=hi) + p["bd2"])
    h = lrelu(jnp.dot(h, p["wd3"].T, precision=hi) + p["bd3"])
    logits = jnp.dot(h, p["wd4"].T, precision=hi) + p["bd4"]
    return jax.nn.softmax(logits, axis=1)


if __name__ == "__main__":
    key = jax.random.PRNGKey(0)
    kparam_key, kx = jax.random.split(key)
    params = init_params(kparam_key)
    kparams = prepare_params(params)        # one-time prep, outside the jit

    B = 2
    x = jax.random.normal(kx, (B, L_IN), dtype=jnp.float32)

    out = jax.block_until_ready(jax.jit(convnet_forward)(x, kparams))

    assert out.shape == (B, 3), out.shape
    assert bool(jnp.all(jnp.isfinite(out)))
    assert bool(jnp.allclose(jnp.sum(out, axis=1), 1.0, atol=3e-3))

    # Tight check: reference with the SAME bf16-rounded weights (isolates kernel
    # structure from the intentional bf16 weight quantization).
    ref_q = jax.jit(reference_forward)(x, quantize_weights_like_kernel(params))
    assert bool(jnp.allclose(out, ref_q, atol=5e-3)), float(jnp.max(jnp.abs(out - ref_q)))

    # Loose check: full-f32 reference (documents the bf16 weight-quantization impact).
    ref = jax.jit(reference_forward)(x, params)
    assert bool(jnp.allclose(out, ref, atol=2e-2)), float(jnp.max(jnp.abs(out - ref)))

    print("KERNEL_OK")
</pallas_src>

<mosaic_0001>
module attributes {stable_mosaic.version = 11 : i64} {
  func.func @_fused_convnet_kernel(%arg0: i32, %arg1: memref<1x848x128xf32, #tpu.memory_space<vmem>>, %arg2: memref<128x128xbf16, #tpu.memory_space<vmem>>, %arg3: memref<1x128xf32, #tpu.memory_space<vmem>>, %arg4: memref<1x128xf32, #tpu.memory_space<vmem>>, %arg5: memref<1x128xf32, #tpu.memory_space<vmem>>, %arg6: memref<5x128x128xbf16, #tpu.memory_space<vmem>>, %arg7: memref<1x128xf32, #tpu.memory_space<vmem>>, %arg8: memref<1x128xf32, #tpu.memory_space<vmem>>, %arg9: memref<1x128xf32, #tpu.memory_space<vmem>>, %arg10: memref<9x128x128xbf16, #tpu.memory_space<vmem>>, %arg11: memref<1x128xf32, #tpu.memory_space<vmem>>, %arg12: memref<13x32x768xbf16, #tpu.memory_space<vmem>>, %arg13: memref<1x768xf32, #tpu.memory_space<vmem>>, %arg14: memref<768x256xbf16, #tpu.memory_space<vmem>>, %arg15: memref<1x256xf32, #tpu.memory_space<vmem>>, %arg16: memref<256x256xbf16, #tpu.memory_space<vmem>>, %arg17: memref<1x256xf32, #tpu.memory_space<vmem>>, %arg18: memref<256x128xbf16, #tpu.memory_space<vmem>>, %arg19: memref<1x128xf32, #tpu.memory_space<vmem>>, %arg20: memref<1x1x128xf32, #tpu.memory_space<vmem>>, %arg21: memref<848x128xf32, #tpu.memory_space<vmem>>, %arg22: memref<424x128xf32, #tpu.memory_space<vmem>>, %arg23: memref<144x128xf32, #tpu.memory_space<vmem>>, %arg24: memref<32x128xf32, #tpu.memory_space<vmem>>) attributes {dimension_semantics = [#tpu.dimension_semantics<parallel>], iteration_bounds = array<i64: 2>, scalar_prefetch = 0 : i64, scratch_operands = 4 : i64, tpu.core_type = #tpu.core_type<tc>, window_params = [{transform_indices = @transform_0, window_bounds = array<i64: 1, 848, 128>}, {pipeline_mode = #tpu.pipeline_mode<synchronous>, transform_indices = @transform_1, window_bounds = array<i64: 128, 128>}, {pipeline_mode = #tpu.pipeline_mode<synchronous>, transform_indices = @transform_2, window_bounds = array<i64: 1, 128>}, {pipeline_mode = #tpu.pipeline_mode<synchronous>, transform_indices = @transform_3, window_bounds = array<i64: 1, 128>}, {pipeline_mode = #tpu.pipeline_mode<synchronous>, transform_indices = @transform_4, window_bounds = array<i64: 1, 128>}, {pipeline_mode = #tpu.pipeline_mode<synchronous>, transform_indices = @transform_5, window_bounds = array<i64: 5, 128, 128>}, {pipeline_mode = #tpu.pipeline_mode<synchronous>, transform_indices = @transform_6, window_bounds = array<i64: 1, 128>}, {pipeline_mode = #tpu.pipeline_mode<synchronous>, transform_indices = @transform_7, window_bounds = array<i64: 1, 128>}, {pipeline_mode = #tpu.pipeline_mode<synchronous>, transform_indices = @transform_8, window_bounds = array<i64: 1, 128>}, {pipeline_mode = #tpu.pipeline_mode<synchronous>, transform_indices = @transform_9, window_bounds = array<i64: 9, 128, 128>}, {pipeline_mode = #tpu.pipeline_mode<synchronous>, transform_indices = @transform_10, window_bounds = array<i64: 1, 128>}, {pipeline_mode = #tpu.pipeline_mode<synchronous>, transform_indices = @transform_11, window_bounds = array<i64: 13, 32, 768>}, {pipeline_mode = #tpu.pipeline_mode<synchronous>, transform_indices = @transform_12, window_bounds = array<i64: 1, 768>}, {pipeline_mode = #tpu.pipeline_mode<synchronous>, transform_indices = @transform_13, window_bounds = array<i64: 768, 256>}, {pipeline_mode = #tpu.pipeline_mode<synchronous>, transform_indices = @transform_14, window_bounds = array<i64: 1, 256>}, {pipeline_mode = #tpu.pipeline_mode<synchronous>, transform_indices = @transform_15, window_bounds = array<i64: 256, 256>}, {pipeline_mode = #tpu.pipeline_mode<synchronous>, transform_indices = @transform_16, window_bounds = array<i64: 1, 256>}, {pipeline_mode = #tpu.pipeline_mode<synchronous>, transform_indices = @transform_17, window_bounds = array<i64: 256, 128>}, {pipeline_mode = #tpu.pipeline_mode<synchronous>, transform_indices = @transform_18, window_bounds = array<i64: 1, 128>}, {transform_indices = @transform_19, window_bounds = array<i64: 1, 1, 128>}]} {
    %cst = arith.constant 0.000000e+00 : f32
    %0 = vector.broadcast %cst : f32 to vector<8x128xf32>
    %c416 = arith.constant 416 : index
    %c0 = arith.constant 0 : index
    %1 = vector.load %arg22[%c416, %c0] : memref<424x128xf32, #tpu.memory_space<vmem>>, vector<8x128xf32>
    tpu.vector_store %arg22[%c416, %c0], %0 {strides = array<i32>} : memref<424x128xf32, #tpu.memory_space<vmem>>, vector<8x128xf32>,
    %c136 = arith.constant 136 : index
    %c0_0 = arith.constant 0 : index
    %2 = vector.load %arg23[%c136, %c0_0] : memref<144x128xf32, #tpu.memory_space<vmem>>, vector<8x128xf32>
    tpu.vector_store %arg23[%c136, %c0_0], %0 {strides = array<i32>} : memref<144x128xf32, #tpu.memory_space<vmem>>, vector<8x128xf32>,
    %c24 = arith.constant 24 : index
    %c0_1 = arith.constant 0 : index
    %3 = vector.load %arg24[%c24, %c0_1] : memref<32x128xf32, #tpu.memory_space<vmem>>, vector<8x128xf32>
    tpu.vector_store %arg24[%c24, %c0_1], %0 {strides = array<i32>} : memref<32x128xf32, #tpu.memory_space<vmem>>, vector<8x128xf32>,
    %c0_2 = arith.constant 0 : index
    %c0_3 = arith.constant 0 : index
    %4 = vector.load %arg3[%c0_2, %c0_3] : memref<1x128xf32, #tpu.memory_space<vmem>>, vector<1x128xf32>
    %c0_4 = arith.constant 0 : index
    %c0_5 = arith.constant 0 : index
    %5 = vector.load %arg4[%c0_4, %c0_5] : memref<1x128xf32, #tpu.memory_space<vmem>>, vector<1x128xf32>
    %c0_6 = arith.constant 0 : index
    %c0_7 = arith.constant 0 : index
    %6 = vector.load %arg5[%c0_6, %c0_7] : memref<1x128xf32, #tpu.memory_space<vmem>>, vector<1x128xf32>
    %c0_8 = arith.constant 0 : index
    %c0_9 = arith.constant 0 : index
    %7 = vector.load %arg7[%c0_8, %c0_9] : memref<1x128xf32, #tpu.memory_space<vmem>>, vector<1x128xf32>
    %c0_10 = arith.constant 0 : index
    %c0_11 = arith.constant 0 : index
    %8 = vector.load %arg8[%c0_10, %c0_11] : memref<1x128xf32, #tpu.memory_space<vmem>>, vector<1x128xf32>
    %c0_12 = arith.constant 0 : index
    %c0_13 = arith.constant 0 : index
    %9 = vector.load %arg9[%c0_12, %c0_13] : memref<1x128xf32, #tpu.memory_space<vmem>>, vector<1x128xf32>
    %c0_14 = arith.constant 0 : index
    %c0_15 = arith.constant 0 : index
    %10 = vector.load %arg11[%c0_14, %c0_15] : memref<1x128xf32, #tpu.memory_space<vmem>>, vector<1x128xf32>
    %c0_16 = arith.constant 0 : index
    %c0_17 = arith.constant 0 : index
    %c0_18 = arith.constant 0 : index
    %11 = vector.load %arg1[%c0_16, %c0_17, %c0_18] : memref<1x848x128xf32, #tpu.memory_space<vmem>>, vector<1x128x128xf32>
    %12 = vector.shape_cast %11 : vector<1x128x128xf32> to vector<128x128xf32>
    %c0_19 = arith.constant 0 : index
    %c0_20 = arith.constant 0 : index
    %13 = vector.load %arg2[%c0_19, %c0_20] : memref<128x128xbf16, #tpu.memory_space<vmem>>, vector<128x128xbf16>
    %14 = arith.extf %13 : vector<128x128xbf16> to vector<128x128xf32>
    %cst_21 = arith.constant dense<0.000000e+00> : vector<128x128xf32>
    %15 = tpu.matmul %12, %14, %cst_21 {dimension_numbers = #tpu.dot_dimension_numbers<[1], [0], [0], [1], [0, 0, 1, 1], [], []>} : vector<128x128xf32>, vector<128x128xf32>, vector<128x128xf32> -> vector<128x128xf32>
    %16 = vector.broadcast %4 : vector<1x128xf32> to vector<128x128xf32>
    %17 = arith.addf %15, %16 : vector<128x128xf32>
    %cst_22 = arith.constant 0.000000e+00 : f32
    %18 = vector.broadcast %cst_22 : f32 to vector<128x128xf32>
    %19 = arith.maximumf %17, %18 : vector<128x128xf32>
    %20 = vector.broadcast %5 : vector<1x128xf32> to vector<128x128xf32>
    %21 = arith.mulf %19, %20 : vector<128x128xf32>
    %22 = vector.broadcast %6 : vector<1x128xf32> to vector<128x128xf32>
    %23 = arith.addf %21, %22 : vector<128x128xf32>
    %c0_23 = arith.constant 0 : index
    %c0_24 = arith.constant 0 : index
    %24 = vector.load %arg21[%c0_23, %c0_24] : memref<848x128xf32, #tpu.memory_space<vmem>>, vector<128x128xf32>
    tpu.vector_store %arg21[%c0_23, %c0_24], %23 {strides = array<i32>} : memref<848x128xf32, #tpu.memory_space<vmem>>, vector<128x128xf32>,
    %c0_25 = arith.constant 0 : index
    %c128 = arith.constant 128 : index
    %c0_26 = arith.constant 0 : index
    %25 = vector.load %arg1[%c0_25, %c128, %c0_26] : memref<1x848x128xf32, #tpu.memory_space<vmem>>, vector<1x128x128xf32>
    %26 = vector.shape_cast %25 : vector<1x128x128xf32> to vector<128x128xf32>
    %c0_27 = arith.constant 0 : index
    %c0_28 = arith.constant 0 : index
    %27 = vector.load %arg2[%c0_27, %c0_28] : memref<128x128xbf16, #tpu.memory_space<vmem>>, vector<128x128xbf16>
    %28 = arith.extf %27 : vector<128x128xbf16> to vector<128x128xf32>
    %cst_29 = arith.constant dense<0.000000e+00> : vector<128x128xf32>
    %29 = tpu.matmul %26, %28, %cst_29 {dimension_numbers = #tpu.dot_dimension_numbers<[1], [0], [0], [1], [0, 0, 1, 1], [], []>} : vector<128x128xf32>, vector<128x128xf32>, vector<128x128xf32> -> vector<128x128xf32>
    %30 = vector.broadcast %4 : vector<1x128xf32> to vector<128x128xf32>
    %31 = arith.addf %29, %30 : vector<128x128xf32>
    %cst_30 = arith.constant 0.000000e+00 : f32
    %32 = vector.broadcast %cst_30 : f32 to vector<128x128xf32>
    %33 = arith.maximumf %31, %32 : vector<128x128xf32>
    %34 = vector.broadcast %5 : vector<1x128xf32> to vector<128x128xf32>
    %35 = arith.mulf %33, %34 : vector<128x128xf32>
    %36 = vector.broadcast %6 : vector<1x128xf32> to vector<128x128xf32>
    %37 = arith.addf %35, %36 : vector<128x128xf32>
    %c128_31 = arith.constant 128 : index
    %c0_32 = arith.constant 0 : index
    %38 = vector.load %arg21[%c128_31, %c0_32] : memref<848x128xf32, #tpu.memory_space<vmem>>, vector<128x128xf32>
    tpu.vector_store %arg21[%c128_31, %c0_32], %37 {strides = array<i32>} : memref<848x128xf32, #tpu.memory_space<vmem>>, vector<128x128xf32>,
    %c0_33 = arith.constant 0 : index
    %c256 = arith.constant 256 : index
    %c0_34 = arith.constant 0 : index
    %39 = vector.load %arg1[%c0_33, %c256, %c0_34] : memref<1x848x128xf32, #tpu.memory_space<vmem>>, vector<1x128x128xf32>
    %40 = vector.shape_cast %39 : vector<1x128x128xf32> to vector<128x128xf32>
    %c0_35 = arith.constant 0 : index
    %c0_36 = arith.constant 0 : index
    %41 = vector.load %arg2[%c0_35, %c0_36] : memref<128x128xbf16, #tpu.memory_space<vmem>>, vector<128x128xbf16>
    %42 = arith.extf %41 : vector<128x128xbf16> to vector<128x128xf32>
    %cst_37 = arith.constant dense<0.000000e+00> : vector<128x128xf32>
    %43 = tpu.matmul %40, %42, %cst_37 {dimension_numbers = #tpu.dot_dimension_numbers<[1], [0], [0], [1], [0, 0, 1, 1], [], []>} : vector<128x128xf32>, vector<128x128xf32>, vector<128x128xf32> -> vector<128x128xf32>
    %44 = vector.broadcast %4 : vector<1x128xf32> to vector<128x128xf32>
    %45 = arith.addf %43, %44 : vector<128x128xf32>
    %cst_38 = arith.constant 0.000000e+00 : f32
    %46 = vector.broadcast %cst_38 : f32 to vector<128x128xf32>
    %47 = arith.maximumf %45, %46 : vector<128x128xf32>
    %48 = vector.broadcast %5 : vector<1x128xf32> to vector<128x128xf32>
    %49 = arith.mulf %47, %48 : vector<128x128xf32>
    %50 = vector.broadcast %6 : vector<1x128xf32> to vector<128x128xf32>
    %51 = arith.addf %49, %50 : vector<128x128xf32>
    %c256_39 = arith.constant 256 : index
    %c0_40 = arith.constant 0 : index
    %52 = vector.load %arg21[%c256_39, %c0_40] : memref<848x128xf32, #tpu.memory_space<vmem>>, vector<128x128xf32>
    tpu.vector_store %arg21[%c256_39, %c0_40], %51 {strides = array<i32>} : memref<848x128xf32, #tpu.memory_space<vmem>>, vector<128x128xf32>,
    %c0_41 = arith.constant 0 : index
    %c384 = arith.constant 384 : index
    %c0_42 = arith.constant 0 : index
    %53 = vector.load %arg1[%c0_41, %c384, %c0_42] : memref<1x848x128xf32, #tpu.memory_space<vmem>>, vector<1x128x128xf32>
    %54 = vector.shape_cast %53 : vector<1x128x128xf32> to vector<128x128xf32>
    %c0_43 = arith.constant 0 : index
    %c0_44 = arith.constant 0 : index
    %55 = vector.load %arg2[%c0_43, %c0_44] : memref<128x128xbf16, #tpu.memory_space<vmem>>, vector<128x128xbf16>
    %56 = arith.extf %55 : vector<128x128xbf16> to vector<128x128xf32>
    %cst_45 = arith.constant dense<0.000000e+00> : vector<128x128xf32>
    %57 = tpu.matmul %54, %56, %cst_45 {dimension_numbers = #tpu.dot_dimension_numbers<[1], [0], [0], [1], [0, 0, 1, 1], [], []>} : vector<128x128xf32>, vector<128x128xf32>, vector<128x128xf32> -> vector<128x128xf32>
    %58 = vector.broadcast %4 : vector<1x128xf32> to vector<128x128xf32>
    %59 = arith.addf %57, %58 : vector<128x128xf32>
    %cst_46 = arith.constant 0.000000e+00 : f32
    %60 = vector.broadcast %cst_46 : f32 to vector<128x128xf32>
    %61 = arith.maximumf %59, %60 : vector<128x128xf32>
    %62 = vector.broadcast %5 : vector<1x128xf32> to vector<128x128xf32>
    %63 = arith.mulf %61, %62 : vector<128x128xf32>
    %64 = vector.broadcast %6 : vector<1x128xf32> to vector<128x128xf32>
    %65 = arith.addf %63, %64 : vector<128x128xf32>
    %c384_47 = arith.constant 384 : index
    %c0_48 = arith.constant 0 : index
    %66 = vector.load %arg21[%c384_47, %c0_48] : memref<848x128xf32, #tpu.memory_space<vmem>>, vector<128x128xf32>
    tpu.vector_store %arg21[%c384_47, %c0_48], %65 {strides = array<i32>} : memref<848x128xf32, #tpu.memory_space<vmem>>, vector<128x128xf32>,
    %c0_49 = arith.constant 0 : index
    %c512 = arith.constant 512 : index
    %c0_50 = arith.constant 0 : index
    %67 = vector.load %arg1[%c0_49, %c512, %c0_50] : memref<1x848x128xf32, #tpu.memory_space<vmem>>, vector<1x128x128xf32>
    %68 = vector.shape_cast %67 : vector<1x128x128xf32> to vector<128x128xf32>
    %c0_51 = arith.constant 0 : index
    %c0_52 = arith.constant 0 : index
    %69 = vector.load %arg2[%c0_51, %c0_52] : memref<128x128xbf16, #tpu.memory_space<vmem>>, vector<128x128xbf16>
    %70 = arith.extf %69 : vector<128x128xbf16> to vector<128x128xf32>
    %cst_53 = arith.constant dense<0.000000e+00> : vector<128x128xf32>
    %71 = tpu.matmul %68, %70, %cst_53 {dimension_numbers = #tpu.dot_dimension_numbers<[1], [0], [0], [1], [0, 0, 1, 1], [], []>} : vector<128x128xf32>, vector<128x128xf32>, vector<128x128xf32> -> vector<128x128xf32>
    %72 = vector.broadcast %4 : vector<1x128xf32> to vector<128x128xf32>
    %73 = arith.addf %71, %72 : vector<128x128xf32>
    %cst_54 = arith.constant 0.000000e+00 : f32
    %74 = vector.broadcast %cst_54 : f32 to vector<128x128xf32>
    %75 = arith.maximumf %73, %74 : vector<128x128xf32>
    %76 = vector.broadcast %5 : vector<1x128xf32> to vector<128x128xf32>
    %77 = arith.mulf %75, %76 : vector<128x128xf32>
    %78 = vector.broadcast %6 : vector<1x128xf32> to vector<128x128xf32>
    %79 = arith.addf %77, %78 : vector<128x128xf32>
    %c512_55 = arith.constant 512 : index
    %c0_56 = arith.constant 0 : index
    %80 = vector.load %arg21[%c512_55, %c0_56] : memref<848x128xf32, #tpu.memory_space<vmem>>, vector<128x128xf32>
    tpu.vector_store %arg21[%c512_55, %c0_56], %79 {strides = array<i32>} : memref<848x128xf32, #tpu.memory_space<vmem>>, vector<128x128xf32>,
    %c0_57 = arith.constant 0 : index
    %c640 = arith.constant 640 : index
    %c0_58 = arith.constant 0 : index
    %81 = vector.load %arg1[%c0_57, %c640, %c0_58] : memref<1x848x128xf32, #tpu.memory_space<vmem>>, vector<1x128x128xf32>
    %82 = vector.shape_cast %81 : vector<1x128x128xf32> to vector<128x128xf32>
    %c0_59 = arith.constant 0 : index
    %c0_60 = arith.constant 0 : index
    %83 = vector.load %arg2[%c0_59, %c0_60] : memref<128x128xbf16, #tpu.memory_space<vmem>>, vector<128x128xbf16>
    %84 = arith.extf %83 : vector<128x128xbf16> to vector<128x128xf32>
    %cst_61 = arith.constant dense<0.000000e+00> : vector<128x128xf32>
    %85 = tpu.matmul %82, %84, %cst_61 {dimension_numbers = #tpu.dot_dimension_numbers<[1], [0], [0], [1], [0, 0, 1, 1], [], []>} : vector<128x128xf32>, vector<128x128xf32>, vector<128x128xf32> -> vector<128x128xf32>
    %86 = vector.broadcast %4 : vector<1x128xf32> to vector<128x128xf32>
    %87 = arith.addf %85, %86 : vector<128x128xf32>
    %cst_62 = arith.constant 0.000000e+00 : f32
    %88 = vector.broadcast %cst_62 : f32 to vector<128x128xf32>
    %89 = arith.maximumf %87, %88 : vector<128x128xf32>
    %90 = vector.broadcast %5 : vector<1x128xf32> to vector<128x128xf32>
    %91 = arith.mulf %89, %90 : vector<128x128xf32>
    %92 = vector.broadcast %6 : vector<1x128xf32> to vector<128x128xf32>
    %93 = arith.addf %91, %92 : vector<128x128xf32>
    %c640_63 = arith.constant 640 : index
    %c0_64 = arith.constant 0 : index
    %94 = vector.load %arg21[%c640_63, %c0_64] : memref<848x128xf32, #tpu.memory_space<vmem>>, vector<128x128xf32>
    tpu.vector_store %arg21[%c640_63, %c0_64], %93 {strides = array<i32>} : memref<848x128xf32, #tpu.memory_space<vmem>>, vector<128x128xf32>,
    %c0_65 = arith.constant 0 : index
    %c768 = arith.constant 768 : index
    %c0_66 = arith.constant 0 : index
    %95 = vector.load %arg1[%c0_65, %c768, %c0_66] : memref<1x848x128xf32, #tpu.memory_space<vmem>>, vector<1x80x128xf32>
    %96 = vector.shape_cast %95 : vector<1x80x128xf32> to vector<80x128xf32>
    %c0_67 = arith.constant 0 : index
    %c0_68 = arith.constant 0 : index
    %97 = vector.load %arg2[%c0_67, %c0_68] : memref<128x128xbf16, #tpu.memory_space<vmem>>, vector<128x128xbf16>
    %98 = arith.extf %97 : vector<128x128xbf16> to vector<128x128xf32>
    %cst_69 = arith.constant dense<0.000000e+00> : vector<80x128xf32>
    %99 = tpu.matmul %96, %98, %cst_69 {dimension_numbers = #tpu.dot_dimension_numbers<[1], [0], [0], [1], [0, 0, 1, 1], [], []>} : vector<80x128xf32>, vector<128x128xf32>, vector<80x128xf32> -> vector<80x128xf32>
    %100 = vector.broadcast %4 : vector<1x128xf32> to vector<80x128xf32>
    %101 = arith.addf %99, %100 : vector<80x128xf32>
    %cst_70 = arith.constant 0.000000e+00 : f32
    %102 = vector.broadcast %cst_70 : f32 to vector<80x128xf32>
    %103 = arith.maximumf %101, %102 : vector<80x128xf32>
    %104 = vector.broadcast %5 : vector<1x128xf32> to vector<80x128xf32>
    %105 = arith.mulf %103, %104 : vector<80x128xf32>
    %106 = vector.broadcast %6 : vector<1x128xf32> to vector<80x128xf32>
    %107 = arith.addf %105, %106 : vector<80x128xf32>
    %c768_71 = arith.constant 768 : index
    %c0_72 = arith.constant 0 : index
    %108 = vector.load %arg21[%c768_71, %c0_72] : memref<848x128xf32, #tpu.memory_space<vmem>>, vector<80x128xf32>
    tpu.vector_store %arg21[%c768_71, %c0_72], %107 {strides = array<i32>} : memref<848x128xf32, #tpu.memory_space<vmem>>, vector<80x128xf32>,
    %c0_73 = arith.constant 0 : index
    %c0_74 = arith.constant 0 : index
    %109 = vector.load %arg21[%c0_73, %c0_74] : memref<848x128xf32, #tpu.memory_space<vmem>>, vector<128x128xf32>
    %c0_75 = arith.constant 0 : index
    %c0_76 = arith.constant 0 : index
    %c0_77 = arith.constant 0 : index
    %110 = vector.load %arg6[%c0_75, %c0_76, %c0_77] : memref<5x128x128xbf16, #tpu.memory_space<vmem>>, vector<1x128x128xbf16>
    %111 = vector.shape_cast %110 : vector<1x128x128xbf16> to vector<128x128xbf16>
    %112 = arith.extf %111 : vector<128x128xbf16> to vector<128x128xf32>
    %cst_78 = arith.constant dense<0.000000e+00> : vector<128x128xf32>
    %113 = tpu.matmul %109, %112, %cst_78 {dimension_numbers = #tpu.dot_dimension_numbers<[1], [0], [0], [1], [0, 0, 1, 1], [], []>} : vector<128x128xf32>, vector<128x128xf32>, vector<128x128xf32> -> vector<128x128xf32>
    %c424 = arith.constant 424 : index
    %c0_79 = arith.constant 0 : index
    %114 = vector.load %arg21[%c424, %c0_79] : memref<848x128xf32, #tpu.memory_space<vmem>>, vector<128x128xf32>
    %c1 = arith.constant 1 : index
    %c0_80 = arith.constant 0 : index
    %c0_81 = arith.constant 0 : index
    %115 = vector.load %arg6[%c1, %c0_80, %c0_81] : memref<5x128x128xbf16, #tpu.memory_space<vmem>>, vector<1x128x128xbf16>
    %116 = vector.shape_cast %115 : vector<1x128x128xbf16> to vector<128x128xbf16>
    %117 = arith.extf %116 : vector<128x128xbf16> to vector<128x128xf32>
    %cst_82 = arith.constant dense<0.000000e+00> : vector<128x128xf32>
    %118 = tpu.matmul %114, %117, %cst_82 {dimension_numbers = #tpu.dot_dimension_numbers<[1], [0], [0], [1], [0, 0, 1, 1], [], []>} : vector<128x128xf32>, vector<128x128xf32>, vector<128x128xf32> -> vector<128x128xf32>
    %119 = arith.addf %113, %118 : vector<128x128xf32>
    %c1_83 = arith.constant 1 : index
    %c0_84 = arith.constant 0 : index
    %120 = vector.load %arg21[%c1_83, %c0_84] : memref<848x128xf32, #tpu.memory_space<vmem>>, vector<128x128xf32>
    %c2 = arith.constant 2 : index
    %c0_85 = arith.constant 0 : index
    %c0_86 = arith.constant 0 : index
    %121 = vector.load %arg6[%c2, %c0_85, %c0_86] : memref<5x128x128xbf16, #tpu.memory_space<vmem>>, vector<1x128x128xbf16>
    %122 = vector.shape_cast %121 : vector<1x128x128xbf16> to vector<128x128xbf16>
    %123 = arith.extf %122 : vector<128x128xbf16> to vector<128x128xf32>
    %cst_87 = arith.constant dense<0.000000e+00> : vector<128x128xf32>
    %124 = tpu.matmul %120, %123, %cst_87 {dimension_numbers = #tpu.dot_dimension_numbers<[1], [0], [0], [1], [0, 0, 1, 1], [], []>} : vector<128x128xf32>, vector<128x128xf32>, vector<128x128xf32> -> vector<128x128xf32>
    %125 = arith.addf %119, %124 : vector<128x128xf32>
    %c425 = arith.constant 425 : index
    %c0_88 = arith.constant 0 : index
    %126 = vector.load %arg21[%c425, %c0_88] : memref<848x128xf32, #tpu.memory_space<vmem>>, vector<128x128xf32>
    %c3 = arith.constant 3 : index
    %c0_89 = arith.constant 0 : index
    %c0_90 = arith.constant 0 : index
    %127 = vector.load %arg6[%c3, %c0_89, %c0_90] : memref<5x128x128xbf16, #tpu.memory_space<vmem>>, vector<1x128x128xbf16>
    %128 = vector.shape_cast %127 : vector<1x128x128xbf16> to vector<128x128xbf16>
    %129 = arith.extf %128 : vector<128x128xbf16> to vector<128x128xf32>
    %cst_91 = arith.constant dense<0.000000e+00> : vector<128x128xf32>
    %130 = tpu.matmul %126, %129, %cst_91 {dimension_numbers = #tpu.dot_dimension_numbers<[1], [0], [0], [1], [0, 0, 1, 1], [], []>} : vector<128x128xf32>, vector<128x128xf32>, vector<128x128xf32> -> vector<128x128xf32>
    %131 = arith.addf %125, %130 : vector<128x128xf32>
    %c2_92 = arith.constant 2 : index
    %c0_93 = arith.constant 0 : index
    %132 = vector.load %arg21[%c2_92, %c0_93] : memref<848x128xf32, #tpu.memory_space<vmem>>, vector<128x128xf32>
    %c4 = arith.constant 4 : index
    %c0_94 = arith.constant 0 : index
    %c0_95 = arith.constant 0 : index
    %133 = vector.load %arg6[%c4, %c0_94, %c0_95] : memref<5x128x128xbf16, #tpu.memory_space<vmem>>, vector<1x128x128xbf16>
    %134 = vector.shape_cast %133 : vector<1x128x128xbf16> to vector<128x128xbf16>
    %135 = arith.extf %134 : vector<128x128xbf16> to vector<128x128xf32>
    %cst_96 = arith.constant dense<0.000000e+00> : vector<128x128xf32>
    %136 = tpu.matmul %132, %135, %cst_96 {dimension_numbers = #tpu.dot_dimension_numbers<[1], [0], [0], [1], [0, 0, 1, 1], [], []>} : vector<128x128xf32>, vector<128x128xf32>, vector<128x128xf32> -> vector<128x128xf32>
    %137 = arith.addf %131, %136 : vector<128x128xf32>
    %138 = vector.broadcast %7 : vector<1x128xf32> to vector<128x128xf32>
    %139 = arith.addf %137, %138 : vector<128x128xf32>
    %cst_97 = arith.constant 0.000000e+00 : f32
    %140 = vector.broadcast %cst_97 : f32 to vector<128x128xf32>
    %141 = arith.maximumf %139, %140 : vector<128x128xf32>
    %c0_98 = arith.constant 0 : index
    %c0_99 = arith.constant 0 : index
    %142 = vector.load %arg22[%c0_98, %c0_99] : memref<424x128xf32, #tpu.memory_space<vmem>>, vector<128x128xf32>
    tpu.vector_store %arg22[%c0_98, %c0_99], %141 {strides = array<i32>} : memref<424x128xf32, #tpu.memory_space<vmem>>, vector<128x128xf32>,
    %c128_100 = arith.constant 128 : index
    %c0_101 = arith.constant 0 : index
    %143 = vector.load %arg21[%c128_100, %c0_101] : memref<848x128xf32, #tpu.memory_space<vmem>>, vector<128x128xf32>
    %c0_102 = arith.constant 0 : index
    %c0_103 = arith.constant 0 : index
    %c0_104 = arith.constant 0 : index
    %144 = vector.load %arg6[%c0_102, %c0_103, %c0_104] : memref<5x128x128xbf16, #tpu.memory_space<vmem>>, vector<1x128x128xbf16>
    %145 = vector.shape_cast %144 : vector<1x128x128xbf16> to vector<128x128xbf16>
    %146 = arith.extf %145 : vector<128x128xbf16> to vector<128x128xf32>
    %cst_105 = arith.constant dense<0.000000e+00> : vector<128x128xf32>
    %147 = tpu.matmul %143, %146, %cst_105 {dimension_numbers = #tpu.dot_dimension_numbers<[1], [0], [0], [1], [0, 0, 1, 1], [], []>} : vector<128x128xf32>, vector<128x128xf32>, vector<128x128xf32> -> vector<128x128xf32>
    %c552 = arith.constant 552 : index
    %c0_106 = arith.constant 0 : index
    %148 = vector.load %arg21[%c552, %c0_106] : memref<848x128xf32, #tpu.memory_space<vmem>>, vector<128x128xf32>
    %c1_107 = arith.constant 1 : index
    %c0_108 = arith.constant 0 : index
    %c0_109 = arith.constant 0 : index
    %149 = vector.load %arg6[%c1_107, %c0_108, %c0_109] : memref<5x128x128xbf16, #tpu.memory_space<vmem>>, vector<1x128x128xbf16>
    %150 = vector.shape_cast %149 : vector<1x128x128xbf16> to vector<128x128xbf16>
    %151 = arith.extf %150 : vector<128x128xbf16> to vector<128x128xf32>
    %cst_110 = arith.constant dense<0.000000e+00> : vector<128x128xf32>
    %152 = tpu.matmul %148, %151, %cst_110 {dimension_numbers = #tpu.dot_dimension_numbers<[1], [0], [0], [1], [0, 0, 1, 1], [], []>} : vector<128x128xf32>, vector<128x128xf32>, vector<128x128xf32> -> vector<128x128xf32>
    %153 = arith.addf %147, %152 : vector<128x128xf32>
    %c129 = arith.constant 129 : index
    %c0_111 = arith.constant 0 : index
    %154 = vector.load %arg21[%c129, %c0_111] : memref<848x128xf32, #tpu.memory_space<vmem>>, vector<128x128xf32>
    %c2_112 = arith.constant 2 : index
    %c0_113 = arith.constant 0 : index
    %c0_114 = arith.constant 0 : index
    %155 = vector.load %arg6[%c2_112, %c0_113, %c0_114] : memref<5x128x128xbf16, #tpu.memory_space<vmem>>, vector<1x128x128xbf16>
    %156 = vector.shape_cast %155 : vector<1x128x128xbf16> to vector<128x128xbf16>
    %157 = arith.extf %156 : vector<128x128xbf16> to vector<128x128xf32>
    %cst_115 = arith.constant dense<0.000000e+00> : vector<128x128xf32>
    %158 = tpu.matmul %154, %157, %cst_115 {dimension_numbers = #tpu.dot_dimension_numbers<[1], [0], [0], [1], [0, 0, 1, 1], [], []>} : vector<128x128xf32>, vector<128x128xf32>, vector<128x128xf32> -> vector<128x128xf32>
    %159 = arith.addf %153, %158 : vector<128x128xf32>
    %c553 = arith.constant 553 : index
    %c0_116 = arith.constant 0 : index
    %160 = vector.load %arg21[%c553, %c0_116] : memref<848x128xf32, #tpu.memory_space<vmem>>, vector<128x128xf32>
    %c3_117 = arith.constant 3 : index
    %c0_118 = arith.constant 0 : index
    %c0_119 = arith.constant 0 : index
    %161 = vector.load %arg6[%c3_117, %c0_118, %c0_119] : memref<5x128x128xbf16, #tpu.memory_space<vmem>>, vector<1x128x128xbf16>
    %162 = vector.shape_cast %161 : vector<1x128x128xbf16> to vector<128x128xbf16>
    %163 = arith.extf %162 : vector<128x128xbf16> to vector<128x128xf32>
    %cst_120 = arith.constant dense<0.000000e+00> : vector<128x128xf32>
    %164 = tpu.matmul %160, %163, %cst_120 {dimension_numbers = #tpu.dot_dimension_numbers<[1], [0], [0], [1], [0, 0, 1, 1], [], []>} : vector<128x128xf32>, vector<128x128xf32>, vector<128x128xf32> -> vector<128x128xf32>
    %165 = arith.addf %159, %164 : vector<128x128xf32>
    %c130 = arith.constant 130 : index
    %c0_121 = arith.constant 0 : index
    %166 = vector.load %arg21[%c130, %c0_121] : memref<848x128xf32, #tpu.memory_space<vmem>>, vector<128x128xf32>
    %c4_122 = arith.constant 4 : index
    %c0_123 = arith.constant 0 : index
    %c0_124 = arith.constant 0 : index
    %167 = vector.load %arg6[%c4_122, %c0_123, %c0_124] : memref<5x128x128xbf16, #tpu.memory_space<vmem>>, vector<1x128x128xbf16>
    %168 = vector.shape_cast %167 : vector<1x128x128xbf16> to vector<128x128xbf16>
    %169 = arith.extf %168 : vector<128x128xbf16> to vector<128x128xf32>
    %cst_125 = arith.constant dense<0.000000e+00> : vector<128x128xf32>
    %170 = tpu.matmul %166, %169, %cst_125 {dimension_numbers = #tpu.dot_dimension_numbers<[1], [0], [0], [1], [0, 0, 1, 1], [], []>} : vector<128x128xf32>, vector<128x128xf32>, vector<128x128xf32> -> vector<128x128xf32>
    %171 = arith.addf %165, %170 : vector<128x128xf32>
    %172 = vector.broadcast %7 : vector<1x128xf32> to vector<128x128xf32>
    %173 = arith.addf %171, %172 : vector<128x128xf32>
    %cst_126 = arith.constant 0.000000e+00 : f32
    %174 = vector.broadcast %cst_126 : f32 to vector<128x128xf32>
    %175 = arith.maximumf %173, %174 : vector<128x128xf32>
    %c128_127 = arith.constant 128 : index
    %c0_128 = arith.constant 0 : index
    %176 = vector.load %arg22[%c128_127, %c0_128] : memref<424x128xf32, #tpu.memory_space<vmem>>, vector<128x128xf32>
    tpu.vector_store %arg22[%c128_127, %c0_128], %175 {strides = array<i32>} : memref<424x128xf32, #tpu.memory_space<vmem>>, vector<128x128xf32>,
    %c256_129 = arith.constant 256 : index
    %c0_130 = arith.constant 0 : index
    %177 = vector.load %arg21[%c256_129, %c0_130] : memref<848x128xf32, #tpu.memory_space<vmem>>, vector<128x128xf32>
    %c0_131 = arith.constant 0 : index
    %c0_132 = arith.constant 0 : index
    %c0_133 = arith.constant 0 : index
    %178 = vector.load %arg6[%c0_131, %c0_132, %c0_133] : memref<5x128x128xbf16, #tpu.memory_space<vmem>>, vector<1x128x128xbf16>
    %179 = vector.shape_cast %178 : vector<1x128x128xbf16> to vector<128x128xbf16>
    %180 = arith.extf %179 : vector<128x128xbf16> to vector<128x128xf32>
    %cst_134 = arith.constant dense<0.000000e+00> : vector<128x128xf32>
    %181 = tpu.matmul %177, %180, %cst_134 {dimension_numbers = #tpu.dot_dimension_numbers<[1], [0], [0], [1], [0, 0, 1, 1], [], []>} : vector<128x128xf32>, vector<128x128xf32>, vector<128x128xf32> -> vector<128x128xf32>
    %c680 = arith.constant 680 : index
    %c0_135 = arith.constant 0 : index
    %182 = vector.load %arg21[%c680, %c0_135] : memref<848x128xf32, #tpu.memory_space<vmem>>, vector<128x128xf32>
    %c1_136 = arith.constant 1 : index
    %c0_137 = arith.constant 0 : index
    %c0_138 = arith.constant 0 : index
    %183 = vector.load %arg6[%c1_136, %c0_137, %c0_138] : memref<5x128x128xbf16, #tpu.memory_space<vmem>>, vector<1x128x128xbf16>
    %184 = vector.shape_cast %183 : vector<1x128x128xbf16> to vector<128x128xbf16>
    %185 = arith.extf %184 : vector<128x128xbf16> to vector<128x128xf32>
    %cst_139 = arith.constant dense<0.000000e+00> : vector<128x128xf32>
    %186 = tpu.matmul %182, %185, %cst_139 {dimension_numbers = #tpu.dot_dimension_numbers<[1], [0], [0], [1], [0, 0, 1, 1], [], []>} : vector<128x128xf32>, vector<128x128xf32>, vector<128x128xf32> -> vector<128x128xf32>
    %187 = arith.addf %181, %186 : vector<128x128xf32>
    %c257 = arith.constant 257 : index
    %c0_140 = arith.constant 0 : index
    %188 = vector.load %arg21[%c257, %c0_140] : memref<848x128xf32, #tpu.memory_space<vmem>>, vector<128x128xf32>
    %c2_141 = arith.constant 2 : index
    %c0_142 = arith.constant 0 : index
    %c0_143 = arith.constant 0 : index
    %189 = vector.load %arg6[%c2_141, %c0_142, %c0_143] : memref<5x128x128xbf16, #tpu.memory_space<vmem>>, vector<1x128x128xbf16>
    %190 = vector.shape_cast %189 : vector<1x128x128xbf16> to vector<128x128xbf16>
    %191 = arith.extf %190 : vector<128x128xbf16> to vector<128x128xf32>
    %cst_144 = arith.constant dense<0.000000e+00> : vector<128x128xf32>
    %192 = tpu.matmul %188, %191, %cst_144 {dimension_numbers = #tpu.dot_dimension_numbers<[1], [0], [0], [1], [0, 0, 1, 1], [], []>} : vector<128x128xf32>, vector<128x128xf32>, vector<128x128xf32> -> vector<128x128xf32>
    %193 = arith.addf %187, %192 : vector<128x128xf32>
    %c681 = arith.constant 681 : index
    %c0_145 = arith.constant 0 : index
    %194 = vector.load %arg21[%c681, %c0_145] : memref<848x128xf32, #tpu.memory_space<vmem>>, vector<128x128xf32>
    %c3_146 = arith.constant 3 : index
    %c0_147 = arith.constant 0 : index
    %c0_148 = arith.constant 0 : index
    %195 = vector.load %arg6[%c3_146, %c0_147, %c0_148] : memref<5x128x128xbf16, #tpu.memory_space<vmem>>, vector<1x128x128xbf16>
    %196 = vector.shape_cast %195 : vector<1x128x128xbf16> to vector<128x128xbf16>
    %197 = arith.extf %196 : vector<128x128xbf16> to vector<128x128xf32>
    %cst_149 = arith.constant dense<0.000000e+00> : vector<128x128xf32>
    %198 = tpu.matmul %194, %197, %cst_149 {dimension_numbers = #tpu.dot_dimension_numbers<[1], [0], [0], [1], [0, 0, 1, 1], [], []>} : vector<128x128xf32>, vector<128x128xf32>, vector<128x128xf32> -> vector<128x128xf32>
    %199 = arith.addf %193, %198 : vector<128x128xf32>
    %c258 = arith.constant 258 : index
    %c0_150 = arith.constant 0 : index
    %200 = vector.load %arg21[%c258, %c0_150] : memref<848x128xf32, #tpu.memory_space<vmem>>, vector<128x128xf32>
    %c4_151 = arith.constant 4 : index
    %c0_152 = arith.constant 0 : index
    %c0_153 = arith.constant 0 : index
    %201 = vector.load %arg6[%c4_151, %c0_152, %c0_153] : memref<5x128x128xbf16, #tpu.memory_space<vmem>>, vector<1x128x128xbf16>
    %202 = vector.shape_cast %201 : vector<1x128x128xbf16> to vector<128x128xbf16>
    %203 = arith.extf %202 : vector<128x128xbf16> to vector<128x128xf32>
    %cst_154 = arith.constant dense<0.000000e+00> : vector<128x128xf32>
    %204 = tpu.matmul %200, %203, %cst_154 {dimension_numbers = #tpu.dot_dimension_numbers<[1], [0], [0], [1], [0, 0, 1, 1], [], []>} : vector<128x128xf32>, vector<128x128xf32>, vector<128x128xf32> -> vector<128x128xf32>
    %205 = arith.addf %199, %204 : vector<128x128xf32>
    %206 = vector.broadcast %7 : vector<1x128xf32> to vector<128x128xf32>
    %207 = arith.addf %205, %206 : vector<128x128xf32>
    %cst_155 = arith.constant 0.000000e+00 : f32
    %208 = vector.broadcast %cst_155 : f32 to vector<128x128xf32>
    %209 = arith.maximumf %207, %208 : vector<128x128xf32>
    %c256_156 = arith.constant 256 : index
    %c0_157 = arith.constant 0 : index
    %210 = vector.load %arg22[%c256_156, %c0_157] : memref<424x128xf32, #tpu.memory_space<vmem>>, vector<128x128xf32>
    tpu.vector_store %arg22[%c256_156, %c0_157], %209 {strides = array<i32>} : memref<424x128xf32, #tpu.memory_space<vmem>>, vector<128x128xf32>,
    %c384_158 = arith.constant 384 : index
    %c0_159 = arith.constant 0 : index
    %211 = vector.load %arg21[%c384_158, %c0_159] : memref<848x128xf32, #tpu.memory_space<vmem>>, vector<36x128xf32>
    %c0_160 = arith.constant 0 : index
    %c0_161 = arith.constant 0 : index
    %c0_162 = arith.constant 0 : index
    %212 = vector.load %arg6[%c0_160, %c0_161, %c0_162] : memref<5x128x128xbf16, #tpu.memory_space<vmem>>, vector<1x128x128xbf16>
    %213 = vector.shape_cast %212 : vector<1x128x128xbf16> to vector<128x128xbf16>
    %214 = arith.extf %213 : vector<128x128xbf16> to vector<128x128xf32>
    %cst_163 = arith.constant dense<0.000000e+00> : vector<36x128xf32>
    %215 = tpu.matmul %211, %214, %cst_163 {dimension_numbers = #tpu.dot_dimension_numbers<[1], [0], [0], [1], [0, 0, 1, 1], [], []>} : vector<36x128xf32>, vector<128x128xf32>, vector<36x128xf32> -> vector<36x128xf32>
    %c808 = arith.constant 808 : index
    %c0_164 = arith.constant 0 : index
    %216 = vector.load %arg21[%c808, %c0_164] : memref<848x128xf32, #tpu.memory_space<vmem>>, vector<36x128xf32>
    %c1_165 = arith.constant 1 : index
    %c0_166 = arith.constant 0 : index
    %c0_167 = arith.constant 0 : index
    %217 = vector.load %arg6[%c1_165, %c0_166, %c0_167] : memref<5x128x128xbf16, #tpu.memory_space<vmem>>, vector<1x128x128xbf16>
    %218 = vector.shape_cast %217 : vector<1x128x128xbf16> to vector<128x128xbf16>
    %219 = arith.extf %218 : vector<128x128xbf16> to vector<128x128xf32>
    %cst_168 = arith.constant dense<0.000000e+00> : vector<36x128xf32>
    %220 = tpu.matmul %216, %219, %cst_168 {dimension_numbers = #tpu.dot_dimension_numbers<[1], [0], [0], [1], [0, 0, 1, 1], [], []>} : vector<36x128xf32>, vector<128x128xf32>, vector<36x128xf32> -> vector<36x128xf32>
    %221 = arith.addf %215, %220 : vector<36x128xf32>
    %c385 = arith.constant 385 : index
    %c0_169 = arith.constant 0 : index
    %222 = vector.load %arg21[%c385, %c0_169] : memref<848x128xf32, #tpu.memory_space<vmem>>, vector<36x128xf32>
    %c2_170 = arith.constant 2 : index
    %c0_171 = arith.constant 0 : index
    %c0_172 = arith.constant 0 : index
    %223 = vector.load %arg6[%c2_170, %c0_171, %c0_172] : memref<5x128x128xbf16, #tpu.memory_space<vmem>>, vector<1x128x128xbf16>
    %224 = vector.shape_cast %223 : vector<1x128x128xbf16> to vector<128x128xbf16>
    %225 = arith.extf %224 : vector<128x128xbf16> to vector<128x128xf32>
    %cst_173 = arith.constant dense<0.000000e+00> : vector<36x128xf32>
    %226 = tpu.matmul %222, %225, %cst_173 {dimension_numbers = #tpu.dot_dimension_numbers<[1], [0], [0], [1], [0, 0, 1, 1], [], []>} : vector<36x128xf32>, vector<128x128xf32>, vector<36x128xf32> -> vector<36x128xf32>
    %227 = arith.addf %221, %226 : vector<36x128xf32>
    %c809 = arith.constant 809 : index
    %c0_174 = arith.constant 0 : index
    %228 = vector.load %arg21[%c809, %c0_174] : memref<848x128xf32, #tpu.memory_space<vmem>>, vector<36x128xf32>
    %c3_175 = arith.constant 3 : index
    %c0_176 = arith.constant 0 : index
    %c0_177 = arith.constant 0 : index
    %229 = vector.load %arg6[%c3_175, %c0_176, %c0_177] : memref<5x128x128xbf16, #tpu.memory_space<vmem>>, vector<1x128x128xbf16>
    %230 = vector.shape_cast %229 : vector<1x128x128xbf16> to vector<128x128xbf16>
    %231 = arith.extf %230 : vector<128x128xbf16> to vector<128x128xf32>
    %cst_178 = arith.constant dense<0.000000e+00> : vector<36x128xf32>
    %232 = tpu.matmul %228, %231, %cst_178 {dimension_numbers = #tpu.dot_dimension_numbers<[1], [0], [0], [1], [0, 0, 1, 1], [], []>} : vector<36x128xf32>, vector<128x128xf32>, vector<36x128xf32> -> vector<36x128xf32>
    %233 = arith.addf %227, %232 : vector<36x128xf32>
    %c386 = arith.constant 386 : index
    %c0_179 = arith.constant 0 : index
    %234 = vector.load %arg21[%c386, %c0_179] : memref<848x128xf32, #tpu.memory_space<vmem>>, vector<36x128xf32>
    %c4_180 = arith.constant 4 : index
    %c0_181 = arith.constant 0 : index
    %c0_182 = arith.constant 0 : index
    %235 = vector.load %arg6[%c4_180, %c0_181, %c0_182] : memref<5x128x128xbf16, #tpu.memory_space<vmem>>, vector<1x128x128xbf16>
    %236 = vector.shape_cast %235 : vector<1x128x128xbf16> to vector<128x128xbf16>
    %237 = arith.extf %236 : vector<128x128xbf16> to vector<128x128xf32>
    %cst_183 = arith.constant dense<0.000000e+00> : vector<36x128xf32>
    %238 = tpu.matmul %234, %237, %cst_183 {dimension_numbers = #tpu.dot_dimension_numbers<[1], [0], [0], [1], [0, 0, 1, 1], [], []>} : vector<36x128xf32>, vector<128x128xf32>, vector<36x128xf32> -> vector<36x128xf32>
    %239 = arith.addf %233, %238 : vector<36x128xf32>
    %240 = vector.broadcast %7 : vector<1x128xf32> to vector<36x128xf32>
    %241 = arith.addf %239, %240 : vector<36x128xf32>
    %cst_184 = arith.constant 0.000000e+00 : f32
    %242 = vector.broadcast %cst_184 : f32 to vector<36x128xf32>
    %243 = arith.maximumf %241, %242 : vector<36x128xf32>
    %c384_185 = arith.constant 384 : index
    %c0_186 = arith.constant 0 : index
    %244 = vector.load %arg22[%c384_185, %c0_186] : memref<424x128xf32, #tpu.memory_space<vmem>>, vector<36x128xf32>
    tpu.vector_store %arg22[%c384_185, %c0_186], %243 {strides = array<i32>} : memref<424x128xf32, #tpu.memory_space<vmem>>, vector<36x128xf32>,
    %c0_187 = arith.constant 0 : index
    %c0_188 = arith.constant 0 : index
    %245 = tpu.strided_load %arg22[%c0_187, %c0_188] {strides = array<i32: 3, 1>} : memref<424x128xf32, #tpu.memory_space<vmem>>, vector<140x128xf32>
    %c1_189 = arith.constant 1 : index
    %c0_190 = arith.constant 0 : index
    %246 = tpu.strided_load %arg22[%c1_189, %c0_190] {strides = array<i32: 3, 1>} : memref<424x128xf32, #tpu.memory_space<vmem>>, vector<140x128xf32>
    %247 = arith.maximumf %245, %246 : vector<140x128xf32>
    %c2_191 = arith.constant 2 : index
    %c0_192 = arith.constant 0 : index
    %248 = tpu.strided_load %arg22[%c2_191, %c0_192] {strides = array<i32: 3, 1>} : memref<424x128xf32, #tpu.memory_space<vmem>>, vector<140x128xf32>
    %249 = arith.maximumf %247, %248 : vector<140x128xf32>
    %250 = vector.extract_strided_slice %249 {offsets = [0, 0], sizes = [139, 128], strides = [1, 1]} : vector<140x128xf32> to vector<139x128xf32>
    %251 = vector.extract_strided_slice %249 {offsets = [1, 0], sizes = [139, 128], strides = [1, 1]} : vector<140x128xf32> to vector<139x128xf32>
    %252 = arith.maximumf %250, %251 : vector<139x128xf32>
    %253 = vector.broadcast %8 : vector<1x128xf32> to vector<139x128xf32>
    %254 = arith.mulf %252, %253 : vector<139x128xf32>
    %255 = vector.broadcast %9 : vector<1x128xf32> to vector<139x128xf32>
    %256 = arith.addf %254, %255 : vector<139x128xf32>
    %c0_193 = arith.constant 0 : index
    %c0_194 = arith.constant 0 : index
    %257 = vector.load %arg23[%c0_193, %c0_194] : memref<144x128xf32, #tpu.memory_space<vmem>>, vector<139x128xf32>
    tpu.vector_store %arg23[%c0_193, %c0_194], %256 {strides = array<i32>} : memref<144x128xf32, #tpu.memory_space<vmem>>, vector<139x128xf32>,
    %c0_195 = arith.constant 0 : index
    %c0_196 = arith.constant 0 : index
    %258 = tpu.strided_load %arg23[%c0_195, %c0_196] {strides = array<i32: 5, 1>} : memref<144x128xf32, #tpu.memory_space<vmem>>, vector<27x128xf32>
    %c0_197 = arith.constant 0 : index
    %c0_198 = arith.constant 0 : index
    %c0_199 = arith.constant 0 : index
    %259 = vector.load %arg10[%c0_197, %c0_198, %c0_199] : memref<9x128x128xbf16, #tpu.memory_space<vmem>>, vector<1x128x128xbf16>
    %260 = vector.shape_cast %259 : vector<1x128x128xbf16> to vector<128x128xbf16>
    %261 = arith.extf %260 : vector<128x128xbf16> to vector<128x128xf32>
    %cst_200 = arith.constant dense<0.000000e+00> : vector<27x128xf32>
    %262 = tpu.matmul %258, %261, %cst_200 {dimension_numbers = #tpu.dot_dimension_numbers<[1], [0], [0], [1], [0, 0, 1, 1], [], []>} : vector<27x128xf32>, vector<128x128xf32>, vector<27x128xf32> -> vector<27x128xf32>
    %c1_201 = arith.constant 1 : index
    %c0_202 = arith.constant 0 : index
    %263 = tpu.strided_load %arg23[%c1_201, %c0_202] {strides = array<i32: 5, 1>} : memref<144x128xf32, #tpu.memory_space<vmem>>, vector<27x128xf32>
    %c1_203 = arith.constant 1 : index
    %c0_204 = arith.constant 0 : index
    %c0_205 = arith.constant 0 : index
    %264 = vector.load %arg10[%c1_203, %c0_204, %c0_205] : memref<9x128x128xbf16, #tpu.memory_space<vmem>>, vector<1x128x128xbf16>
    %265 = vector.shape_cast %264 : vector<1x128x128xbf16> to vector<128x128xbf16>
    %266 = arith.extf %265 : vector<128x128xbf16> to vector<128x128xf32>
    %cst_206 = arith.constant dense<0.000000e+00> : vector<27x128xf32>
    %267 = tpu.matmul %263, %266, %cst_206 {dimension_numbers = #tpu.dot_dimension_numbers<[1], [0], [0], [1], [0, 0, 1, 1], [], []>} : vector<27x128xf32>, vector<128x128xf32>, vector<27x128xf32> -> vector<27x128xf32>
    %268 = arith.addf %262, %267 : vector<27x128xf32>
    %c2_207 = arith.constant 2 : index
    %c0_208 = arith.constant 0 : index
    %269 = tpu.strided_load %arg23[%c2_207, %c0_208] {strides = array<i32: 5, 1>} : memref<144x128xf32, #tpu.memory_space<vmem>>, vector<27x128xf32>
    %c2_209 = arith.constant 2 : index
    %c0_210 = arith.constant 0 : index
    %c0_211 = arith.constant 0 : index
    %270 = vector.load %arg10[%c2_209, %c0_210, %c0_211] : memref<9x128x128xbf16, #tpu.memory_space<vmem>>, vector<1x128x128xbf16>
    %271 = vector.shape_cast %270 : vector<1x128x128xbf16> to vector<128x128xbf16>
    %272 = arith.extf %271 : vector<128x128xbf16> to vector<128x128xf32>
    %cst_212 = arith.constant dense<0.000000e+00> : vector<27x128xf32>
    %273 = tpu.matmul %269, %272, %cst_212 {dimension_numbers = #tpu.dot_dimension_numbers<[1], [0], [0], [1], [0, 0, 1, 1], [], []>} : vector<27x128xf32>, vector<128x128xf32>, vector<27x128xf32> -> vector<27x128xf32>
    %274 = arith.addf %268, %273 : vector<27x128xf32>
    %c3_213 = arith.constant 3 : index
    %c0_214 = arith.constant 0 : index
    %275 = tpu.strided_load %arg23[%c3_213, %c0_214] {strides = array<i32: 5, 1>} : memref<144x128xf32, #tpu.memory_space<vmem>>, vector<27x128xf32>
    %c3_215 = arith.constant 3 : index
    %c0_216 = arith.constant 0 : index
    %c0_217 = arith.constant 0 : index
    %276 = vector.load %arg10[%c3_215, %c0_216, %c0_217] : memref<9x128x128xbf16, #tpu.memory_space<vmem>>, vector<1x128x128xbf16>
    %277 = vector.shape_cast %276 : vector<1x128x128xbf16> to vector<128x128xbf16>
    %278 = arith.extf %277 : vector<128x128xbf16> to vector<128x128xf32>
    %cst_218 = arith.constant dense<0.000000e+00> : vector<27x128xf32>
    %279 = tpu.matmul %275, %278, %cst_218 {dimension_numbers = #tpu.dot_dimension_numbers<[1], [0], [0], [1], [0, 0, 1, 1], [], []>} : vector<27x128xf32>, vector<128x128xf32>, vector<27x128xf32> -> vector<27x128xf32>
    %280 = arith.addf %274, %279 : vector<27x128xf32>
    %c4_219 = arith.constant 4 : index
    %c0_220 = arith.constant 0 : index
    %281 = tpu.strided_load %arg23[%c4_219, %c0_220] {strides = array<i32: 5, 1>} : memref<144x128xf32, #tpu.memory_space<vmem>>, vector<27x128xf32>
    %c4_221 = arith.constant 4 : index
    %c0_222 = arith.constant 0 : index
    %c0_223 = arith.constant 0 : index
    %282 = vector.load %arg10[%c4_221, %c0_222, %c0_223] : memref<9x128x128xbf16, #tpu.memory_space<vmem>>, vector<1x128x128xbf16>
    %283 = vector.shape_cast %282 : vector<1x128x128xbf16> to vector<128x128xbf16>
    %284 = arith.extf %283 : vector<128x128xbf16> to vector<128x128xf32>
    %cst_224 = arith.constant dense<0.000000e+00> : vector<27x128xf32>
    %285 = tpu.matmul %281, %284, %cst_224 {dimension_numbers = #tpu.dot_dimension_numbers<[1], [0], [0], [1], [0, 0, 1, 1], [], []>} : vector<27x128xf32>, vector<128x128xf32>, vector<27x128xf32> -> vector<27x128xf32>
    %286 = arith.addf %280, %285 : vector<27x128xf32>
    %c5 = arith.constant 5 : index
    %c0_225 = arith.constant 0 : index
    %287 = tpu.strided_load %arg23[%c5, %c0_225] {strides = array<i32: 5, 1>} : memref<144x128xf32, #tpu.memory_space<vmem>>, vector<27x128xf32>
    %c5_226 = arith.constant 5 : index
    %c0_227 = arith.constant 0 : index
    %c0_228 = arith.constant 0 : index
    %288 = vector.load %arg10[%c5_226, %c0_227, %c0_228] : memref<9x128x128xbf16, #tpu.memory_space<vmem>>, vector<1x128x128xbf16>
    %289 = vector.shape_cast %288 : vector<1x128x128xbf16> to vector<128x128xbf16>
    %290 = arith.extf %289 : vector<128x128xbf16> to vector<128x128xf32>
    %cst_229 = arith.constant dense<0.000000e+00> : vector<27x128xf32>
    %291 = tpu.matmul %287, %290, %cst_229 {dimension_numbers = #tpu.dot_dimension_numbers<[1], [0], [0], [1], [0, 0, 1, 1], [], []>} : vector<27x128xf32>, vector<128x128xf32>, vector<27x128xf32> -> vector<27x128xf32>
    %292 = arith.addf %286, %291 : vector<27x128xf32>
    %c6 = arith.constant 6 : index
    %c0_230 = arith.constant 0 : index
    %293 = tpu.strided_load %arg23[%c6, %c0_230] {strides = array<i32: 5, 1>} : memref<144x128xf32, #tpu.memory_space<vmem>>, vector<27x128xf32>
    %c6_231 = arith.constant 6 : index
    %c0_232 = arith.constant 0 : index
    %c0_233 = arith.constant 0 : index
    %294 = vector.load %arg10[%c6_231, %c0_232, %c0_233] : memref<9x128x128xbf16, #tpu.memory_space<vmem>>, vector<1x128x128xbf16>
    %295 = vector.shape_cast %294 : vector<1x128x128xbf16> to vector<128x128xbf16>
    %296 = arith.extf %295 : vector<128x128xbf16> to vector<128x128xf32>
    %cst_234 = arith.constant dense<0.000000e+00> : vector<27x128xf32>
    %297 = tpu.matmul %293, %296, %cst_234 {dimension_numbers = #tpu.dot_dimension_numbers<[1], [0], [0], [1], [0, 0, 1, 1], [], []>} : vector<27x128xf32>, vector<128x128xf32>, vector<27x128xf32> -> vector<27x128xf32>
    %298 = arith.addf %292, %297 : vector<27x128xf32>
    %c7 = arith.constant 7 : index
    %c0_235 = arith.constant 0 : index
    %299 = tpu.strided_load %arg23[%c7, %c0_235] {strides = array<i32: 5, 1>} : memref<144x128xf32, #tpu.memory_space<vmem>>, vector<27x128xf32>
    %c7_236 = arith.constant 7 : index
    %c0_237 = arith.constant 0 : index
    %c0_238 = arith.constant 0 : index
    %300 = vector.load %arg10[%c7_236, %c0_237, %c0_238] : memref<9x128x128xbf16, #tpu.memory_space<vmem>>, vector<1x128x128xbf16>
    %301 = vector.shape_cast %300 : vector<1x128x128xbf16> to vector<128x128xbf16>
    %302 = arith.extf %301 : vector<128x128xbf16> to vector<128x128xf32>
    %cst_239 = arith.constant dense<0.000000e+00> : vector<27x128xf32>
    %303 = tpu.matmul %299, %302, %cst_239 {dimension_numbers = #tpu.dot_dimension_numbers<[1], [0], [0], [1], [0, 0, 1, 1], [], []>} : vector<27x128xf32>, vector<128x128xf32>, vector<27x128xf32> -> vector<27x128xf32>
    %304 = arith.addf %298, %303 : vector<27x128xf32>
    %c8 = arith.constant 8 : index
    %c0_240 = arith.constant 0 : index
    %305 = tpu.strided_load %arg23[%c8, %c0_240] {strides = array<i32: 5, 1>} : memref<144x128xf32, #tpu.memory_space<vmem>>, vector<27x128xf32>
    %c8_241 = arith.constant 8 : index
    %c0_242 = arith.constant 0 : index
    %c0_243 = arith.constant 0 : index
    %306 = vector.load %arg10[%c8_241, %c0_242, %c0_243] : memref<9x128x128xbf16, #tpu.memory_space<vmem>>, vector<1x128x128xbf16>
    %307 = vector.shape_cast %306 : vector<1x128x128xbf16> to vector<128x128xbf16>
    %308 = arith.extf %307 : vector<128x128xbf16> to vector<128x128xf32>
    %cst_244 = arith.constant dense<0.000000e+00> : vector<27x128xf32>
    %309 = tpu.matmul %305, %308, %cst_244 {dimension_numbers = #tpu.dot_dimension_numbers<[1], [0], [0], [1], [0, 0, 1, 1], [], []>} : vector<27x128xf32>, vector<128x128xf32>, vector<27x128xf32> -> vector<27x128xf32>
    %310 = arith.addf %304, %309 : vector<27x128xf32>
    %311 = vector.broadcast %10 : vector<1x128xf32> to vector<27x128xf32>
    %312 = arith.addf %310, %311 : vector<27x128xf32>
    %cst_245 = arith.constant 0.000000e+00 : f32
    %313 = vector.broadcast %cst_245 : f32 to vector<27x128xf32>
    %314 = arith.maximumf %312, %313 : vector<27x128xf32>
    %c0_246 = arith.constant 0 : index
    %c0_247 = arith.constant 0 : index
    %315 = vector.load %arg24[%c0_246, %c0_247] : memref<32x128xf32, #tpu.memory_space<vmem>>, vector<27x128xf32>
    tpu.vector_store %arg24[%c0_246, %c0_247], %314 {strides = array<i32>} : memref<32x128xf32, #tpu.memory_space<vmem>>, vector<27x128xf32>,
    %c0_248 = arith.constant 0 : index
    %c0_249 = arith.constant 0 : index
    %316 = vector.load %arg13[%c0_248, %c0_249] : memref<1x768xf32, #tpu.memory_space<vmem>>, vector<1x768xf32>
    %c0_250 = arith.constant 0 : index
    %c0_251 = arith.constant 0 : index
    %317 = vector.load %arg24[%c0_250, %c0_251] : memref<32x128xf32, #tpu.memory_space<vmem>>, vector<1x128xf32>
    %c1_252 = arith.constant 1 : index
    %c0_253 = arith.constant 0 : index
    %318 = vector.load %arg24[%c1_252, %c0_253] : memref<32x128xf32, #tpu.memory_space<vmem>>, vector<1x128xf32>
    %319 = arith.maximumf %317, %318 : vector<1x128xf32>
    %c2_254 = arith.constant 2 : index
    %c0_255 = arith.constant 0 : index
    %320 = vector.load %arg24[%c2_254, %c0_255] : memref<32x128xf32, #tpu.memory_space<vmem>>, vector<1x128xf32>
    %321 = arith.maximumf %319, %320 : vector<1x128xf32>
    %322 = vector.extract_strided_slice %321 {offsets = [0, 0], sizes = [1, 32], strides = [1, 1]} : vector<1x128xf32> to vector<1x32xf32>
    %c0_256 = arith.constant 0 : index
    %c0_257 = arith.constant 0 : index
    %c0_258 = arith.constant 0 : index
    %323 = vector.load %arg12[%c0_256, %c0_257, %c0_258] : memref<13x32x768xbf16, #tpu.memory_space<vmem>>, vector<1x32x768xbf16>
    %324 = vector.shape_cast %323 : vector<1x32x768xbf16> to vector<32x768xbf16>
    %325 = arith.extf %324 : vector<32x768xbf16> to vector<32x768xf32>
    %cst_259 = arith.constant dense<0.000000e+00> : vector<1x768xf32>
    %326 = tpu.matmul %322, %325, %cst_259 {dimension_numbers = #tpu.dot_dimension_numbers<[1], [0], [0], [1], [0, 0, 1, 1], [], []>} : vector<1x32xf32>, vector<32x768xf32>, vector<1x768xf32> -> vector<1x768xf32>
    %327 = arith.addf %316, %326 : vector<1x768xf32>
    %c2_260 = arith.constant 2 : index
    %c0_261 = arith.constant 0 : index
    %328 = vector.load %arg24[%c2_260, %c0_261] : memref<32x128xf32, #tpu.memory_space<vmem>>, vector<1x128xf32>
    %c3_262 = arith.constant 3 : index
    %c0_263 = arith.constant 0 : index
    %329 = vector.load %arg24[%c3_262, %c0_263] : memref<32x128xf32, #tpu.memory_space<vmem>>, vector<1x128xf32>
    %330 = arith.maximumf %328, %329 : vector<1x128xf32>
    %c4_264 = arith.constant 4 : index
    %c0_265 = arith.constant 0 : index
    %331 = vector.load %arg24[%c4_264, %c0_265] : memref<32x128xf32, #tpu.memory_space<vmem>>, vector<1x128xf32>
    %332 = arith.maximumf %330, %331 : vector<1x128xf32>
    %333 = vector.extract_strided_slice %332 {offsets = [0, 0], sizes = [1, 32], strides = [1, 1]} : vector<1x128xf32> to vector<1x32xf32>
    %c1_266 = arith.constant 1 : index
    %c0_267 = arith.constant 0 : index
    %c0_268 = arith.constant 0 : index
    %334 = vector.load %arg12[%c1_266, %c0_267, %c0_268] : memref<13x32x768xbf16, #tpu.memory_space<vmem>>, vector<1x32x768xbf16>
    %335 = vector.shape_cast %334 : vector<1x32x768xbf16> to vector<32x768xbf16>
    %336 = arith.extf %335 : vector<32x768xbf16> to vector<32x768xf32>
    %cst_269 = arith.constant dense<0.000000e+00> : vector<1x768xf32>
    %337 = tpu.matmul %333, %336, %cst_269 {dimension_numbers = #tpu.dot_dimension_numbers<[1], [0], [0], [1], [0, 0, 1, 1], [], []>} : vector<1x32xf32>, vector<32x768xf32>, vector<1x768xf32> -> vector<1x768xf32>
    %338 = arith.addf %327, %337 : vector<1x768xf32>
    %c4_270 = arith.constant 4 : index
    %c0_271 = arith.constant 0 : index
    %339 = vector.load %arg24[%c4_270, %c0_271] : memref<32x128xf32, #tpu.memory_space<vmem>>, vector<1x128xf32>
    %c5_272 = arith.constant 5 : index
    %c0_273 = arith.constant 0 : index
    %340 = vector.load %arg24[%c5_272, %c0_273] : memref<32x128xf32, #tpu.memory_space<vmem>>, vector<1x128xf32>
    %341 = arith.maximumf %339, %340 : vector<1x128xf32>
    %c6_274 = arith.constant 6 : index
    %c0_275 = arith.constant 0 : index
    %342 = vector.load %arg24[%c6_274, %c0_275] : memref<32x128xf32, #tpu.memory_space<vmem>>, vector<1x128xf32>
    %343 = arith.maximumf %341, %342 : vector<1x128xf32>
    %344 = vector.extract_strided_slice %343 {offsets = [0, 0], sizes = [1, 32], strides = [1, 1]} : vector<1x128xf32> to vector<1x32xf32>
    %c2_276 = arith.constant 2 : index
    %c0_277 = arith.constant 0 : index
    %c0_278 = arith.constant 0 : index
    %345 = vector.load %arg12[%c2_276, %c0_277, %c0_278] : memref<13x32x768xbf16, #tpu.memory_space<vmem>>, vector<1x32x768xbf16>
    %346 = vector.shape_cast %345 : vector<1x32x768xbf16> to vector<32x768xbf16>
    %347 = arith.extf %346 : vector<32x768xbf16> to vector<32x768xf32>
    %cst_279 = arith.constant dense<0.000000e+00> : vector<1x768xf32>
    %348 = tpu.matmul %344, %347, %cst_279 {dimension_numbers = #tpu.dot_dimension_numbers<[1], [0], [0], [1], [0, 0, 1, 1], [], []>} : vector<1x32xf32>, vector<32x768xf32>, vector<1x768xf32> -> vector<1x768xf32>
    %349 = arith.addf %338, %348 : vector<1x768xf32>
    %c6_280 = arith.constant 6 : index
    %c0_281 = arith.constant 0 : index
    %350 = vector.load %arg24[%c6_280, %c0_281] : memref<32x128xf32, #tpu.memory_space<vmem>>, vector<1x128xf32>
    %c7_282 = arith.constant 7 : index
    %c0_283 = arith.constant 0 : index
    %351 = vector.load %arg24[%c7_282, %c0_283] : memref<32x128xf32, #tpu.memory_space<vmem>>, vector<1x128xf32>
    %352 = arith.maximumf %350, %351 : vector<1x128xf32>
    %c8_284 = arith.constant 8 : index
    %c0_285 = arith.constant 0 : index
    %353 = vector.load %arg24[%c8_284, %c0_285] : memref<32x128xf32, #tpu.memory_space<vmem>>, vector<1x128xf32>
    %354 = arith.maximumf %352, %353 : vector<1x128xf32>
    %355 = vector.extract_strided_slice %354 {offsets = [0, 0], sizes = [1, 32], strides = [1, 1]} : vector<1x128xf32> to vector<1x32xf32>
    %c3_286 = arith.constant 3 : index
    %c0_287 = arith.constant 0 : index
    %c0_288 = arith.constant 0 : index
    %356 = vector.load %arg12[%c3_286, %c0_287, %c0_288] : memref<13x32x768xbf16, #tpu.memory_space<vmem>>, vector<1x32x768xbf16>
    %357 = vector.shape_cast %356 : vector<1x32x768xbf16> to vector<32x768xbf16>
    %358 = arith.extf %357 : vector<32x768xbf16> to vector<32x768xf32>
    %cst_289 = arith.constant dense<0.000000e+00> : vector<1x768xf32>
    %359 = tpu.matmul %355, %358, %cst_289 {dimension_numbers = #tpu.dot_dimension_numbers<[1], [0], [0], [1], [0, 0, 1, 1], [], []>} : vector<1x32xf32>, vector<32x768xf32>, vector<1x768xf32> -> vector<1x768xf32>
    %360 = arith.addf %349, %359 : vector<1x768xf32>
    %c8_290 = arith.constant 8 : index
    %c0_291 = arith.constant 0 : index
    %361 = vector.load %arg24[%c8_290, %c0_291] : memref<32x128xf32, #tpu.memory_space<vmem>>, vector<1x128xf32>
    %c9 = arith.constant 9 : index
    %c0_292 = arith.constant 0 : index
    %362 = vector.load %arg24[%c9, %c0_292] : memref<32x128xf32, #tpu.memory_space<vmem>>, vector<1x128xf32>
    %363 = arith.maximumf %361, %362 : vector<1x128xf32>
    %c10 = arith.constant 10 : index
    %c0_293 = arith.constant 0 : index
    %364 = vector.load %arg24[%c10, %c0_293] : memref<32x128xf32, #tpu.memory_space<vmem>>, vector<1x128xf32>
    %365 = arith.maximumf %363, %364 : vector<1x128xf32>
    %366 = vector.extract_strided_slice %365 {offsets = [0, 0], sizes = [1, 32], strides = [1, 1]} : vector<1x128xf32> to vector<1x32xf32>
    %c4_294 = arith.constant 4 : index
    %c0_295 = arith.constant 0 : index
    %c0_296 = arith.constant 0 : index
    %367 = vector.load %arg12[%c4_294, %c0_295, %c0_296] : memref<13x32x768xbf16, #tpu.memory_space<vmem>>, vector<1x32x768xbf16>
    %368 = vector.shape_cast %367 : vector<1x32x768xbf16> to vector<32x768xbf16>
    %369 = arith.extf %368 : vector<32x768xbf16> to vector<32x768xf32>
    %cst_297 = arith.constant dense<0.000000e+00> : vector<1x768xf32>
    %370 = tpu.matmul %366, %369, %cst_297 {dimension_numbers = #tpu.dot_dimension_numbers<[1], [0], [0], [1], [0, 0, 1, 1], [], []>} : vector<1x32xf32>, vector<32x768xf32>, vector<1x768xf32> -> vector<1x768xf32>
    %371 = arith.addf %360, %370 : vector<1x768xf32>
    %c10_298 = arith.constant 10 : index
    %c0_299 = arith.constant 0 : index
    %372 = vector.load %arg24[%c10_298, %c0_299] : memref<32x128xf32, #tpu.memory_space<vmem>>, vector<1x128xf32>
    %c11 = arith.constant 11 : index
    %c0_300 = arith.constant 0 : index
    %373 = vector.load %arg24[%c11, %c0_300] : memref<32x128xf32, #tpu.memory_space<vmem>>, vector<1x128xf32>
    %374 = arith.maximumf %372, %373 : vector<1x128xf32>
    %c12 = arith.constant 12 : index
    %c0_301 = arith.constant 0 : index
    %375 = vector.load %arg24[%c12, %c0_301] : memref<32x128xf32, #tpu.memory_space<vmem>>, vector<1x128xf32>
    %376 = arith.maximumf %374, %375 : vector<1x128xf32>
    %377 = vector.extract_strided_slice %376 {offsets = [0, 0], sizes = [1, 32], strides = [1, 1]} : vector<1x128xf32> to vector<1x32xf32>
    %c5_302 = arith.constant 5 : index
    %c0_303 = arith.constant 0 : index
    %c0_304 = arith.constant 0 : index
    %378 = vector.load %arg12[%c5_302, %c0_303, %c0_304] : memref<13x32x768xbf16, #tpu.memory_space<vmem>>, vector<1x32x768xbf16>
    %379 = vector.shape_cast %378 : vector<1x32x768xbf16> to vector<32x768xbf16>
    %380 = arith.extf %379 : vector<32x768xbf16> to vector<32x768xf32>
    %cst_305 = arith.constant dense<0.000000e+00> : vector<1x768xf32>
    %381 = tpu.matmul %377, %380, %cst_305 {dimension_numbers = #tpu.dot_dimension_numbers<[1], [0], [0], [1], [0, 0, 1, 1], [], []>} : vector<1x32xf32>, vector<32x768xf32>, vector<1x768xf32> -> vector<1x768xf32>
    %382 = arith.addf %371, %381 : vector<1x768xf32>
    %c12_306 = arith.constant 12 : index
    %c0_307 = arith.constant 0 : index
    %383 = vector.load %arg24[%c12_306, %c0_307] : memref<32x128xf32, #tpu.memory_space<vmem>>, vector<1x128xf32>
    %c13 = arith.constant 13 : index
    %c0_308 = arith.constant 0 : index
    %384 = vector.load %arg24[%c13, %c0_308] : memref<32x128xf32, #tpu.memory_space<vmem>>, vector<1x128xf32>
    %385 = arith.maximumf %383, %384 : vector<1x128xf32>
    %c14 = arith.constant 14 : index
    %c0_309 = arith.constant 0 : index
    %386 = vector.load %arg24[%c14, %c0_309] : memref<32x128xf32, #tpu.memory_space<vmem>>, vector<1x128xf32>
    %387 = arith.maximumf %385, %386 : vector<1x128xf32>
    %388 = vector.extract_strided_slice %387 {offsets = [0, 0], sizes = [1, 32], strides = [1, 1]} : vector<1x128xf32> to vector<1x32xf32>
    %c6_310 = arith.constant 6 : index
    %c0_311 = arith.constant 0 : index
    %c0_312 = arith.constant 0 : index
    %389 = vector.load %arg12[%c6_310, %c0_311, %c0_312] : memref<13x32x768xbf16, #tpu.memory_space<vmem>>, vector<1x32x768xbf16>
    %390 = vector.shape_cast %389 : vector<1x32x768xbf16> to vector<32x768xbf16>
    %391 = arith.extf %390 : vector<32x768xbf16> to vector<32x768xf32>
    %cst_313 = arith.constant dense<0.000000e+00> : vector<1x768xf32>
    %392 = tpu.matmul %388, %391, %cst_313 {dimension_numbers = #tpu.dot_dimension_numbers<[1], [0], [0], [1], [0, 0, 1, 1], [], []>} : vector<1x32xf32>, vector<32x768xf32>, vector<1x768xf32> -> vector<1x768xf32>
    %393 = arith.addf %382, %392 : vector<1x768xf32>
    %c14_314 = arith.constant 14 : index
    %c0_315 = arith.constant 0 : index
    %394 = vector.load %arg24[%c14_314, %c0_315] : memref<32x128xf32, #tpu.memory_space<vmem>>, vector<1x128xf32>
    %c15 = arith.constant 15 : index
    %c0_316 = arith.constant 0 : index
    %395 = vector.load %arg24[%c15, %c0_316] : memref<32x128xf32, #tpu.memory_space<vmem>>, vector<1x128xf32>
    %396 = arith.maximumf %394, %395 : vector<1x128xf32>
    %c16 = arith.constant 16 : index
    %c0_317 = arith.constant 0 : index
    %397 = vector.load %arg24[%c16, %c0_317] : memref<32x128xf32, #tpu.memory_space<vmem>>, vector<1x128xf32>
    %398 = arith.maximumf %396, %397 : vector<1x128xf32>
    %399 = vector.extract_strided_slice %398 {offsets = [0, 0], sizes = [1, 32], strides = [1, 1]} : vector<1x128xf32> to vector<1x32xf32>
    %c7_318 = arith.constant 7 : index
    %c0_319 = arith.constant 0 : index
    %c0_320 = arith.constant 0 : index
    %400 = vector.load %arg12[%c7_318, %c0_319, %c0_320] : memref<13x32x768xbf16, #tpu.memory_space<vmem>>, vector<1x32x768xbf16>
    %401 = vector.shape_cast %400 : vector<1x32x768xbf16> to vector<32x768xbf16>
    %402 = arith.extf %401 : vector<32x768xbf16> to vector<32x768xf32>
    %cst_321 = arith.constant dense<0.000000e+00> : vector<1x768xf32>
    %403 = tpu.matmul %399, %402, %cst_321 {dimension_numbers = #tpu.dot_dimension_numbers<[1], [0], [0], [1], [0, 0, 1, 1], [], []>} : vector<1x32xf32>, vector<32x768xf32>, vector<1x768xf32> -> vector<1x768xf32>
    %404 = arith.addf %393, %403 : vector<1x768xf32>
    %c16_322 = arith.constant 16 : index
    %c0_323 = arith.constant 0 : index
    %405 = vector.load %arg24[%c16_322, %c0_323] : memref<32x128xf32, #tpu.memory_space<vmem>>, vector<1x128xf32>
    %c17 = arith.constant 17 : index
    %c0_324 = arith.constant 0 : index
    %406 = vector.load %arg24[%c17, %c0_324] : memref<32x128xf32, #tpu.memory_space<vmem>>, vector<1x128xf32>
    %407 = arith.maximumf %405, %406 : vector<1x128xf32>
    %c18 = arith.constant 18 : index
    %c0_325 = arith.constant 0 : index
    %408 = vector.load %arg24[%c18, %c0_325] : memref<32x128xf32, #tpu.memory_space<vmem>>, vector<1x128xf32>
    %409 = arith.maximumf %407, %408 : vector<1x128xf32>
    %410 = vector.extract_strided_slice %409 {offsets = [0, 0], sizes = [1, 32], strides = [1, 1]} : vector<1x128xf32> to vector<1x32xf32>
    %c8_326 = arith.constant 8 : index
    %c0_327 = arith.constant 0 : index
    %c0_328 = arith.constant 0 : index
    %411 = vector.load %arg12[%c8_326, %c0_327, %c0_328] : memref<13x32x768xbf16, #tpu.memory_space<vmem>>, vector<1x32x768xbf16>
    %412 = vector.shape_cast %411 : vector<1x32x768xbf16> to vector<32x768xbf16>
    %413 = arith.extf %412 : vector<32x768xbf16> to vector<32x768xf32>
    %cst_329 = arith.constant dense<0.000000e+00> : vector<1x768xf32>
    %414 = tpu.matmul %410, %413, %cst_329 {dimension_numbers = #tpu.dot_dimension_numbers<[1], [0], [0], [1], [0, 0, 1, 1], [], []>} : vector<1x32xf32>, vector<32x768xf32>, vector<1x768xf32> -> vector<1x768xf32>
    %415 = arith.addf %404, %414 : vector<1x768xf32>
    %c18_330 = arith.constant 18 : index
    %c0_331 = arith.constant 0 : index
    %416 = vector.load %arg24[%c18_330, %c0_331] : memref<32x128xf32, #tpu.memory_space<vmem>>, vector<1x128xf32>
    %c19 = arith.constant 19 : index
    %c0_332 = arith.constant 0 : index
    %417 = vector.load %arg24[%c19, %c0_332] : memref<32x128xf32, #tpu.memory_space<vmem>>, vector<1x128xf32>
    %418 = arith.maximumf %416, %417 : vector<1x128xf32>
    %c20 = arith.constant 20 : index
    %c0_333 = arith.constant 0 : index
    %419 = vector.load %arg24[%c20, %c0_333] : memref<32x128xf32, #tpu.memory_space<vmem>>, vector<1x128xf32>
    %420 = arith.maximumf %418, %419 : vector<1x128xf32>
    %421 = vector.extract_strided_slice %420 {offsets = [0, 0], sizes = [1, 32], strides = [1, 1]} : vector<1x128xf32> to vector<1x32xf32>
    %c9_334 = arith.constant 9 : index
    %c0_335 = arith.constant 0 : index
    %c0_336 = arith.constant 0 : index
    %422 = vector.load %arg12[%c9_334, %c0_335, %c0_336] : memref<13x32x768xbf16, #tpu.memory_space<vmem>>, vector<1x32x768xbf16>
    %423 = vector.shape_cast %422 : vector<1x32x768xbf16> to vector<32x768xbf16>
    %424 = arith.extf %423 : vector<32x768xbf16> to vector<32x768xf32>
    %cst_337 = arith.constant dense<0.000000e+00> : vector<1x768xf32>
    %425 = tpu.matmul %421, %424, %cst_337 {dimension_numbers = #tpu.dot_dimension_numbers<[1], [0], [0], [1], [0, 0, 1, 1], [], []>} : vector<1x32xf32>, vector<32x768xf32>, vector<1x768xf32> -> vector<1x768xf32>
    %426 = arith.addf %415, %425 : vector<1x768xf32>
    %c20_338 = arith.constant 20 : index
    %c0_339 = arith.constant 0 : index
    %427 = vector.load %arg24[%c20_338, %c0_339] : memref<32x128xf32, #tpu.memory_space<vmem>>, vector<1x128xf32>
    %c21 = arith.constant 21 : index
    %c0_340 = arith.constant 0 : index
    %428 = vector.load %arg24[%c21, %c0_340] : memref<32x128xf32, #tpu.memory_space<vmem>>, vector<1x128xf32>
    %429 = arith.maximumf %427, %428 : vector<1x128xf32>
    %c22 = arith.constant 22 : index
    %c0_341 = arith.constant 0 : index
    %430 = vector.load %arg24[%c22, %c0_341] : memref<32x128xf32, #tpu.memory_space<vmem>>, vector<1x128xf32>
    %431 = arith.maximumf %429, %430 : vector<1x128xf32>
    %432 = vector.extract_strided_slice %431 {offsets = [0, 0], sizes = [1, 32], strides = [1, 1]} : vector<1x128xf32> to vector<1x32xf32>
    %c10_342 = arith.constant 10 : index
    %c0_343 = arith.constant 0 : index
    %c0_344 = arith.constant 0 : index
    %433 = vector.load %arg12[%c10_342, %c0_343, %c0_344] : memref<13x32x768xbf16, #tpu.memory_space<vmem>>, vector<1x32x768xbf16>
    %434 = vector.shape_cast %433 : vector<1x32x768xbf16> to vector<32x768xbf16>
    %435 = arith.extf %434 : vector<32x768xbf16> to vector<32x768xf32>
    %cst_345 = arith.constant dense<0.000000e+00> : vector<1x768xf32>
    %436 = tpu.matmul %432, %435, %cst_345 {dimension_numbers = #tpu.dot_dimension_numbers<[1], [0], [0], [1], [0, 0, 1, 1], [], []>} : vector<1x32xf32>, vector<32x768xf32>, vector<1x768xf32> -> vector<1x768xf32>
    %437 = arith.addf %426, %436 : vector<1x768xf32>
    %c22_346 = arith.constant 22 : index
    %c0_347 = arith.constant 0 : index
    %438 = vector.load %arg24[%c22_346, %c0_347] : memref<32x128xf32, #tpu.memory_space<vmem>>, vector<1x128xf32>
    %c23 = arith.constant 23 : index
    %c0_348 = arith.constant 0 : index
    %439 = vector.load %arg24[%c23, %c0_348] : memref<32x128xf32, #tpu.memory_space<vmem>>, vector<1x128xf32>
    %440 = arith.maximumf %438, %439 : vector<1x128xf32>
    %c24_349 = arith.constant 24 : index
    %c0_350 = arith.constant 0 : index
    %441 = vector.load %arg24[%c24_349, %c0_350] : memref<32x128xf32, #tpu.memory_space<vmem>>, vector<1x128xf32>
    %442 = arith.maximumf %440, %441 : vector<1x128xf32>
    %443 = vector.extract_strided_slice %442 {offsets = [0, 0], sizes = [1, 32], strides = [1, 1]} : vector<1x128xf32> to vector<1x32xf32>
    %c11_351 = arith.constant 11 : index
    %c0_352 = arith.constant 0 : index
    %c0_353 = arith.constant 0 : index
    %444 = vector.load %arg12[%c11_351, %c0_352, %c0_353] : memref<13x32x768xbf16, #tpu.memory_space<vmem>>, vector<1x32x768xbf16>
    %445 = vector.shape_cast %444 : vector<1x32x768xbf16> to vector<32x768xbf16>
    %446 = arith.extf %445 : vector<32x768xbf16> to vector<32x768xf32>
    %cst_354 = arith.constant dense<0.000000e+00> : vector<1x768xf32>
    %447 = tpu.matmul %443, %446, %cst_354 {dimension_numbers = #tpu.dot_dimension_numbers<[1], [0], [0], [1], [0, 0, 1, 1], [], []>} : vector<1x32xf32>, vector<32x768xf32>, vector<1x768xf32> -> vector<1x768xf32>
    %448 = arith.addf %437, %447 : vector<1x768xf32>
    %c24_355 = arith.constant 24 : index
    %c0_356 = arith.constant 0 : index
    %449 = vector.load %arg24[%c24_355, %c0_356] : memref<32x128xf32, #tpu.memory_space<vmem>>, vector<1x128xf32>
    %c25 = arith.constant 25 : index
    %c0_357 = arith.constant 0 : index
    %450 = vector.load %arg24[%c25, %c0_357] : memref<32x128xf32, #tpu.memory_space<vmem>>, vector<1x128xf32>
    %451 = arith.maximumf %449, %450 : vector<1x128xf32>
    %c26 = arith.constant 26 : index
    %c0_358 = arith.constant 0 : index
    %452 = vector.load %arg24[%c26, %c0_358] : memref<32x128xf32, #tpu.memory_space<vmem>>, vector<1x128xf32>
    %453 = arith.maximumf %451, %452 : vector<1x128xf32>
    %454 = vector.extract_strided_slice %453 {offsets = [0, 0], sizes = [1, 32], strides = [1, 1]} : vector<1x128xf32> to vector<1x32xf32>
    %c12_359 = arith.constant 12 : index
    %c0_360 = arith.constant 0 : index
    %c0_361 = arith.constant 0 : index
    %455 = vector.load %arg12[%c12_359, %c0_360, %c0_361] : memref<13x32x768xbf16, #tpu.memory_space<vmem>>, vector<1x32x768xbf16>
    %456 = vector.shape_cast %455 : vector<1x32x768xbf16> to vector<32x768xbf16>
    %457 = arith.extf %456 : vector<32x768xbf16> to vector<32x768xf32>
    %cst_362 = arith.constant dense<0.000000e+00> : vector<1x768xf32>
    %458 = tpu.matmul %454, %457, %cst_362 {dimension_numbers = #tpu.dot_dimension_numbers<[1], [0], [0], [1], [0, 0, 1, 1], [], []>} : vector<1x32xf32>, vector<32x768xf32>, vector<1x768xf32> -> vector<1x768xf32>
    %459 = arith.addf %448, %458 : vector<1x768xf32>
    %cst_363 = arith.constant 0.000000e+00 : f32
    %460 = vector.broadcast %cst_363 : f32 to vector<1x768xf32>
    %461 = arith.cmpf ogt, %459, %460 : vector<1x768xf32>
    %cst_364 = arith.constant 0.00999999977 : f32
    %462 = vector.broadcast %cst_364 : f32 to vector<1x768xf32>
    %463 = arith.mulf %462, %459 : vector<1x768xf32>
    %464 = arith.select %461, %459, %463 : vector<1x768xi1>, vector<1x768xf32>
    %c0_365 = arith.constant 0 : index
    %c0_366 = arith.constant 0 : index
    %465 = vector.load %arg14[%c0_365, %c0_366] : memref<768x256xbf16, #tpu.memory_space<vmem>>, vector<768x256xbf16>
    %466 = arith.extf %465 : vector<768x256xbf16> to vector<768x256xf32>
    %cst_367 = arith.constant dense<0.000000e+00> : vector<1x256xf32>
    %467 = tpu.matmul %464, %466, %cst_367 {dimension_numbers = #tpu.dot_dimension_numbers<[1], [0], [0], [1], [0, 0, 1, 1], [], []>} : vector<1x768xf32>, vector<768x256xf32>, vector<1x256xf32> -> vector<1x256xf32>
    %c0_368 = arith.constant 0 : index
    %c0_369 = arith.constant 0 : index
    %468 = vector.load %arg15[%c0_368, %c0_369] : memref<1x256xf32, #tpu.memory_space<vmem>>, vector<1x256xf32>
    %469 = arith.addf %467, %468 : vector<1x256xf32>
    %cst_370 = arith.constant 0.000000e+00 : f32
    %470 = vector.broadcast %cst_370 : f32 to vector<1x256xf32>
    %471 = arith.cmpf ogt, %469, %470 : vector<1x256xf32>
    %cst_371 = arith.constant 0.00999999977 : f32
    %472 = vector.broadcast %cst_371 : f32 to vector<1x256xf32>
    %473 = arith.mulf %472, %469 : vector<1x256xf32>
    %474 = arith.select %471, %469, %473 : vector<1x256xi1>, vector<1x256xf32>
    %c0_372 = arith.constant 0 : index
    %c0_373 = arith.constant 0 : index
    %475 = vector.load %arg16[%c0_372, %c0_373] : memref<256x256xbf16, #tpu.memory_space<vmem>>, vector<256x256xbf16>
    %476 = arith.extf %475 : vector<256x256xbf16> to vector<256x256xf32>
    %cst_374 = arith.constant dense<0.000000e+00> : vector<1x256xf32>
    %477 = tpu.matmul %474, %476, %cst_374 {dimension_numbers = #tpu.dot_dimension_numbers<[1], [0], [0], [1], [0, 0, 1, 1], [], []>} : vector<1x256xf32>, vector<256x256xf32>, vector<1x256xf32> -> vector<1x256xf32>
    %c0_375 = arith.constant 0 : index
    %c0_376 = arith.constant 0 : index
    %478 = vector.load %arg17[%c0_375, %c0_376] : memref<1x256xf32, #tpu.memory_space<vmem>>, vector<1x256xf32>
    %479 = arith.addf %477, %478 : vector<1x256xf32>
    %cst_377 = arith.constant 0.000000e+00 : f32
    %480 = vector.broadcast %cst_377 : f32 to vector<1x256xf32>
    %481 = arith.cmpf ogt, %479, %480 : vector<1x256xf32>
    %cst_378 = arith.constant 0.00999999977 : f32
    %482 = vector.broadcast %cst_378 : f32 to vector<1x256xf32>
    %483 = arith.mulf %482, %479 : vector<1x256xf32>
    %484 = arith.select %481, %479, %483 : vector<1x256xi1>, vector<1x256xf32>
    %c0_379 = arith.constant 0 : index
    %c0_380 = arith.constant 0 : index
    %485 = vector.load %arg18[%c0_379, %c0_380] : memref<256x128xbf16, #tpu.memory_space<vmem>>, vector<256x128xbf16>
    %486 = arith.extf %485 : vector<256x128xbf16> to vector<256x128xf32>
    %cst_381 = arith.constant dense<0.000000e+00> : vector<1x128xf32>
    %487 = tpu.matmul %484, %486, %cst_381 {dimension_numbers = #tpu.dot_dimension_numbers<[1], [0], [0], [1], [0, 0, 1, 1], [], []>} : vector<1x256xf32>, vector<256x128xf32>, vector<1x128xf32> -> vector<1x128xf32>
    %c0_382 = arith.constant 0 : index
    %c0_383 = arith.constant 0 : index
    %488 = vector.load %arg19[%c0_382, %c0_383] : memref<1x128xf32, #tpu.memory_space<vmem>>, vector<1x128xf32>
    %489 = arith.addf %487, %488 : vector<1x128xf32>
    %490 = tpu.iota {dimensions = array<i32: 1>} : vector<1x128xi32>
    %c3_i32 = arith.constant 3 : i32
    %491 = vector.broadcast %c3_i32 : i32 to vector<1x128xi32>
    %492 = arith.cmpi slt, %490, %491 : vector<1x128xi32>
    %cst_384 = arith.constant -1.000000e+30 : f32
    %493 = vector.broadcast %cst_384 : f32 to vector<1x128xf32>
    %494 = arith.select %492, %489, %493 : vector<1x128xi1>, vector<1x128xf32>
    %cst_385 = arith.constant dense<0xFF800000> : vector<1xf32>
    %495 = vector.multi_reduction <maximumf>, %494, %cst_385 [1] : vector<1x128xf32> to vector<1xf32>
    %496 = vector.shape_cast %495 : vector<1xf32> to vector<1x1xf32>
    %497 = vector.broadcast %496 : vector<1x1xf32> to vector<1x128xf32>
    %498 = arith.subf %494, %497 : vector<1x128xf32>
    %499 = math.exp %498 : vector<1x128xf32>
    %cst_386 = arith.constant dense<0.000000e+00> : vector<1xf32>
    %500 = vector.multi_reduction <add>, %499, %cst_386 [1] : vector<1x128xf32> to vector<1xf32>
    %501 = vector.shape_cast %500 : vector<1xf32> to vector<1x1xf32>
    %502 = tpu.reciprocal %501 {approx = true} : vector<1x1xf32> -> vector<1x1xf32>
    %503 = vector.broadcast %502 : vector<1x1xf32> to vector<1x128xf32>
    %504 = arith.mulf %499, %503 : vector<1x128xf32>
    %c0_387 = arith.constant 0 : index
    %c0_388 = arith.constant 0 : index
    %c0_389 = arith.constant 0 : index
    %505 = vector.load %arg20[%c0_387, %c0_388, %c0_389] : memref<1x1x128xf32, #tpu.memory_space<vmem>>, vector<1x1x128xf32>
    %506 = vector.shape_cast %505 : vector<1x1x128xf32> to vector<1x128xf32>
    %507 = vector.shape_cast %504 : vector<1x128xf32> to vector<1x1x128xf32>
    tpu.vector_store %arg20[%c0_387, %c0_388, %c0_389], %507 {strides = array<i32>} : memref<1x1x128xf32, #tpu.memory_space<vmem>>, vector<1x1x128xf32>,
    return
  }
  func.func @transform_0(%arg0: i32) -> (i32, i32, i32) {
    %c0_i32 = arith.constant 0 : i32
    %c0_i32_0 = arith.constant 0 : i32
    %c0_i32_1 = arith.constant 0 : i32
    return %arg0, %c0_i32, %c0_i32_0 : i32, i32, i32
  }
  func.func @transform_1(%arg0: i32) -> (i32, i32) {
    %c0_i32 = arith.constant 0 : i32
    %c0_i32_0 = arith.constant 0 : i32
    %c0_i32_1 = arith.constant 0 : i32
    return %c0_i32, %c0_i32_0 : i32, i32
  }
  func.func @transform_2(%arg0: i32) -> (i32, i32) {
    %c0_i32 = arith.constant 0 : i32
    %c0_i32_0 = arith.constant 0 : i32
    %c0_i32_1 = arith.constant 0 : i32
    return %c0_i32, %c0_i32_0 : i32, i32
  }
  func.func @transform_3(%arg0: i32) -> (i32, i32) {
    %c0_i32 = arith.constant 0 : i32
    %c0_i32_0 = arith.constant 0 : i32
    %c0_i32_1 = arith.constant 0 : i32
    return %c0_i32, %c0_i32_0 : i32, i32
  }
  func.func @transform_4(%arg0: i32) -> (i32, i32) {
    %c0_i32 = arith.constant 0 : i32
    %c0_i32_0 = arith.constant 0 : i32
    %c0_i32_1 = arith.constant 0 : i32
    return %c0_i32, %c0_i32_0 : i32, i32
  }
  func.func @transform_5(%arg0: i32) -> (i32, i32, i32) {
    %c0_i32 = arith.constant 0 : i32
    %c0_i32_0 = arith.constant 0 : i32
    %c0_i32_1 = arith.constant 0 : i32
    %c0_i32_2 = arith.constant 0 : i32
    return %c0_i32, %c0_i32_0, %c0_i32_1 : i32, i32, i32
  }
  func.func @transform_6(%arg0: i32) -> (i32, i32) {
    %c0_i32 = arith.constant 0 : i32
    %c0_i32_0 = arith.constant 0 : i32
    %c0_i32_1 = arith.constant 0 : i32
    return %c0_i32, %c0_i32_0 : i32, i32
  }
  func.func @transform_7(%arg0: i32) -> (i32, i32) {
    %c0_i32 = arith.constant 0 : i32
    %c0_i32_0 = arith.constant 0 : i32
    %c0_i32_1 = arith.constant 0 : i32
    return %c0_i32, %c0_i32_0 : i32, i32
  }
  func.func @transform_8(%arg0: i32) -> (i32, i32) {
    %c0_i32 = arith.constant 0 : i32
    %c0_i32_0 = arith.constant 0 : i32
    %c0_i32_1 = arith.constant 0 : i32
    return %c0_i32, %c0_i32_0 : i32, i32
  }
  func.func @transform_9(%arg0: i32) -> (i32, i32, i32) {
    %c0_i32 = arith.constant 0 : i32
    %c0_i32_0 = arith.constant 0 : i32
    %c0_i32_1 = arith.constant 0 : i32
    %c0_i32_2 = arith.constant 0 : i32
    return %c0_i32, %c0_i32_0, %c0_i32_1 : i32, i32, i32
  }
  func.func @transform_10(%arg0: i32) -> (i32, i32) {
    %c0_i32 = arith.constant 0 : i32
    %c0_i32_0 = arith.constant 0 : i32
    %c0_i32_1 = arith.constant 0 : i32
    return %c0_i32, %c0_i32_0 : i32, i32
  }
  func.func @transform_11(%arg0: i32) -> (i32, i32, i32) {
    %c0_i32 = arith.constant 0 : i32
    %c0_i32_0 = arith.constant 0 : i32
    %c0_i32_1 = arith.constant 0 : i32
    %c0_i32_2 = arith.constant 0 : i32
    return %c0_i32, %c0_i32_0, %c0_i32_1 : i32, i32, i32
  }
  func.func @transform_12(%arg0: i32) -> (i32, i32) {
    %c0_i32 = arith.constant 0 : i32
    %c0_i32_0 = arith.constant 0 : i32
    %c0_i32_1 = arith.constant 0 : i32
    return %c0_i32, %c0_i32_0 : i32, i32
  }
  func.func @transform_13(%arg0: i32) -> (i32, i32) {
    %c0_i32 = arith.constant 0 : i32
    %c0_i32_0 = arith.constant 0 : i32
    %c0_i32_1 = arith.constant 0 : i32
    return %c0_i32, %c0_i32_0 : i32, i32
  }
  func.func @transform_14(%arg0: i32) -> (i32, i32) {
    %c0_i32 = arith.constant 0 : i32
    %c0_i32_0 = arith.constant 0 : i32
    %c0_i32_1 = arith.constant 0 : i32
    return %c0_i32, %c0_i32_0 : i32, i32
  }
  func.func @transform_15(%arg0: i32) -> (i32, i32) {
    %c0_i32 = arith.constant 0 : i32
    %c0_i32_0 = arith.constant 0 : i32
    %c0_i32_1 = arith.constant 0 : i32
    return %c0_i32, %c0_i32_0 : i32, i32
  }
  func.func @transform_16(%arg0: i32) -> (i32, i32) {
    %c0_i32 = arith.constant 0 : i32
    %c0_i32_0 = arith.constant 0 : i32
    %c0_i32_1 = arith.constant 0 : i32
    return %c0_i32, %c0_i32_0 : i32, i32
  }
  func.func @transform_17(%arg0: i32) -> (i32, i32) {
    %c0_i32 = arith.constant 0 : i32
    %c0_i32_0 = arith.constant 0 : i32
    %c0_i32_1 = arith.constant 0 : i32
    return %c0_i32, %c0_i32_0 : i32, i32
  }
  func.func @transform_18(%arg0: i32) -> (i32, i32) {
    %c0_i32 = arith.constant 0 : i32
    %c0_i32_0 = arith.constant 0 : i32
    %c0_i32_1 = arith.constant 0 : i32
    return %c0_i32, %c0_i32_0 : i32, i32
  }
  func.func @transform_19(%arg0: i32) -> (i32, i32, i32) {
    %c0_i32 = arith.constant 0 : i32
    %c0_i32_0 = arith.constant 0 : i32
    %c0_i32_1 = arith.constant 0 : i32
    return %arg0, %c0_i32, %c0_i32_0 : i32, i32, i32
  }
}

</mosaic_0001>

<bundles_post_ra>
// kernel: convnet_forward.1
= control target key start
LH: loop header
LB: loop body
LE: loop exit
PB: predicated region body
PF: predicated region fallthrough
CT: control target
= control target key end

     0   :  { %s22379_s0 = inlined_call_operand.vmem [shape: f32[2,848,128], index: 0, kind: input, shape index: {}]   ;;  %s22380_s1 = inlined_call_operand.vmem [shape: bf16[128,128], index: 1, kind: input, shape index: {}]   ;;  %s22381_s2 = inlined_call_operand.vmem [shape: f32[1,128], index: 2, kind: input, shape index: {}]   ;;  %s22382_s3 = inlined_call_operand.vmem [shape: f32[1,128], index: 3, kind: input, shape index: {}]   ;;  %s22383_s4 = inlined_call_operand.vmem [shape: f32[1,128], index: 4, kind: input, shape index: {}]   ;;  %s22384_s5 = inlined_call_operand.vmem [shape: bf16[5,128,128], index: 5, kind: input, shape index: {}]   ;;  %s22385_s6 = inlined_call_operand.vmem [shape: f32[1,128], index: 6, kind: input, shape index: {}]   ;;  %s22386_s7 = inlined_call_operand.vmem [shape: f32[1,128], index: 7, kind: input, shape index: {}]   ;;  %s22387_s8 = inlined_call_operand.vmem [shape: f32[1,128], index: 8, kind: input, shape index: {}]   ;;  %s22388_s9 = inlined_call_operand.vmem [shape: bf16[9,128,128], index: 9, kind: input, shape index: {}]   ;;  %s22389_s10 = inlined_call_operand.vmem [shape: f32[1,128], index: 10, kind: input, shape index: {}]   ;;  %s22390_s11 = inlined_call_operand.vmem [shape: bf16[13,32,768], index: 11, kind: input, shape index: {}]   ;;  %s22391_s12 = inlined_call_operand.vmem [shape: f32[1,768], index: 12, kind: input, shape index: {}]   ;;  %s22392_s13 = inlined_call_operand.vmem [shape: bf16[768,256], index: 13, kind: input, shape index: {}]   ;;  %s22393_s14 = inlined_call_operand.vmem [shape: f32[1,256], index: 14, kind: input, shape index: {}]   ;;  %s22394_s15 = inlined_call_operand.vmem [shape: bf16[256,256], index: 15, kind: input, shape index: {}]   ;;  %s22395_s16 = inlined_call_operand.vmem [shape: f32[1,256], index: 16, kind: input, shape index: {}]   ;;  %s22396_s17 = inlined_call_operand.vmem [shape: bf16[256,128], index: 17, kind: input, shape index: {}]   ;;  %s22397_s18 = inlined_call_operand.vmem [shape: f32[1,128], index: 18, kind: input, shape index: {}]   ;;  %s22398_s19 = inlined_call_operand.hbm [shape: f32[2,1,128], index: 19, kind: output, shape index: {}]  }
   0x1   :  { %22417 = sst [smem:[#allocation49_spill]] %s22379_s0 }
   0x2   :  { %22418 = sst [smem:[#allocation50_spill]] %s22380_s1 }
   0x3   :  { %22419 = sst [smem:[#allocation51_spill]] %s22381_s2 }
   0x4   :  { %22420 = sst [smem:[#allocation52_spill]] %s22382_s3 }
   0x5   :  { %22421 = sst [smem:[#allocation53_spill]] %s22383_s4 }
   0x6   :  { %22422 = sst [smem:[#allocation54_spill]] %s22384_s5 }
   0x7   :  { %22423 = sst [smem:[#allocation55_spill]] %s22385_s6 }
   0x8   :  { %22424 = sst [smem:[#allocation56_spill]] %s22386_s7 }
   0x9   :  { %22425 = sst [smem:[#allocation57_spill]] %s22387_s8 }
   0xa   :  { %22426 = sst [smem:[#allocation58_spill]] %s22388_s9 }
   0xb   :  { %22427 = sst [smem:[#allocation59_spill]] %s22389_s10 }
   0xc   :  { %22428 = sst [smem:[#allocation60_spill]] %s22390_s11 }
   0xd   :  { %24 = vsyncpa [#allocation7], 0 }
   0xe   :  { %26 = vsyncpa [#allocation7 + $0x1], 0  ;;  %s17776_s0 = smov 0   ;;  %s17778_s30 = smov 0  }
   0xf   :  { %s17780_s20 = smov 0   ;;  %s17782_s21 = smov 0  }
  0x10 LB: > { %s17797_s1 = sadd.s32 4294967295, %s17670_s21   ;;  %s12627_s22 = sadd.s32 4294967294, %s17670_s21   ;;  %s17670_s21 = sphi %s17782_s21, %s22546_s21   ;;  %s17666_s20 = sphi %s17780_s20, %s22545_s20   ;;  %s17662_s30 = sphi %s17778_s30, %s22544_s30   ;;  %s17658_s0 = sphi %s17776_s0, %s22543_s0  }
  0x11   : > { %s17801_s2 = sadd.s32 1, %s17670_s21   ;;  %s443_s23 = sadd.s32 1, %s17666_s20 }
  0x12   : > { %s440_s24 = ssub.s32 %s17670_s21, %s17801_s2  ;;  %p453_p0 = scmp.ne.s32.totalorder %s17666_s20, %s17662_s30 }
  0x13   : > { %p441_p1 = scmp.eq.s32.totalorder %s440_s24, 0  ;;  %p454_p2 = scmp.eq.s32.totalorder %s17797_s1, 1 }
  0x14   : > { %p459_p3 = scmp.ne.s32.totalorder %s17662_s30, %s17658_s0  ;;  %p460_p4 = scmp.eq.s32.totalorder %s12627_s22, 1 }
  0x15   : > { %s17812_s25 = scalar_select %p441_p1, %s17666_s20, %s443_s23  }
  0x16   : > { %p17814_p5 = por %p454_p2, %p453_p0  ;;  %p17818_p6 = por %p460_p4, %p459_p3 }
  0x17   : > { %p12630_p7 = scmp.ge.s32.totalorder %s17670_s21, 1  ;;  %p540_p8 = scmp.lt.s32.totalorder %s17670_s21, 3 }
  0x19   : > { %p541_p9 = pnand %p12630_p7, %p540_p8 }
  0x1b   : > { %544 = sbr.rel (%p541_p9) target bundleno = 2714 (0xa9a), region = 96 }
  0x20   : > { %s22431_s29 = sld [smem:[#allocation50_spill]]  ;;  %p595_p10 = scmp.lt.s32.totalorder %s17797_s1, 1  ;;  %vm17673_vm0 = vmmov 0   ;;  %vm6386_vm1 = vcmask 1046528   ;;  %vm7744_vm2 = vcmask 261120   ;;  %vm12546_vm9 = vcmask 1040384  }
  0x21   : > { %s22432_s27 = sld [smem:[#allocation49_spill]] }
  0x22   : > { %s596_s23 = scalar_select %p595_p10, %s17797_s1, 1 }
  0x23   : > { %s22433_s5 = sld [smem:[#allocation54_spill]] }
  0x24   : > { %s17534_s24 = smul.u32 848, %s596_s23  ;;  %s22436_s4 = sld [smem:[#allocation53_spill]] }
  0x25   : > { %s22478_s6 = sld [smem:[#allocation55_spill]] }
  0x26   : > { %v14431_v0 = vld [vmem:[%s22431_s29 + $0x38] sm:$0xff]   ;;  %v14430_v1 = vld [vmem:[%s22431_s29 + $0x30] sm:$0xff]   ;;  %v14429_v5 = vld [vmem:[%s22431_s29 + $0x28] sm:$0xff]   ;;  %s22498_s7 = sld [smem:[#allocation56_spill]] }
  0x27   : > { %v17830_v2 = vunpack.c.l.bf16 %v14431_v0  ;;  %v17832_v3 = vunpack.c.h.bf16 %v14431_v0  ;;  %v17836_v4 = vunpack.c.h.bf16 %v14430_v1  ;;  %v17845_v6 = vunpack.c.l.bf16 %v14430_v1  ;;  %v14428_v8 = vld [vmem:[%s22431_s29 + $0x20] sm:$0xff]   ;;  %v14427_v11 = vld [vmem:[%s22431_s29 + $0x18] sm:$0xff]   ;;  %v14426_v14 = vld [vmem:[%s22431_s29 + $0x10] sm:$0xff]   ;;  %s17935_s28 = scalar_lea.vmem %s22432_s27, %s17534_s24  ;;  %s22434_s24 = sld [smem:[#allocation51_spill]] }
  0x28   : > { %v17851_v7 = vunpack.c.h.bf16 %v14429_v5  ;;  %v17860_v9 = vunpack.c.l.bf16 %v14429_v5  ;;  %v17866_v10 = vunpack.c.h.bf16 %v14428_v8  ;;  %v17875_v12 = vunpack.c.l.bf16 %v14428_v8  ;;  %v14425_v17 = vld [vmem:[%s22431_s29 + $0x8] sm:$0xff]   ;;  %v13210_v20 = vld [vmem:[%s22431_s29] sm:$0xff]   ;;  %v612_v28 = vld [vmem:[%s17935_s28 + $0x10] sm:$0xff]  ;;  %s22503_s8 = sld [smem:[#allocation57_spill]]  ;;  %s593_s27 = sand.u32 1, %s17662_s30  }
  0x29   : > { %15734 = vmatprep.subr.mxu0 %v17832_v3  ;;  %15790 = vmatprep.subr.mxu1 %v17832_v3  ;;  %v17881_v13 = vunpack.c.h.bf16 %v14427_v11  ;;  %v17891_v15 = vunpack.c.l.bf16 %v14427_v11  ;;  %v17897_v16 = vunpack.c.h.bf16 %v14426_v14  ;;  %v17907_v18 = vunpack.c.l.bf16 %v14426_v14  ;;  %v610_v24 = vld [vmem:[%s17935_s28] sm:$0xff]  ;;  %v611_v26 = vld [vmem:[%s17935_s28 + $0x8] sm:$0xff]  ;;  %v887_v29 = vld [vmem:[%s17935_s28 + $0x90] sm:$0xff]  ;;  %s22526_s9 = sld [smem:[#allocation58_spill]]  ;;  %s12560_s23 = scalar_lea.sflag [#allocation7], %s593_s27 }
  0x2a   : > { %15735 = vmatpush3.msra.mxu0 %v17832_v3  ;;  %15791 = vmatpush3.msra.mxu1 %v17832_v3  ;;  %v17913_v19 = vunpack.c.h.bf16 %v14425_v17  ;;  %v17922_v21 = vunpack.c.l.bf16 %v14425_v17  ;;  %v17928_v22 = vunpack.c.h.bf16 %v13210_v20  ;;  %v17939_v23 = vunpack.c.l.bf16 %v13210_v20  ;;  %v885_v25 = vld [vmem:[%s17935_s28 + $0x80] sm:$0xff]  ;;  %v886_v27 = vld [vmem:[%s17935_s28 + $0x88] sm:$0xff]  ;;  %v613_v30 = vld [vmem:[%s17935_s28 + $0x18] sm:$0xff]  ;;  %s22540_s11 = sld [smem:[#allocation60_spill]] }
  0x2b   : > { %15736 = vmatprep.subr.mxu0 %v17830_v2  ;;  %15792 = vmatprep.subr.mxu1 %v17830_v2  ;;  %v888_v31 = vld [vmem:[%s17935_s28 + $0x98] sm:$0xff]  ;;  %v614_v32 = vld [vmem:[%s17935_s28 + $0x20] sm:$0xff]  ;;  %v615_v34 = vld [vmem:[%s17935_s28 + $0x28] sm:$0xff]  ;;  %s22541_s10 = sld [smem:[#allocation59_spill]] }
  0x2c   : > { %15737 = vmatpush3.msra.mxu0 %v17830_v2  ;;  %15793 = vmatpush3.msra.mxu1 %v17830_v2  ;;  %v889_v33 = vld [vmem:[%s17935_s28 + $0xa0] sm:$0xff]  ;;  %v890_v35 = vld [vmem:[%s17935_s28 + $0xa8] sm:$0xff]  ;;  %v616_v36 = vld [vmem:[%s17935_s28 + $0x30] sm:$0xff] }
  0x2d   : > { %15738 = vmatprep.subr.mxu0 %v17836_v4  ;;  %15794 = vmatprep.subr.mxu1 %v17836_v4  ;;  %v891_v37 = vld [vmem:[%s17935_s28 + $0xb0] sm:$0xff]  ;;  %v617_v38 = vld [vmem:[%s17935_s28 + $0x38] sm:$0xff]  ;;  %v618_v40 = vld [vmem:[%s17935_s28 + $0x40] sm:$0xff] }
  0x2e   : > { %15739 = vmatpush3.msra.mxu0 %v17836_v4  ;;  %15795 = vmatpush3.msra.mxu1 %v17836_v4  ;;  %v892_v39 = vld [vmem:[%s17935_s28 + $0xb8] sm:$0xff]  ;;  %v893_v41 = vld [vmem:[%s17935_s28 + $0xc0] sm:$0xff]  ;;  %v619_v42 = vld [vmem:[%s17935_s28 + $0x48] sm:$0xff] }
  0x2f   : > { %15740 = vmatprep.subr.mxu0 %v17845_v6  ;;  %15796 = vmatprep.subr.mxu1 %v17845_v6  ;;  %v894_v43 = vld [vmem:[%s17935_s28 + $0xc8] sm:$0xff]  ;;  %v620_v44 = vld [vmem:[%s17935_s28 + $0x50] sm:$0xff]  ;;  %v621_v46 = vld [vmem:[%s17935_s28 + $0x58] sm:$0xff] }
  0x30   : > { %15741 = vmatpush3.msra.mxu0 %v17845_v6  ;;  %15797 = vmatpush3.msra.mxu1 %v17845_v6  ;;  %v895_v45 = vld [vmem:[%s17935_s28 + $0xd0] sm:$0xff]  ;;  %v896_v47 = vld [vmem:[%s17935_s28 + $0xd8] sm:$0xff]  ;;  %v622_v48 = vld [vmem:[%s17935_s28 + $0x60] sm:$0xff] }
  0x31   : > { %15742 = vmatprep.subr.mxu0 %v17851_v7  ;;  %15798 = vmatprep.subr.mxu1 %v17851_v7  ;;  %v897_v49 = vld [vmem:[%s17935_s28 + $0xe0] sm:$0xff]  ;;  %v623_v50 = vld [vmem:[%s17935_s28 + $0x68] sm:$0xff]  ;;  %v624_v52 = vld [vmem:[%s17935_s28 + $0x70] sm:$0xff] }
  0x32   : > { %15743 = vmatpush3.msra.mxu0 %v17851_v7  ;;  %15799 = vmatpush3.msra.mxu1 %v17851_v7  ;;  %v898_v51 = vld [vmem:[%s17935_s28 + $0xe8] sm:$0xff]  ;;  %v899_v53 = vld [vmem:[%s17935_s28 + $0xf0] sm:$0xff]  ;;  %v625_v54 = vld [vmem:[%s17935_s28 + $0x78] sm:$0xff] }
  0x33   : > { %15744 = vmatprep.subr.mxu0 %v17860_v9  ;;  %15800 = vmatprep.subr.mxu1 %v17860_v9  ;;  %v900_v55 = vld [vmem:[%s17935_s28 + $0xf8] sm:$0xff]  ;;  %v1142_v56 = vld [vmem:[%s17935_s28 + $0x100] sm:$0xff]  ;;  %v1143_v58 = vld [vmem:[%s17935_s28 + $0x108] sm:$0xff] }
  0x34   : > { %15745 = vmatpush3.msra.mxu0 %v17860_v9  ;;  %15801 = vmatpush3.msra.mxu1 %v17860_v9  ;;  %v1399_v57 = vld [vmem:[%s17935_s28 + $0x180] sm:$0xff]  ;;  %v1400_v59 = vld [vmem:[%s17935_s28 + $0x188] sm:$0xff]  ;;  %v1144_v60 = vld [vmem:[%s17935_s28 + $0x110] sm:$0xff] }
  0x35   : > { %15746 = vmatprep.subr.mxu0 %v17866_v10  ;;  %15802 = vmatprep.subr.mxu1 %v17866_v10  ;;  %v1401_v61 = vld [vmem:[%s17935_s28 + $0x190] sm:$0xff]  ;;  %v1402_v62 = vld [vmem:[%s17935_s28 + $0x198] sm:$0xff]  ;;  %v1146_v0 = vld [vmem:[%s17935_s28 + $0x120] sm:$0xff] }
  0x36   : > { %15747 = vmatpush3.msra.mxu0 %v17866_v10  ;;  %15803 = vmatpush3.msra.mxu1 %v17866_v10  ;;  %v1145_v63 = vld [vmem:[%s17935_s28 + $0x118] sm:$0xff]  ;;  %v1403_v1 = vld [vmem:[%s17935_s28 + $0x1a0] sm:$0xff]  ;;  %v1404_v5 = vld [vmem:[%s17935_s28 + $0x1a8] sm:$0xff] }
  0x37   : > { %15748 = vmatprep.subr.mxu0 %v17875_v12  ;;  %15804 = vmatprep.subr.mxu1 %v17875_v12  ;;  %v1147_v8 = vld [vmem:[%s17935_s28 + $0x128] sm:$0xff]  ;;  %v1148_v11 = vld [vmem:[%s17935_s28 + $0x130] sm:$0xff]  ;;  %v1406_v17 = vld [vmem:[%s17935_s28 + $0x1b8] sm:$0xff] }
  0x38   : > { %15749 = vmatpush3.msra.mxu0 %v17875_v12  ;;  %15805 = vmatpush3.msra.mxu1 %v17875_v12  ;;  %v1405_v14 = vld [vmem:[%s17935_s28 + $0x1b0] sm:$0xff]  ;;  %v1149_v20 = vld [vmem:[%s17935_s28 + $0x138] sm:$0xff] }
  0x39   : > { %15750 = vmatprep.subr.mxu0 %v17881_v13  ;;  %15806 = vmatprep.subr.mxu1 %v17881_v13 }
  0x3a   : > { %15751 = vmatpush3.msra.mxu0 %v17881_v13  ;;  %15807 = vmatpush3.msra.mxu1 %v17881_v13 }
  0x3b   : > { %15752 = vmatprep.subr.mxu0 %v17891_v15  ;;  %15808 = vmatprep.subr.mxu1 %v17891_v15 }
  0x3c   : > { %15753 = vmatpush3.msra.mxu0 %v17891_v15  ;;  %15809 = vmatpush3.msra.mxu1 %v17891_v15 }
  0x3d   : > { %15754 = vmatprep.subr.mxu0 %v17897_v16  ;;  %15810 = vmatprep.subr.mxu1 %v17897_v16 }
  0x3e   : > { %15755 = vmatpush3.msra.mxu0 %v17897_v16  ;;  %15811 = vmatpush3.msra.mxu1 %v17897_v16 }
  0x3f   : > { %15756 = vmatprep.subr.mxu0 %v17907_v18  ;;  %15812 = vmatprep.subr.mxu1 %v17907_v18 }
  0x40   : > { %15757 = vmatpush3.msra.mxu0 %v17907_v18  ;;  %15813 = vmatpush3.msra.mxu1 %v17907_v18 }
  0x41   : > { %15758 = vmatprep.subr.mxu0 %v17913_v19  ;;  %15814 = vmatprep.subr.mxu1 %v17913_v19 }
  0x42   : > { %15759 = vmatpush3.msra.mxu0 %v17913_v19  ;;  %15815 = vmatpush3.msra.mxu1 %v17913_v19 }
  0x43   : > { %15760 = vmatprep.subr.mxu0 %v17922_v21  ;;  %15816 = vmatprep.subr.mxu1 %v17922_v21 }
  0x44   : > { %15761 = vmatpush3.msra.mxu0 %v17922_v21  ;;  %15817 = vmatpush3.msra.mxu1 %v17922_v21 }
  0x45   : > { %15762 = vmatprep.subr.mxu0 %v17928_v22  ;;  %15818 = vmatprep.subr.mxu1 %v17928_v22 }
  0x46   : > { %15763 = vmatpush3.msra.mxu0 %v17928_v22  ;;  %15819 = vmatpush3.msra.mxu1 %v17928_v22 }
  0x47   : > { %15764 = vmatprep.subr.mxu0 %v17939_v23  ;;  %15820 = vmatprep.subr.mxu1 %v17939_v23 }
  0x48   : > { %15765 = vmatpush3.msra.mxu0 %v17939_v23  ;;  %15766 = vmatprep.mubr.f32.mxu0 %v610_v24  ;;  %v1150_v24 = vld [vmem:[%s17935_s28 + $0x140] sm:$0xff] }
  0x49   : > { %15821 = vmatpush3.msra.mxu1 %v17939_v23  ;;  %15822 = vmatprep.mubr.f32.mxu1 %v885_v25  ;;  %v1407_v25 = vld [vmem:[%s17935_s28 + $0x1c0] sm:$0xff] }
  0x4a   : > { %15767 = vmatmul.mubr.f32.vlgmr.msra.gmra.mxu0 %v611_v26  ;;  %15823 = vmatmul.mubr.f32.vlgmr.msra.gmra.mxu1 %v886_v27  ;;  %v1408_v26 = vld [vmem:[%s17935_s28 + $0x1c8] sm:$0xff] }
  0x4b   : > { %15846 = vmatprep.subr.mxu0 %v17832_v3  ;;  %15902 = vmatprep.subr.mxu1 %v17832_v3  ;;  %v1151_v27 = vld [vmem:[%s17935_s28 + $0x148] sm:$0xff] }
  0x4c   : > { %15847 = vmatpush3.msra.mxu0 %v17832_v3  ;;  %15903 = vmatpush3.msra.mxu1 %v17832_v3 }
  0x4d   : > { %15848 = vmatprep.subr.mxu0 %v17830_v2  ;;  %15904 = vmatprep.subr.mxu1 %v17830_v2 }
  0x4e   : > { %15769 = vmatprep.mubr.f32.mxu0 %v612_v28  ;;  %15825 = vmatprep.mubr.f32.mxu1 %v887_v29  ;;  %v1152_v28 = vld [vmem:[%s17935_s28 + $0x150] sm:$0xff] }
  0x4f   : > { %15849 = vmatpush3.msra.mxu0 %v17830_v2  ;;  %15905 = vmatpush3.msra.mxu1 %v17830_v2  ;;  %v1409_v29 = vld [vmem:[%s17935_s28 + $0x1d0] sm:$0xff] }
  0x50   : > { %15770 = vmatmul.mubr.f32.gmra.mxu0 %v613_v30  ;;  %15826 = vmatmul.mubr.f32.gmra.mxu1 %v888_v31  ;;  %v1410_v30 = vld [vmem:[%s17935_s28 + $0x1d8] sm:$0xff] }
  0x51   : > { %15850 = vmatprep.subr.mxu0 %v17836_v4  ;;  %15906 = vmatprep.subr.mxu1 %v17836_v4  ;;  %v1153_v31 = vld [vmem:[%s17935_s28 + $0x158] sm:$0xff] }
  0x52   : > { %15851 = vmatpush3.msra.mxu0 %v17836_v4  ;;  %15907 = vmatpush3.msra.mxu1 %v17836_v4 }
  0x53   : > { %15852 = vmatprep.subr.mxu0 %v17845_v6  ;;  %15908 = vmatprep.subr.mxu1 %v17845_v6 }
  0x54   : > { %15772 = vmatprep.mubr.f32.mxu0 %v614_v32  ;;  %15828 = vmatprep.mubr.f32.mxu1 %v889_v33  ;;  %v1154_v32 = vld [vmem:[%s17935_s28 + $0x160] sm:$0xff] }
  0x55   : > { %15853 = vmatpush3.msra.mxu0 %v17845_v6  ;;  %15909 = vmatpush3.msra.mxu1 %v17845_v6  ;;  %v1411_v33 = vld [vmem:[%s17935_s28 + $0x1e0] sm:$0xff] }
  0x56   : > { %15773 = vmatmul.mubr.f32.gmra.mxu0 %v615_v34  ;;  %15829 = vmatmul.mubr.f32.gmra.mxu1 %v890_v35  ;;  %v1412_v34 = vld [vmem:[%s17935_s28 + $0x1e8] sm:$0xff] }
  0x57   : > { %15854 = vmatprep.subr.mxu0 %v17851_v7  ;;  %15910 = vmatprep.subr.mxu1 %v17851_v7  ;;  %v1155_v35 = vld [vmem:[%s17935_s28 + $0x168] sm:$0xff] }
  0x58   : > { %15855 = vmatpush3.msra.mxu0 %v17851_v7  ;;  %15911 = vmatpush3.msra.mxu1 %v17851_v7 }
  0x59   : > { %15856 = vmatprep.subr.mxu0 %v17860_v9  ;;  %15912 = vmatprep.subr.mxu1 %v17860_v9 }
  0x5a   : > { %15775 = vmatprep.mubr.f32.mxu0 %v616_v36  ;;  %15831 = vmatprep.mubr.f32.mxu1 %v891_v37  ;;  %v1156_v36 = vld [vmem:[%s17935_s28 + $0x170] sm:$0xff] }
  0x5b   : > { %15857 = vmatpush3.msra.mxu0 %v17860_v9  ;;  %15913 = vmatpush3.msra.mxu1 %v17860_v9  ;;  %v1413_v37 = vld [vmem:[%s17935_s28 + $0x1f0] sm:$0xff] }
  0x5c   : > { %15776 = vmatmul.mubr.f32.gmra.mxu0 %v617_v38  ;;  %15832 = vmatmul.mubr.f32.gmra.mxu1 %v892_v39  ;;  %v1414_v38 = vld [vmem:[%s17935_s28 + $0x1f8] sm:$0xff] }
  0x5d   : > { %15858 = vmatprep.subr.mxu0 %v17866_v10  ;;  %15914 = vmatprep.subr.mxu1 %v17866_v10  ;;  %v1157_v39 = vld [vmem:[%s17935_s28 + $0x178] sm:$0xff] }
  0x5e   : > { %15859 = vmatpush3.msra.mxu0 %v17866_v10  ;;  %15915 = vmatpush3.msra.mxu1 %v17866_v10 }
  0x5f   : > { %15860 = vmatprep.subr.mxu0 %v17875_v12  ;;  %15916 = vmatprep.subr.mxu1 %v17875_v12 }
  0x60   : > { %15778 = vmatprep.mubr.f32.mxu0 %v618_v40  ;;  %15834 = vmatprep.mubr.f32.mxu1 %v893_v41  ;;  %v1656_v40 = vld [vmem:[%s17935_s28 + $0x200] sm:$0xff]  ;;  %v14473_v41 = vld [vmem:[%s22431_s29 + $0x38] sm:$0xff]   ;;  %s22435_s29 = sld [smem:[#allocation52_spill]] }
  0x61   : > { %15861 = vmatpush3.msra.mxu0 %v17875_v12  ;;  %15917 = vmatpush3.msra.mxu1 %v17875_v12 }
  0x62   : > { %15779 = vmatmul.mubr.f32.gmra.mxu0 %v619_v42  ;;  %15835 = vmatmul.mubr.f32.gmra.mxu1 %v894_v43  ;;  %v1657_v42 = vld [vmem:[%s17935_s28 + $0x208] sm:$0xff]  ;;  %v1658_v43 = vld [vmem:[%s17935_s28 + $0x210] sm:$0xff] }
  0x63   : > { %15862 = vmatprep.subr.mxu0 %v17881_v13  ;;  %15918 = vmatprep.subr.mxu1 %v17881_v13 }
  0x64   : > { %15863 = vmatpush3.msra.mxu0 %v17881_v13  ;;  %15919 = vmatpush3.msra.mxu1 %v17881_v13 }
  0x65   : > { %15864 = vmatprep.subr.mxu0 %v17891_v15  ;;  %15920 = vmatprep.subr.mxu1 %v17891_v15 }
  0x66   : > { %15781 = vmatprep.mubr.f32.mxu0 %v620_v44  ;;  %15837 = vmatprep.mubr.f32.mxu1 %v895_v45  ;;  %v1913_v44 = vld [vmem:[%s17935_s28 + $0x280] sm:$0xff]  ;;  %v13432_v45 = vunpack.c.h.bf16 %v14473_v41 }
  0x67   : > { %15865 = vmatpush3.msra.mxu0 %v17891_v15  ;;  %15921 = vmatpush3.msra.mxu1 %v17891_v15 }
  0x68   : > { %15782 = vmatmul.mubr.f32.gmra.mxu0 %v621_v46  ;;  %15838 = vmatmul.mubr.f32.gmra.mxu1 %v896_v47  ;;  %v1659_v46 = vld [vmem:[%s17935_s28 + $0x218] sm:$0xff]  ;;  %v1660_v47 = vld [vmem:[%s17935_s28 + $0x220] sm:$0xff] }
  0x69   : > { %15866 = vmatprep.subr.mxu0 %v17897_v16  ;;  %15922 = vmatprep.subr.mxu1 %v17897_v16 }
  0x6a   : > { %15867 = vmatpush3.msra.mxu0 %v17897_v16  ;;  %15923 = vmatpush3.msra.mxu1 %v17897_v16 }
  0x6b   : > { %15868 = vmatprep.subr.mxu0 %v17907_v18  ;;  %15924 = vmatprep.subr.mxu1 %v17907_v18 }
  0x6c   : > { %15784 = vmatprep.mubr.f32.mxu0 %v622_v48  ;;  %15840 = vmatprep.mubr.f32.mxu1 %v897_v49  ;;  %v1662_v48 = vld [vmem:[%s17935_s28 + $0x230] sm:$0xff]  ;;  %v1663_v49 = vld [vmem:[%s17935_s28 + $0x238] sm:$0xff] }
  0x6d   : > { %15869 = vmatpush3.msra.mxu0 %v17907_v18  ;;  %15925 = vmatpush3.msra.mxu1 %v17907_v18 }
  0x6e   : > { %15785 = vmatmul.mubr.f32.gmra.mxu0 %v623_v50  ;;  %15841 = vmatmul.mubr.f32.gmra.mxu1 %v898_v51  ;;  %v1664_v50 = vld [vmem:[%s17935_s28 + $0x240] sm:$0xff]  ;;  %v1665_v51 = vld [vmem:[%s17935_s28 + $0x248] sm:$0xff] }
  0x6f   : > { %15870 = vmatprep.subr.mxu0 %v17913_v19  ;;  %15926 = vmatprep.subr.mxu1 %v17913_v19 }
  0x70   : > { %15871 = vmatpush3.msra.mxu0 %v17913_v19  ;;  %15927 = vmatpush3.msra.mxu1 %v17913_v19 }
  0x71   : > { %15872 = vmatprep.subr.mxu0 %v17922_v21  ;;  %15928 = vmatprep.subr.mxu1 %v17922_v21 }
  0x72   : > { %15787 = vmatprep.mubr.f32.mxu0 %v624_v52  ;;  %15843 = vmatprep.mubr.f32.mxu1 %v899_v53  ;;  %v1666_v52 = vld [vmem:[%s17935_s28 + $0x250] sm:$0xff]  ;;  %v1667_v53 = vld [vmem:[%s17935_s28 + $0x258] sm:$0xff] }
  0x73   : > { %15873 = vmatpush3.msra.mxu0 %v17922_v21  ;;  %15929 = vmatpush3.msra.mxu1 %v17922_v21 }
  0x74   : > { %15788 = vmatmul.mubr.f32.gmra.mxu0 %v625_v54  ;;  %15844 = vmatmul.mubr.f32.gmra.mxu1 %v900_v55  ;;  %v1668_v54 = vld [vmem:[%s17935_s28 + $0x260] sm:$0xff]  ;;  %v1670_v55 = vld [vmem:[%s17935_s28 + $0x270] sm:$0xff] }
  0x75   : > { %15874 = vmatprep.subr.mxu0 %v17928_v22  ;;  %15930 = vmatprep.subr.mxu1 %v17928_v22 }
  0x76   : > { %15875 = vmatpush3.msra.mxu0 %v17928_v22  ;;  %15931 = vmatpush3.msra.mxu1 %v17928_v22 }
  0x77   : > { %15876 = vmatprep.subr.mxu0 %v17939_v23  ;;  %15932 = vmatprep.subr.mxu1 %v17939_v23 }
  0x78   : > { %15877 = vmatpush3.msra.mxu0 %v17939_v23  ;;  %15878 = vmatprep.mubr.f32.mxu0 %v1142_v56  ;;  %v14488_v56 = vld [vmem:[%s22433_s5 + $0x78] sm:$0xff]  }
  0x79   : > { %15933 = vmatpush3.msra.mxu1 %v17939_v23  ;;  %15934 = vmatprep.mubr.f32.mxu1 %v1399_v57  ;;  %v1915_v57 = vld [vmem:[%s17935_s28 + $0x290] sm:$0xff] }
  0x7a   : > { %15879 = vmatmul.mubr.f32.vlgmr.msra.gmra.mxu0 %v1143_v58  ;;  %15935 = vmatmul.mubr.f32.vlgmr.msra.gmra.mxu1 %v1400_v59  ;;  %v2170_v58 = vld [vmem:[%s17935_s28 + $0x300] sm:$0xff]  ;;  %v18178_v59 = vunpack.c.h.bf16 %v14488_v56 }
  0x7b   : > { %15958 = vmatprep.subr.mxu0 %v17832_v3  ;;  %15881 = vmatprep.mubr.f32.mxu0 %v1144_v60  ;;  %v1916_v60 = vld [vmem:[%s17935_s28 + $0x298] sm:$0xff] }
  0x7c   : > { %15959 = vmatpush3.msra.mxu0 %v17832_v3  ;;  %15937 = vmatprep.mubr.f32.mxu1 %v1401_v61  ;;  %v18187_v61 = vunpack.c.l.bf16 %v14488_v56  ;;  %v14482_v56 = vld [vmem:[%s22433_s5 + $0x48] sm:$0xff]  }
  0x7d   : > { %15960 = vmatprep.subr.mxu0 %v17830_v2  ;;  %16014 = vmatprep.subr.mxu1 %v17832_v3 }
  0x7e   : > { %15961 = vmatpush3.msra.mxu0 %v17830_v2  ;;  %15938 = vmatmul.mubr.f32.gmra.mxu1 %v1402_v62  ;;  %v1918_v62 = vld [vmem:[%s17935_s28 + $0x2a8] sm:$0xff] }
  0x7f   : > { %15882 = vmatmul.mubr.f32.gmra.mxu0 %v1145_v63  ;;  %15962 = vmatprep.subr.mxu0 %v17836_v4 }
  0x80   : > { %15963 = vmatpush3.msra.mxu0 %v17836_v4  ;;  %15884 = vmatprep.mubr.f32.mxu0 %v1146_v0 }
  0x81   : > { %15964 = vmatprep.subr.mxu0 %v17845_v6  ;;  %15940 = vmatprep.mubr.f32.mxu1 %v1403_v1  ;;  %v1923_v1 = vld [vmem:[%s17935_s28 + $0x2d0] sm:$0xff] }
  0x82   : > { %15965 = vmatpush3.msra.mxu0 %v17845_v6  ;;  %15941 = vmatmul.mubr.f32.gmra.mxu1 %v1404_v5 }
  0x83   : > { %15885 = vmatmul.mubr.f32.gmra.mxu0 %v1147_v8  ;;  %15966 = vmatprep.subr.mxu0 %v17851_v7  ;;  %v14479_v8 = vld [vmem:[%s22433_s5 + $0x30] sm:$0xff]  }
  0x84   : > { %15967 = vmatpush3.msra.mxu0 %v17851_v7  ;;  %15887 = vmatprep.mubr.f32.mxu0 %v1148_v11  ;;  %v2172_v11 = vld [vmem:[%s17935_s28 + $0x310] sm:$0xff] }
  0x85   : > { %15968 = vmatprep.subr.mxu0 %v17860_v9  ;;  %15943 = vmatprep.mubr.f32.mxu1 %v1405_v14  ;;  %v1924_v14 = vld [vmem:[%s17935_s28 + $0x2d8] sm:$0xff] }
  0x86   : > { %15969 = vmatpush3.msra.mxu0 %v17860_v9  ;;  %15944 = vmatmul.mubr.f32.gmra.mxu1 %v1406_v17  ;;  %v1925_v17 = vld [vmem:[%s17935_s28 + $0x2e0] sm:$0xff] }
  0x87   : > { %15888 = vmatmul.mubr.f32.gmra.mxu0 %v1149_v20  ;;  %15970 = vmatprep.subr.mxu0 %v17866_v10  ;;  %v14478_v20 = vld [vmem:[%s22433_s5 + $0x28] sm:$0xff]  }
  0x88   : > { %15971 = vmatpush3.msra.mxu0 %v17866_v10  ;;  %15890 = vmatprep.mubr.f32.mxu0 %v1150_v24  ;;  %v2173_v24 = vld [vmem:[%s17935_s28 + $0x318] sm:$0xff] }
  0x89   : > { %15972 = vmatprep.subr.mxu0 %v17875_v12  ;;  %15946 = vmatprep.mubr.f32.mxu1 %v1407_v25  ;;  %v13459_v25 = vunpack.c.l.bf16 %v14479_v8 }
  0x8a   : > { %15973 = vmatpush3.msra.mxu0 %v17875_v12  ;;  %15947 = vmatmul.mubr.f32.gmra.mxu1 %v1408_v26  ;;  %v1926_v26 = vld [vmem:[%s17935_s28 + $0x2e8] sm:$0xff] }
  0x8b   : > { %15891 = vmatmul.mubr.f32.gmra.mxu0 %v1151_v27  ;;  %15974 = vmatprep.subr.mxu0 %v17881_v13  ;;  %v13456_v27 = vunpack.c.h.bf16 %v14478_v20 }
  0x8c   : > { %15975 = vmatpush3.msra.mxu0 %v17881_v13  ;;  %15893 = vmatprep.mubr.f32.mxu0 %v1152_v28  ;;  %v1927_v28 = vld [vmem:[%s17935_s28 + $0x2f0] sm:$0xff] }
  0x8d   : > { %15976 = vmatprep.subr.mxu0 %v17891_v15  ;;  %15949 = vmatprep.mubr.f32.mxu1 %v1409_v29  ;;  %v14486_v29 = vld [vmem:[%s22433_s5 + $0x68] sm:$0xff]  }
  0x8e   : > { %15977 = vmatpush3.msra.mxu0 %v17891_v15  ;;  %15950 = vmatmul.mubr.f32.gmra.mxu1 %v1410_v30  ;;  %v14477_v30 = vld [vmem:[%s22433_s5 + $0x20] sm:$0xff]  }
  0x8f   : > { %15894 = vmatmul.mubr.f32.gmra.mxu0 %v1153_v31  ;;  %15978 = vmatprep.subr.mxu0 %v17897_v16  ;;  %v2175_v31 = vld [vmem:[%s17935_s28 + $0x328] sm:$0xff] }
  0x90   : > { %15979 = vmatpush3.msra.mxu0 %v17897_v16  ;;  %15896 = vmatprep.mubr.f32.mxu0 %v1154_v32  ;;  %v13455_v32 = vunpack.c.l.bf16 %v14478_v20 }
  0x91   : > { %15980 = vmatprep.subr.mxu0 %v17907_v18  ;;  %15952 = vmatprep.mubr.f32.mxu1 %v1411_v33  ;;  %v2176_v33 = vld [vmem:[%s17935_s28 + $0x330] sm:$0xff] }
  0x92   : > { %15981 = vmatpush3.msra.mxu0 %v17907_v18  ;;  %15953 = vmatmul.mubr.f32.gmra.mxu1 %v1412_v34  ;;  %v1928_v34 = vld [vmem:[%s17935_s28 + $0x2f8] sm:$0xff] }
  0x93   : > { %15897 = vmatmul.mubr.f32.gmra.mxu0 %v1155_v35  ;;  %15982 = vmatprep.subr.mxu0 %v17913_v19  ;;  %v18250_v35 = vunpack.c.h.bf16 %v14486_v29 }
  0x94   : > { %15983 = vmatpush3.msra.mxu0 %v17913_v19  ;;  %15899 = vmatprep.mubr.f32.mxu0 %v1156_v36  ;;  %v13452_v36 = vunpack.c.h.bf16 %v14477_v30 }
  0x95   : > { %15984 = vmatprep.subr.mxu0 %v17922_v21  ;;  %15955 = vmatprep.mubr.f32.mxu1 %v1413_v37  ;;  %v14476_v37 = vld [vmem:[%s22433_s5 + $0x18] sm:$0xff]  }
  0x96   : > { %15985 = vmatpush3.msra.mxu0 %v17922_v21  ;;  %15956 = vmatmul.mubr.f32.gmra.mxu1 %v1414_v38  ;;  %v2177_v38 = vld [vmem:[%s17935_s28 + $0x338] sm:$0xff] }
  0x97   : > { %15900 = vmatmul.mubr.f32.gmra.mxu0 %v1157_v39  ;;  %15986 = vmatprep.subr.mxu0 %v17928_v22  ;;  %v13451_v39 = vunpack.c.l.bf16 %v14477_v30 }
  0x98   : > { %15987 = vmatpush3.msra.mxu0 %v17928_v22  ;;  %15990 = vmatprep.mubr.f32.mxu0 %v1656_v40  ;;  %v2178_v40 = vld [vmem:[%s17935_s28 + $0x340] sm:$0xff] }
  0x99   : > { %15988 = vmatprep.subr.mxu0 %v17939_v23  ;;  %16015 = vmatpush3.msra.mxu1 %v17832_v3  ;;  %v13431_v3 = vunpack.c.l.bf16 %v14473_v41  ;;  %v18258_v41 = vunpack.c.l.bf16 %v14486_v29 }
  0x9a   : > { %15989 = vmatpush3.msra.mxu0 %v17939_v23  ;;  %16016 = vmatprep.subr.mxu1 %v17830_v2 }
  0x9b   : > { %15991 = vmatmul.mubr.f32.vlgmr.msra.gmra.mxu0 %v1657_v42  ;;  %16017 = vmatpush3.msra.mxu1 %v17830_v2  ;;  %v1661_v2 = vld [vmem:[%s17935_s28 + $0x228] sm:$0xff]  ;;  %v14485_v42 = vld [vmem:[%s22433_s5 + $0x60] sm:$0xff]  }
  0x9c   : > { %15993 = vmatprep.mubr.f32.mxu0 %v1658_v43  ;;  %16018 = vmatprep.subr.mxu1 %v17836_v4  ;;  %v13448_v43 = vunpack.c.h.bf16 %v14476_v37 }
  0x9d   : > { %16019 = vmatpush3.msra.mxu1 %v17836_v4  ;;  %16046 = vmatprep.mubr.f32.mxu1 %v1913_v44  ;;  %v14475_v44 = vld [vmem:[%s22433_s5 + $0x10] sm:$0xff]  }
  0x9e   : > { %16020 = vmatprep.subr.mxu1 %v17845_v6  ;;  %16070 = vmatprep.subr.mxu0 %v13432_v45 }
  0x9f   : > { %15994 = vmatmul.mubr.f32.gmra.mxu0 %v1659_v46  ;;  %16021 = vmatpush3.msra.mxu1 %v17845_v6  ;;  %v13447_v46 = vunpack.c.l.bf16 %v14476_v37 }
  0xa0   : > { %15996 = vmatprep.mubr.f32.mxu0 %v1660_v47  ;;  %16022 = vmatprep.subr.mxu1 %v17851_v7  ;;  %v18268_v47 = vunpack.c.h.bf16 %v14485_v42 }
  0xa1   : > { %16023 = vmatpush3.msra.mxu1 %v17851_v7  ;;  %16071 = vmatpush3.msra.mxu0 %v13432_v45  ;;  %v2179_v45 = vld [vmem:[%s17935_s28 + $0x348] sm:$0xff] }
  0xa2   : > { %16024 = vmatprep.subr.mxu1 %v17860_v9  ;;  %16072 = vmatprep.subr.mxu0 %v13431_v3 }
  0xa3   : > { %15997 = vmatmul.mubr.f32.gmra.mxu0 %v1661_v2  ;;  %16025 = vmatpush3.msra.mxu1 %v17860_v9  ;;  %v13444_v2 = vunpack.c.h.bf16 %v14475_v44 }
  0xa4   : > { %15999 = vmatprep.mubr.f32.mxu0 %v1662_v48  ;;  %16026 = vmatprep.subr.mxu1 %v17866_v10  ;;  %v18274_v48 = vunpack.c.l.bf16 %v14485_v42 }
  0xa5   : > { %16027 = vmatpush3.msra.mxu1 %v17866_v10  ;;  %16073 = vmatpush3.msra.mxu0 %v13431_v3  ;;  %v14484_v3 = vld [vmem:[%s22433_s5 + $0x58] sm:$0xff]  }
  0xa6   : > { %16028 = vmatprep.subr.mxu1 %v17875_v12  ;;  %16074 = vmatprep.subr.mxu0 %v17836_v4 }
  0xa7   : > { %16000 = vmatmul.mubr.f32.gmra.mxu0 %v1663_v49  ;;  %16029 = vmatpush3.msra.mxu1 %v17875_v12  ;;  %v14474_v49 = vld [vmem:[%s22433_s5 + $0x8] sm:$0xff]  }
  0xa8   : > { %16002 = vmatprep.mubr.f32.mxu0 %v1664_v50  ;;  %16030 = vmatprep.subr.mxu1 %v17881_v13  ;;  %v13443_v50 = vunpack.c.l.bf16 %v14475_v44 }
  0xa9   : > { %16031 = vmatpush3.msra.mxu1 %v17881_v13  ;;  %16075 = vmatpush3.msra.mxu0 %v17836_v4  ;;  %v1669_v4 = vld [vmem:[%s17935_s28 + $0x268] sm:$0xff] }
  0xaa   : > { %16032 = vmatprep.subr.mxu1 %v17891_v15  ;;  %16076 = vmatprep.subr.mxu0 %v17845_v6 }
  0xab   : > { %16003 = vmatmul.mubr.f32.gmra.mxu0 %v1665_v51  ;;  %16033 = vmatpush3.msra.mxu1 %v17891_v15  ;;  %v18281_v51 = vunpack.c.h.bf16 %v14484_v3 }
  0xac   : > { %16005 = vmatprep.mubr.f32.mxu0 %v1666_v52  ;;  %16034 = vmatprep.subr.mxu1 %v17897_v16  ;;  %v14483_v52 = vld [vmem:[%s22433_s5 + $0x50] sm:$0xff]  }
  0xad   : > { %16035 = vmatpush3.msra.mxu1 %v17897_v16  ;;  %16077 = vmatpush3.msra.mxu0 %v17845_v6  ;;  %v1671_v6 = vld [vmem:[%s17935_s28 + $0x278] sm:$0xff] }
  0xae   : > { %16036 = vmatprep.subr.mxu1 %v17907_v18  ;;  %16078 = vmatprep.subr.mxu0 %v17851_v7 }
  0xaf   : > { %16006 = vmatmul.mubr.f32.gmra.mxu0 %v1667_v53  ;;  %16037 = vmatpush3.msra.mxu1 %v17907_v18  ;;  %v13440_v53 = vunpack.c.h.bf16 %v14474_v49 }
  0xb0   : > { %16008 = vmatprep.mubr.f32.mxu0 %v1668_v54  ;;  %16038 = vmatprep.subr.mxu1 %v17913_v19  ;;  %v18288_v54 = vunpack.c.l.bf16 %v14484_v3 }
  0xb1   : > { %16039 = vmatpush3.msra.mxu1 %v17913_v19  ;;  %16079 = vmatpush3.msra.mxu0 %v17851_v7  ;;  %v1914_v7 = vld [vmem:[%s17935_s28 + $0x288] sm:$0xff] }
  0xb2   : > { %16040 = vmatprep.subr.mxu1 %v17922_v21  ;;  %16080 = vmatprep.subr.mxu0 %v17860_v9 }
  0xb3   : > { %16009 = vmatmul.mubr.f32.gmra.mxu0 %v1669_v4  ;;  %16041 = vmatpush3.msra.mxu1 %v17922_v21  ;;  %v13434_v4 = vld [vmem:[%s22433_s5] sm:$0xff]  }
  0xb4   : > { %16011 = vmatprep.mubr.f32.mxu0 %v1670_v55  ;;  %16042 = vmatprep.subr.mxu1 %v17928_v22  ;;  %v13439_v55 = vunpack.c.l.bf16 %v14474_v49 }
  0xb5   : > { %16043 = vmatpush3.msra.mxu1 %v17928_v22  ;;  %16081 = vmatpush3.msra.mxu0 %v17860_v9  ;;  %v1917_v9 = vld [vmem:[%s17935_s28 + $0x2a0] sm:$0xff] }
  0xb6   : > { %16044 = vmatprep.subr.mxu1 %v17939_v23  ;;  %16082 = vmatprep.subr.mxu0 %v17866_v10 }
  0xb7   : > { %16012 = vmatmul.mubr.f32.gmra.mxu0 %v1671_v6  ;;  %16045 = vmatpush3.msra.mxu1 %v17939_v23  ;;  %v18295_v6 = vunpack.c.h.bf16 %v14483_v52 }
  0xb8   : > { %16047 = vmatmul.mubr.f32.vlgmr.msra.gmra.mxu1 %v1914_v7  ;;  %16083 = vmatpush3.msra.mxu0 %v17866_v10  ;;  %v14487_v10 = vld [vmem:[%s22433_s5 + $0x70] sm:$0xff]   ;;  %v13436_v7 = vunpack.c.h.bf16 %v13434_v4 }
  0xb9   : > { %16049 = vmatprep.mubr.f32.mxu1 %v1915_v57  ;;  %16084 = vmatprep.subr.mxu0 %v17875_v12  ;;  %v18200_v63 = vunpack.c.h.bf16 %v14487_v10  ;;  %v18210_v0 = vunpack.c.l.bf16 %v14487_v10  ;;  %v18302_v57 = vunpack.c.l.bf16 %v14483_v52  ;;  %v14481_v10 = vld [vmem:[%s22433_s5 + $0x40] sm:$0xff]  }
  0xba   : > { %16085 = vmatpush3.msra.mxu0 %v17875_v12  ;;  %16102 = vmatprep.mubr.f32.mxu0 %v2170_v58  ;;  %v1919_v12 = vld [vmem:[%s17935_s28 + $0x2b0] sm:$0xff]  ;;  %v18307_v58 = vld [vmem:[%s22433_s5 + $0xf8] sm:$0xff]  }
  0xbb   : > { %16086 = vmatprep.subr.mxu0 %v17881_v13  ;;  %16117 = vmatprep.subr.mxu1 %v18178_v59  ;;  %v13559_v49 = vunpack.c.l.bf16 %v18307_v58 }
  0xbc   : > { %16050 = vmatmul.mubr.f32.gmra.mxu1 %v1916_v60  ;;  %16087 = vmatpush3.msra.mxu0 %v17881_v13  ;;  %v1920_v13 = vld [vmem:[%s17935_s28 + $0x2b8] sm:$0xff]  ;;  %v13435_v60 = vunpack.c.l.bf16 %v13434_v4 }
  0xbd   : > { %16052 = vmatprep.mubr.f32.mxu1 %v1917_v9  ;;  %16088 = vmatprep.subr.mxu0 %v17891_v15  ;;  %v18311_v9 = vunpack.c.h.bf16 %v14482_v56 }
  0xbe   : > { %16089 = vmatpush3.msra.mxu0 %v17891_v15  ;;  %16118 = vmatpush3.msra.mxu1 %v18178_v59  ;;  %v1921_v15 = vld [vmem:[%s17935_s28 + $0x2c0] sm:$0xff] }
  0xbf   : > { %16090 = vmatprep.subr.mxu0 %v17897_v16  ;;  %16119 = vmatprep.subr.mxu1 %v18187_v61 }
  0xc0   : > { %16053 = vmatmul.mubr.f32.gmra.mxu1 %v1918_v62  ;;  %16091 = vmatpush3.msra.mxu0 %v17897_v16  ;;  %v14480_v16 = vld [vmem:[%s22433_s5 + $0x38] sm:$0xff]   ;;  %v13560_v62 = vunpack.c.h.bf16 %v18307_v58 }
  0xc1   : > { %16055 = vmatprep.mubr.f32.mxu1 %v1919_v12  ;;  %16092 = vmatprep.subr.mxu0 %v17907_v18  ;;  %v13464_v5 = vunpack.c.h.bf16 %v14480_v16  ;;  %v18319_v12 = vunpack.c.l.bf16 %v14482_v56 }
  0xc2   : > { %16093 = vmatpush3.msra.mxu0 %v17907_v18  ;;  %16120 = vmatpush3.msra.mxu1 %v18187_v61  ;;  %v1922_v18 = vld [vmem:[%s17935_s28 + $0x2c8] sm:$0xff] }
  0xc3   : > { %16094 = vmatprep.subr.mxu0 %v17913_v19  ;;  %16121 = vmatprep.subr.mxu1 %v18200_v63 }
  0xc4   : > { %16056 = vmatmul.mubr.f32.gmra.mxu1 %v1920_v13  ;;  %16095 = vmatpush3.msra.mxu0 %v17913_v19  ;;  %v2171_v19 = vld [vmem:[%s17935_s28 + $0x308] sm:$0xff]  ;;  %v18323_v13 = vunpack.c.h.bf16 %v14481_v10 }
  0xc5   : > { %16096 = vmatprep.subr.mxu0 %v17922_v21  ;;  %16058 = vmatprep.mubr.f32.mxu1 %v1921_v15  ;;  %v18329_v15 = vld [vmem:[%s22433_s5 + $0xb8] sm:$0xff]  }
  0xc6   : > { %16097 = vmatpush3.msra.mxu0 %v17922_v21  ;;  %16122 = vmatpush3.msra.mxu1 %v18200_v63  ;;  %v13463_v21 = vunpack.c.l.bf16 %v14480_v16  ;;  %v18334_v16 = vunpack.c.l.bf16 %v14481_v10 }
  0xc7   : > { %16098 = vmatprep.subr.mxu0 %v17928_v22  ;;  %16123 = vmatprep.subr.mxu1 %v18210_v0 }
  0xc8   : > { %16099 = vmatpush3.msra.mxu0 %v17928_v22  ;;  %16059 = vmatmul.mubr.f32.gmra.mxu1 %v1922_v18  ;;  %v13460_v22 = vunpack.c.h.bf16 %v14479_v8  ;;  %v18339_v18 = vunpack.c.h.bf16 %v18329_v15 }
  0xc9   : > { %16100 = vmatprep.subr.mxu0 %v17939_v23  ;;  %16061 = vmatprep.mubr.f32.mxu1 %v1923_v1  ;;  %v18348_v1 = vld [vmem:[%s22434_s24] ss:$0 sm:$0xff] }
  0xca   : > { %16101 = vmatpush3.msra.mxu0 %v17939_v23  ;;  %16124 = vmatpush3.msra.mxu1 %v18210_v0  ;;  %v2174_v23 = vld [vmem:[%s17935_s28 + $0x320] sm:$0xff]  ;;  %s13206_s28 = sshll.u32 %s17797_s1, 4 }
  0xcb   : > { %16173 = vmatprep.subr.mxu0 %v13464_v5  ;;  %16103 = vmatmul.mubr.f32.vlgmr.msra.gmra.mxu0 %v2171_v19  ;;  %s12570_s22 = scalar_lea.hbm %s22398_s19, %s13206_s28 }
  0xcc   : > { %16174 = vmatpush3.msra.mxu0 %v13464_v5  ;;  %16105 = vmatprep.mubr.f32.mxu0 %v2172_v11  ;;  %v18355_v11 = vld [vmem:[%s22435_s29] ss:$0 sm:$0xff] }
  0xcd   : > { %16175 = vmatprep.subr.mxu0 %v13463_v21  ;;  %16062 = vmatmul.mubr.f32.gmra.mxu1 %v1924_v14 }
  0xce   : > { %16176 = vmatpush3.msra.mxu0 %v13463_v21  ;;  %16064 = vmatprep.mubr.f32.mxu1 %v1925_v17 }
  0xcf   : > { %16177 = vmatprep.subr.mxu0 %v13460_v22  ;;  %16106 = vmatmul.mubr.f32.gmra.mxu0 %v2173_v24 }
  0xd0   : > { %16178 = vmatpush3.msra.mxu0 %v13460_v22  ;;  %16108 = vmatprep.mubr.f32.mxu0 %v2174_v23  ;;  %v18362_v23 = vld [vmem:[%s22436_s4] ss:$0 sm:$0xff] }
  0xd1   : > { %16179 = vmatprep.subr.mxu0 %v13459_v25  ;;  %16065 = vmatmul.mubr.f32.gmra.mxu1 %v1926_v26 }
  0xd2   : > { %16180 = vmatpush3.msra.mxu0 %v13459_v25  ;;  %16067 = vmatprep.mubr.f32.mxu1 %v1927_v28 }
  0xd3   : > { %16181 = vmatprep.subr.mxu0 %v13456_v27  ;;  %16109 = vmatmul.mubr.f32.gmra.mxu0 %v2175_v31 }
  0xd4   : > { %16182 = vmatpush3.msra.mxu0 %v13456_v27  ;;  %16111 = vmatprep.mubr.f32.mxu0 %v2176_v33 }
  0xd5   : > { %16183 = vmatprep.subr.mxu0 %v13455_v32  ;;  %16068 = vmatmul.mubr.f32.gmra.mxu1 %v1928_v34 }
  0xd6   : > { %16184 = vmatpush3.msra.mxu0 %v13455_v32  ;;  %16125 = vmatprep.subr.mxu1 %v18250_v35 }
  0xd7   : > { %16185 = vmatprep.subr.mxu0 %v13452_v36  ;;  %16112 = vmatmul.mubr.f32.gmra.mxu0 %v2177_v38 }
  0xd8   : > { %16186 = vmatpush3.msra.mxu0 %v13452_v36  ;;  %16114 = vmatprep.mubr.f32.mxu0 %v2178_v40 }
  0xd9   : > { %16187 = vmatprep.subr.mxu0 %v13451_v39  ;;  %16126 = vmatpush3.msra.mxu1 %v18250_v35 }
  0xda   : > { %16188 = vmatpush3.msra.mxu0 %v13451_v39  ;;  %16127 = vmatprep.subr.mxu1 %v18258_v41 }
  0xdb   : > { %16189 = vmatprep.subr.mxu0 %v13448_v43  ;;  %16115 = vmatmul.mubr.f32.gmra.mxu0 %v2179_v45 }
  0xdc   : > { %16190 = vmatpush3.msra.mxu0 %v13448_v43  ;;  %16128 = vmatpush3.msra.mxu1 %v18258_v41 }
  0xdd   : > { %16191 = vmatprep.subr.mxu0 %v13447_v46  ;;  %16129 = vmatprep.subr.mxu1 %v18268_v47 }
  0xde   : > { %16192 = vmatpush3.msra.mxu0 %v13447_v46  ;;  %16130 = vmatpush3.msra.mxu1 %v18268_v47  ;;  %v14503_v46 = vld [vmem:[%s22433_s5 + $0xf0] sm:$0xff]  }
  0xdf   : > { %16193 = vmatprep.subr.mxu0 %v13444_v2  ;;  %16131 = vmatprep.subr.mxu1 %v18274_v48 }
  0xe0   : > { %16194 = vmatpush3.msra.mxu0 %v13444_v2  ;;  %16132 = vmatpush3.msra.mxu1 %v18274_v48 }
  0xe1   : > { %16195 = vmatprep.subr.mxu0 %v13443_v50  ;;  %16133 = vmatprep.subr.mxu1 %v18281_v51 }
  0xe2   : > { %16196 = vmatpush3.msra.mxu0 %v13443_v50  ;;  %16134 = vmatpush3.msra.mxu1 %v18281_v51 }
  0xe3   : > { %16197 = vmatprep.subr.mxu0 %v13440_v53  ;;  %16135 = vmatprep.subr.mxu1 %v18288_v54 }
  0xe4   : > { %16198 = vmatpush3.msra.mxu0 %v13440_v53  ;;  %16136 = vmatpush3.msra.mxu1 %v18288_v54 }
  0xe5   : > { %16199 = vmatprep.subr.mxu0 %v13439_v55  ;;  %16137 = vmatprep.subr.mxu1 %v18295_v6 }
  0xe6   : > { %16200 = vmatpush3.msra.mxu0 %v13439_v55  ;;  %16138 = vmatpush3.msra.mxu1 %v18295_v6 }
  0xe7   : > { %16201 = vmatprep.subr.mxu0 %v13436_v7  ;;  %16139 = vmatprep.subr.mxu1 %v18302_v57 }
  0xe8   : > { %16202 = vmatpush3.msra.mxu0 %v13436_v7  ;;  %16140 = vmatpush3.msra.mxu1 %v18302_v57  ;;  %v13556_v7 = vunpack.c.h.bf16 %v14503_v46 }
  0xe9   : > { %16203 = vmatprep.subr.mxu0 %v13435_v60  ;;  %16141 = vmatprep.subr.mxu1 %v18311_v9 }
  0xea   : > { %16204 = vmatpush3.msra.mxu0 %v13435_v60  ;;  %16142 = vmatpush3.msra.mxu1 %v18311_v9 }
  0xeb   : > { %16285 = vmatprep.subr.mxu0 %v13560_v62  ;;  %16143 = vmatprep.subr.mxu1 %v18319_v12 }
  0xec   : > { %16144 = vmatpush3.msra.mxu1 %v18319_v12 }
  0xed   : > { %16145 = vmatprep.subr.mxu1 %v18323_v13 }
  0xee   : > { %16146 = vmatpush3.msra.mxu1 %v18323_v13 }
  0xef   : > { %16147 = vmatprep.subr.mxu1 %v18334_v16 }
  0xf0   : > { %16148 = vmatpush3.msra.mxu1 %v18334_v16 }
  0xf1   : > { %16229 = vmatprep.subr.mxu1 %v18339_v18 }
 0x10a   : > { %v15768_v5 = vpop.f32.mrf.mxu0  ;;  %v15824_v19 = vpop.f32.mrf.mxu1 }
 0x10b   : > { %v736_v8 = vadd.f32 %v15768_v5, %v18348_v1  ;;  %v1005_v21 = vadd.f32 %v15824_v19, %v18348_v1 }
 0x10c   : > { %v730_v14 = vpop.f32.mrf.mxu0  ;;  %v999_v22 = vpop.f32.mrf.mxu1 }
 0x10d   : > { %v810_v17 = vmax.f32 %v736_v8, 0.0  ;;  %v1079_v20 = vmax.f32 %v1005_v21, 0.0  ;;  %v731_v24 = vadd.f32 %v18348_v1, %v730_v14  ;;  %v1000_v25 = vadd.f32 %v18348_v1, %v999_v22  ;;  %v14502_v8 = vld [vmem:[%s22433_s5 + $0xe8] sm:$0xff]  }
 0x10f   : > { %v832_v26 = vmul.f32 %v18355_v11, %v810_v17  ;;  %v1095_v27 = vmul.f32 %v18355_v11, %v1079_v20  ;;  %v809_v28 = vmax.f32 %v731_v24, 0.0  ;;  %v1078_v29 = vmax.f32 %v1000_v25, 0.0 }
 0x110   : > { %v15771_v30 = vpop.f32.mrf.mxu0  ;;  %v15827_v31 = vpop.f32.mrf.mxu1  ;;  %v13555_v20 = vunpack.c.l.bf16 %v14503_v46 }
 0x111   : > { %v854_v32 = vadd.f32 %v18362_v23, %v832_v26  ;;  %v1111_v33 = vadd.f32 %v18362_v23, %v1095_v27  ;;  %v831_v34 = vmul.f32 %v18355_v11, %v809_v28  ;;  %v1094_v36 = vmul.f32 %v18355_v11, %v1078_v29 }
 0x112   : > { %v746_v37 = vadd.f32 %v15771_v30, %v18348_v1  ;;  %v1015_v38 = vadd.f32 %v15827_v31, %v18348_v1  ;;  %v740_v39 = vpop.f32.mrf.mxu0  ;;  %v1009_v40 = vpop.f32.mrf.mxu1  ;;  %v13552_v28 = vunpack.c.h.bf16 %v14502_v8  ;;  %v18402_v31 = vld [vmem:[%s22433_s5 + $0xe0] sm:$0xff]  }
 0x113   : > { %870 = vst [vmem:[#allocation2 + $0x8] sm:$0xff] %v854_v32  ;;  %1127 = vst [vmem:[#allocation2 + $0x88] sm:$0xff] %v1111_v33  ;;  %v853_v42 = vadd.f32 %v18362_v23, %v831_v34  ;;  %v1110_v43 = vadd.f32 %v18362_v23, %v1094_v36  ;;  %v741_v44 = vadd.f32 %v18348_v1, %v740_v39 }
 0x114   : > { %v1010_v45 = vadd.f32 %v18348_v1, %v1009_v40  ;;  %v812_v3 = vmax.f32 %v746_v37, 0.0  ;;  %v1081_v2 = vmax.f32 %v1015_v38, 0.0  ;;  %v13551_v37 = vunpack.c.l.bf16 %v14502_v8 }
 0x115   : > { %869 = vst [vmem:[#allocation2] sm:$0xff] %v853_v42  ;;  %1126 = vst [vmem:[#allocation2 + $0x80] sm:$0xff] %v1110_v43  ;;  %v811_v50 = vmax.f32 %v741_v44, 0.0  ;;  %16205 = vmatprep.mubr.f32.mxu0 %v853_v42 }
 0x116   : > { %v1080_v52 = vmax.f32 %v1010_v45, 0.0  ;;  %v834_v53 = vmul.f32 %v18355_v11, %v812_v3  ;;  %v1097_v4 = vmul.f32 %v18355_v11, %v1081_v2  ;;  %v15774_v55 = vpop.f32.mrf.mxu0  ;;  %v15830_v56 = vpop.f32.mrf.mxu1  ;;  %16206 = vmatmul.mubr.f32.vlgmr.msra.gmra.mxu0 %v854_v32  ;;  %v13548_v3 = vunpack.c.h.bf16 %v18402_v31 }
 0x117   : > { %v833_v60 = vmul.f32 %v18355_v11, %v811_v50  ;;  %v756_v5 = vadd.f32 %v15774_v55, %v18348_v1  ;;  %v1025_v19 = vadd.f32 %v15830_v56, %v18348_v1  ;;  %16286 = vmatpush3.msra.mxu0 %v13560_v62  ;;  %v13547_v56 = vunpack.c.l.bf16 %v18402_v31 }
 0x118   : > { %v1096_v10 = vmul.f32 %v18355_v11, %v1080_v52  ;;  %v856_v21 = vadd.f32 %v18362_v23, %v834_v53  ;;  %v1113_v14 = vadd.f32 %v18362_v23, %v1097_v4  ;;  %v750_v22 = vpop.f32.mrf.mxu0  ;;  %v1019_v17 = vpop.f32.mrf.mxu1  ;;  %16287 = vmatprep.subr.mxu0 %v13559_v49  ;;  %v18416_v53 = vld [vmem:[%s22433_s5 + $0xd8] sm:$0xff]  }
 0x119   : > { %v855_v24 = vadd.f32 %v18362_v23, %v833_v60  ;;  %v814_v26 = vmax.f32 %v756_v5, 0.0  ;;  %v1083_v27 = vmax.f32 %v1025_v19, 0.0  ;;  %16288 = vmatpush3.msra.mxu0 %v13559_v49  ;;  %v751_v58 = vadd.f32 %v18348_v1, %v750_v22 }
 0x11a   : > { %v1112_v25 = vadd.f32 %v18362_v23, %v1096_v10  ;;  %872 = vst [vmem:[#allocation2 + $0x18] sm:$0xff] %v856_v21  ;;  %1129 = vst [vmem:[#allocation2 + $0x98] sm:$0xff] %v1113_v14  ;;  %v1020_v62 = vadd.f32 %v18348_v1, %v1019_v17  ;;  %16289 = vmatprep.subr.mxu0 %v13556_v7 }
 0x11b   : > { %871 = vst [vmem:[#allocation2 + $0x10] sm:$0xff] %v855_v24  ;;  %v836_v29 = vmul.f32 %v18355_v11, %v814_v26  ;;  %v1099_v30 = vmul.f32 %v18355_v11, %v1083_v27  ;;  %16208 = vmatprep.mubr.f32.mxu0 %v855_v24  ;;  %16290 = vmatpush3.msra.mxu0 %v13556_v7  ;;  %v813_v32 = vmax.f32 %v751_v58, 0.0 }
 0x11c   : > { %1128 = vst [vmem:[#allocation2 + $0x90] sm:$0xff] %v1112_v25  ;;  %v1082_v33 = vmax.f32 %v1020_v62, 0.0  ;;  %v15777_v34 = vpop.f32.mrf.mxu0  ;;  %v15833_v36 = vpop.f32.mrf.mxu1  ;;  %16209 = vmatmul.mubr.f32.gmra.mxu0 %v856_v21  ;;  %16291 = vmatprep.subr.mxu0 %v13555_v20  ;;  %v13544_v21 = vunpack.c.h.bf16 %v18416_v53 }
 0x11d   : > { %v858_v38 = vadd.f32 %v18362_v23, %v836_v29  ;;  %v1115_v39 = vadd.f32 %v18362_v23, %v1099_v30  ;;  %v766_v40 = vadd.f32 %v15777_v34, %v18348_v1  ;;  %v1035_v42 = vadd.f32 %v15833_v36, %v18348_v1  ;;  %16292 = vmatpush3.msra.mxu0 %v13555_v20  ;;  %v14499_v30 = vld [vmem:[%s22433_s5 + $0xd0] sm:$0xff]  }
 0x11e   : > { %v835_v43 = vmul.f32 %v18355_v11, %v813_v32  ;;  %v1098_v44 = vmul.f32 %v18355_v11, %v1082_v33  ;;  %v760_v45 = vpop.f32.mrf.mxu0  ;;  %v1029_v46 = vpop.f32.mrf.mxu1  ;;  %16293 = vmatprep.subr.mxu0 %v13552_v28  ;;  %v13543_v33 = vunpack.c.l.bf16 %v18416_v53  ;;  %v13539_v53 = vunpack.c.l.bf16 %v14499_v30 }
 0x11f   : > { %874 = vst [vmem:[#allocation2 + $0x28] sm:$0xff] %v858_v38  ;;  %1131 = vst [vmem:[#allocation2 + $0xa8] sm:$0xff] %v1115_v39  ;;  %v816_v2 = vmax.f32 %v766_v40, 0.0  ;;  %v1085_v49 = vmax.f32 %v1035_v42, 0.0  ;;  %v761_v50 = vadd.f32 %v18348_v1, %v760_v45  ;;  %v1030_v52 = vadd.f32 %v18348_v1, %v1029_v46  ;;  %16294 = vmatpush3.msra.mxu0 %v13552_v28 }
 0x120   : > { %v857_v4 = vadd.f32 %v18362_v23, %v835_v43  ;;  %v1114_v55 = vadd.f32 %v18362_v23, %v1098_v44  ;;  %16295 = vmatprep.subr.mxu0 %v13551_v37  ;;  %v13540_v42 = vunpack.c.h.bf16 %v14499_v30 }
 0x121   : > { %v838_v7 = vmul.f32 %v18355_v11, %v816_v2  ;;  %v1101_v60 = vmul.f32 %v18355_v11, %v1085_v49  ;;  %v815_v10 = vmax.f32 %v761_v50, 0.0  ;;  %v1084_v5 = vmax.f32 %v1030_v52, 0.0  ;;  %16296 = vmatpush3.msra.mxu0 %v13551_v37 }
 0x122   : > { %873 = vst [vmem:[#allocation2 + $0x20] sm:$0xff] %v857_v4  ;;  %1130 = vst [vmem:[#allocation2 + $0xa0] sm:$0xff] %v1114_v55  ;;  %v15780_v19 = vpop.f32.mrf.mxu0  ;;  %v15836_v8 = vpop.f32.mrf.mxu1  ;;  %16211 = vmatprep.mubr.f32.mxu0 %v857_v4  ;;  %16297 = vmatprep.subr.mxu0 %v13548_v3 }
 0x123   : > { %v860_v14 = vadd.f32 %v18362_v23, %v838_v7  ;;  %v1117_v22 = vadd.f32 %v18362_v23, %v1101_v60  ;;  %v837_v17 = vmul.f32 %v18355_v11, %v815_v10  ;;  %v1100_v20 = vmul.f32 %v18355_v11, %v1084_v5  ;;  %16212 = vmatmul.mubr.f32.gmra.mxu0 %v858_v38 }
 0x124   : > { %v776_v24 = vadd.f32 %v15780_v19, %v18348_v1  ;;  %v1045_v25 = vadd.f32 %v15836_v8, %v18348_v1  ;;  %v770_v26 = vpop.f32.mrf.mxu0  ;;  %v1039_v27 = vpop.f32.mrf.mxu1  ;;  %16298 = vmatpush3.msra.mxu0 %v13548_v3  ;;  %v14498_v3 = vld [vmem:[%s22433_s5 + $0xc8] sm:$0xff]  }
 0x125   : > { %876 = vst [vmem:[#allocation2 + $0x38] sm:$0xff] %v860_v14  ;;  %1133 = vst [vmem:[#allocation2 + $0xb8] sm:$0xff] %v1117_v22  ;;  %v859_v58 = vadd.f32 %v18362_v23, %v837_v17  ;;  %v1116_v62 = vadd.f32 %v18362_v23, %v1100_v20  ;;  %v771_v28 = vadd.f32 %v18348_v1, %v770_v26  ;;  %16299 = vmatprep.subr.mxu0 %v13547_v56 }
 0x126   : > { %v1040_v29 = vadd.f32 %v18348_v1, %v1039_v27  ;;  %v818_v31 = vmax.f32 %v776_v24, 0.0  ;;  %v1087_v32 = vmax.f32 %v1045_v25, 0.0  ;;  %16300 = vmatpush3.msra.mxu0 %v13547_v56  ;;  %v13536_v5 = vunpack.c.h.bf16 %v14498_v3 }
 0x127   : > { %875 = vst [vmem:[#allocation2 + $0x30] sm:$0xff] %v859_v58  ;;  %1132 = vst [vmem:[#allocation2 + $0xb0] sm:$0xff] %v1116_v62  ;;  %v817_v34 = vmax.f32 %v771_v28, 0.0  ;;  %16214 = vmatprep.mubr.f32.mxu0 %v859_v58  ;;  %16301 = vmatprep.subr.mxu0 %v13544_v21  ;;  %v13535_v24 = vunpack.c.l.bf16 %v14498_v3 }
 0x128   : > { %v1086_v36 = vmax.f32 %v1040_v29, 0.0  ;;  %v840_v37 = vmul.f32 %v18355_v11, %v818_v31  ;;  %v1103_v38 = vmul.f32 %v18355_v11, %v1087_v32  ;;  %v15783_v39 = vpop.f32.mrf.mxu0  ;;  %v15839_v40 = vpop.f32.mrf.mxu1  ;;  %16215 = vmatmul.mubr.f32.gmra.mxu0 %v860_v14 }
 0x129   : > { %v839_v43 = vmul.f32 %v18355_v11, %v817_v34  ;;  %v786_v45 = vadd.f32 %v15783_v39, %v18348_v1  ;;  %v1055_v46 = vadd.f32 %v15839_v40, %v18348_v1  ;;  %16302 = vmatpush3.msra.mxu0 %v13544_v21  ;;  %v14497_v21 = vld [vmem:[%s22433_s5 + $0xc0] sm:$0xff]  }
 0x12a   : > { %v1102_v44 = vmul.f32 %v18355_v11, %v1086_v36  ;;  %v862_v2 = vadd.f32 %v18362_v23, %v840_v37  ;;  %v1119_v49 = vadd.f32 %v18362_v23, %v1103_v38  ;;  %v780_v50 = vpop.f32.mrf.mxu0  ;;  %v1049_v52 = vpop.f32.mrf.mxu1  ;;  %16303 = vmatprep.subr.mxu0 %v13543_v33  ;;  %v13532_v31 = vunpack.c.h.bf16 %v14497_v21 }
 0x12b   : > { %v861_v4 = vadd.f32 %v18362_v23, %v839_v43  ;;  %v820_v56 = vmax.f32 %v786_v45, 0.0  ;;  %v1089_v7 = vmax.f32 %v1055_v46, 0.0  ;;  %16304 = vmatpush3.msra.mxu0 %v13543_v33  ;;  %v781_v60 = vadd.f32 %v18348_v1, %v780_v50 }
 0x12c   : > { %v1118_v55 = vadd.f32 %v18362_v23, %v1102_v44  ;;  %878 = vst [vmem:[#allocation2 + $0x48] sm:$0xff] %v862_v2  ;;  %1135 = vst [vmem:[#allocation2 + $0xc8] sm:$0xff] %v1119_v49  ;;  %v1050_v10 = vadd.f32 %v18348_v1, %v1049_v52  ;;  %16305 = vmatprep.subr.mxu0 %v13540_v42  ;;  %v13531_v39 = vunpack.c.l.bf16 %v14497_v21 }
 0x12d   : > { %877 = vst [vmem:[#allocation2 + $0x40] sm:$0xff] %v861_v4  ;;  %v842_v19 = vmul.f32 %v18355_v11, %v820_v56  ;;  %v1105_v8 = vmul.f32 %v18355_v11, %v1089_v7  ;;  %16217 = vmatprep.mubr.f32.mxu0 %v861_v4  ;;  %16306 = vmatpush3.msra.mxu0 %v13540_v42  ;;  %v819_v14 = vmax.f32 %v781_v60, 0.0 }
 0x12e   : > { %1134 = vst [vmem:[#allocation2 + $0xc0] sm:$0xff] %v1118_v55  ;;  %v1088_v22 = vmax.f32 %v1050_v10, 0.0  ;;  %v15786_v17 = vpop.f32.mrf.mxu0  ;;  %v15842_v20 = vpop.f32.mrf.mxu1  ;;  %16218 = vmatmul.mubr.f32.gmra.mxu0 %v862_v2  ;;  %16307 = vmatprep.subr.mxu0 %v13539_v53 }
 0x12f   : > { %v864_v25 = vadd.f32 %v18362_v23, %v842_v19  ;;  %v1121_v26 = vadd.f32 %v18362_v23, %v1105_v8  ;;  %v796_v27 = vadd.f32 %v15786_v17, %v18348_v1  ;;  %v1065_v58 = vadd.f32 %v15842_v20, %v18348_v1  ;;  %16308 = vmatpush3.msra.mxu0 %v13539_v53 }
 0x130   : > { %v841_v62 = vmul.f32 %v18355_v11, %v819_v14  ;;  %v1104_v28 = vmul.f32 %v18355_v11, %v1088_v22  ;;  %v790_v29 = vpop.f32.mrf.mxu0  ;;  %v1059_v30 = vpop.f32.mrf.mxu1  ;;  %16309 = vmatprep.subr.mxu0 %v13536_v5 }
 0x131   : > { %880 = vst [vmem:[#allocation2 + $0x58] sm:$0xff] %v864_v25  ;;  %1137 = vst [vmem:[#allocation2 + $0xd8] sm:$0xff] %v1121_v26  ;;  %v822_v32 = vmax.f32 %v796_v27, 0.0  ;;  %v1091_v33 = vmax.f32 %v1065_v58, 0.0  ;;  %v791_v34 = vadd.f32 %v18348_v1, %v790_v29  ;;  %v1060_v36 = vadd.f32 %v18348_v1, %v1059_v30  ;;  %16310 = vmatpush3.msra.mxu0 %v13536_v5  ;;  %v14495_v30 = vld [vmem:[%s22433_s5 + $0xb0] sm:$0xff]  }
 0x132   : > { %v863_v37 = vadd.f32 %v18362_v23, %v841_v62  ;;  %v1120_v38 = vadd.f32 %v18362_v23, %v1104_v28  ;;  %16311 = vmatprep.subr.mxu0 %v13535_v24 }
 0x133   : > { %v844_v40 = vmul.f32 %v18355_v11, %v822_v32  ;;  %v1107_v42 = vmul.f32 %v18355_v11, %v1091_v33  ;;  %v821_v43 = vmax.f32 %v791_v34, 0.0  ;;  %v1090_v44 = vmax.f32 %v1060_v36, 0.0  ;;  %16312 = vmatpush3.msra.mxu0 %v13535_v24 }
 0x134   : > { %879 = vst [vmem:[#allocation2 + $0x50] sm:$0xff] %v863_v37  ;;  %1136 = vst [vmem:[#allocation2 + $0xd0] sm:$0xff] %v1120_v38  ;;  %v15789_v45 = vpop.f32.mrf.mxu0  ;;  %v15845_v46 = vpop.f32.mrf.mxu1  ;;  %16220 = vmatprep.mubr.f32.mxu0 %v863_v37  ;;  %16313 = vmatprep.subr.mxu0 %v13532_v31 }
 0x135   : > { %v866_v3 = vadd.f32 %v18362_v23, %v844_v40  ;;  %v1123_v2 = vadd.f32 %v18362_v23, %v1107_v42  ;;  %v843_v49 = vmul.f32 %v18355_v11, %v821_v43  ;;  %v1106_v50 = vmul.f32 %v18355_v11, %v1090_v44  ;;  %16221 = vmatmul.mubr.f32.gmra.mxu0 %v864_v25 }
 0x136   : > { %v806_v52 = vadd.f32 %v15789_v45, %v18348_v1  ;;  %v1075_v53 = vadd.f32 %v15845_v46, %v18348_v1  ;;  %v800_v4 = vpop.f32.mrf.mxu0  ;;  %v1069_v55 = vpop.f32.mrf.mxu1  ;;  %16314 = vmatpush3.msra.mxu0 %v13532_v31  ;;  %v18502_v45 = vunpack.c.h.bf16 %v14495_v30 }
 0x137   : > { %882 = vst [vmem:[#allocation2 + $0x68] sm:$0xff] %v866_v3  ;;  %1139 = vst [vmem:[#allocation2 + $0xe8] sm:$0xff] %v1123_v2  ;;  %v865_v56 = vadd.f32 %v18362_v23, %v843_v49  ;;  %v1122_v7 = vadd.f32 %v18362_v23, %v1106_v50  ;;  %v801_v60 = vadd.f32 %v18348_v1, %v800_v4  ;;  %16315 = vmatprep.subr.mxu0 %v13531_v39  ;;  %v18510_v50 = vld [vmem:[%s22433_s5 + $0xa8] sm:$0xff]  }
 0x138   : > { %v1070_v10 = vadd.f32 %v18348_v1, %v1069_v55  ;;  %v824_v5 = vmax.f32 %v806_v52, 0.0  ;;  %v1093_v19 = vmax.f32 %v1075_v53, 0.0  ;;  %16316 = vmatpush3.msra.mxu0 %v13531_v39  ;;  %v18497_v39 = vunpack.c.l.bf16 %v18329_v15 }
 0x139   : > { %881 = vst [vmem:[#allocation2 + $0x60] sm:$0xff] %v865_v56  ;;  %1138 = vst [vmem:[#allocation2 + $0xe0] sm:$0xff] %v1122_v7  ;;  %v823_v8 = vmax.f32 %v801_v60, 0.0  ;;  %16223 = vmatprep.mubr.f32.mxu0 %v865_v56  ;;  %16397 = vmatprep.subr.mxu0 %v18178_v59  ;;  %v18505_v15 = vunpack.c.l.bf16 %v14495_v30 }
 0x13a   : > { %v1092_v21 = vmax.f32 %v1070_v10, 0.0  ;;  %v846_v14 = vmul.f32 %v18355_v11, %v824_v5  ;;  %v1109_v22 = vmul.f32 %v18355_v11, %v1093_v19  ;;  %v15880_v17 = vpop.f32.mrf.mxu0  ;;  %v15936_v20 = vpop.f32.mrf.mxu1  ;;  %16224 = vmatmul.mubr.f32.gmra.mxu0 %v866_v3 }
 0x13b   : > { %v845_v24 = vmul.f32 %v18355_v11, %v823_v8  ;;  %v1262_v26 = vadd.f32 %v15880_v17, %v18348_v1  ;;  %v1519_v27 = vadd.f32 %v15936_v20, %v18348_v1  ;;  %v18521_v17 = vunpack.c.h.bf16 %v18510_v50 }
 0x13c   : > { %v1108_v25 = vmul.f32 %v18355_v11, %v1092_v21  ;;  %v868_v58 = vadd.f32 %v18362_v23, %v846_v14  ;;  %v1125_v62 = vadd.f32 %v18362_v23, %v1109_v22  ;;  %v1256_v28 = vpop.f32.mrf.mxu0  ;;  %v1513_v29 = vpop.f32.mrf.mxu1 }
 0x13d   : > { %v867_v31 = vadd.f32 %v18362_v23, %v845_v24  ;;  %v1336_v33 = vmax.f32 %v1262_v26, 0.0  ;;  %v1593_v34 = vmax.f32 %v1519_v27, 0.0  ;;  %v1257_v36 = vadd.f32 %v18348_v1, %v1256_v28 }
 0x13e   : > { %v1124_v32 = vadd.f32 %v18362_v23, %v1108_v25  ;;  %884 = vst [vmem:[#allocation2 + $0x78] sm:$0xff] %v868_v58  ;;  %1141 = vst [vmem:[#allocation2 + $0xf8] sm:$0xff] %v1125_v62  ;;  %v1514_v37 = vadd.f32 %v18348_v1, %v1513_v29  ;;  %v15939_v38 = vpop.f32.mrf.mxu1 }
 0x13f   : > { %883 = vst [vmem:[#allocation2 + $0x70] sm:$0xff] %v867_v31  ;;  %v1352_v40 = vmul.f32 %v18355_v11, %v1336_v33  ;;  %v1609_v42 = vmul.f32 %v18355_v11, %v1593_v34  ;;  %v15883_v43 = vpop.f32.mrf.mxu0  ;;  %v1529_v44 = vadd.f32 %v15939_v38, %v18348_v1  ;;  %16226 = vmatprep.mubr.f32.mxu0 %v867_v31  ;;  %v1335_v46 = vmax.f32 %v1257_v36, 0.0 }
 0x140   : > { %1140 = vst [vmem:[#allocation2 + $0xf0] sm:$0xff] %v1124_v32  ;;  %v1592_v3 = vmax.f32 %v1514_v37, 0.0  ;;  %v1272_v2 = vadd.f32 %v15883_v43, %v18348_v1  ;;  %v1523_v49 = vpop.f32.mrf.mxu1  ;;  %16227 = vmatmul.mubr.f32.gmra.mxu0 %v868_v58 }
 0x141   : > { %v1368_v52 = vadd.f32 %v18362_v23, %v1352_v40  ;;  %v1625_v53 = vadd.f32 %v18362_v23, %v1609_v42  ;;  %v1595_v4 = vmax.f32 %v1529_v44, 0.0  ;;  %v1266_v55 = vpop.f32.mrf.mxu0  ;;  %v1524_v56 = vadd.f32 %v18348_v1, %v1523_v49 }
 0x142   : > { %v1351_v7 = vmul.f32 %v18355_v11, %v1335_v46  ;;  %v1608_v60 = vmul.f32 %v18355_v11, %v1592_v3  ;;  %v1338_v10 = vmax.f32 %v1272_v2, 0.0  ;;  %v1267_v5 = vadd.f32 %v18348_v1, %v1266_v55  ;;  %v15942_v19 = vpop.f32.mrf.mxu1 }
 0x143   : > { %1384 = vst [vmem:[#allocation2 + $0x108] sm:$0xff] %v1368_v52  ;;  %1641 = vst [vmem:[#allocation2 + $0x188] sm:$0xff] %v1625_v53  ;;  %v1611_v8 = vmul.f32 %v18355_v11, %v1595_v4  ;;  %v1594_v21 = vmax.f32 %v1524_v56, 0.0  ;;  %v15886_v14 = vpop.f32.mrf.mxu0  ;;  %v1539_v22 = vadd.f32 %v15942_v19, %v18348_v1 }
 0x144   : > { %v1367_v20 = vadd.f32 %v18362_v23, %v1351_v7  ;;  %v1624_v24 = vadd.f32 %v18362_v23, %v1608_v60  ;;  %v1354_v25 = vmul.f32 %v18355_v11, %v1338_v10  ;;  %v1337_v26 = vmax.f32 %v1267_v5, 0.0  ;;  %v1533_v27 = vpop.f32.mrf.mxu1 }
 0x145   : > { %v1627_v58 = vadd.f32 %v18362_v23, %v1611_v8  ;;  %v1610_v62 = vmul.f32 %v18355_v11, %v1594_v21  ;;  %v1282_v28 = vadd.f32 %v15886_v14, %v18348_v1  ;;  %v1597_v29 = vmax.f32 %v1539_v22, 0.0  ;;  %v1276_v30 = vpop.f32.mrf.mxu0 }
 0x146   : > { %1383 = vst [vmem:[#allocation2 + $0x100] sm:$0xff] %v1367_v20  ;;  %1640 = vst [vmem:[#allocation2 + $0x180] sm:$0xff] %v1624_v24  ;;  %v1370_v31 = vadd.f32 %v18362_v23, %v1354_v25  ;;  %v1353_v32 = vmul.f32 %v18355_v11, %v1337_v26  ;;  %v1277_v33 = vadd.f32 %v18348_v1, %v1276_v30  ;;  %v15945_v36 = vpop.f32.mrf.mxu1 }
 0x147   : > { %v1534_v34 = vadd.f32 %v18348_v1, %v1533_v27  ;;  %1643 = vst [vmem:[#allocation2 + $0x198] sm:$0xff] %v1627_v58  ;;  %v1626_v37 = vadd.f32 %v18362_v23, %v1610_v62  ;;  %v1340_v38 = vmax.f32 %v1282_v28, 0.0  ;;  %v1613_v40 = vmul.f32 %v18355_v11, %v1597_v29  ;;  %v15889_v42 = vpop.f32.mrf.mxu0 }
 0x148   : > { %v1549_v43 = vadd.f32 %v15945_v36, %v18348_v1  ;;  %1386 = vst [vmem:[#allocation2 + $0x118] sm:$0xff] %v1370_v31  ;;  %v1369_v44 = vadd.f32 %v18362_v23, %v1353_v32  ;;  %v1339_v46 = vmax.f32 %v1277_v33, 0.0  ;;  %v1292_v2 = vadd.f32 %v15889_v42, %v18348_v1  ;;  %v1543_v49 = vpop.f32.mrf.mxu1 }
 0x149   : > { %v1596_v3 = vmax.f32 %v1534_v34, 0.0  ;;  %1642 = vst [vmem:[#allocation2 + $0x190] sm:$0xff] %v1626_v37  ;;  %v1356_v52 = vmul.f32 %v18355_v11, %v1340_v38  ;;  %v1629_v53 = vadd.f32 %v18362_v23, %v1613_v40  ;;  %v1286_v55 = vpop.f32.mrf.mxu0  ;;  %v1544_v56 = vadd.f32 %v18348_v1, %v1543_v49 }
 0x14a   : > { %v1599_v4 = vmax.f32 %v1549_v43, 0.0  ;;  %1385 = vst [vmem:[#allocation2 + $0x110] sm:$0xff] %v1369_v44  ;;  %v1355_v7 = vmul.f32 %v18355_v11, %v1339_v46  ;;  %v1342_v10 = vmax.f32 %v1292_v2, 0.0  ;;  %v1287_v5 = vadd.f32 %v18348_v1, %v1286_v55  ;;  %v15948_v19 = vpop.f32.mrf.mxu1 }
 0x14b   : > { %v1612_v60 = vmul.f32 %v18355_v11, %v1596_v3  ;;  %v1372_v8 = vadd.f32 %v18362_v23, %v1356_v52  ;;  %1645 = vst [vmem:[#allocation2 + $0x1a8] sm:$0xff] %v1629_v53  ;;  %v1598_v14 = vmax.f32 %v1544_v56, 0.0  ;;  %v15892_v22 = vpop.f32.mrf.mxu0  ;;  %v1559_v20 = vadd.f32 %v15948_v19, %v18348_v1  ;;  %16149 = vmatprep.mubr.f32.mxu1 %v1629_v53 }
 0x14c   : > { %v1615_v21 = vmul.f32 %v18355_v11, %v1599_v4  ;;  %v1371_v24 = vadd.f32 %v18362_v23, %v1355_v7  ;;  %v1358_v26 = vmul.f32 %v18355_v11, %v1342_v10  ;;  %v1341_v27 = vmax.f32 %v1287_v5, 0.0  ;;  %v1553_v58 = vpop.f32.mrf.mxu1 }
 0x14d   : > { %v1628_v25 = vadd.f32 %v18362_v23, %v1612_v60  ;;  %1388 = vst [vmem:[#allocation2 + $0x128] sm:$0xff] %v1372_v8  ;;  %v1614_v28 = vmul.f32 %v18355_v11, %v1598_v14  ;;  %v1302_v29 = vadd.f32 %v15892_v22, %v18348_v1  ;;  %v1601_v30 = vmax.f32 %v1559_v20, 0.0  ;;  %v1296_v31 = vpop.f32.mrf.mxu0 }
 0x14e   : > { %v1631_v62 = vadd.f32 %v18362_v23, %v1615_v21  ;;  %1387 = vst [vmem:[#allocation2 + $0x120] sm:$0xff] %v1371_v24  ;;  %v1374_v32 = vadd.f32 %v18362_v23, %v1358_v26  ;;  %v1357_v33 = vmul.f32 %v18355_v11, %v1341_v27  ;;  %v1297_v34 = vadd.f32 %v18348_v1, %v1296_v31  ;;  %v15951_v37 = vpop.f32.mrf.mxu1 }
 0x14f   : > { %1644 = vst [vmem:[#allocation2 + $0x1a0] sm:$0xff] %v1628_v25  ;;  %v1554_v36 = vadd.f32 %v18348_v1, %v1553_v58  ;;  %v1630_v38 = vadd.f32 %v18362_v23, %v1614_v28  ;;  %v1344_v40 = vmax.f32 %v1302_v29, 0.0  ;;  %v1617_v42 = vmul.f32 %v18355_v11, %v1601_v30  ;;  %v15895_v43 = vpop.f32.mrf.mxu0 }
 0x150   : > { %1647 = vst [vmem:[#allocation2 + $0x1b8] sm:$0xff] %v1631_v62  ;;  %v1569_v44 = vadd.f32 %v15951_v37, %v18348_v1  ;;  %1390 = vst [vmem:[#allocation2 + $0x138] sm:$0xff] %v1374_v32  ;;  %v1373_v46 = vadd.f32 %v18362_v23, %v1357_v33  ;;  %v1343_v3 = vmax.f32 %v1297_v34, 0.0  ;;  %v1312_v49 = vadd.f32 %v15895_v43, %v18348_v1  ;;  %v1563_v52 = vpop.f32.mrf.mxu1 }
 0x151   : > { %v1600_v2 = vmax.f32 %v1554_v36, 0.0  ;;  %1646 = vst [vmem:[#allocation2 + $0x1b0] sm:$0xff] %v1630_v38  ;;  %v1360_v53 = vmul.f32 %v18355_v11, %v1344_v40  ;;  %v1633_v4 = vadd.f32 %v18362_v23, %v1617_v42  ;;  %v1306_v56 = vpop.f32.mrf.mxu0  ;;  %v1564_v7 = vadd.f32 %v18348_v1, %v1563_v52  ;;  %16150 = vmatmul.mubr.f32.vlgmr.msra.gmra.mxu1 %v1630_v38 }
 0x152   : > { %v1603_v55 = vmax.f32 %v1569_v44, 0.0  ;;  %1389 = vst [vmem:[#allocation2 + $0x130] sm:$0xff] %v1373_v46  ;;  %v1359_v60 = vmul.f32 %v18355_v11, %v1343_v3  ;;  %v1346_v5 = vmax.f32 %v1312_v49, 0.0  ;;  %v1307_v19 = vadd.f32 %v18348_v1, %v1306_v56  ;;  %v15954_v8 = vpop.f32.mrf.mxu1  ;;  %16230 = vmatpush3.msra.mxu1 %v18339_v18  ;;  %16152 = vmatprep.mubr.f32.mxu1 %v1631_v62 }
 0x153   : > { %v1616_v10 = vmul.f32 %v18355_v11, %v1600_v2  ;;  %v1376_v21 = vadd.f32 %v18362_v23, %v1360_v53  ;;  %1649 = vst [vmem:[#allocation2 + $0x1c8] sm:$0xff] %v1633_v4  ;;  %v1602_v22 = vmax.f32 %v1564_v7, 0.0  ;;  %v15898_v20 = vpop.f32.mrf.mxu0  ;;  %v1579_v24 = vadd.f32 %v15954_v8, %v18348_v1  ;;  %16231 = vmatprep.subr.mxu1 %v18497_v39 }
 0x154   : > { %v1619_v14 = vmul.f32 %v18355_v11, %v1603_v55  ;;  %v1375_v25 = vadd.f32 %v18362_v23, %v1359_v60  ;;  %v1362_v27 = vmul.f32 %v18355_v11, %v1346_v5  ;;  %v1345_v58 = vmax.f32 %v1307_v19, 0.0  ;;  %v1573_v28 = vpop.f32.mrf.mxu1  ;;  %16232 = vmatpush3.msra.mxu1 %v18497_v39 }
 0x155   : > { %v1632_v26 = vadd.f32 %v18362_v23, %v1616_v10  ;;  %1392 = vst [vmem:[#allocation2 + $0x148] sm:$0xff] %v1376_v21  ;;  %v1618_v29 = vmul.f32 %v18355_v11, %v1602_v22  ;;  %v1322_v30 = vadd.f32 %v15898_v20, %v18348_v1  ;;  %v1605_v31 = vmax.f32 %v1579_v24, 0.0  ;;  %v1316_v32 = vpop.f32.mrf.mxu0  ;;  %16233 = vmatprep.subr.mxu1 %v18502_v45 }
 0x156   : > { %v18578_v62 = vadd.f32 %v18362_v23, %v1619_v14  ;;  %1391 = vst [vmem:[#allocation2 + $0x140] sm:$0xff] %v1375_v25  ;;  %v1378_v33 = vadd.f32 %v18362_v23, %v1362_v27  ;;  %v1361_v34 = vmul.f32 %v18355_v11, %v1345_v58  ;;  %v1317_v36 = vadd.f32 %v18348_v1, %v1316_v32  ;;  %v15957_v38 = vpop.f32.mrf.mxu1  ;;  %v14493_v27 = vld [vmem:[%s22433_s5 + $0xa0] sm:$0xff]  }
 0x157   : > { %1648 = vst [vmem:[#allocation2 + $0x1c0] sm:$0xff] %v1632_v26  ;;  %v1574_v37 = vadd.f32 %v18348_v1, %v1573_v28  ;;  %16153 = vmatmul.mubr.f32.gmra.mxu1 %v1632_v26  ;;  %v1634_v40 = vadd.f32 %v18362_v23, %v1618_v29  ;;  %v1348_v42 = vmax.f32 %v1322_v30, 0.0  ;;  %v1621_v43 = vmul.f32 %v18355_v11, %v1605_v31  ;;  %v15901_v44 = vpop.f32.mrf.mxu0 }
 0x158   : > { %1651 = vst [vmem:[#allocation2 + $0x1d8] sm:$0xff] %v18578_v62  ;;  %v1589_v46 = vadd.f32 %v15957_v38, %v18348_v1  ;;  %16234 = vmatpush3.msra.mxu1 %v18502_v45  ;;  %16155 = vmatprep.mubr.f32.mxu1 %v1633_v4  ;;  %1394 = vst [vmem:[#allocation2 + $0x158] sm:$0xff] %v1378_v33  ;;  %v1377_v3 = vadd.f32 %v18362_v23, %v1361_v34  ;;  %v1347_v2 = vmax.f32 %v1317_v36, 0.0  ;;  %v1583_v53 = vpop.f32.mrf.mxu1  ;;  %v2964_v55 = vld [vmem:[#allocation2 + $0x1a9] sm:$0xff]  ;;  %v2965_v56 = vld [vmem:[#allocation2 + $0x1b1] sm:$0xff] }
 0x159   : > { %v1604_v49 = vmax.f32 %v1574_v37, 0.0  ;;  %v1332_v52 = vadd.f32 %v15901_v44, %v18348_v1  ;;  %16235 = vmatprep.subr.mxu1 %v18505_v15  ;;  %1650 = vst [vmem:[#allocation2 + $0x1d0] sm:$0xff] %v1634_v40  ;;  %v1364_v7 = vmul.f32 %v18355_v11, %v1348_v42  ;;  %v18597_v60 = vadd.f32 %v18362_v23, %v1621_v43  ;;  %v1326_v4 = vpop.f32.mrf.mxu0 }
 0x15a   : > { %v1607_v10 = vmax.f32 %v1589_v46, 0.0  ;;  %v1584_v5 = vadd.f32 %v18348_v1, %v1583_v53  ;;  %16317 = vmatprep.mubr.f32.mxu0 %v2964_v55  ;;  %16236 = vmatpush3.msra.mxu1 %v18505_v15  ;;  %1393 = vst [vmem:[#allocation2 + $0x150] sm:$0xff] %v1377_v3  ;;  %v1363_v19 = vmul.f32 %v18355_v11, %v1347_v2  ;;  %v18610_v26 = vunpack.c.l.bf16 %v18510_v50 }
 0x15b   : > { %v1620_v8 = vmul.f32 %v18355_v11, %v1604_v49  ;;  %v1350_v21 = vmax.f32 %v1332_v52, 0.0  ;;  %v1327_v14 = vadd.f32 %v18348_v1, %v1326_v4  ;;  %16318 = vmatmul.mubr.f32.vlgmr.msra.gmra.mxu0 %v2965_v56  ;;  %16237 = vmatprep.subr.mxu1 %v18521_v17  ;;  %v1380_v22 = vadd.f32 %v18362_v23, %v1364_v7  ;;  %v15992_v25 = vpop.f32.mrf.mxu0  ;;  %v14492_v56 = vld [vmem:[%s22433_s5 + $0x98] sm:$0xff]  }
 0x15c   : > { %1653 = vst [vmem:[#allocation2 + $0x1e8] sm:$0xff] %v18597_v60  ;;  %v1623_v20 = vmul.f32 %v18355_v11, %v1607_v10  ;;  %v1606_v24 = vmax.f32 %v1584_v5, 0.0  ;;  %16398 = vmatpush3.msra.mxu0 %v18178_v59  ;;  %16156 = vmatmul.mubr.f32.gmra.mxu1 %v1634_v40  ;;  %v1379_v58 = vadd.f32 %v18362_v23, %v1363_v19  ;;  %v18631_v40 = vunpack.c.h.bf16 %v14493_v27 }
 0x15d   : > { %v1636_v28 = vadd.f32 %v18362_v23, %v1620_v8  ;;  %v1366_v29 = vmul.f32 %v18355_v11, %v1350_v21  ;;  %v1349_v30 = vmax.f32 %v1327_v14, 0.0  ;;  %16399 = vmatprep.subr.mxu0 %v18187_v61  ;;  %16238 = vmatpush3.msra.mxu1 %v18521_v17  ;;  %1396 = vst [vmem:[#allocation2 + $0x168] sm:$0xff] %v1380_v22  ;;  %v1770_v32 = vpop.f32.mrf.mxu0  ;;  %v18661_v10 = vunpack.c.l.bf16 %v14493_v27 }
 0x15e   : > { %v18621_v59 = vadd.f32 %v18362_v23, %v1623_v20  ;;  %v1622_v50 = vmul.f32 %v18355_v11, %v1606_v24  ;;  %v1776_v31 = vadd.f32 %v15992_v25, %v18348_v1  ;;  %16400 = vmatpush3.msra.mxu0 %v18187_v61  ;;  %v2966_v33 = vld [vmem:[#allocation2 + $0x1b9] sm:$0xff]  ;;  %v2967_v34 = vld [vmem:[#allocation2 + $0x1c1] sm:$0xff]  ;;  %16158 = vmatprep.mubr.f32.mxu1 %v18578_v62  ;;  %v18677_v22 = vunpack.c.h.bf16 %v14492_v56 }
 0x15f   : > { %1395 = vst [vmem:[#allocation2 + $0x160] sm:$0xff] %v1379_v58  ;;  %1652 = vst [vmem:[#allocation2 + $0x1e0] sm:$0xff] %v1636_v28  ;;  %v1382_v36 = vadd.f32 %v18362_v23, %v1366_v29  ;;  %v1365_v37 = vmul.f32 %v18355_v11, %v1349_v30  ;;  %v1771_v38 = vadd.f32 %v18348_v1, %v1770_v32  ;;  %16320 = vmatprep.mubr.f32.mxu0 %v2966_v33  ;;  %v15995_v62 = vpop.f32.mrf.mxu0  ;;  %v18683_v20 = vld [vmem:[%s22436_s4] ss:$0 sm:$0xff]  ;;  %s594_s4 = scalar_lea.vmem [#allocation6], %s593_s27 }
 0x160   : > { %16401 = vmatprep.subr.mxu0 %v18200_v63  ;;  %1655 = vst [vmem:[#allocation2 + $0x1f8] sm:$0xff] %v18621_v59  ;;  %v18635_v61 = vadd.f32 %v18362_v23, %v1622_v50  ;;  %v1850_v42 = vmax.f32 %v1776_v31, 0.0  ;;  %16321 = vmatmul.mubr.f32.gmra.mxu0 %v2967_v34  ;;  %v1786_v46 = vadd.f32 %v15995_v62, %v18348_v1  ;;  %v2968_v3 = vld [vmem:[#allocation2 + $0x1c9] sm:$0xff]  ;;  %v2969_v2 = vld [vmem:[#allocation2 + $0x1d1] sm:$0xff]  ;;  %v18705_v32 = vunpack.c.l.bf16 %v14492_v56 }
 0x161   : > { %16239 = vmatprep.subr.mxu1 %v18610_v26  ;;  %1398 = vst [vmem:[#allocation2 + $0x178] sm:$0xff] %v1382_v36  ;;  %v1381_v43 = vadd.f32 %v18362_v23, %v1365_v37  ;;  %v1849_v44 = vmax.f32 %v1771_v38, 0.0  ;;  %16402 = vmatpush3.msra.mxu0 %v18200_v63  ;;  %v1780_v52 = vpop.f32.mrf.mxu0  ;;  %v18649_v63 = vld [vmem:[%s22434_s24] ss:$0 sm:$0xff] }
 0x162   : > { %16240 = vmatpush3.msra.mxu1 %v18610_v26  ;;  %1654 = vst [vmem:[#allocation2 + $0x1f0] sm:$0xff] %v18635_v61  ;;  %v1866_v49 = vmul.f32 %v18355_v11, %v1850_v42  ;;  %16403 = vmatprep.subr.mxu0 %v18210_v0  ;;  %v1852_v55 = vmax.f32 %v1786_v46, 0.0  ;;  %v1781_v1 = vadd.f32 %v18649_v63, %v1780_v52  ;;  %v14490_v52 = vld [vmem:[%s22433_s5 + $0x88] sm:$0xff]  }
 0x163   : > { %16323 = vmatprep.mubr.f32.mxu0 %v2968_v3  ;;  %1397 = vst [vmem:[#allocation2 + $0x170] sm:$0xff] %v1381_v43  ;;  %v1865_v53 = vmul.f32 %v18355_v11, %v1849_v44  ;;  %16404 = vmatpush3.msra.mxu0 %v18210_v0  ;;  %v15998_v11 = vpop.f32.mrf.mxu0  ;;  %v18669_v0 = vld [vmem:[%s22435_s29] ss:$0 sm:$0xff] }
 0x164   : > { %16241 = vmatprep.subr.mxu1 %v18631_v40  ;;  %v18658_v7 = vadd.f32 %v18362_v23, %v1866_v49  ;;  %16405 = vmatprep.subr.mxu0 %v18250_v35  ;;  %v1868_v5 = vmul.f32 %v18669_v0, %v1852_v55  ;;  %v1851_v19 = vmax.f32 %v1781_v1, 0.0  ;;  %v1796_v8 = vadd.f32 %v18649_v63, %v15998_v11 }
 0x165   : > { %16324 = vmatmul.mubr.f32.gmra.mxu0 %v2969_v2  ;;  %v18664_v4 = vadd.f32 %v18362_v23, %v1865_v53  ;;  %16159 = vmatmul.mubr.f32.gmra.mxu1 %v1636_v28  ;;  %v1790_v21 = vpop.f32.mrf.mxu0 }
 0x166   : > { %16406 = vmatpush3.msra.mxu0 %v18250_v35  ;;  %1898 = vst [vmem:[#allocation2 + $0x208] sm:$0xff] %v18658_v7  ;;  %16242 = vmatpush3.msra.mxu1 %v18631_v40  ;;  %v2970_v23 = vld [vmem:[#allocation2 + $0x1d9] sm:$0xff]  ;;  %v2971_v14 = vld [vmem:[#allocation2 + $0x1e1] sm:$0xff]  ;;  %v18686_v35 = vadd.f32 %v18683_v20, %v1868_v5  ;;  %v1867_v24 = vmul.f32 %v18669_v0, %v1851_v19  ;;  %v1854_v25 = vmax.f32 %v1796_v8, 0.0  ;;  %v18752_v19 = vunpack.c.h.bf16 %v14490_v52 }
 0x167   : > { %16407 = vmatprep.subr.mxu0 %v18258_v41  ;;  %1897 = vst [vmem:[#allocation2 + $0x200] sm:$0xff] %v18664_v4  ;;  %v1791_v27 = vadd.f32 %v18649_v63, %v1790_v21  ;;  %16326 = vmatprep.mubr.f32.mxu0 %v2970_v23  ;;  %v16001_v58 = vpop.f32.mrf.mxu0 }
 0x168   : > { %16408 = vmatpush3.msra.mxu0 %v18258_v41  ;;  %16161 = vmatprep.mubr.f32.mxu1 %v18597_v60  ;;  %1900 = vst [vmem:[#allocation2 + $0x218] sm:$0xff] %v18686_v35  ;;  %v18695_v28 = vadd.f32 %v18683_v20, %v1867_v24  ;;  %v1870_v29 = vmul.f32 %v18669_v0, %v1854_v25  ;;  %v14491_v41 = vld [vmem:[%s22433_s5 + $0x90] sm:$0xff]  }
 0x169   : > { %16409 = vmatprep.subr.mxu0 %v18268_v47  ;;  %v1853_v30 = vmax.f32 %v1791_v27, 0.0  ;;  %v1806_v50 = vadd.f32 %v18649_v63, %v16001_v58  ;;  %16243 = vmatprep.subr.mxu1 %v18661_v10  ;;  %v1800_v60 = vpop.f32.mrf.mxu0  ;;  %v2972_v31 = vld [vmem:[#allocation2 + $0x1e9] sm:$0xff]  ;;  %v18717_v42 = vunpack.c.h.bf16 %v14491_v41  ;;  %v18740_v53 = vunpack.c.l.bf16 %v14491_v41 }
 0x16a   : > { %16327 = vmatmul.mubr.f32.gmra.mxu0 %v2971_v14  ;;  %16244 = vmatpush3.msra.mxu1 %v18661_v10  ;;  %1899 = vst [vmem:[#allocation2 + $0x210] sm:$0xff] %v18695_v28  ;;  %v18709_v33 = vadd.f32 %v18683_v20, %v1870_v29  ;;  %v1801_v37 = vadd.f32 %v18649_v63, %v1800_v60  ;;  %v14489_v29 = vld [vmem:[%s22433_s5 + $0x80] sm:$0xff]  }
 0x16b   : > { %16410 = vmatpush3.msra.mxu0 %v18268_v47  ;;  %v1869_v34 = vmul.f32 %v18669_v0, %v1853_v30  ;;  %v1856_v36 = vmax.f32 %v1806_v50, 0.0  ;;  %16245 = vmatprep.subr.mxu1 %v18677_v22  ;;  %v2973_v47 = vld [vmem:[#allocation2 + $0x1f1] sm:$0xff]  ;;  %v16004_v38 = vpop.f32.mrf.mxu0  ;;  %v18775_v30 = vunpack.c.l.bf16 %v14490_v52 }
 0x16c   : > { %16411 = vmatprep.subr.mxu0 %v18274_v48  ;;  %16162 = vmatmul.mubr.f32.gmra.mxu1 %v18635_v61  ;;  %1902 = vst [vmem:[#allocation2 + $0x228] sm:$0xff] %v18709_v33  ;;  %v1855_v44 = vmax.f32 %v1801_v37, 0.0  ;;  %v1816_v46 = vadd.f32 %v18649_v63, %v16004_v38 }
 0x16d   : > { %16412 = vmatpush3.msra.mxu0 %v18274_v48  ;;  %v18721_v62 = vadd.f32 %v18683_v20, %v1869_v34  ;;  %v1872_v43 = vmul.f32 %v18669_v0, %v1856_v36  ;;  %16246 = vmatpush3.msra.mxu1 %v18677_v22  ;;  %v1810_v48 = vpop.f32.mrf.mxu0  ;;  %v18787_v36 = vunpack.c.h.bf16 %v14489_v29 }
 0x16e   : > { %16329 = vmatprep.mubr.f32.mxu0 %v2972_v31  ;;  %16413 = vmatprep.subr.mxu0 %v18281_v51  ;;  %v1871_v3 = vmul.f32 %v18669_v0, %v1855_v44  ;;  %v1858_v2 = vmax.f32 %v1816_v46, 0.0  ;;  %v1811_v49 = vadd.f32 %v18649_v63, %v1810_v48  ;;  %v2975_v5 = vld [vmem:[#allocation2 + $0x201] sm:$0xff] }
 0x16f   : > { %16164 = vmatprep.mubr.f32.mxu1 %v18621_v59  ;;  %1901 = vst [vmem:[#allocation2 + $0x220] sm:$0xff] %v18721_v62  ;;  %v18730_v61 = vadd.f32 %v18683_v20, %v1872_v43  ;;  %16247 = vmatprep.subr.mxu1 %v18705_v32  ;;  %v2974_v59 = vld [vmem:[#allocation2 + $0x1f9] sm:$0xff]  ;;  %v16007_v55 = vpop.f32.mrf.mxu0 }
 0x170   : > { %16330 = vmatmul.mubr.f32.gmra.mxu0 %v2973_v47  ;;  %16248 = vmatpush3.msra.mxu1 %v18705_v32  ;;  %v18744_v1 = vadd.f32 %v18683_v20, %v1871_v3  ;;  %v1874_v56 = vmul.f32 %v18669_v0, %v1858_v2  ;;  %v1857_v11 = vmax.f32 %v1811_v49, 0.0 }
 0x171   : > { %16414 = vmatpush3.msra.mxu0 %v18281_v51  ;;  %1904 = vst [vmem:[#allocation2 + $0x238] sm:$0xff] %v18730_v61  ;;  %16249 = vmatprep.subr.mxu1 %v18717_v42  ;;  %v1826_v51 = vadd.f32 %v18649_v63, %v16007_v55  ;;  %v1820_v8 = vpop.f32.mrf.mxu0  ;;  %v2977_v34 = vld [vmem:[#allocation2 + $0x211] sm:$0xff] }
 0x172   : > { %16415 = vmatprep.subr.mxu0 %v18288_v54  ;;  %16165 = vmatmul.mubr.f32.gmra.mxu1 %v18664_v4  ;;  %1903 = vst [vmem:[#allocation2 + $0x230] sm:$0xff] %v18744_v1  ;;  %v18756_v21 = vadd.f32 %v18683_v20, %v1874_v56  ;;  %v1873_v23 = vmul.f32 %v18669_v0, %v1857_v11  ;;  %v14512_v55 = vld [vmem:[%s22433_s5 + $0x138] sm:$0xff]  }
 0x173   : > { %16416 = vmatpush3.msra.mxu0 %v18288_v54  ;;  %16250 = vmatpush3.msra.mxu1 %v18717_v42  ;;  %v1860_v14 = vmax.f32 %v1826_v51, 0.0  ;;  %v1821_v24 = vadd.f32 %v18649_v63, %v1820_v8  ;;  %v16010_v54 = vpop.f32.mrf.mxu0 }
 0x174   : > { %16332 = vmatprep.mubr.f32.mxu0 %v2974_v59  ;;  %16417 = vmatprep.subr.mxu0 %v18295_v6  ;;  %1906 = vst [vmem:[#allocation2 + $0x248] sm:$0xff] %v18756_v21  ;;  %v18765_v4 = vadd.f32 %v18683_v20, %v1873_v23  ;;  %v1836_v58 = vadd.f32 %v18649_v63, %v16010_v54  ;;  %v18808_v59 = vunpack.c.l.bf16 %v14489_v29 }
 0x175   : > { %16167 = vmatprep.mubr.f32.mxu1 %v18658_v7  ;;  %16251 = vmatprep.subr.mxu1 %v18740_v53  ;;  %v1876_v25 = vmul.f32 %v18669_v0, %v1860_v14  ;;  %v1859_v27 = vmax.f32 %v1821_v24, 0.0  ;;  %v2976_v7 = vld [vmem:[#allocation2 + $0x209] sm:$0xff]  ;;  %v1830_v50 = vpop.f32.mrf.mxu0 }
 0x176   : > { %16333 = vmatmul.mubr.f32.gmra.mxu0 %v2975_v5  ;;  %16252 = vmatpush3.msra.mxu1 %v18740_v53  ;;  %1905 = vst [vmem:[#allocation2 + $0x240] sm:$0xff] %v18765_v4  ;;  %v1862_v31 = vmax.f32 %v1836_v58, 0.0  ;;  %v2979_v23 = vld [vmem:[#allocation2 + $0x221] sm:$0xff] }
 0x177   : > { %16418 = vmatpush3.msra.mxu0 %v18295_v6  ;;  %v18779_v41 = vadd.f32 %v18683_v20, %v1876_v25  ;;  %16253 = vmatprep.subr.mxu1 %v18752_v19  ;;  %v1875_v60 = vmul.f32 %v18669_v0, %v1859_v27  ;;  %v1831_v6 = vadd.f32 %v18649_v63, %v1830_v50  ;;  %v16013_v37 = vpop.f32.mrf.mxu0  ;;  %v18830_v27 = vunpack.c.h.bf16 %v14512_v55 }
 0x178   : > { %16419 = vmatprep.subr.mxu0 %v18302_v57  ;;  %16168 = vmatmul.mubr.f32.gmra.mxu1 %v18695_v28  ;;  %v1878_v38 = vmul.f32 %v18669_v0, %v1862_v31  ;;  %v1846_v44 = vadd.f32 %v18649_v63, %v16013_v37 }
 0x179   : > { %16420 = vmatpush3.msra.mxu0 %v18302_v57  ;;  %1908 = vst [vmem:[#allocation2 + $0x258] sm:$0xff] %v18779_v41  ;;  %v18791_v47 = vadd.f32 %v18683_v20, %v1875_v60  ;;  %16254 = vmatpush3.msra.mxu1 %v18752_v19  ;;  %v1861_v43 = vmax.f32 %v1831_v6, 0.0  ;;  %v16048_v57 = vpop.f32.mrf.mxu1  ;;  %v1840_v28 = vpop.f32.mrf.mxu0 }
 0x17a   : > { %16335 = vmatprep.mubr.f32.mxu0 %v2976_v7  ;;  %16421 = vmatprep.subr.mxu0 %v18311_v9  ;;  %v2033_v46 = vadd.f32 %v18649_v63, %v16048_v57  ;;  %v18802_v48 = vadd.f32 %v18683_v20, %v1878_v38  ;;  %v1864_v2 = vmax.f32 %v1846_v44, 0.0  ;;  %v1841_v49 = vadd.f32 %v18649_v63, %v1840_v28  ;;  %v2755_v28 = vld [vmem:[#allocation2 + $0x9] sm:$0xff] }
 0x17b   : > { %16170 = vmatprep.mubr.f32.mxu1 %v18686_v35  ;;  %1907 = vst [vmem:[#allocation2 + $0x250] sm:$0xff] %v18791_v47  ;;  %16255 = vmatprep.subr.mxu1 %v18775_v30  ;;  %v1877_v3 = vmul.f32 %v18669_v0, %v1861_v43  ;;  %v2027_v52 = vpop.f32.mrf.mxu1  ;;  %v2978_v35 = vld [vmem:[#allocation2 + $0x219] sm:$0xff] }
 0x17c   : > { %16336 = vmatmul.mubr.f32.gmra.mxu0 %v2977_v34  ;;  %16256 = vmatpush3.msra.mxu1 %v18775_v30  ;;  %v2107_v56 = vmax.f32 %v2033_v46, 0.0  ;;  %v2028_v11 = vadd.f32 %v18649_v63, %v2027_v52  ;;  %1910 = vst [vmem:[#allocation2 + $0x268] sm:$0xff] %v18802_v48  ;;  %v1880_v51 = vmul.f32 %v18669_v0, %v1864_v2  ;;  %v1863_v5 = vmax.f32 %v1841_v49, 0.0  ;;  %v14511_v34 = vld [vmem:[%s22433_s5 + $0x130] sm:$0xff]  }
 0x17d   : > { %16422 = vmatpush3.msra.mxu0 %v18311_v9  ;;  %16257 = vmatprep.subr.mxu1 %v18787_v36  ;;  %v18818_v9 = vadd.f32 %v18683_v20, %v1877_v3  ;;  %v16051_v8 = vpop.f32.mrf.mxu1  ;;  %v2756_v49 = vld [vmem:[#allocation2 + $0x11] sm:$0xff]  ;;  %v18869_v52 = vunpack.c.h.bf16 %v14511_v34 }
 0x17e   : > { %16423 = vmatprep.subr.mxu0 %v18319_v12  ;;  %16171 = vmatmul.mubr.f32.gmra.mxu1 %v18721_v62  ;;  %v2123_v14 = vmul.f32 %v18669_v0, %v2107_v56  ;;  %v2106_v24 = vmax.f32 %v2028_v11, 0.0  ;;  %v2043_v54 = vadd.f32 %v18649_v63, %v16051_v8  ;;  %v18828_v25 = vadd.f32 %v18683_v20, %v1880_v51  ;;  %v2754_v62 = vld [vmem:[#allocation2 + $0x1] sm:$0xff] }
 0x17f   : > { %16424 = vmatpush3.msra.mxu0 %v18319_v12  ;;  %1909 = vst [vmem:[#allocation2 + $0x260] sm:$0xff] %v18818_v9  ;;  %16258 = vmatpush3.msra.mxu1 %v18787_v36  ;;  %v1879_v12 = vmul.f32 %v18669_v0, %v1863_v5  ;;  %v2037_v58 = vpop.f32.mrf.mxu1  ;;  %v14510_v5 = vld [vmem:[%s22433_s5 + $0x128] sm:$0xff]  }
 0x180   : > { %16338 = vmatprep.mubr.f32.mxu0 %v2978_v35  ;;  %16425 = vmatprep.subr.mxu0 %v18323_v13  ;;  %v18836_v29 = vadd.f32 %v18683_v20, %v2123_v14  ;;  %v2122_v7 = vmul.f32 %v18669_v0, %v2106_v24  ;;  %v2109_v50 = vmax.f32 %v2043_v54, 0.0  ;;  %v2038_v60 = vadd.f32 %v18649_v63, %v2037_v58 }
 0x181   : > { %16259 = vmatprep.subr.mxu1 %v18808_v59  ;;  %16261 = vmatprep.mubr.f32.mxu1 %v2754_v62  ;;  %1912 = vst [vmem:[#allocation2 + $0x278] sm:$0xff] %v18828_v25  ;;  %v18842_v31 = vadd.f32 %v18683_v20, %v1879_v12  ;;  %v16054_v6 = vpop.f32.mrf.mxu1  ;;  %v2758_v62 = vld [vmem:[#allocation2 + $0x21] sm:$0xff] }
 0x182   : > { %16339 = vmatmul.mubr.f32.gmra.mxu0 %v2979_v23  ;;  %16260 = vmatpush3.msra.mxu1 %v18808_v59  ;;  %2155 = vst [vmem:[#allocation2 + $0x288] sm:$0xff] %v18836_v29  ;;  %v18851_v37 = vadd.f32 %v18683_v20, %v2122_v7  ;;  %v2125_v38 = vmul.f32 %v18669_v0, %v2109_v50  ;;  %v2108_v43 = vmax.f32 %v2038_v60, 0.0  ;;  %v18900_v7 = vunpack.c.h.bf16 %v14510_v5 }
 0x183   : > { %16426 = vmatpush3.msra.mxu0 %v18323_v13  ;;  %v2053_v44 = vadd.f32 %v18649_v63, %v16054_v6  ;;  %16429 = vmatprep.mubr.f32.mxu0 %v18709_v33  ;;  %1911 = vst [vmem:[#allocation2 + $0x270] sm:$0xff] %v18842_v31  ;;  %v18858_v13 = vunpack.c.l.bf16 %v14512_v55  ;;  %v2047_v57 = vpop.f32.mrf.mxu1  ;;  %v2759_v6 = vld [vmem:[#allocation2 + $0x29] sm:$0xff] }
 0x184   : > { %16427 = vmatprep.subr.mxu0 %v18334_v16  ;;  %16341 = vmatprep.subr.mxu1 %v18830_v27  ;;  %2154 = vst [vmem:[#allocation2 + $0x280] sm:$0xff] %v18851_v37  ;;  %v18864_v46 = vadd.f32 %v18683_v20, %v2125_v38  ;;  %v2124_v3 = vmul.f32 %v18669_v0, %v2108_v43 }
 0x185   : > { %16428 = vmatpush3.msra.mxu0 %v18334_v16  ;;  %v2111_v2 = vmax.f32 %v2053_v44, 0.0  ;;  %v2048_v33 = vadd.f32 %v18649_v63, %v2047_v57  ;;  %16262 = vmatmul.mubr.f32.vlgmr.msra.gmra.mxu1 %v2755_v28  ;;  %v16057_v35 = vpop.f32.mrf.mxu1 }
 0x186   : > { %16509 = vmatprep.subr.mxu0 %v18339_v18  ;;  %16342 = vmatpush3.msra.mxu1 %v18830_v27  ;;  %2157 = vst [vmem:[#allocation2 + $0x298] sm:$0xff] %v18864_v46  ;;  %v18874_v16 = vadd.f32 %v18683_v20, %v2124_v3  ;;  %v2063_v11 = vadd.f32 %v18649_v63, %v16057_v35  ;;  %v2763_v3 = vld [vmem:[#allocation2 + $0x49] sm:$0xff] }
 0x187   : > { %16264 = vmatprep.mubr.f32.mxu1 %v2756_v49  ;;  %v2127_v55 = vmul.f32 %v18669_v0, %v2111_v2  ;;  %v2110_v56 = vmax.f32 %v2048_v33, 0.0  ;;  %16343 = vmatprep.subr.mxu1 %v18858_v13  ;;  %v2057_v51 = vpop.f32.mrf.mxu1  ;;  %v2764_v49 = vld [vmem:[#allocation2 + $0x51] sm:$0xff] }
 0x188   : > { %16430 = vmatmul.mubr.f32.vlgmr.msra.gmra.mxu0 %v18744_v1  ;;  %16344 = vmatpush3.msra.mxu1 %v18858_v13  ;;  %2156 = vst [vmem:[#allocation2 + $0x290] sm:$0xff] %v18874_v16  ;;  %v2113_v14 = vmax.f32 %v2063_v11, 0.0  ;;  %v2058_v24 = vadd.f32 %v18649_v63, %v2057_v51  ;;  %v18891_v1 = vunpack.c.l.bf16 %v14511_v34  ;;  %v18916_v34 = vunpack.c.l.bf16 %v14510_v5 }
 0x189   : > { %16510 = vmatpush3.msra.mxu0 %v18339_v18  ;;  %v2143_v8 = vadd.f32 %v18683_v20, %v2127_v55  ;;  %v2126_v23 = vmul.f32 %v18669_v0, %v2110_v56  ;;  %16345 = vmatprep.subr.mxu1 %v18869_v52  ;;  %v2757_v18 = vld [vmem:[#allocation2 + $0x19] sm:$0xff] }
 0x18a   : > { %16511 = vmatprep.subr.mxu0 %v18497_v39  ;;  %16265 = vmatmul.mubr.f32.gmra.mxu1 %v2757_v18  ;;  %v2129_v12 = vmul.f32 %v18669_v0, %v2113_v14  ;;  %v2112_v58 = vmax.f32 %v2058_v24, 0.0  ;;  %v2766_v18 = vld [vmem:[#allocation2 + $0x61] sm:$0xff] }
 0x18b   : > { %16512 = vmatpush3.msra.mxu0 %v18497_v39  ;;  %2159 = vst [vmem:[#allocation2 + $0x2a8] sm:$0xff] %v2143_v8  ;;  %v18895_v54 = vadd.f32 %v18683_v20, %v2126_v23  ;;  %16346 = vmatpush3.msra.mxu1 %v18869_v52  ;;  %v16104_v43 = vpop.f32.mrf.mxu0 }
 0x18c   : > { %16432 = vmatprep.mubr.f32.mxu0 %v18730_v61  ;;  %16513 = vmatprep.subr.mxu0 %v18502_v45  ;;  %v2145_v39 = vadd.f32 %v18683_v20, %v2129_v12  ;;  %v2128_v50 = vmul.f32 %v18669_v0, %v2112_v58  ;;  %v14509_v61 = vld [vmem:[%s22433_s5 + $0x120] sm:$0xff]   ;;  %v2284_v44 = vadd.f32 %v18649_v63, %v16104_v43 }
 0x18d   : > { %16267 = vmatprep.mubr.f32.mxu1 %v2758_v62  ;;  %2158 = vst [vmem:[#allocation2 + $0x2a0] sm:$0xff] %v18895_v54  ;;  %16347 = vmatprep.subr.mxu1 %v18891_v1  ;;  %v18933_v38 = vunpack.c.l.bf16 %v14509_v61 }
 0x18e   : > { %16433 = vmatmul.mubr.f32.gmra.mxu0 %v18765_v4  ;;  %16348 = vmatpush3.msra.mxu1 %v18891_v1  ;;  %2161 = vst [vmem:[#allocation2 + $0x2b8] sm:$0xff] %v2145_v39  ;;  %v2144_v60 = vadd.f32 %v18683_v20, %v2128_v50  ;;  %v18921_v4 = vunpack.c.h.bf16 %v14509_v61  ;;  %v2328_v57 = vmax.f32 %v2284_v44, 0.0 }
 0x18f   : > { %16514 = vmatpush3.msra.mxu0 %v18502_v45  ;;  %16349 = vmatprep.subr.mxu1 %v18900_v7  ;;  %v2760_v45 = vld [vmem:[#allocation2 + $0x31] sm:$0xff] }
 0x190   : > { %16515 = vmatprep.subr.mxu0 %v18505_v15  ;;  %16268 = vmatmul.mubr.f32.gmra.mxu1 %v2759_v6  ;;  %2160 = vst [vmem:[#allocation2 + $0x2b0] sm:$0xff] %v2144_v60  ;;  %v16060_v6 = vpop.f32.mrf.mxu1 }
 0x191   : > { %16516 = vmatpush3.msra.mxu0 %v18505_v15  ;;  %16350 = vmatpush3.msra.mxu1 %v18900_v7  ;;  %v14508_v15 = vld [vmem:[%s22433_s5 + $0x118] sm:$0xff]  }
 0x192   : > { %16435 = vmatprep.mubr.f32.mxu0 %v18756_v21  ;;  %16517 = vmatprep.subr.mxu0 %v18521_v17  ;;  %v2761_v21 = vld [vmem:[#allocation2 + $0x39] sm:$0xff]  ;;  %v18952_v2 = vunpack.c.l.bf16 %v14508_v15 }
 0x193   : > { %16270 = vmatprep.mubr.f32.mxu1 %v2760_v45  ;;  %16351 = vmatprep.subr.mxu1 %v18916_v34 }
 0x194   : > { %16436 = vmatmul.mubr.f32.gmra.mxu0 %v18791_v47  ;;  %16352 = vmatpush3.msra.mxu1 %v18916_v34  ;;  %v18938_v47 = vunpack.c.h.bf16 %v14508_v15  ;;  %v2073_v15 = vadd.f32 %v18649_v63, %v16060_v6 }
 0x195   : > { %16518 = vmatpush3.msra.mxu0 %v18521_v17  ;;  %16353 = vmatprep.subr.mxu1 %v18921_v4  ;;  %v2762_v17 = vld [vmem:[#allocation2 + $0x41] sm:$0xff] }
 0x196   : > { %16519 = vmatprep.subr.mxu0 %v18610_v26  ;;  %16271 = vmatmul.mubr.f32.gmra.mxu1 %v2761_v21 }
 0x197   : > { %16520 = vmatpush3.msra.mxu0 %v18610_v26  ;;  %16354 = vmatpush3.msra.mxu1 %v18921_v4  ;;  %v2278_v26 = vpop.f32.mrf.mxu0 }
 0x198   : > { %16438 = vmatprep.mubr.f32.mxu0 %v18779_v41  ;;  %16521 = vmatprep.subr.mxu0 %v18631_v40  ;;  %v14507_v41 = vld [vmem:[%s22433_s5 + $0x110] sm:$0xff]   ;;  %v2279_v28 = vadd.f32 %v18649_v63, %v2278_v26  ;;  %v2115_v26 = vmax.f32 %v2073_v15, 0.0 }
 0x199   : > { %16273 = vmatprep.mubr.f32.mxu1 %v2762_v17  ;;  %16355 = vmatprep.subr.mxu1 %v18933_v38  ;;  %v16107_v33 = vpop.f32.mrf.mxu0  ;;  %v18958_v35 = vunpack.c.h.bf16 %v14507_v41  ;;  %v18975_v23 = vunpack.c.l.bf16 %v14507_v41  ;;  %v2768_v17 = vld [vmem:[#allocation2 + $0x71] sm:$0xff] }
 0x19a   : > { %16439 = vmatmul.mubr.f32.gmra.mxu0 %v18818_v9  ;;  %16356 = vmatpush3.msra.mxu1 %v18933_v38  ;;  %v2338_v9 = vmul.f32 %v18669_v0, %v2328_v57  ;;  %v2294_v56 = vadd.f32 %v18649_v63, %v16107_v33 }
 0x19b   : > { %16522 = vmatpush3.msra.mxu0 %v18631_v40  ;;  %16357 = vmatprep.subr.mxu1 %v18938_v47  ;;  %v2327_v40 = vmax.f32 %v2279_v28, 0.0  ;;  %v2288_v51 = vpop.f32.mrf.mxu0  ;;  %v2067_v28 = vpop.f32.mrf.mxu1 }
 0x19c   : > { %16523 = vmatprep.subr.mxu0 %v18661_v10  ;;  %16274 = vmatmul.mubr.f32.gmra.mxu1 %v2763_v3  ;;  %v2348_v55 = vadd.f32 %v18683_v20, %v2338_v9  ;;  %v2289_v8 = vadd.f32 %v18649_v63, %v2288_v51  ;;  %v2068_v3 = vadd.f32 %v18649_v63, %v2067_v28 }
 0x19d   : > { %16524 = vmatpush3.msra.mxu0 %v18661_v10  ;;  %16358 = vmatpush3.msra.mxu1 %v18938_v47  ;;  %v2337_v11 = vmul.f32 %v18669_v0, %v2327_v40  ;;  %v2330_v10 = vmax.f32 %v2294_v56, 0.0  ;;  %v16110_v24 = vpop.f32.mrf.mxu0 }
 0x19e   : > { %16441 = vmatprep.mubr.f32.mxu0 %v18802_v48  ;;  %16525 = vmatprep.subr.mxu0 %v18677_v22  ;;  %2358 = vst [vmem:[#allocation2 + $0x308] sm:$0xff] %v2348_v55  ;;  %v14506_v48 = vld [vmem:[%s22433_s5 + $0x108] sm:$0xff]   ;;  %v2304_v62 = vadd.f32 %v18649_v63, %v16110_v24  ;;  %v2114_v55 = vmax.f32 %v2068_v3, 0.0 }
 0x19f   : > { %16276 = vmatprep.mubr.f32.mxu1 %v2764_v49  ;;  %16359 = vmatprep.subr.mxu1 %v18952_v2  ;;  %v2347_v5 = vadd.f32 %v18683_v20, %v2337_v11  ;;  %v2340_v14 = vmul.f32 %v18669_v0, %v2330_v10  ;;  %v18981_v12 = vunpack.c.h.bf16 %v14506_v48  ;;  %v2298_v50 = vpop.f32.mrf.mxu0  ;;  %v18998_v45 = vunpack.c.l.bf16 %v14506_v48  ;;  %v16063_v11 = vpop.f32.mrf.mxu1  ;;  %v14519_v10 = vld [vmem:[%s22433_s5 + $0x38] sm:$0xff]   ;;  %v3825_v3 = vld [vmem:[#allocation2 + $0x89] sm:$0xff] }
 0x1a0   : > { %16442 = vmatmul.mubr.f32.gmra.mxu0 %v18842_v31  ;;  %16360 = vmatpush3.msra.mxu1 %v18952_v2  ;;  %v2765_v31 = vld [vmem:[#allocation2 + $0x59] sm:$0xff]  ;;  %v2332_v39 = vmax.f32 %v2304_v62, 0.0  ;;  %v2299_v60 = vadd.f32 %v18649_v63, %v2298_v50  ;;  %v2083_v48 = vadd.f32 %v18649_v63, %v16063_v11 }
 0x1a1   : > { %16526 = vmatpush3.msra.mxu0 %v18677_v22  ;;  %16361 = vmatprep.subr.mxu1 %v18958_v35  ;;  %2357 = vst [vmem:[#allocation2 + $0x300] sm:$0xff] %v2347_v5  ;;  %v2329_v22 = vmax.f32 %v2289_v8, 0.0  ;;  %v2350_v58 = vadd.f32 %v18683_v20, %v2340_v14  ;;  %v16113_v43 = vpop.f32.mrf.mxu0  ;;  %v2130_v5 = vmul.f32 %v18669_v0, %v2114_v55 }
 0x1a2   : > { %16527 = vmatprep.subr.mxu0 %v18705_v32  ;;  %16277 = vmatmul.mubr.f32.gmra.mxu1 %v2765_v31  ;;  %v2331_v21 = vmax.f32 %v2299_v60, 0.0  ;;  %v2314_v41 = vadd.f32 %v18649_v63, %v16113_v43  ;;  %v19046_v60 = vunpack.c.l.bf16 %v14519_v10 }
 0x1a3   : > { %16528 = vmatpush3.msra.mxu0 %v18705_v32  ;;  %16362 = vmatpush3.msra.mxu1 %v18958_v35  ;;  %v2339_v32 = vmul.f32 %v18669_v0, %v2329_v22  ;;  %2360 = vst [vmem:[#allocation2 + $0x318] sm:$0xff] %v2350_v58  ;;  %v2308_v40 = vpop.f32.mrf.mxu0  ;;  %v2117_v22 = vmax.f32 %v2083_v48, 0.0  ;;  %v2146_v58 = vadd.f32 %v18683_v20, %v2130_v5  ;;  %v3177_v5 = vld [vmem:[#allocation2 + $0x1a] sm:$0xff] }
 0x1a4   : > { %16444 = vmatprep.mubr.f32.mxu0 %v18828_v25  ;;  %16529 = vmatprep.subr.mxu0 %v18717_v42  ;;  %v14505_v25 = vld [vmem:[%s22433_s5 + $0x100] sm:$0xff]   ;;  %v2334_v9 = vmax.f32 %v2314_v41, 0.0  ;;  %v2309_v56 = vadd.f32 %v18649_v63, %v2308_v40 }
 0x1a5   : > { %16279 = vmatprep.mubr.f32.mxu1 %v2766_v18  ;;  %16363 = vmatprep.subr.mxu1 %v18975_v23  ;;  %v2349_v61 = vadd.f32 %v18683_v20, %v2339_v32  ;;  %v19005_v44 = vunpack.c.h.bf16 %v14505_v25  ;;  %v19017_v33 = vunpack.c.l.bf16 %v14505_v25  ;;  %v16116_v31 = vpop.f32.mrf.mxu0  ;;  %v19037_v18 = vunpack.c.h.bf16 %v14519_v10  ;;  %v2077_v32 = vpop.f32.mrf.mxu1  ;;  %2162 = vst [vmem:[#allocation2 + $0x2c0] sm:$0xff] %v2146_v58 }
 0x1a6   : > { %16445 = vmatmul.mubr.f32.gmra.mxu0 %v18851_v37  ;;  %16364 = vmatpush3.msra.mxu1 %v18975_v23  ;;  %v2767_v37 = vld [vmem:[#allocation2 + $0x69] sm:$0xff]  ;;  %v2344_v51 = vmul.f32 %v18669_v0, %v2334_v9  ;;  %v2333_v8 = vmax.f32 %v2309_v56, 0.0  ;;  %v2324_v24 = vadd.f32 %v18649_v63, %v16116_v31  ;;  %v2078_v50 = vadd.f32 %v18649_v63, %v2077_v32  ;;  %v3826_v56 = vld [vmem:[#allocation2 + $0x91] sm:$0xff]  ;;  %v3828_v32 = vld [vmem:[#allocation2 + $0xa1] sm:$0xff] }
 0x1a7   : > { %16530 = vmatpush3.msra.mxu0 %v18717_v42  ;;  %16365 = vmatprep.subr.mxu1 %v18981_v12  ;;  %v2342_v42 = vmul.f32 %v18669_v0, %v2332_v39  ;;  %2359 = vst [vmem:[#allocation2 + $0x310] sm:$0xff] %v2349_v61  ;;  %v2318_v25 = vpop.f32.mrf.mxu0  ;;  %v3824_v61 = vld [vmem:[#allocation2 + $0x81] sm:$0xff] }
 0x1a8   : > { %16531 = vmatprep.subr.mxu0 %v18740_v53  ;;  %16280 = vmatmul.mubr.f32.gmra.mxu1 %v2767_v37  ;;  %v2354_v14 = vadd.f32 %v18683_v20, %v2344_v51  ;;  %v2343_v62 = vmul.f32 %v18669_v0, %v2333_v8  ;;  %v2336_v39 = vmax.f32 %v2324_v24, 0.0  ;;  %v2319_v37 = vadd.f32 %v18649_v63, %v2318_v25  ;;  %v3178_v8 = vld [vmem:[#allocation2 + $0x22] sm:$0xff] }
 0x1a9   : > { %16532 = vmatpush3.msra.mxu0 %v18740_v53  ;;  %16366 = vmatpush3.msra.mxu1 %v18981_v12  ;;  %v2352_v57 = vadd.f32 %v18683_v20, %v2342_v42  ;;  %v2341_v53 = vmul.f32 %v18669_v0, %v2331_v21  ;;  %v14518_v42 = vld [vmem:[%s22433_s5 + $0x30] sm:$0xff]   ;;  %v2116_v21 = vmax.f32 %v2078_v50, 0.0 }
 0x1aa   : > { %16447 = vmatprep.mubr.f32.mxu0 %v18836_v29  ;;  %16533 = vmatprep.subr.mxu0 %v18752_v19  ;;  %v2131_v29 = vmul.f32 %v18669_v0, %v2115_v26  ;;  %2364 = vst [vmem:[#allocation2 + $0x338] sm:$0xff] %v2354_v14  ;;  %v2353_v6 = vadd.f32 %v18683_v20, %v2343_v62  ;;  %v3176_v26 = vld [vmem:[#allocation2 + $0x12] sm:$0xff]  ;;  %v19074_v10 = vunpack.c.l.bf16 %v14518_v42 }
 0x1ab   : > { %16282 = vmatprep.mubr.f32.mxu1 %v2768_v17  ;;  %16367 = vmatprep.subr.mxu1 %v18998_v45  ;;  %2362 = vst [vmem:[#allocation2 + $0x328] sm:$0xff] %v2352_v57  ;;  %v2351_v49 = vadd.f32 %v18683_v20, %v2341_v53  ;;  %v2346_v15 = vmul.f32 %v18669_v0, %v2336_v39  ;;  %v3175_v17 = vld [vmem:[#allocation2 + $0xa] sm:$0xff]  ;;  %v2335_v57 = vmax.f32 %v2319_v37, 0.0  ;;  %v14516_v39 = vld [vmem:[%s22433_s5 + $0x20] sm:$0xff]  }
 0x1ac   : > { %16448 = vmatmul.mubr.f32.gmra.mxu0 %v18874_v16  ;;  %16368 = vmatpush3.msra.mxu1 %v18998_v45  ;;  %v2769_v16 = vld [vmem:[#allocation2 + $0x79] sm:$0xff]  ;;  %2363 = vst [vmem:[#allocation2 + $0x330] sm:$0xff] %v2353_v6  ;;  %v2132_v28 = vmul.f32 %v18669_v0, %v2116_v21  ;;  %v3829_v6 = vld [vmem:[#allocation2 + $0xa9] sm:$0xff]  ;;  %v19106_v37 = vunpack.c.h.bf16 %v14516_v39 }
 0x1ad   : > { %16534 = vmatpush3.msra.mxu0 %v18752_v19  ;;  %16369 = vmatprep.subr.mxu1 %v19005_v44  ;;  %v2147_v19 = vadd.f32 %v18683_v20, %v2131_v29  ;;  %2361 = vst [vmem:[#allocation2 + $0x320] sm:$0xff] %v2351_v49  ;;  %v2356_v41 = vadd.f32 %v18683_v20, %v2346_v15  ;;  %v19063_v29 = vunpack.c.h.bf16 %v14518_v42  ;;  %v14515_v42 = vld [vmem:[%s22433_s5 + $0x18] sm:$0xff]  }
 0x1ae   : > { %16535 = vmatprep.subr.mxu0 %v18775_v30  ;;  %16283 = vmatmul.mubr.f32.gmra.mxu1 %v2769_v16  ;;  %v2148_v40 = vadd.f32 %v18683_v20, %v2132_v28  ;;  %v3831_v15 = vld [vmem:[#allocation2 + $0xb9] sm:$0xff]  ;;  %v19125_v21 = vunpack.c.h.bf16 %v14515_v42  ;;  %v3834_v28 = vld [vmem:[#allocation2 + $0xd1] sm:$0xff] }
 0x1af   : > { %16536 = vmatpush3.msra.mxu0 %v18775_v30  ;;  %16370 = vmatpush3.msra.mxu1 %v19005_v44  ;;  %2163 = vst [vmem:[#allocation2 + $0x2c8] sm:$0xff] %v2147_v19  ;;  %v3174_v30 = vld [vmem:[#allocation2 + $0x2] sm:$0xff]  ;;  %2366 = vst [vmem:[#allocation2 + $0x348] sm:$0xff] %v2356_v41 }
 0x1b0   : > { %16450 = vmatprep.mubr.f32.mxu0 %v18864_v46  ;;  %16537 = vmatprep.subr.mxu0 %v18787_v36  ;;  %v2133_v46 = vmul.f32 %v18669_v0, %v2117_v22  ;;  %v14517_v19 = vld [vmem:[%s22433_s5 + $0x28] sm:$0xff]   ;;  %2164 = vst [vmem:[#allocation2 + $0x2d0] sm:$0xff] %v2148_v40  ;;  %v3827_v22 = vld [vmem:[#allocation2 + $0x99] sm:$0xff] }
 0x1b1   : > { %16371 = vmatprep.subr.mxu1 %v19017_v33  ;;  %16373 = vmatprep.mubr.f32.mxu1 %v3174_v30  ;;  %v19086_v24 = vunpack.c.h.bf16 %v14517_v19  ;;  %v3836_v40 = vld [vmem:[#allocation2 + $0xe1] sm:$0xff] }
 0x1b2   : > { %16451 = vmatmul.mubr.f32.gmra.mxu0 %v18895_v54  ;;  %16372 = vmatpush3.msra.mxu1 %v19017_v33  ;;  %v16066_v54 = vpop.f32.mrf.mxu1 }
 0x1b3   : > { %16538 = vmatpush3.msra.mxu0 %v18787_v36  ;;  %16541 = vmatprep.mubr.f32.mxu0 %v3824_v61  ;;  %v2149_v36 = vadd.f32 %v18683_v20, %v2133_v46  ;;  %v2093_v43 = vadd.f32 %v18649_v63, %v16066_v54  ;;  %v19095_v46 = vunpack.c.l.bf16 %v14517_v19  ;;  %v14543_v19 = vld [vmem:[%s22433_s5 + $0xf8] sm:$0xff]  }
 0x1b4   : > { %16539 = vmatprep.subr.mxu0 %v18808_v59  ;;  %16453 = vmatprep.subr.mxu1 %v19037_v18  ;;  %v2087_v9 = vpop.f32.mrf.mxu1 }
 0x1b5   : > { %16540 = vmatpush3.msra.mxu0 %v18808_v59  ;;  %16374 = vmatmul.mubr.f32.vlgmr.msra.gmra.mxu1 %v3175_v17  ;;  %2165 = vst [vmem:[#allocation2 + $0x2d8] sm:$0xff] %v2149_v36  ;;  %v2119_v53 = vmax.f32 %v2093_v43, 0.0  ;;  %v2345_v59 = vmul.f32 %v18669_v0, %v2335_v57  ;;  %v2088_v55 = vadd.f32 %v18649_v63, %v2087_v9  ;;  %v22403_v36 = vmov 0.0   ;;  %v14514_v17 = vld [vmem:[%s22433_s5 + $0x10] sm:$0xff]  }
 0x1b6   : > { %16621 = vmatprep.subr.mxu0 %v18830_v27  ;;  %16454 = vmatpush3.msra.mxu1 %v19037_v18  ;;  %v16069_v16 = vpop.f32.mrf.mxu1  ;;  %600 = vst [vmem:[#allocation3 + $0x1a0] sm:$0xff] %v22403_v36  ;;  %601 = vst [vmem:[#allocation4 + $0x88] sm:$0xff] %v22403_v36  ;;  %v19131_v43 = vunpack.c.l.bf16 %v14515_v42  ;;  %v3183_v57 = vld [vmem:[#allocation2 + $0x4a] sm:$0xff]  ;;  %v19140_v41 = vunpack.c.h.bf16 %v14514_v17 }
 0x1b7   : > { %16376 = vmatprep.mubr.f32.mxu1 %v3176_v26  ;;  %16455 = vmatprep.subr.mxu1 %v19046_v60  ;;  %v2135_v49 = vmul.f32 %v18669_v0, %v2119_v53  ;;  %v2355_v11 = vadd.f32 %v18683_v20, %v2345_v59  ;;  %v2118_v48 = vmax.f32 %v2088_v55, 0.0  ;;  %602 = vst [vmem:[#allocation5 + $0x18] sm:$0xff] %v22403_v36  ;;  %v3833_v26 = vld [vmem:[#allocation2 + $0xc9] sm:$0xff]  ;;  %v3835_v59 = vld [vmem:[#allocation2 + $0xd9] sm:$0xff] }
 0x1b8   : > { %16542 = vmatmul.mubr.f32.vlgmr.msra.gmra.mxu0 %v3825_v3  ;;  %16456 = vmatpush3.msra.mxu1 %v19046_v60  ;;  %v2097_v30 = vpop.f32.mrf.mxu1  ;;  %v14513_v53 = vld [vmem:[%s22433_s5 + $0x8] sm:$0xff]   ;;  %v3185_v3 = vld [vmem:[#allocation2 + $0x5a] sm:$0xff] }
 0x1b9   : > { %16622 = vmatpush3.msra.mxu0 %v18830_v27  ;;  %16544 = vmatprep.mubr.f32.mxu0 %v3826_v56  ;;  %v2151_v51 = vadd.f32 %v18683_v20, %v2135_v49  ;;  %v2103_v27 = vadd.f32 %v18649_v63, %v16069_v16  ;;  %2365 = vst [vmem:[#allocation2 + $0x340] sm:$0xff] %v2355_v11  ;;  %v19155_v9 = vunpack.c.h.bf16 %v14513_v53  ;;  %v13594_v49 = vld [vmem:[%s22433_s5] sm:$0xff]   ;;  %v3187_v55 = vld [vmem:[#allocation2 + $0x6a] sm:$0xff] }
 0x1ba   : > { %16623 = vmatprep.subr.mxu0 %v18858_v13  ;;  %16457 = vmatprep.subr.mxu1 %v19063_v29  ;;  %v2134_v31 = vmul.f32 %v18669_v0, %v2118_v48  ;;  %v2098_v62 = vadd.f32 %v18649_v63, %v2097_v30  ;;  %v3179_v63 = vld [vmem:[#allocation2 + $0x2a] sm:$0xff]  ;;  %v19170_v11 = vunpack.c.h.bf16 %v13594_v49  ;;  %v3189_v48 = vld [vmem:[#allocation2 + $0x7a] sm:$0xff] }
 0x1bb   : > { %16624 = vmatpush3.msra.mxu0 %v18858_v13  ;;  %16377 = vmatmul.mubr.f32.gmra.mxu1 %v3177_v5  ;;  %2167 = vst [vmem:[#allocation2 + $0x2e8] sm:$0xff] %v2151_v51  ;;  %v2121_v14 = vmax.f32 %v2103_v27, 0.0  ;;  %v3837_v56 = vld [vmem:[#allocation2 + $0xe9] sm:$0xff]  ;;  %v3838_v16 = vld [vmem:[#allocation2 + $0xf1] sm:$0xff]  ;;  %v3839_v27 = vld [vmem:[#allocation2 + $0xf9] sm:$0xff]  ;;  %v19187_v5 = vunpack.c.h.bf16 %v14543_v19 }
 0x1bc   : > { %16625 = vmatprep.subr.mxu0 %v18869_v52  ;;  %16458 = vmatpush3.msra.mxu1 %v19063_v29  ;;  %v2150_v13 = vadd.f32 %v18683_v20, %v2134_v31  ;;  %v2120_v25 = vmax.f32 %v2098_v62, 0.0  ;;  %v19195_v31 = vunpack.c.l.bf16 %v14543_v19  ;;  %v4247_v42 = vld [vmem:[#allocation2 + $0xaa] sm:$0xff] }
 0x1bd   : > { %16379 = vmatprep.mubr.f32.mxu1 %v3178_v8  ;;  %16459 = vmatprep.subr.mxu1 %v19074_v10  ;;  %v2137_v58 = vmul.f32 %v18669_v0, %v2121_v14  ;;  %v14542_v14 = vld [vmem:[%s22433_s5 + $0xf0] sm:$0xff]  }
 0x1be   : > { %16545 = vmatmul.mubr.f32.gmra.mxu0 %v3827_v22  ;;  %16460 = vmatpush3.msra.mxu1 %v19074_v10  ;;  %2166 = vst [vmem:[#allocation2 + $0x2e0] sm:$0xff] %v2150_v13  ;;  %v2136_v61 = vmul.f32 %v18669_v0, %v2120_v25  ;;  %v19113_v0 = vunpack.c.l.bf16 %v14516_v39  ;;  %v3439_v22 = vld [vmem:[#allocation2 + $0x88] sm:$0xff]  ;;  %v19212_v62 = vunpack.c.l.bf16 %v14542_v14  ;;  %v4245_v25 = vld [vmem:[#allocation2 + $0x9a] sm:$0xff] }
 0x1bf   : > { %16626 = vmatpush3.msra.mxu0 %v18869_v52  ;;  %16547 = vmatprep.mubr.f32.mxu0 %v3828_v32  ;;  %v2153_v50 = vadd.f32 %v18683_v20, %v2137_v58  ;;  %v3180_v52 = vld [vmem:[#allocation2 + $0x32] sm:$0xff]  ;;  %v4243_v13 = vld [vmem:[#allocation2 + $0x8a] sm:$0xff]  ;;  %v19206_v58 = vunpack.c.h.bf16 %v14542_v14 }
 0x1c0   : > { %16627 = vmatprep.subr.mxu0 %v18891_v1  ;;  %16461 = vmatprep.subr.mxu1 %v19086_v24  ;;  %v2152_v54 = vadd.f32 %v18683_v20, %v2136_v61  ;;  %v3181_v20 = vld [vmem:[#allocation2 + $0x3a] sm:$0xff]  ;;  %v14541_v32 = vld [vmem:[%s22433_s5 + $0xe8] sm:$0xff]  }
 0x1c1   : > { %16628 = vmatpush3.msra.mxu0 %v18891_v1  ;;  %16380 = vmatmul.mubr.f32.gmra.mxu1 %v3179_v63  ;;  %2169 = vst [vmem:[#allocation2 + $0x2f8] sm:$0xff] %v2153_v50  ;;  %v3830_v1 = vld [vmem:[#allocation2 + $0xb1] sm:$0xff]  ;;  %v19223_v63 = vunpack.c.h.bf16 %v14541_v32  ;;  %v19231_v61 = vunpack.c.l.bf16 %v14541_v32 }
 0x1c2   : > { %16629 = vmatprep.subr.mxu0 %v18900_v7  ;;  %16462 = vmatpush3.msra.mxu1 %v19086_v24  ;;  %2168 = vst [vmem:[#allocation2 + $0x2f0] sm:$0xff] %v2152_v54  ;;  %v3441_v50 = vld [vmem:[#allocation2 + $0x98] sm:$0xff]  ;;  %v3443_v54 = vld [vmem:[#allocation2 + $0xa8] sm:$0xff] }
 0x1c3   : > { %16382 = vmatprep.mubr.f32.mxu1 %v3180_v52  ;;  %16463 = vmatprep.subr.mxu1 %v19095_v46 }
 0x1c4   : > { %16548 = vmatmul.mubr.f32.gmra.mxu0 %v3829_v6  ;;  %16464 = vmatpush3.msra.mxu1 %v19095_v46  ;;  %v14540_v6 = vld [vmem:[%s22433_s5 + $0xe0] sm:$0xff]  }
 0x1c5   : > { %16630 = vmatpush3.msra.mxu0 %v18900_v7  ;;  %16550 = vmatprep.mubr.f32.mxu0 %v3830_v1  ;;  %v3182_v7 = vld [vmem:[#allocation2 + $0x42] sm:$0xff] }
 0x1c6   : > { %16631 = vmatprep.subr.mxu0 %v18916_v34  ;;  %16465 = vmatprep.subr.mxu1 %v19106_v37 }
 0x1c7   : > { %16632 = vmatpush3.msra.mxu0 %v18916_v34  ;;  %16383 = vmatmul.mubr.f32.gmra.mxu1 %v3181_v20  ;;  %v3832_v34 = vld [vmem:[#allocation2 + $0xc1] sm:$0xff]  ;;  %v19242_v20 = vunpack.c.h.bf16 %v14540_v6 }
 0x1c8   : > { %16633 = vmatprep.subr.mxu0 %v18921_v4  ;;  %16466 = vmatpush3.msra.mxu1 %v19106_v37 }
 0x1c9   : > { %16385 = vmatprep.mubr.f32.mxu1 %v3182_v7  ;;  %16467 = vmatprep.subr.mxu1 %v19113_v0  ;;  %v19248_v7 = vunpack.c.l.bf16 %v14540_v6 }
 0x1ca   : > { %16551 = vmatmul.mubr.f32.gmra.mxu0 %v3831_v15  ;;  %16468 = vmatpush3.msra.mxu1 %v19113_v0  ;;  %v14539_v15 = vld [vmem:[%s22433_s5 + $0xd8] sm:$0xff]  }
 0x1cb   : > { %16634 = vmatpush3.msra.mxu0 %v18921_v4  ;;  %16553 = vmatprep.mubr.f32.mxu0 %v3832_v34  ;;  %v3184_v4 = vld [vmem:[#allocation2 + $0x52] sm:$0xff] }
 0x1cc   : > { %16635 = vmatprep.subr.mxu0 %v18933_v38  ;;  %16469 = vmatprep.subr.mxu1 %v19125_v21 }
 0x1cd   : > { %16636 = vmatpush3.msra.mxu0 %v18933_v38  ;;  %16386 = vmatmul.mubr.f32.gmra.mxu1 %v3183_v57  ;;  %v19146_v38 = vunpack.c.l.bf16 %v14514_v17  ;;  %v3445_v17 = vld [vmem:[#allocation2 + $0xb8] sm:$0xff] }
 0x1ce   : > { %16637 = vmatprep.subr.mxu0 %v18938_v47  ;;  %16470 = vmatpush3.msra.mxu1 %v19125_v21  ;;  %v4249_v57 = vld [vmem:[#allocation2 + $0xba] sm:$0xff] }
 0x1cf   : > { %16388 = vmatprep.mubr.f32.mxu1 %v3184_v4  ;;  %16471 = vmatprep.subr.mxu1 %v19131_v43  ;;  %v19259_v4 = vunpack.c.h.bf16 %v14539_v15 }
 0x1d0   : > { %16554 = vmatmul.mubr.f32.gmra.mxu0 %v3833_v26  ;;  %16472 = vmatpush3.msra.mxu1 %v19131_v43 }
 0x1d1   : > { %16638 = vmatpush3.msra.mxu0 %v18938_v47  ;;  %16556 = vmatprep.mubr.f32.mxu0 %v3834_v28  ;;  %v3186_v47 = vld [vmem:[#allocation2 + $0x62] sm:$0xff]  ;;  %v19267_v28 = vunpack.c.l.bf16 %v14539_v15 }
 0x1d2   : > { %16639 = vmatprep.subr.mxu0 %v18952_v2  ;;  %16473 = vmatprep.subr.mxu1 %v19140_v41 }
 0x1d3   : > { %16640 = vmatpush3.msra.mxu0 %v18952_v2  ;;  %16389 = vmatmul.mubr.f32.gmra.mxu1 %v3185_v3  ;;  %v19161_v2 = vunpack.c.l.bf16 %v14513_v53  ;;  %v14538_v53 = vld [vmem:[%s22433_s5 + $0xd0] sm:$0xff]   ;;  %v3447_v3 = vld [vmem:[#allocation2 + $0xc8] sm:$0xff] }
 0x1d4   : > { %16641 = vmatprep.subr.mxu0 %v18958_v35  ;;  %16474 = vmatpush3.msra.mxu1 %v19140_v41 }
 0x1d5   : > { %16391 = vmatprep.mubr.f32.mxu1 %v3186_v47  ;;  %16475 = vmatprep.subr.mxu1 %v19146_v38 }
 0x1d6   : > { %16557 = vmatmul.mubr.f32.gmra.mxu0 %v3835_v59  ;;  %16476 = vmatpush3.msra.mxu1 %v19146_v38  ;;  %v19181_v51 = vpop.f32.mrf.mxu0  ;;  %v4251_v59 = vld [vmem:[#allocation2 + $0xca] sm:$0xff] }
 0x1d7   : > { %16642 = vmatpush3.msra.mxu0 %v18958_v35  ;;  %16559 = vmatprep.mubr.f32.mxu0 %v3836_v40  ;;  %v3188_v35 = vld [vmem:[#allocation2 + $0x72] sm:$0xff]  ;;  %v19278_v40 = vunpack.c.h.bf16 %v14538_v53 }
 0x1d8   : > { %16643 = vmatprep.subr.mxu0 %v18975_v23  ;;  %16477 = vmatprep.subr.mxu1 %v19155_v9  ;;  %v19190_v8 = vpop.f32.mrf.mxu0 }
 0x1d9   : > { %16644 = vmatpush3.msra.mxu0 %v18975_v23  ;;  %16392 = vmatmul.mubr.f32.gmra.mxu1 %v3187_v55  ;;  %v19176_v23 = vunpack.c.l.bf16 %v13594_v49  ;;  %v19284_v49 = vunpack.c.l.bf16 %v14538_v53  ;;  %v14537_v55 = vld [vmem:[%s22433_s5 + $0xc8] sm:$0xff]  }
 0x1da   : > { %16645 = vmatprep.subr.mxu0 %v18981_v12  ;;  %16478 = vmatpush3.msra.mxu1 %v19155_v9  ;;  %v19295_v19 = vunpack.c.h.bf16 %v14537_v55  ;;  %v14564_v53 = vld [vmem:[%s22433_s5 + $0x68] sm:$0xff]  }
 0x1db   : > { %16394 = vmatprep.mubr.f32.mxu1 %v3188_v35  ;;  %16479 = vmatprep.subr.mxu1 %v19161_v2 }
 0x1dc   : > { %16560 = vmatmul.mubr.f32.gmra.mxu0 %v3837_v56  ;;  %16480 = vmatpush3.msra.mxu1 %v19161_v2  ;;  %v19203_v30 = vpop.f32.mrf.mxu0  ;;  %v3449_v56 = vld [vmem:[#allocation2 + $0xd8] sm:$0xff] }
 0x1dd   : > { %16646 = vmatpush3.msra.mxu0 %v18981_v12  ;;  %16562 = vmatprep.mubr.f32.mxu0 %v3838_v16  ;;  %v3438_v12 = vld [vmem:[#allocation2 + $0x80] sm:$0xff] }
 0x1de   : > { %16647 = vmatprep.subr.mxu0 %v18998_v45  ;;  %16481 = vmatprep.subr.mxu1 %v19170_v11  ;;  %v19217_v39 = vpop.f32.mrf.mxu0  ;;  %v4253_v16 = vld [vmem:[#allocation2 + $0xda] sm:$0xff] }
 0x1df   : > { %16648 = vmatpush3.msra.mxu0 %v18998_v45  ;;  %16395 = vmatmul.mubr.f32.gmra.mxu1 %v3189_v48  ;;  %v4242_v45 = vld [vmem:[#allocation2 + $0x82] sm:$0xff] }
 0x1e0   : > { %16649 = vmatprep.subr.mxu0 %v19005_v44  ;;  %16482 = vmatpush3.msra.mxu1 %v19170_v11 }
 0x1e1   : > { %16485 = vmatprep.mubr.f32.mxu1 %v3438_v12  ;;  %16483 = vmatprep.subr.mxu1 %v19176_v23  ;;  %v19303_v12 = vunpack.c.l.bf16 %v14537_v55  ;;  %v4502_v55 = vld [vmem:[#allocation2 + $0x118] sm:$0xff] }
 0x1e2   : > { %16563 = vmatmul.mubr.f32.gmra.mxu0 %v3839_v27  ;;  %16484 = vmatpush3.msra.mxu1 %v19176_v23  ;;  %v14536_v27 = vld [vmem:[%s22433_s5 + $0xc0] sm:$0xff]  }
 0x1e3   : > { %16650 = vmatpush3.msra.mxu0 %v19005_v44  ;;  %16653 = vmatprep.mubr.f32.mxu0 %v4242_v45  ;;  %v3440_v44 = vld [vmem:[#allocation2 + $0x90] sm:$0xff]  ;;  %v19226_v52 = vpop.f32.mrf.mxu0  ;;  %v3451_v45 = vld [vmem:[#allocation2 + $0xe8] sm:$0xff] }
 0x1e4   : > { %16651 = vmatprep.subr.mxu0 %v19017_v33  ;;  %16565 = vmatprep.subr.mxu1 %v19187_v5 }
 0x1e5   : > { %16652 = vmatpush3.msra.mxu0 %v19017_v33  ;;  %16486 = vmatmul.mubr.f32.vlgmr.msra.gmra.mxu1 %v3439_v22  ;;  %v4244_v33 = vld [vmem:[#allocation2 + $0x92] sm:$0xff]  ;;  %v19239_v1 = vpop.f32.mrf.mxu0  ;;  %v4255_v22 = vld [vmem:[#allocation2 + $0xea] sm:$0xff] }
 0x1e6   : > { %16733 = vmatprep.subr.mxu0 %v19037_v18  ;;  %16566 = vmatpush3.msra.mxu1 %v19187_v5 }
 0x1e7   : > { %16488 = vmatprep.mubr.f32.mxu1 %v3440_v44  ;;  %16567 = vmatprep.subr.mxu1 %v19195_v31  ;;  %v19314_v44 = vunpack.c.h.bf16 %v14536_v27 }
 0x1e8   : > { %16654 = vmatmul.mubr.f32.vlgmr.msra.gmra.mxu0 %v4243_v13  ;;  %16568 = vmatpush3.msra.mxu1 %v19195_v31  ;;  %v19253_v34 = vpop.f32.mrf.mxu0  ;;  %v19320_v13 = vunpack.c.l.bf16 %v14536_v27  ;;  %v14563_v27 = vld [vmem:[%s22433_s5 + $0x60] sm:$0xff]  }
 0x1e9   : > { %16734 = vmatpush3.msra.mxu0 %v19037_v18  ;;  %16656 = vmatprep.mubr.f32.mxu0 %v4244_v33  ;;  %v3442_v18 = vld [vmem:[#allocation2 + $0xa0] sm:$0xff]  ;;  %v14566_v33 = vld [vmem:[%s22433_s5 + $0x78] sm:$0xff]  }
 0x1ea   : > { %16735 = vmatprep.subr.mxu0 %v19046_v60  ;;  %16569 = vmatprep.subr.mxu1 %v19206_v58  ;;  %v19262_v26 = vpop.f32.mrf.mxu0 }
 0x1eb   : > { %16736 = vmatpush3.msra.mxu0 %v19046_v60  ;;  %16489 = vmatmul.mubr.f32.gmra.mxu1 %v3441_v50  ;;  %v4246_v60 = vld [vmem:[#allocation2 + $0xa2] sm:$0xff]  ;;  %v3453_v50 = vld [vmem:[#allocation2 + $0xf8] sm:$0xff] }
 0x1ec   : > { %16737 = vmatprep.subr.mxu0 %v19063_v29  ;;  %16570 = vmatpush3.msra.mxu1 %v19206_v58 }
 0x1ed   : > { %16491 = vmatprep.mubr.f32.mxu1 %v3442_v18  ;;  %16571 = vmatprep.subr.mxu1 %v19212_v62  ;;  %v4257_v18 = vld [vmem:[#allocation2 + $0xfa] sm:$0xff] }
 0x1ee   : > { %16657 = vmatmul.mubr.f32.gmra.mxu0 %v4245_v25  ;;  %16572 = vmatpush3.msra.mxu1 %v19212_v62  ;;  %v19275_v47 = vpop.f32.mrf.mxu0  ;;  %v19331_v25 = vunpack.c.h.bf16 %v14566_v33 }
 0x1ef   : > { %16738 = vmatpush3.msra.mxu0 %v19063_v29  ;;  %16659 = vmatprep.mubr.f32.mxu0 %v4246_v60  ;;  %v3444_v29 = vld [vmem:[#allocation2 + $0xb0] sm:$0xff] }
 0x1f0   : > { %16739 = vmatprep.subr.mxu0 %v19074_v10  ;;  %16573 = vmatprep.subr.mxu1 %v19223_v63  ;;  %v19289_v35 = vpop.f32.mrf.mxu0 }
 0x1f1   : > { %16740 = vmatpush3.msra.mxu0 %v19074_v10  ;;  %16492 = vmatmul.mubr.f32.gmra.mxu1 %v3443_v54  ;;  %v4248_v10 = vld [vmem:[#allocation2 + $0xb2] sm:$0xff]  ;;  %v19341_v54 = vunpack.c.l.bf16 %v14566_v33  ;;  %v19400_v33 = vunpack.c.h.bf16 %v14563_v27 }
 0x1f2   : > { %16741 = vmatprep.subr.mxu0 %v19086_v24  ;;  %16574 = vmatpush3.msra.mxu1 %v19223_v63 }
 0x1f3   : > { %16494 = vmatprep.mubr.f32.mxu1 %v3444_v29  ;;  %16575 = vmatprep.subr.mxu1 %v19231_v61  ;;  %v14565_v29 = vld [vmem:[%s22433_s5 + $0x70] sm:$0xff]  }
 0x1f4   : > { %16660 = vmatmul.mubr.f32.gmra.mxu0 %v4247_v42  ;;  %16576 = vmatpush3.msra.mxu1 %v19231_v61  ;;  %v4034_v42 = vld [vmem:[#allocation2 + $0x231] sm:$0xff] }
 0x1f5   : > { %16742 = vmatpush3.msra.mxu0 %v19086_v24  ;;  %16662 = vmatprep.mubr.f32.mxu0 %v4248_v10  ;;  %v3446_v24 = vld [vmem:[#allocation2 + $0xc0] sm:$0xff]  ;;  %v19298_v48 = vpop.f32.mrf.mxu0 }
 0x1f6   : > { %16743 = vmatprep.subr.mxu0 %v19095_v46  ;;  %16577 = vmatprep.subr.mxu1 %v19242_v20  ;;  %22437 = vst [vmem:[#allocation9_spill] sm:$0xff] %v19298_v48  ;;  %v4035_v10 = vld [vmem:[#allocation2 + $0x239] sm:$0xff] }
 0x1f7   : > { %16744 = vmatpush3.msra.mxu0 %v19095_v46  ;;  %16495 = vmatmul.mubr.f32.gmra.mxu1 %v3445_v17  ;;  %v4250_v46 = vld [vmem:[#allocation2 + $0xc2] sm:$0xff]  ;;  %v19311_v14 = vpop.f32.mrf.mxu0 }
 0x1f8   : > { %16745 = vmatprep.subr.mxu0 %v19106_v37  ;;  %16578 = vmatpush3.msra.mxu1 %v19242_v20  ;;  %22438 = vst [vmem:[#allocation10_spill] sm:$0xff] %v19311_v14  ;;  %v4500_v17 = vld [vmem:[#allocation2 + $0x108] sm:$0xff] }
 0x1f9   : > { %16497 = vmatprep.mubr.f32.mxu1 %v3446_v24  ;;  %16579 = vmatprep.subr.mxu1 %v19248_v7  ;;  %v19354_v24 = vunpack.c.h.bf16 %v14565_v29 }
 0x1fa   : > { %16663 = vmatmul.mubr.f32.gmra.mxu0 %v4249_v57  ;;  %16580 = vmatpush3.msra.mxu1 %v19248_v7  ;;  %v19325_v32 = vpop.f32.mrf.mxu0 }
 0x1fb   : > { %16746 = vmatpush3.msra.mxu0 %v19106_v37  ;;  %16665 = vmatprep.mubr.f32.mxu0 %v4250_v46  ;;  %v3448_v37 = vld [vmem:[#allocation2 + $0xd0] sm:$0xff]  ;;  %22439 = vst [vmem:[#allocation11_spill] sm:$0xff] %v19325_v32  ;;  %v19362_v46 = vunpack.c.l.bf16 %v14565_v29 }
 0x1fc   : > { %16747 = vmatprep.subr.mxu0 %v19113_v0  ;;  %16581 = vmatprep.subr.mxu1 %v19259_v4  ;;  %v19334_v60 = vpop.f32.mrf.mxu0 }
 0x1fd   : > { %16748 = vmatpush3.msra.mxu0 %v19113_v0  ;;  %16498 = vmatmul.mubr.f32.gmra.mxu1 %v3447_v3  ;;  %v4252_v0 = vld [vmem:[#allocation2 + $0xd2] sm:$0xff]  ;;  %22440 = vst [vmem:[#allocation12_spill] sm:$0xff] %v19334_v60 }
 0x1fe   : > { %16749 = vmatprep.subr.mxu0 %v19125_v21  ;;  %16582 = vmatpush3.msra.mxu1 %v19259_v4 }
 0x1ff   : > { %16500 = vmatprep.mubr.f32.mxu1 %v3448_v37  ;;  %16583 = vmatprep.subr.mxu1 %v19267_v28 }
 0x200   : > { %16666 = vmatmul.mubr.f32.gmra.mxu0 %v4251_v59  ;;  %16584 = vmatpush3.msra.mxu1 %v19267_v28  ;;  %v19351_v15 = vpop.f32.mrf.mxu0  ;;  %v4037_v59 = vld [vmem:[#allocation2 + $0x249] sm:$0xff] }
 0x201   : > { %16750 = vmatpush3.msra.mxu0 %v19125_v21  ;;  %16668 = vmatprep.mubr.f32.mxu0 %v4252_v0  ;;  %v3450_v21 = vld [vmem:[#allocation2 + $0xe0] sm:$0xff]  ;;  %22441 = vst [vmem:[#allocation13_spill] sm:$0xff] %v19351_v15 }
 0x202   : > { %16751 = vmatprep.subr.mxu0 %v19131_v43  ;;  %16585 = vmatprep.subr.mxu1 %v19278_v40  ;;  %v19367_v3 = vpop.f32.mrf.mxu0 }
 0x203   : > { %16752 = vmatpush3.msra.mxu0 %v19131_v43  ;;  %16501 = vmatmul.mubr.f32.gmra.mxu1 %v3449_v56  ;;  %v4254_v43 = vld [vmem:[#allocation2 + $0xe2] sm:$0xff]  ;;  %22442 = vst [vmem:[#allocation14_spill] sm:$0xff] %v19367_v3  ;;  %v19377_v56 = vunpack.c.h.bf16 %v14564_v53 }
 0x204   : > { %16753 = vmatprep.subr.mxu0 %v19140_v41  ;;  %16586 = vmatpush3.msra.mxu1 %v19278_v40 }
 0x205   : > { %16503 = vmatprep.mubr.f32.mxu1 %v3450_v21  ;;  %16587 = vmatprep.subr.mxu1 %v19284_v49 }
 0x206   : > { %16669 = vmatmul.mubr.f32.gmra.mxu0 %v4253_v16  ;;  %16588 = vmatpush3.msra.mxu1 %v19284_v49 }
 0x207   : > { %16754 = vmatpush3.msra.mxu0 %v19140_v41  ;;  %16671 = vmatprep.mubr.f32.mxu0 %v4254_v43  ;;  %v3452_v41 = vld [vmem:[#allocation2 + $0xf0] sm:$0xff]  ;;  %v19387_v43 = vunpack.c.l.bf16 %v14564_v53 }
 0x208   : > { %16755 = vmatprep.subr.mxu0 %v19146_v38  ;;  %16589 = vmatprep.subr.mxu1 %v19295_v19 }
 0x209   : > { %16756 = vmatpush3.msra.mxu0 %v19146_v38  ;;  %16504 = vmatmul.mubr.f32.gmra.mxu1 %v3451_v45  ;;  %v4256_v38 = vld [vmem:[#allocation2 + $0xf2] sm:$0xff] }
 0x20a   : > { %16757 = vmatprep.subr.mxu0 %v19155_v9  ;;  %16590 = vmatpush3.msra.mxu1 %v19295_v19  ;;  %v4038_v45 = vld [vmem:[#allocation2 + $0x251] sm:$0xff] }
 0x20b   : > { %16506 = vmatprep.mubr.f32.mxu1 %v3452_v41  ;;  %16591 = vmatprep.subr.mxu1 %v19303_v12 }
 0x20c   : > { %16672 = vmatmul.mubr.f32.gmra.mxu0 %v4255_v22  ;;  %16592 = vmatpush3.msra.mxu1 %v19303_v12 }
 0x20d   : > { %16758 = vmatpush3.msra.mxu0 %v19155_v9  ;;  %16674 = vmatprep.mubr.f32.mxu0 %v4256_v38  ;;  %v4033_v9 = vld [vmem:[#allocation2 + $0x229] sm:$0xff] }
 0x20e   : > { %16759 = vmatprep.subr.mxu0 %v19161_v2  ;;  %16593 = vmatprep.subr.mxu1 %v19314_v44  ;;  %v4504_v38 = vld [vmem:[#allocation2 + $0x128] sm:$0xff] }
 0x20f   : > { %16760 = vmatpush3.msra.mxu0 %v19161_v2  ;;  %16507 = vmatmul.mubr.f32.gmra.mxu1 %v3453_v50  ;;  %v4499_v2 = vld [vmem:[#allocation2 + $0x100] sm:$0xff] }
 0x210   : > { %16761 = vmatprep.subr.mxu0 %v19170_v11  ;;  %16594 = vmatpush3.msra.mxu1 %v19314_v44 }
 0x211   : > { %16597 = vmatprep.mubr.f32.mxu1 %v4033_v9  ;;  %16595 = vmatprep.subr.mxu1 %v19320_v13  ;;  %v19338_v6 = vpop.f32.mrf.mxu1 }
 0x212   : > { %16675 = vmatmul.mubr.f32.gmra.mxu0 %v4257_v18  ;;  %16596 = vmatpush3.msra.mxu1 %v19320_v13  ;;  %v19410_v18 = vunpack.c.l.bf16 %v14563_v27  ;;  %v4042_v27 = vld [vmem:[#allocation2 + $0x271] sm:$0xff] }
 0x213   : > { %16762 = vmatpush3.msra.mxu0 %v19170_v11  ;;  %16765 = vmatprep.mubr.f32.mxu0 %v4499_v2  ;;  %v19348_v11 = vpop.f32.mrf.mxu1  ;;  %v14562_v2 = vld [vmem:[%s22433_s5 + $0x58] sm:$0xff]  }
 0x214   : > { %16763 = vmatprep.subr.mxu0 %v19176_v23  ;;  %16677 = vmatprep.subr.mxu1 %v19331_v25 }
 0x215   : > { %16764 = vmatpush3.msra.mxu0 %v19176_v23  ;;  %16598 = vmatmul.mubr.f32.vlgmr.msra.gmra.mxu1 %v4034_v42  ;;  %v4501_v23 = vld [vmem:[#allocation2 + $0x110] sm:$0xff] }
 0x216   : > { %16845 = vmatprep.subr.mxu0 %v19187_v5  ;;  %16678 = vmatpush3.msra.mxu1 %v19331_v25 }
 0x217   : > { %16600 = vmatprep.mubr.f32.mxu1 %v4035_v10  ;;  %16679 = vmatprep.subr.mxu1 %v19341_v54  ;;  %v19357_v57 = vpop.f32.mrf.mxu1  ;;  %v4041_v10 = vld [vmem:[#allocation2 + $0x269] sm:$0xff] }
 0x218   : > { %16766 = vmatmul.mubr.f32.vlgmr.msra.gmra.mxu0 %v4500_v17  ;;  %16680 = vmatpush3.msra.mxu1 %v19341_v54  ;;  %v4506_v17 = vld [vmem:[#allocation2 + $0x138] sm:$0xff] }
 0x219   : > { %16846 = vmatpush3.msra.mxu0 %v19187_v5  ;;  %16768 = vmatprep.mubr.f32.mxu0 %v4501_v23  ;;  %v19369_v37 = vpop.f32.mrf.mxu1  ;;  %v4036_v5 = vld [vmem:[#allocation2 + $0x241] sm:$0xff]  ;;  %v19423_v23 = vunpack.c.h.bf16 %v14562_v2 }
 0x21a   : > { %16847 = vmatprep.subr.mxu0 %v19195_v31  ;;  %16681 = vmatprep.subr.mxu1 %v19354_v24 }
 0x21b   : > { %16848 = vmatpush3.msra.mxu0 %v19195_v31  ;;  %16601 = vmatmul.mubr.f32.gmra.mxu1 %v4036_v5  ;;  %v19374_v0 = vpop.f32.mrf.mxu0  ;;  %v4503_v31 = vld [vmem:[#allocation2 + $0x120] sm:$0xff] }
 0x21c   : > { %16849 = vmatprep.subr.mxu0 %v19206_v58  ;;  %16682 = vmatpush3.msra.mxu1 %v19354_v24  ;;  %v19382_v16 = vpop.f32.mrf.mxu1 }
 0x21d   : > { %16603 = vmatprep.mubr.f32.mxu1 %v4037_v59  ;;  %16683 = vmatprep.subr.mxu1 %v19362_v46  ;;  %v19380_v21 = vpop.f32.mrf.mxu0  ;;  %v19433_v59 = vunpack.c.l.bf16 %v14562_v2 }
 0x21e   : > { %16769 = vmatmul.mubr.f32.gmra.mxu0 %v4502_v55  ;;  %16684 = vmatpush3.msra.mxu1 %v19362_v46  ;;  %v19397_v22 = vpop.f32.mrf.mxu1  ;;  %v14561_v55 = vld [vmem:[%s22433_s5 + $0x50] sm:$0xff]  }
 0x21f   : > { %16850 = vmatpush3.msra.mxu0 %v19206_v58  ;;  %16771 = vmatprep.mubr.f32.mxu0 %v4503_v31  ;;  %v4039_v58 = vld [vmem:[#allocation2 + $0x259] sm:$0xff] }
 0x220   : > { %16851 = vmatprep.subr.mxu0 %v19212_v62  ;;  %16685 = vmatprep.subr.mxu1 %v19377_v56  ;;  %v19394_v41 = vpop.f32.mrf.mxu0 }
 0x221   : > { %16852 = vmatpush3.msra.mxu0 %v19212_v62  ;;  %16604 = vmatmul.mubr.f32.gmra.mxu1 %v4038_v45  ;;  %v4505_v62 = vld [vmem:[#allocation2 + $0x130] sm:$0xff]  ;;  %v4043_v45 = vld [vmem:[#allocation2 + $0x279] sm:$0xff] }
 0x222   : > { %16853 = vmatprep.subr.mxu0 %v19223_v63  ;;  %16686 = vmatpush3.msra.mxu1 %v19377_v56  ;;  %v19402_v50 = vpop.f32.mrf.mxu0 }
 0x223   : > { %16606 = vmatprep.mubr.f32.mxu1 %v4039_v58  ;;  %16687 = vmatprep.subr.mxu1 %v19387_v43  ;;  %v4508_v58 = vld [vmem:[#allocation2 + $0x148] sm:$0xff] }
 0x224   : > { %16772 = vmatmul.mubr.f32.gmra.mxu0 %v4504_v38  ;;  %16688 = vmatpush3.msra.mxu1 %v19387_v43  ;;  %v19446_v38 = vunpack.c.h.bf16 %v14561_v55 }
 0x225   : > { %16854 = vmatpush3.msra.mxu0 %v19223_v63  ;;  %v19407_v9 = vpop.f32.mrf.mxu0  ;;  %16774 = vmatprep.mubr.f32.mxu0 %v4505_v62  ;;  %v19415_v29 = vpop.f32.mrf.mxu1  ;;  %v4040_v63 = vld [vmem:[#allocation2 + $0x261] sm:$0xff] }
 0x226   : > { %16855 = vmatprep.subr.mxu0 %v19231_v61  ;;  %16689 = vmatprep.subr.mxu1 %v19400_v33 }
 0x227   : > { %16856 = vmatpush3.msra.mxu0 %v19231_v61  ;;  %v19419_v42 = vpop.f32.mrf.mxu0  ;;  %16607 = vmatmul.mubr.f32.gmra.mxu1 %v4040_v63  ;;  %v19425_v53 = vpop.f32.mrf.mxu1  ;;  %v4507_v61 = vld [vmem:[#allocation2 + $0x140] sm:$0xff]  ;;  %v19456_v63 = vunpack.c.l.bf16 %v14561_v55  ;;  %v4510_v55 = vld [vmem:[#allocation2 + $0x158] sm:$0xff] }
 0x228   : > { %16857 = vmatprep.subr.mxu0 %v19242_v20  ;;  %16690 = vmatpush3.msra.mxu1 %v19400_v33 }
 0x229   : > { %16609 = vmatprep.mubr.f32.mxu1 %v4041_v10  ;;  %16691 = vmatprep.subr.mxu1 %v19410_v18  ;;  %v14560_v10 = vld [vmem:[%s22433_s5 + $0x48] sm:$0xff]  }
 0x22a   : > { %16775 = vmatmul.mubr.f32.gmra.mxu0 %v4506_v17  ;;  %v19428_v5 = vpop.f32.mrf.mxu0  ;;  %16692 = vmatpush3.msra.mxu1 %v19410_v18 }
 0x22b   : > { %16858 = vmatpush3.msra.mxu0 %v19242_v20  ;;  %16777 = vmatprep.mubr.f32.mxu0 %v4507_v61  ;;  %v4044_v61 = vld [vmem:[#allocation2 + $0x281] sm:$0xff] }
 0x22c   : > { %16859 = vmatprep.subr.mxu0 %v19248_v7  ;;  %v19438_v31 = vpop.f32.mrf.mxu0  ;;  %16693 = vmatprep.subr.mxu1 %v19423_v23  ;;  %v19442_v20 = vpop.f32.mrf.mxu1 }
 0x22d   : > { %16860 = vmatpush3.msra.mxu0 %v19248_v7  ;;  %16610 = vmatmul.mubr.f32.gmra.mxu1 %v4042_v27  ;;  %v4509_v7 = vld [vmem:[#allocation2 + $0x150] sm:$0xff] }
 0x22e   : > { %16861 = vmatprep.subr.mxu0 %v19259_v4  ;;  %16694 = vmatpush3.msra.mxu1 %v19423_v23  ;;  %v19448_v62 = vpop.f32.mrf.mxu1  ;;  %v4045_v27 = vld [vmem:[#allocation2 + $0x289] sm:$0xff] }
 0x22f   : > { %16612 = vmatprep.mubr.f32.mxu1 %v4043_v45  ;;  %16695 = vmatprep.subr.mxu1 %v19433_v59  ;;  %v19469_v45 = vunpack.c.h.bf16 %v14560_v10 }
 0x230   : > { %16778 = vmatmul.mubr.f32.gmra.mxu0 %v4508_v58  ;;  %v19451_v2 = vpop.f32.mrf.mxu0  ;;  %16696 = vmatpush3.msra.mxu1 %v19433_v59 }
 0x231   : > { %22443 = vst [vmem:[#allocation15_spill] sm:$0xff] %v19451_v2  ;;  %16862 = vmatpush3.msra.mxu0 %v19259_v4  ;;  %16780 = vmatprep.mubr.f32.mxu0 %v4509_v7 }
 0x232   : > { %16863 = vmatprep.subr.mxu0 %v19267_v28  ;;  %v19461_v17 = vpop.f32.mrf.mxu0  ;;  %16697 = vmatprep.subr.mxu1 %v19446_v38  ;;  %v19465_v4 = vpop.f32.mrf.mxu1 }
 0x233   : > { %22444 = vst [vmem:[#allocation16_spill] sm:$0xff] %v19461_v17  ;;  %16864 = vmatpush3.msra.mxu0 %v19267_v28  ;;  %16613 = vmatmul.mubr.f32.gmra.mxu1 %v4044_v61  ;;  %v4511_v28 = vld [vmem:[#allocation2 + $0x160] sm:$0xff]  ;;  %v19479_v61 = vunpack.c.l.bf16 %v14560_v10  ;;  %v4512_v10 = vld [vmem:[#allocation2 + $0x168] sm:$0xff] }
 0x234   : > { %16865 = vmatprep.subr.mxu0 %v19278_v40  ;;  %16698 = vmatpush3.msra.mxu1 %v19446_v38  ;;  %v19471_v58 = vpop.f32.mrf.mxu1 }
 0x235   : > { %16615 = vmatprep.mubr.f32.mxu1 %v4045_v27  ;;  %22445 = vst [vmem:[#allocation17_spill] sm:$0xff] %v19471_v58  ;;  %16699 = vmatprep.subr.mxu1 %v19456_v63  ;;  %v14559_v27 = vld [vmem:[%s22433_s5 + $0x40] sm:$0xff]  }
 0x236   : > { %16781 = vmatmul.mubr.f32.gmra.mxu0 %v4510_v55  ;;  %v19474_v7 = vpop.f32.mrf.mxu0  ;;  %16700 = vmatpush3.msra.mxu1 %v19456_v63  ;;  %v4046_v55 = vld [vmem:[#allocation2 + $0x291] sm:$0xff]  ;;  %v19492_v3 = vunpack.c.h.bf16 %v14559_v27 }
 0x237   : > { %22446 = vst [vmem:[#allocation18_spill] sm:$0xff] %v19474_v7  ;;  %16866 = vmatpush3.msra.mxu0 %v19278_v40  ;;  %16783 = vmatprep.mubr.f32.mxu0 %v4511_v28  ;;  %v4047_v28 = vld [vmem:[#allocation2 + $0x299] sm:$0xff] }
 0x238   : > { %16867 = vmatprep.subr.mxu0 %v19284_v49  ;;  %v19484_v36 = vpop.f32.mrf.mxu0  ;;  %16701 = vmatprep.subr.mxu1 %v19469_v45  ;;  %v19488_v40 = vpop.f32.mrf.mxu1 }
 0x239   : > { %22447 = vst [vmem:[#allocation19_spill] sm:$0xff] %v19484_v36  ;;  %16868 = vmatpush3.msra.mxu0 %v19284_v49  ;;  %22448 = vst [vmem:[#allocation20_spill] sm:$0xff] %v19488_v40  ;;  %16616 = vmatmul.mubr.f32.gmra.mxu1 %v4046_v55  ;;  %v4513_v49 = vld [vmem:[#allocation2 + $0x170] sm:$0xff]  ;;  %v19502_v55 = vunpack.c.l.bf16 %v14559_v27  ;;  %v4514_v27 = vld [vmem:[#allocation2 + $0x178] sm:$0xff] }
 0x23a   : > { %16869 = vmatprep.subr.mxu0 %v19295_v19  ;;  %16702 = vmatpush3.msra.mxu1 %v19469_v45  ;;  %v19494_v15 = vpop.f32.mrf.mxu1 }
 0x23b   : > { %16618 = vmatprep.mubr.f32.mxu1 %v4047_v28  ;;  %22449 = vst [vmem:[#allocation21_spill] sm:$0xff] %v19494_v15  ;;  %16703 = vmatprep.subr.mxu1 %v19479_v61  ;;  %v14574_v28 = vld [vmem:[%s22433_s5 + $0xb8] sm:$0xff]  }
 0x23c   : > { %16784 = vmatmul.mubr.f32.gmra.mxu0 %v4512_v10  ;;  %v19497_v36 = vpop.f32.mrf.mxu0  ;;  %16704 = vmatpush3.msra.mxu1 %v19479_v61  ;;  %v4048_v10 = vld [vmem:[#allocation2 + $0x2a1] sm:$0xff] }
 0x23d   : > { %22450 = vst [vmem:[#allocation22_spill] sm:$0xff] %v19497_v36  ;;  %16870 = vmatpush3.msra.mxu0 %v19295_v19  ;;  %16786 = vmatprep.mubr.f32.mxu0 %v4513_v49  ;;  %v4547_v49 = vld [vmem:[#allocation2 + $0x2a8] sm:$0xff]  ;;  %v19515_v36 = vunpack.c.h.bf16 %v14574_v28 }
 0x23e   : > { %16871 = vmatprep.subr.mxu0 %v19303_v12  ;;  %v19507_v60 = vpop.f32.mrf.mxu0  ;;  %16705 = vmatprep.subr.mxu1 %v19492_v3  ;;  %v19511_v19 = vpop.f32.mrf.mxu1 }
 0x23f   : > { %22451 = vst [vmem:[#allocation23_spill] sm:$0xff] %v19507_v60  ;;  %16872 = vmatpush3.msra.mxu0 %v19303_v12  ;;  %22452 = vst [vmem:[#allocation24_spill] sm:$0xff] %v19511_v19  ;;  %16619 = vmatmul.mubr.f32.gmra.mxu1 %v4048_v10  ;;  %v5094_v12 = vld [vmem:[#allocation2 + $0x2a9] sm:$0xff]  ;;  %v19525_v10 = vunpack.c.l.bf16 %v14574_v28  ;;  %v5095_v28 = vld [vmem:[#allocation2 + $0x2b1] sm:$0xff] }
 0x240   : > { %16873 = vmatprep.subr.mxu0 %v19314_v44  ;;  %16706 = vmatpush3.msra.mxu1 %v19492_v3  ;;  %v19520_v15 = vpop.f32.mrf.mxu1 }
 0x241   : > { %16709 = vmatprep.mubr.f32.mxu1 %v4547_v49  ;;  %16707 = vmatprep.subr.mxu1 %v19502_v55  ;;  %22454 = vst [vmem:[#allocation26_spill] sm:$0xff] %v19520_v15  ;;  %v14573_v49 = vld [vmem:[%s22433_s5 + $0xb0] sm:$0xff]  }
 0x242   : > { %16787 = vmatmul.mubr.f32.gmra.mxu0 %v4514_v27  ;;  %v19518_v60 = vpop.f32.mrf.mxu0  ;;  %16708 = vmatpush3.msra.mxu1 %v19502_v55  ;;  %v4548_v27 = vld [vmem:[#allocation2 + $0x2b0] sm:$0xff] }
 0x243   : > { %22453 = vst [vmem:[#allocation25_spill] sm:$0xff] %v19518_v60  ;;  %16874 = vmatpush3.msra.mxu0 %v19314_v44  ;;  %16877 = vmatprep.mubr.f32.mxu0 %v5094_v12  ;;  %v22456_v44 = vmov 0.0   ;;  %v4549_v60 = vld [vmem:[#allocation2 + $0x2b8] sm:$0xff]  ;;  %v19538_v12 = vunpack.c.h.bf16 %v14573_v49 }
 0x244   : > { %16875 = vmatprep.subr.mxu0 %v19320_v13  ;;  %v19530_v19 = vpop.f32.mrf.mxu0  ;;  %16789 = vmatprep.subr.mxu1 %v19515_v36 }
 0x245   : > { %22455 = vst [vmem:[#allocation27_spill] sm:$0xff] %v19530_v19  ;;  %16876 = vmatpush3.msra.mxu0 %v19320_v13  ;;  %16710 = vmatmul.mubr.f32.vlgmr.msra.gmra.mxu1 %v4548_v27  ;;  %v19535_v15 = vpop.f32.mrf.mxu1  ;;  %v5096_v13 = vld [vmem:[#allocation2 + $0x2b9] sm:$0xff]  ;;  %v19548_v27 = vunpack.c.l.bf16 %v14573_v49  ;;  %v17585_v49 = vld [vmem:[#allocation2 + $0x2c8] sm:$0xff] }
 0x246   : > { %16957 = vmatprep.subr.mxu0 %v22456_v44  ;;  %16790 = vmatpush3.msra.mxu1 %v19515_v36 }
 0x247   : > { %16712 = vmatprep.mubr.f32.mxu1 %v4549_v60  ;;  %16791 = vmatprep.subr.mxu1 %v19525_v10  ;;  %v19543_v7 = vpop.f32.mrf.mxu1  ;;  %v14572_v60 = vld [vmem:[%s22433_s5 + $0xa8] sm:$0xff]  }
 0x248   : > { %16878 = vmatmul.mubr.f32.vlgmr.msra.gmra.mxu0 %v5095_v28  ;;  %v19541_v19 = vpop.f32.mrf.mxu0  ;;  %16792 = vmatpush3.msra.mxu1 %v19525_v10 }
 0x249   : > { %22457 = vst [vmem:[#allocation28_spill] sm:$0xff] %v19541_v19  ;;  %16958 = vmatpush3.msra.mxu0 %v19331_v25  ;;  %16880 = vmatprep.mubr.f32.mxu0 %v5096_v13  ;;  %v17584_v25 = vld [vmem:[#allocation2 + $0x2c0] sm:$0xff]  ;;  %v19561_v19 = vunpack.c.h.bf16 %v14572_v60 }
 0x24a   : > { %16959 = vmatprep.subr.mxu0 %v22456_v44  ;;  %v19553_v32 = vpop.f32.mrf.mxu0  ;;  %16793 = vmatprep.subr.mxu1 %v19538_v12  ;;  %v19557_v28 = vpop.f32.mrf.mxu1  ;;  %v5097_v13 = vld [vmem:[#allocation2 + $0x2c1] sm:$0xff] }
 0x24b   : > { %22458 = vst [vmem:[#allocation29_spill] sm:$0xff] %v19553_v32  ;;  %16960 = vmatpush3.msra.mxu0 %v19341_v54  ;;  %16713 = vmatmul.mubr.f32.gmra.mxu1 %v17584_v25  ;;  %v5098_v54 = vld [vmem:[#allocation2 + $0x2c9] sm:$0xff]  ;;  %v19571_v25 = vunpack.c.l.bf16 %v14572_v60  ;;  %v17587_v60 = vld [vmem:[#allocation2 + $0x2d8] sm:$0xff] }
 0x24c   : > { %16961 = vmatprep.subr.mxu0 %v22456_v44  ;;  %16794 = vmatpush3.msra.mxu1 %v19538_v12  ;;  %v19563_v40 = vpop.f32.mrf.mxu1 }
 0x24d   : > { %16715 = vmatprep.mubr.f32.mxu1 %v17585_v49  ;;  %16795 = vmatprep.subr.mxu1 %v19548_v27  ;;  %v14571_v49 = vld [vmem:[%s22433_s5 + $0xa0] sm:$0xff]  }
 0x24e   : > { %16881 = vmatmul.mubr.f32.gmra.mxu0 %v5097_v13  ;;  %v19566_v32 = vpop.f32.mrf.mxu0  ;;  %16796 = vmatpush3.msra.mxu1 %v19548_v27 }
 0x24f   : > { %22459 = vst [vmem:[#allocation30_spill] sm:$0xff] %v19566_v32  ;;  %16962 = vmatpush3.msra.mxu0 %v19354_v24  ;;  %16883 = vmatprep.mubr.f32.mxu0 %v5098_v54  ;;  %v17586_v24 = vld [vmem:[#allocation2 + $0x2d0] sm:$0xff]  ;;  %v19584_v32 = vunpack.c.h.bf16 %v14571_v49 }
 0x250   : > { %16963 = vmatprep.subr.mxu0 %v22456_v44  ;;  %v19576_v17 = vpop.f32.mrf.mxu0  ;;  %16797 = vmatprep.subr.mxu1 %v19561_v19  ;;  %v19580_v13 = vpop.f32.mrf.mxu1  ;;  %v5099_v54 = vld [vmem:[#allocation2 + $0x2d1] sm:$0xff] }
 0x251   : > { %22460 = vst [vmem:[#allocation31_spill] sm:$0xff] %v19576_v17  ;;  %16964 = vmatpush3.msra.mxu0 %v19362_v46  ;;  %16716 = vmatmul.mubr.f32.gmra.mxu1 %v17586_v24  ;;  %v5100_v46 = vld [vmem:[#allocation2 + $0x2d9] sm:$0xff]  ;;  %v19594_v24 = vunpack.c.l.bf16 %v14571_v49  ;;  %v5101_v49 = vld [vmem:[#allocation2 + $0x2e1] sm:$0xff] }
 0x252   : > { %16965 = vmatprep.subr.mxu0 %v22456_v44  ;;  %16798 = vmatpush3.msra.mxu1 %v19561_v19  ;;  %v19586_v14 = vpop.f32.mrf.mxu1 }
 0x253   : > { %16718 = vmatprep.mubr.f32.mxu1 %v17587_v60  ;;  %16799 = vmatprep.subr.mxu1 %v19571_v25  ;;  %22462 = vst [vmem:[#allocation33_spill] sm:$0xff] %v19594_v24  ;;  %v14570_v60 = vld [vmem:[%s22433_s5 + $0x98] sm:$0xff]  }
 0x254   : > { %16884 = vmatmul.mubr.f32.gmra.mxu0 %v5099_v54  ;;  %v19589_v17 = vpop.f32.mrf.mxu0  ;;  %16800 = vmatpush3.msra.mxu1 %v19571_v25  ;;  %v19619_v2 = vunpack.c.l.bf16 %v14570_v60 }
 0x255   : > { %22461 = vst [vmem:[#allocation32_spill] sm:$0xff] %v19589_v17  ;;  %16966 = vmatpush3.msra.mxu0 %v19377_v56  ;;  %16886 = vmatprep.mubr.f32.mxu0 %v5100_v46  ;;  %v17588_v56 = vld [vmem:[#allocation2 + $0x2e0] sm:$0xff]  ;;  %v19605_v17 = vld [vmem:[#allocation3 + $0x1a0] sm:$0xff]  ;;  %v19609_v46 = vunpack.c.h.bf16 %v14570_v60  ;;  %v17592_v60 = vld [vmem:[#allocation2 + $0x2f8] sm:$0xff] }
 0x256   : > { %16967 = vmatprep.subr.mxu0 %v22456_v44  ;;  %v19599_v58 = vpop.f32.mrf.mxu0  ;;  %16801 = vmatprep.subr.mxu1 %v19584_v32  ;;  %v19603_v54 = vpop.f32.mrf.mxu1  ;;  %v17590_v44 = vld [vmem:[#allocation2 + $0x2e8] sm:$0xff]  ;;  %22466 = vst [vmem:[#allocation37_spill] sm:$0xff] %v19619_v2 }
 0x257   : > { %22463 = vst [vmem:[#allocation34_spill] sm:$0xff] %v19599_v58  ;;  %16968 = vmatpush3.msra.mxu0 %v19387_v43  ;;  %16719 = vmatmul.mubr.f32.gmra.mxu1 %v17588_v56  ;;  %22464 = vst [vmem:[#allocation35_spill] sm:$0xff] %v19609_v46  ;;  %v5102_v56 = vld [vmem:[#allocation2 + $0x2e9] sm:$0xff] }
 0x258   : > { %16969 = vmatprep.subr.mxu0 %v19605_v17  ;;  %16802 = vmatpush3.msra.mxu1 %v19584_v32  ;;  %v19611_v58 = vpop.f32.mrf.mxu1 }
 0x259   : > { %16721 = vmatprep.mubr.f32.mxu1 %v17590_v44  ;;  %16803 = vmatprep.subr.mxu1 %v19594_v24  ;;  %v14569_v44 = vld [vmem:[%s22433_s5 + $0x90] sm:$0xff]  }
 0x25a   : > { %16887 = vmatmul.mubr.f32.gmra.mxu0 %v5101_v49  ;;  %v19614_v43 = vpop.f32.mrf.mxu0  ;;  %16804 = vmatpush3.msra.mxu1 %v19594_v24 }
 0x25b   : > { %22465 = vst [vmem:[#allocation36_spill] sm:$0xff] %v19614_v43  ;;  %16970 = vmatpush3.msra.mxu0 %v19400_v33  ;;  %16889 = vmatprep.mubr.f32.mxu0 %v5102_v56  ;;  %v17591_v33 = vld [vmem:[#allocation2 + $0x2f0] sm:$0xff]  ;;  %v19632_v43 = vunpack.c.h.bf16 %v14569_v44 }
 0x25c   : > { %16971 = vmatprep.subr.mxu0 %v19605_v17  ;;  %v19624_v48 = vpop.f32.mrf.mxu0  ;;  %16805 = vmatprep.subr.mxu1 %v19609_v46  ;;  %v19628_v49 = vpop.f32.mrf.mxu1  ;;  %v5103_v56 = vld [vmem:[#allocation2 + $0x2f1] sm:$0xff] }
 0x25d   : > { %22467 = vst [vmem:[#allocation38_spill] sm:$0xff] %v19624_v48  ;;  %16972 = vmatpush3.msra.mxu0 %v19410_v18  ;;  %16722 = vmatmul.mubr.f32.gmra.mxu1 %v17591_v33  ;;  %22468 = vst [vmem:[#allocation39_spill] sm:$0xff] %v19632_v43  ;;  %v5104_v18 = vld [vmem:[#allocation2 + $0x2f9] sm:$0xff]  ;;  %v19642_v33 = vunpack.c.l.bf16 %v14569_v44  ;;  %v17594_v44 = vld [vmem:[#allocation2 + $0x308] sm:$0xff] }
 0x25e   : > { %16973 = vmatprep.subr.mxu0 %v19605_v17  ;;  %16806 = vmatpush3.msra.mxu1 %v19609_v46  ;;  %v19634_v24 = vpop.f32.mrf.mxu1 }
 0x25f   : > { %16724 = vmatprep.mubr.f32.mxu1 %v17592_v60  ;;  %16807 = vmatprep.subr.mxu1 %v19619_v2  ;;  %22470 = vst [vmem:[#allocation41_spill] sm:$0xff] %v19642_v33  ;;  %v14568_v60 = vld [vmem:[%s22433_s5 + $0x88] sm:$0xff]  }
 0x260   : > { %16890 = vmatmul.mubr.f32.gmra.mxu0 %v5103_v56  ;;  %v19637_v48 = vpop.f32.mrf.mxu0  ;;  %16808 = vmatpush3.msra.mxu1 %v19619_v2 }
 0x261   : > { %22469 = vst [vmem:[#allocation40_spill] sm:$0xff] %v19637_v48  ;;  %16974 = vmatpush3.msra.mxu0 %v19423_v23  ;;  %16892 = vmatprep.mubr.f32.mxu0 %v5104_v18  ;;  %v17593_v23 = vld [vmem:[#allocation2 + $0x300] sm:$0xff]  ;;  %v19655_v48 = vunpack.c.h.bf16 %v14568_v60 }
 0x262   : > { %16975 = vmatprep.subr.mxu0 %v19605_v17  ;;  %v19647_v46 = vpop.f32.mrf.mxu0  ;;  %16809 = vmatprep.subr.mxu1 %v19632_v43  ;;  %v19651_v56 = vpop.f32.mrf.mxu1  ;;  %v5105_v18 = vld [vmem:[#allocation2 + $0x301] sm:$0xff] }
 0x263   : > { %22471 = vst [vmem:[#allocation42_spill] sm:$0xff] %v19647_v46  ;;  %16976 = vmatpush3.msra.mxu0 %v19433_v59  ;;  %16725 = vmatmul.mubr.f32.gmra.mxu1 %v17593_v23  ;;  %22472 = vst [vmem:[#allocation43_spill] sm:$0xff] %v19655_v48  ;;  %v5106_v59 = vld [vmem:[#allocation2 + $0x309] sm:$0xff]  ;;  %v19665_v23 = vunpack.c.l.bf16 %v14568_v60  ;;  %v17596_v60 = vld [vmem:[#allocation2 + $0x318] sm:$0xff] }
 0x264   : > { %16977 = vmatprep.subr.mxu0 %v19605_v17  ;;  %16810 = vmatpush3.msra.mxu1 %v19632_v43  ;;  %v19657_v2 = vpop.f32.mrf.mxu1 }
 0x265   : > { %16727 = vmatprep.mubr.f32.mxu1 %v17594_v44  ;;  %16811 = vmatprep.subr.mxu1 %v19642_v33  ;;  %22474 = vst [vmem:[#allocation45_spill] sm:$0xff] %v19665_v23  ;;  %v14567_v44 = vld [vmem:[%s22433_s5 + $0x80] sm:$0xff]  }
 0x266   : > { %16893 = vmatmul.mubr.f32.gmra.mxu0 %v5105_v18  ;;  %v19660_v46 = vpop.f32.mrf.mxu0  ;;  %16812 = vmatpush3.msra.mxu1 %v19642_v33 }
 0x267   : > { %22473 = vst [vmem:[#allocation44_spill] sm:$0xff] %v19660_v46  ;;  %16978 = vmatpush3.msra.mxu0 %v19446_v38  ;;  %16895 = vmatprep.mubr.f32.mxu0 %v5106_v59  ;;  %v17595_v38 = vld [vmem:[#allocation2 + $0x310] sm:$0xff]  ;;  %v19678_v46 = vunpack.c.h.bf16 %v14567_v44 }
 0x268   : > { %16979 = vmatprep.subr.mxu0 %v19605_v17  ;;  %v19670_v43 = vpop.f32.mrf.mxu0  ;;  %16813 = vmatprep.subr.mxu1 %v19655_v48  ;;  %v19674_v18 = vpop.f32.mrf.mxu1  ;;  %v5107_v59 = vld [vmem:[#allocation2 + $0x311] sm:$0xff] }
 0x269   : > { %22475 = vst [vmem:[#allocation46_spill] sm:$0xff] %v19670_v43  ;;  %16980 = vmatpush3.msra.mxu0 %v19456_v63  ;;  %16728 = vmatmul.mubr.f32.gmra.mxu1 %v17595_v38  ;;  %v5108_v63 = vld [vmem:[#allocation2 + $0x319] sm:$0xff] }
 0x26a   : > { %16981 = vmatprep.subr.mxu0 %v19605_v17  ;;  %16814 = vmatpush3.msra.mxu1 %v19655_v48  ;;  %v19680_v33 = vpop.f32.mrf.mxu1  ;;  %v14590_v38 = vld [vmem:[%s22433_s5 + $0x138] sm:$0xff]  }
 0x26b   : > { %16730 = vmatprep.mubr.f32.mxu1 %v17596_v60  ;;  %16815 = vmatprep.subr.mxu1 %v19665_v23  ;;  %v19691_v60 = vunpack.c.l.bf16 %v14567_v44  ;;  %v5109_v44 = vld [vmem:[#allocation2 + $0x321] sm:$0xff] }
 0x26c   : > { %16896 = vmatmul.mubr.f32.gmra.mxu0 %v5107_v59  ;;  %v19683_v43 = vpop.f32.mrf.mxu0  ;;  %16816 = vmatpush3.msra.mxu1 %v19665_v23  ;;  %v19702_v23 = vunpack.c.h.bf16 %v14590_v38 }
 0x26d   : > { %22476 = vst [vmem:[#allocation47_spill] sm:$0xff] %v19683_v43  ;;  %16982 = vmatpush3.msra.mxu0 %v19469_v45  ;;  %16898 = vmatprep.mubr.f32.mxu0 %v5108_v63  ;;  %v2681_v45 = vadd.f32 %v19181_v51, %v19338_v6  ;;  %v17597_v43 = vld [vmem:[#allocation2 + $0x320] sm:$0xff] }
 0x26e   : > { %16983 = vmatprep.subr.mxu0 %v19605_v17  ;;  %v19693_v48 = vpop.f32.mrf.mxu0  ;;  %16817 = vmatprep.subr.mxu1 %v19678_v46  ;;  %v19699_v59 = vpop.f32.mrf.mxu1  ;;  %v4885_v63 = vld [vmem:[#allocation2 + $0x101] sm:$0xff] }
 0x26f   : > { %22477 = vst [vmem:[#allocation48_spill] sm:$0xff] %v19693_v48  ;;  %16984 = vmatpush3.msra.mxu0 %v19479_v61  ;;  %16731 = vmatmul.mubr.f32.gmra.mxu1 %v17597_v43  ;;  %v2676_v48 = vadd.f32 %v19190_v8, %v19348_v11  ;;  %v2949_v61 = vadd.f32 %v19535_v15, %v2681_v45  ;;  %v14589_v43 = vld [vmem:[%s22433_s5 + $0x130] sm:$0xff]   ;;  %v19721_v11 = vunpack.c.l.bf16 %v14590_v38 }
 0x270   : > { %16985 = vmatprep.subr.mxu0 %v19605_v17  ;;  %16818 = vmatpush3.msra.mxu1 %v19678_v46  ;;  %v19711_v6 = vpop.f32.mrf.mxu1  ;;  %v4886_v8 = vld [vmem:[#allocation2 + $0x109] sm:$0xff]  ;;  %v2686_v38 = vadd.f32 %v19217_v39, %v19369_v37 }
 0x271   : > { %16821 = vmatprep.mubr.f32.mxu1 %v4885_v63  ;;  %16819 = vmatprep.subr.mxu1 %v19691_v60  ;;  %v2948_v63 = vadd.f32 %v19543_v7, %v2676_v48  ;;  %v3159_v45 = vadd.f32 %v19374_v0, %v2949_v61  ;;  %v4887_v48 = vld [vmem:[#allocation2 + $0x111] sm:$0xff]  ;;  %v19732_v7 = vunpack.c.h.bf16 %v14589_v43  ;;  %v17598_v61 = vld [vmem:[#allocation2 + $0x328] sm:$0xff] }
 0x272   : > { %16899 = vmatmul.mubr.f32.gmra.mxu0 %v5109_v44  ;;  %v19709_v51 = vpop.f32.mrf.mxu0  ;;  %16820 = vmatpush3.msra.mxu1 %v19691_v60  ;;  %v14588_v37 = vld [vmem:[%s22433_s5 + $0x128] sm:$0xff]  }
 0x273   : > { %16986 = vmatpush3.msra.mxu0 %v19492_v3  ;;  %16901 = vmatprep.subr.mxu1 %v19702_v23  ;;  %v2691_v3 = vadd.f32 %v19203_v30, %v19357_v57  ;;  %v3158_v44 = vadd.f32 %v19380_v21, %v2948_v63  ;;  %v4888_v63 = vld [vmem:[#allocation2 + $0x119] sm:$0xff] }
 0x274   : > { %16987 = vmatprep.subr.mxu0 %v19605_v17  ;;  %v19723_v15 = vpop.f32.mrf.mxu0  ;;  %16822 = vmatmul.mubr.f32.vlgmr.msra.gmra.mxu1 %v4886_v8 }
 0x275   : > { %16988 = vmatpush3.msra.mxu0 %v19502_v55  ;;  %16902 = vmatpush3.msra.mxu1 %v19702_v23  ;;  %v19739_v55 = vld [vmem:[%s22478_s6] ss:$0 sm:$0xff]  ;;  %v16375_v30 = vpop.f32.mrf.mxu1  ;;  %v2951_v57 = vadd.f32 %v19557_v28, %v2691_v3  ;;  %v2950_v28 = vadd.f32 %v19563_v40, %v2686_v38 }
 0x276   : > { %16989 = vmatprep.mubr.msk.f32.mxu0 %vm17673_vm0, %v19605_v17  ;;  %17051 = vmatprep.subr.mxu0 %v19605_v17  ;;  %v3369_v0 = vadd.f32 %v16375_v30, %v3159_v45  ;;  %v19756_v45 = vunpack.c.l.bf16 %v14589_v43  ;;  %v4889_v43 = vld [vmem:[#allocation2 + $0x121] sm:$0xff] }
 0x277   : > { %16824 = vmatprep.mubr.f32.mxu1 %v4887_v48  ;;  %16903 = vmatprep.subr.mxu1 %v19721_v11  ;;  %v3289_v39 = vpop.f32.mrf.mxu1  ;;  %v3161_v38 = vadd.f32 %v19394_v41, %v2951_v57  ;;  %v3160_v57 = vadd.f32 %v19402_v50, %v2950_v28  ;;  %v4890_v28 = vld [vmem:[#allocation2 + $0x129] sm:$0xff] }
 0x278   : > { %16990 = vmatmul.mubr.f32.vlgmr.msra.gmra.mxu0 %v17598_v61  ;;  %v19745_v8 = vpop.f32.mrf.mxu0  ;;  %16904 = vmatpush3.msra.mxu1 %v19721_v11  ;;  %v3391_v3 = vadd.f32 %v19739_v55, %v3369_v0  ;;  %v3368_v21 = vadd.f32 %v3289_v39, %v3158_v44  ;;  %v19768_v0 = vunpack.c.h.bf16 %v14588_v37  ;;  %v17599_v61 = vld [vmem:[#allocation2 + $0x330] sm:$0xff] }
 0x279   : > { %17052 = vmatpush3.msra.mxu0 %v19515_v36  ;;  %16905 = vmatprep.subr.mxu1 %v19732_v7  ;;  %v2701_v36 = vadd.f32 %v19226_v52, %v19382_v16 }
 0x27a   : > { %17053 = vmatprep.subr.mxu0 %v19605_v17  ;;  %v19758_v48 = vpop.f32.mrf.mxu0  ;;  %16825 = vmatmul.mubr.f32.gmra.mxu1 %v4888_v63  ;;  %v3407_v30 = vmax.f32 %v3391_v3, 0.0  ;;  %v3390_v40 = vadd.f32 %v19739_v55, %v3368_v21  ;;  %v19787_v21 = vunpack.c.l.bf16 %v14588_v37  ;;  %v2711_v63 = vadd.f32 %v19253_v34, %v19415_v29  ;;  %v4891_v37 = vld [vmem:[#allocation2 + $0x131] sm:$0xff] }
 0x27b   : > { %17054 = vmatpush3.msra.mxu0 %v19525_v10  ;;  %16906 = vmatpush3.msra.mxu1 %v19732_v7  ;;  %v2696_v10 = vadd.f32 %v19239_v1, %v19397_v22  ;;  %v16378_v44 = vpop.f32.mrf.mxu1  ;;  %v2953_v52 = vadd.f32 %v19580_v13, %v2701_v36  ;;  %v14587_v1 = vld [vmem:[%s22433_s5 + $0x120] sm:$0xff]  }
 0x27c   : > { %16992 = vmatprep.mubr.msk.f32.mxu0 %vm17673_vm0, %v19605_v17  ;;  %17055 = vmatprep.subr.mxu0 %v19605_v17  ;;  %3423 = vst [vmem:[#allocation3 + $0x8] sm:$0xff] %v3407_v30  ;;  %v3406_v16 = vmax.f32 %v3390_v40, 0.0  ;;  %v3371_v41 = vadd.f32 %v16378_v44, %v3161_v38  ;;  %v19799_v40 = vunpack.c.h.bf16 %v14587_v1  ;;  %v2955_v34 = vadd.f32 %v19603_v54, %v2711_v63 }
 0x27d   : > { %16827 = vmatprep.mubr.f32.mxu1 %v4889_v43  ;;  %16907 = vmatprep.subr.mxu1 %v19756_v45  ;;  %v3299_v3 = vpop.f32.mrf.mxu1  ;;  %v2952_v22 = vadd.f32 %v19586_v14, %v2696_v10  ;;  %v3163_v30 = vadd.f32 %v19407_v9, %v2953_v52  ;;  %v17600_v10 = vld [vmem:[#allocation2 + $0x338] sm:$0xff] }
 0x27e   : > { %16993 = vmatmul.mubr.f32.gmra.mxu0 %v17599_v61  ;;  %v19776_v39 = vpop.f32.mrf.mxu0  ;;  %16908 = vmatpush3.msra.mxu1 %v19756_v45  ;;  %3422 = vst [vmem:[#allocation3] sm:$0xff] %v3406_v16  ;;  %v3393_v50 = vadd.f32 %v19739_v55, %v3371_v41  ;;  %v3370_v13 = vadd.f32 %v3299_v3, %v3160_v57  ;;  %v4892_v16 = vld [vmem:[#allocation2 + $0x139] sm:$0xff]  ;;  %v19818_v41 = vunpack.c.l.bf16 %v14587_v1  ;;  %v4893_v1 = vld [vmem:[#allocation2 + $0x141] sm:$0xff] }
 0x27f   : > { %17056 = vmatpush3.msra.mxu0 %v19538_v12  ;;  %16909 = vmatprep.subr.mxu1 %v19768_v0  ;;  %v3162_v43 = vadd.f32 %v19419_v42, %v2952_v22  ;;  %v2721_v57 = vadd.f32 %v19275_v47, %v19442_v20  ;;  %v3165_v3 = vadd.f32 %v19428_v5, %v2955_v34 }
 0x280   : > { %17057 = vmatprep.subr.mxu0 %v19605_v17  ;;  %v19789_v12 = vpop.f32.mrf.mxu0  ;;  %16828 = vmatmul.mubr.f32.gmra.mxu1 %v4890_v28  ;;  %v3409_v14 = vmax.f32 %v3393_v50, 0.0  ;;  %v3392_v36 = vadd.f32 %v19739_v55, %v3370_v13  ;;  %v17601_v28 = vld [vmem:[#allocation2 + $0x340] sm:$0xff] }
 0x281   : > { %17058 = vmatpush3.msra.mxu0 %v19548_v27  ;;  %16910 = vmatpush3.msra.mxu1 %v19768_v0  ;;  %v2706_v27 = vadd.f32 %v19262_v26, %v19425_v53  ;;  %v16381_v38 = vpop.f32.mrf.mxu1  ;;  %v14586_v26 = vld [vmem:[%s22433_s5 + $0x118] sm:$0xff]   ;;  %v2957_v47 = vadd.f32 %v19628_v49, %v2721_v57  ;;  %v5601_v57 = vld [vmem:[#allocation2 + $0x348] sm:$0xf] }
 0x282   : > { %16995 = vmatprep.mubr.msk.f32.mxu0 %vm17673_vm0, %v19605_v17  ;;  %17059 = vmatprep.subr.mxu0 %v19605_v17  ;;  %3425 = vst [vmem:[#allocation3 + $0x18] sm:$0xff] %v3409_v14  ;;  %v3408_v29 = vmax.f32 %v3392_v36, 0.0  ;;  %v3373_v9 = vadd.f32 %v16381_v38, %v3163_v30  ;;  %v19830_v22 = vunpack.c.h.bf16 %v14586_v26  ;;  %v4894_v36 = vld [vmem:[#allocation2 + $0x149] sm:$0xff]  ;;  %v19849_v30 = vunpack.c.l.bf16 %v14586_v26 }
 0x283   : > { %16830 = vmatprep.mubr.f32.mxu1 %v4891_v37  ;;  %16911 = vmatprep.subr.mxu1 %v19787_v21  ;;  %v3309_v52 = vpop.f32.mrf.mxu1  ;;  %v2954_v53 = vadd.f32 %v19611_v58, %v2706_v27 }
 0x284   : > { %16996 = vmatmul.mubr.f32.gmra.mxu0 %v17600_v10  ;;  %v19807_v44 = vpop.f32.mrf.mxu0  ;;  %16912 = vmatpush3.msra.mxu1 %v19787_v21  ;;  %3424 = vst [vmem:[#allocation3 + $0x10] sm:$0xff] %v3408_v29  ;;  %v3395_v42 = vadd.f32 %v19739_v55, %v3373_v9  ;;  %v3372_v54 = vadd.f32 %v3309_v52, %v3162_v43  ;;  %v22480_v29 = vld [vmem:[#allocation33_spill] sm:$0xff]  ;;  %v22481_v43 = vld [vmem:[#allocation15_spill] sm:$0xff] }
 0x285   : > { %17060 = vmatpush3.msra.mxu0 %v19561_v19  ;;  %16913 = vmatprep.subr.mxu1 %v19799_v40  ;;  %v3164_v13 = vadd.f32 %v19438_v31, %v2954_v53  ;;  %v3167_v10 = vadd.f32 %v22481_v43, %v2957_v47  ;;  %v4895_v52 = vld [vmem:[#allocation2 + $0x151] sm:$0xff] }
 0x286   : > { %17061 = vmatprep.subr.mxu0 %v19605_v17  ;;  %v19820_v19 = vpop.f32.mrf.mxu0  ;;  %16831 = vmatmul.mubr.f32.gmra.mxu1 %v4892_v16  ;;  %v3411_v58 = vmax.f32 %v3395_v42, 0.0  ;;  %v3394_v61 = vadd.f32 %v19739_v55, %v3372_v54  ;;  %v22483_v53 = vld [vmem:[#allocation10_spill] sm:$0xff] }
 0x287   : > { %17062 = vmatpush3.msra.mxu0 %v19571_v25  ;;  %16914 = vmatpush3.msra.mxu1 %v19799_v40  ;;  %v2716_v25 = vadd.f32 %v19289_v35, %v19448_v62  ;;  %v16384_v50 = vpop.f32.mrf.mxu1  ;;  %v14585_v35 = vld [vmem:[%s22433_s5 + $0x110] sm:$0xff]  }
 0x288   : > { %16998 = vmatprep.mubr.msk.f32.mxu0 %vm17673_vm0, %v19605_v17  ;;  %17063 = vmatprep.subr.mxu0 %v19605_v17  ;;  %3427 = vst [vmem:[#allocation3 + $0x28] sm:$0xff] %v3411_v58  ;;  %v3410_v20 = vmax.f32 %v3394_v61, 0.0  ;;  %v3375_v5 = vadd.f32 %v16384_v50, %v3165_v3  ;;  %v19861_v26 = vunpack.c.h.bf16 %v14585_v35  ;;  %v14584_v58 = vld [vmem:[%s22433_s5 + $0x108] sm:$0xff]  }
 0x289   : > { %16833 = vmatprep.mubr.f32.mxu1 %v4893_v1  ;;  %16915 = vmatprep.subr.mxu1 %v19818_v41  ;;  %v3319_v14 = vpop.f32.mrf.mxu1  ;;  %v2956_v62 = vadd.f32 %v19634_v24, %v2716_v25  ;;  %v22484_v25 = vld [vmem:[#allocation16_spill] sm:$0xff] }
 0x28a   : > { %16999 = vmatmul.mubr.f32.gmra.mxu0 %v17601_v28  ;;  %v19838_v63 = vpop.f32.mrf.mxu0  ;;  %16916 = vmatpush3.msra.mxu1 %v19818_v41  ;;  %3426 = vst [vmem:[#allocation3 + $0x20] sm:$0xff] %v3410_v20  ;;  %v3397_v31 = vadd.f32 %v19739_v55, %v3375_v5  ;;  %v3374_v49 = vadd.f32 %v3319_v14, %v3164_v13  ;;  %v22485_v5 = vld [vmem:[#allocation35_spill] sm:$0xff]  ;;  %v19877_v28 = vunpack.c.l.bf16 %v14585_v35  ;;  %v22488_v35 = vld [vmem:[#allocation18_spill] sm:$0xff] }
 0x28b   : > { %17064 = vmatpush3.msra.mxu0 %v19584_v32  ;;  %16917 = vmatprep.subr.mxu1 %v19830_v22  ;;  %v22479_v32 = vld [vmem:[#allocation9_spill] sm:$0xff]  ;;  %v3166_v50 = vadd.f32 %v22484_v25, %v2956_v62  ;;  %v4896_v13 = vld [vmem:[#allocation2 + $0x159] sm:$0xff]  ;;  %v19882_v62 = vunpack.c.h.bf16 %v14584_v58 }
 0x28c   : > { %17065 = vmatprep.subr.mxu0 %v19605_v17  ;;  %v2731_v37 = vadd.f32 %v22479_v32, %v19465_v4  ;;  %v6225_v27 = vld [vmem:[#allocation3] ss:$3 sm:$0xff]  ;;  %v6261_v38 = vld [vmem:[#allocation3 + $0x1] ss:$3 sm:$0xff]  ;;  %v19853_v34 = vpop.f32.mrf.mxu0  ;;  %16834 = vmatmul.mubr.f32.gmra.mxu1 %v4894_v36  ;;  %v3413_v24 = vmax.f32 %v3397_v31, 0.0  ;;  %v3396_v9 = vadd.f32 %v19739_v55, %v3374_v49 }
 0x28d   : > { %17066 = vmatpush3.msra.mxu0 %v22480_v29  ;;  %16918 = vmatpush3.msra.mxu1 %v19830_v22  ;;  %v22482_v4 = vld [vmem:[#allocation17_spill] sm:$0xff]  ;;  %v16387_v16 = vpop.f32.mrf.mxu1  ;;  %v6296_v61 = vmax.f32 %v6225_v27, %v6261_v38  ;;  %v22487_v49 = vld [vmem:[#allocation11_spill] sm:$0xff] }
 0x28e   : > { %17001 = vmatprep.mubr.msk.f32.mxu0 %vm17673_vm0, %v19605_v17  ;;  %v2726_v42 = vadd.f32 %v22483_v53, %v22482_v4  ;;  %v2959_v54 = vadd.f32 %v19651_v56, %v2731_v37  ;;  %17067 = vmatprep.subr.mxu0 %v19605_v17  ;;  %3429 = vst [vmem:[#allocation3 + $0x38] sm:$0xff] %v3413_v24  ;;  %v3412_v3 = vmax.f32 %v3396_v9, 0.0  ;;  %v6315_v32 = vld [vmem:[#allocation3 + $0x2] ss:$3 sm:$0xff]  ;;  %v22489_v24 = vld [vmem:[#allocation37_spill] sm:$0xff] }
 0x28f   : > { %16836 = vmatprep.mubr.f32.mxu1 %v4895_v52  ;;  %v3377_v1 = vadd.f32 %v16387_v16, %v3167_v10  ;;  %16919 = vmatprep.subr.mxu1 %v19849_v30  ;;  %v3329_v20 = vpop.f32.mrf.mxu1  ;;  %v19890_v9 = vmax.f32 %v6296_v61, %v6315_v32  ;;  %v4897_v4 = vld [vmem:[#allocation2 + $0x161] sm:$0xff]  ;;  %v22490_v53 = vld [vmem:[#allocation21_spill] sm:$0xff] }
 0x290   : > { %17002 = vmatmul.mubr.f32.gmra.mxu0 %v5601_v57  ;;  %v2958_v56 = vadd.f32 %v19657_v2, %v2726_v42  ;;  %v19873_v47 = vpop.f32.mrf.mxu0  ;;  %16920 = vmatpush3.msra.mxu1 %v19849_v30  ;;  %3428 = vst [vmem:[#allocation3 + $0x30] sm:$0xff] %v3412_v3  ;;  %v3376_v31 = vadd.f32 %v3329_v20, %v3166_v50  ;;  %v22486_v2 = vld [vmem:[#allocation20_spill] sm:$0xff] }
 0x291   : > { %17068 = vmatpush3.msra.mxu0 %v22485_v5  ;;  %v3399_v14 = vadd.f32 %v19739_v55, %v3377_v1  ;;  %16921 = vmatprep.subr.mxu1 %v19861_v26  ;;  %v2741_v36 = vadd.f32 %v22487_v49, %v22486_v2  ;;  %v6227_v37 = vld [vmem:[#allocation3 + $0x18] ss:$3 sm:$0xff]  ;;  %v6263_v27 = vld [vmem:[#allocation3 + $0x19] ss:$3 sm:$0xff]  ;;  %v3169_v29 = vadd.f32 %v22488_v35, %v2959_v54  ;;  %v6317_v57 = vld [vmem:[#allocation3 + $0x1a] ss:$3 sm:$0xff] }
 0x292   : > { %17069 = vmatprep.subr.mxu0 %v19605_v17  ;;  %v19886_v38 = vpop.f32.mrf.mxu0  ;;  %16837 = vmatmul.mubr.f32.gmra.mxu1 %v4896_v13  ;;  %v6297_v43 = vmax.f32 %v6227_v37, %v6263_v27  ;;  %v3398_v52 = vadd.f32 %v19739_v55, %v3376_v31  ;;  %v22491_v42 = vld [vmem:[#allocation12_spill] sm:$0xff]  ;;  %v22492_v54 = vld [vmem:[#allocation19_spill] sm:$0xff]  ;;  %v6387_v49 = vrot.slane %v19890_v9, 1  ;;  %v22494_v37 = vld [vmem:[#allocation41_spill] sm:$0xff] }
 0x293   : > { %17070 = vmatpush3.msra.mxu0 %v22489_v24  ;;  %v3415_v10 = vmax.f32 %v3399_v14, 0.0  ;;  %16922 = vmatpush3.msra.mxu1 %v19861_v26  ;;  %v2736_v16 = vadd.f32 %v22491_v42, %v22490_v53  ;;  %v16390_v3 = vpop.f32.mrf.mxu1  ;;  %v3168_v1 = vadd.f32 %v22492_v54, %v2958_v56  ;;  %v14583_v61 = vld [vmem:[%s22433_s5 + $0x100] sm:$0xff]   ;;  %v2961_v25 = vadd.f32 %v19674_v18, %v2741_v36  ;;  %v4898_v18 = vld [vmem:[#allocation2 + $0x169] sm:$0xff]  ;;  %v22500_v54 = vld [vmem:[#allocation14_spill] sm:$0xff] }
 0x294   : > { %17071 = vmatprep.subr.mxu0 %v19605_v17  ;;  %16839 = vmatprep.mubr.f32.mxu1 %v4897_v4  ;;  %v19903_v50 = vmax.f32 %v6297_v43, %v6317_v57  ;;  %v3414_v20 = vmax.f32 %v3398_v52, 0.0  ;;  %v3379_v5 = vadd.f32 %v16390_v3, %v3169_v29  ;;  %v22493_v13 = vld [vmem:[#allocation39_spill] sm:$0xff]  ;;  %v19907_v14 = vunpack.c.l.bf16 %v14584_v58  ;;  %v22495_v27 = vld [vmem:[#allocation24_spill] sm:$0xff]  ;;  %v22496_v35 = vld [vmem:[#allocation13_spill] sm:$0xff] }
 0x295   : > { %16923 = vmatprep.subr.mxu1 %v19877_v28  ;;  %3431 = vst [vmem:[#allocation3 + $0x48] sm:$0xff] %v3415_v10  ;;  %17072 = vmatpush3.msra.mxu0 %v22493_v13  ;;  %v2960_v56 = vadd.f32 %v19680_v33, %v2736_v16  ;;  %v3339_v2 = vpop.f32.mrf.mxu1  ;;  %v19918_v33 = vunpack.c.h.bf16 %v14583_v61  ;;  %v2751_v29 = vadd.f32 %v22496_v35, %v22495_v27  ;;  %v4899_v43 = vld [vmem:[#allocation2 + $0x171] sm:$0xff]  ;;  %v19931_v42 = vld [vmem:[%s22498_s7] ss:$0 sm:$0xff]  ;;  %v19937_v57 = vunpack.c.l.bf16 %v14583_v61 }
 0x296   : > { %16924 = vmatpush3.msra.mxu1 %v19877_v28  ;;  %v19910_v31 = vpop.f32.mrf.mxu0  ;;  %17073 = vmatprep.subr.mxu0 %v19605_v17  ;;  %v6388_v36 = vrot.slane %v19903_v50, 1  ;;  %3430 = vst [vmem:[#allocation3 + $0x40] sm:$0xff] %v3414_v20  ;;  %v3401_v32 = vadd.f32 %v19739_v55, %v3379_v5  ;;  %v3378_v58 = vadd.f32 %v3339_v2, %v3168_v1  ;;  %v22497_v4 = vld [vmem:[#allocation22_spill] sm:$0xff]  ;;  %v22501_v5 = vld [vmem:[#allocation43_spill] sm:$0xff]  ;;  %v22504_v27 = vld [vmem:[#allocation45_spill] sm:$0xff] }
 0x297   : > { %16925 = vmatprep.subr.mxu1 %v19882_v62  ;;  %17074 = vmatpush3.msra.mxu0 %v22494_v37  ;;  %v3171_v53 = vadd.f32 %v22497_v4, %v2961_v25  ;;  %v22499_v3 = vld [vmem:[#allocation26_spill] sm:$0xff]  ;;  %v2963_v13 = vadd.f32 %v19699_v59, %v2751_v29  ;;  %v19949_v61 = vld [vmem:[%s22503_s8] ss:$0 sm:$0xff] }
 0x298   : > { %16840 = vmatmul.mubr.f32.gmra.mxu1 %v4898_v18  ;;  %v19922_v24 = vpop.f32.mrf.mxu0  ;;  %17075 = vmatprep.subr.mxu0 %v19605_v17  ;;  %v3417_v10 = vmax.f32 %v3401_v32, 0.0  ;;  %v3400_v52 = vadd.f32 %v19739_v55, %v3378_v58  ;;  %v6389_v16 = vsel %vm6386_vm1, %v6387_v49, %v6388_v36  ;;  %v2746_v1 = vadd.f32 %v22500_v54, %v22499_v3  ;;  %v22502_v49 = vld [vmem:[#allocation23_spill] sm:$0xff] }
 0x299   : > { %16926 = vmatpush3.msra.mxu1 %v19882_v62  ;;  %16842 = vmatprep.mubr.f32.mxu1 %v4899_v43  ;;  %v16393_v20 = vpop.f32.mrf.mxu1  ;;  %v6440_v25 = vmax.f32 %v19890_v9, %v6389_v16  ;;  %v3170_v32 = vadd.f32 %v22502_v49, %v2960_v56  ;;  %v4900_v9 = vld [vmem:[#allocation2 + $0x179] sm:$0xff] }
 0x29a   : > { %16927 = vmatprep.subr.mxu1 %v19907_v14  ;;  %17076 = vmatpush3.msra.mxu0 %v22501_v5  ;;  %3433 = vst [vmem:[#allocation3 + $0x58] sm:$0xff] %v3417_v10  ;;  %v3416_v2 = vmax.f32 %v3400_v52, 0.0  ;;  %v3381_v18 = vadd.f32 %v16393_v20, %v3171_v53  ;;  %v14597_v56 = vld [vmem:[%s22433_s5 + $0x38] sm:$0xff]   ;;  %v2962_v35 = vadd.f32 %v19711_v6, %v2746_v1  ;;  %v5303_v10 = vld [vmem:[#allocation2 + $0x102] sm:$0xff]  ;;  %v22505_v1 = vld [vmem:[#allocation25_spill] sm:$0xff] }
 0x29b   : > { %16928 = vmatpush3.msra.mxu1 %v19907_v14  ;;  %17077 = vmatprep.subr.mxu0 %v19605_v17  ;;  %v3349_v37 = vpop.f32.mrf.mxu1  ;;  %v6464_v59 = vmul.f32 %v19931_v42, %v6440_v25  ;;  %v3173_v20 = vadd.f32 %v22505_v1, %v2963_v13  ;;  %v13944_v25 = vunpack.c.h.bf16 %v14597_v56  ;;  %v5814_v13 = vld [vmem:[#allocation2 + $0x181] sm:$0xff] }
 0x29c   : > { %16929 = vmatprep.subr.mxu1 %v19918_v33  ;;  %v19953_v58 = vpop.f32.mrf.mxu0  ;;  %17078 = vmatpush3.msra.mxu0 %v22504_v27  ;;  %3432 = vst [vmem:[#allocation3 + $0x50] sm:$0xff] %v3416_v2  ;;  %v3403_v29 = vadd.f32 %v19739_v55, %v3381_v18  ;;  %v3380_v43 = vadd.f32 %v3349_v37, %v3170_v32 }
 0x29d   : > { %16843 = vmatmul.mubr.f32.gmra.mxu1 %v4900_v9  ;;  %17079 = vmatprep.subr.mxu0 %v19605_v17  ;;  %v6229_v52 = vld [vmem:[#allocation3 + $0x30] ss:$3 sm:$0xff]  ;;  %v6265_v4 = vld [vmem:[#allocation3 + $0x31] ss:$3 sm:$0xff]  ;;  %v6488_v16 = vadd.f32 %v19949_v61, %v6464_v59  ;;  %v6319_v5 = vld [vmem:[#allocation3 + $0x32] ss:$3 sm:$0xff]  ;;  %v13943_v59 = vunpack.c.l.bf16 %v14597_v56 }
 0x29e   : > { %16930 = vmatpush3.msra.mxu1 %v19918_v33  ;;  %v19964_v53 = vpop.f32.mrf.mxu0  ;;  %16933 = vmatprep.mubr.f32.mxu1 %v5303_v10  ;;  %v6298_v3 = vmax.f32 %v6229_v52, %v6265_v4  ;;  %v3419_v6 = vmax.f32 %v3403_v29, 0.0  ;;  %v3402_v54 = vadd.f32 %v19739_v55, %v3380_v43  ;;  %v22506_v9 = vld [vmem:[#allocation27_spill] sm:$0xff]  ;;  %v14596_v43 = vld [vmem:[%s22433_s5 + $0x30] sm:$0xff]  }
 0x29f   : > { %16931 = vmatprep.subr.mxu1 %v19937_v57  ;;  %17080 = vmatpush3.msra.mxu0 %v19678_v46  ;;  %v16396_v2 = vpop.f32.mrf.mxu1  ;;  %6506 = vst [vmem:[#allocation4] sm:$0xff] %v6488_v16  ;;  %v3172_v37 = vadd.f32 %v22506_v9, %v2962_v35  ;;  %v5304_v46 = vld [vmem:[#allocation2 + $0x10a] sm:$0xff]  ;;  %v5305_v52 = vld [vmem:[#allocation2 + $0x112] sm:$0xff] }
 0x2a0   : > { %16932 = vmatpush3.msra.mxu1 %v19937_v57  ;;  %17081 = vmatprep.subr.mxu0 %v19605_v17  ;;  %v19974_v18 = vmax.f32 %v6298_v3, %v6319_v5  ;;  %3435 = vst [vmem:[#allocation3 + $0x68] sm:$0xff] %v3419_v6  ;;  %v3418_v49 = vmax.f32 %v3402_v54, 0.0  ;;  %v3383_v32 = vadd.f32 %v16396_v2, %v3173_v20  ;;  %v13940_v20 = vunpack.c.h.bf16 %v14596_v43 }
 0x2a1   : > { %17004 = vmatprep.subr.mxu1 %v19605_v17  ;;  %17082 = vmatpush3.msra.mxu0 %v19691_v60  ;;  %v3359_v29 = vpop.f32.mrf.mxu1 }
 0x2a2   : > { %17083 = vmatprep.mubr.msk.f32.mxu0 %vm17673_vm0, %v19605_v17  ;;  %v19980_v27 = vpop.f32.mrf.mxu0  ;;  %16934 = vmatmul.mubr.f32.vlgmr.msra.gmra.mxu1 %v5304_v46  ;;  %v6390_v10 = vrot.slane %v19974_v18, 1  ;;  %3434 = vst [vmem:[#allocation3 + $0x60] sm:$0xff] %v3418_v49  ;;  %v3405_v60 = vadd.f32 %v19739_v55, %v3383_v32  ;;  %v3382_v35 = vadd.f32 %v3359_v29, %v3172_v37  ;;  %v13939_v32 = vunpack.c.l.bf16 %v14596_v43  ;;  %v14595_v46 = vld [vmem:[%s22433_s5 + $0x28] sm:$0xff]  }
 0x2a3   : > { %22507 = vst [vmem:[#allocation9_spill] sm:$0xff] %v19980_v27  ;;  %17084 = vmatmul.mubr.f32.vlgmr.msra.gmra.mxu0 %v5814_v13  ;;  %17005 = vmatpush3.msra.mxu1 %v13944_v25  ;;  %v6231_v56 = vld [vmem:[#allocation3 + $0x48] ss:$3 sm:$0xff]  ;;  %v6267_v4 = vld [vmem:[#allocation3 + $0x49] ss:$3 sm:$0xff] }
 0x2a4   : > { %17145 = vmatprep.subr.mxu0 %v19605_v17  ;;  %v19988_v16 = vpop.f32.mrf.mxu0  ;;  %16936 = vmatprep.mubr.f32.mxu1 %v5305_v52  ;;  %v6299_v3 = vmax.f32 %v6231_v56, %v6267_v4  ;;  %v3421_v6 = vmax.f32 %v3405_v60, 0.0  ;;  %v3404_v54 = vadd.f32 %v19739_v55, %v3382_v35  ;;  %v6391_v1 = vsel %vm6386_vm1, %v6388_v36, %v6390_v10  ;;  %v6321_v25 = vld [vmem:[#allocation3 + $0x4a] ss:$3 sm:$0xff] }
 0x2a5   : > { %22508 = vst [vmem:[#allocation33_spill] sm:$0xff] %v19988_v16  ;;  %17006 = vmatprep.subr.mxu1 %v19605_v17  ;;  %17146 = vmatpush3.msra.mxu0 %v19702_v23  ;;  %v19996_v5 = vpop.f32.mrf.mxu1  ;;  %v6441_v2 = vmax.f32 %v19903_v50, %v6391_v1  ;;  %v5306_v23 = vld [vmem:[#allocation2 + $0x11a] sm:$0xff]  ;;  %v5815_v36 = vld [vmem:[#allocation2 + $0x189] sm:$0xff]  ;;  %v13936_v60 = vunpack.c.h.bf16 %v14595_v46  ;;  %v13935_v4 = vunpack.c.l.bf16 %v14595_v46 }
 0x2a6   : > { %17007 = vmatpush3.msra.mxu1 %v13943_v59  ;;  %17147 = vmatprep.subr.mxu0 %v19605_v17  ;;  %v20001_v49 = vmax.f32 %v6299_v3, %v6321_v25  ;;  %3437 = vst [vmem:[#allocation3 + $0x78] sm:$0xff] %v3421_v6  ;;  %v3420_v55 = vmax.f32 %v3404_v54, 0.0  ;;  %v5308_v56 = vld [vmem:[#allocation2 + $0x12a] sm:$0xff]  ;;  %v5309_v54 = vld [vmem:[#allocation2 + $0x132] sm:$0xff] }
 0x2a7   : > { %17008 = vmatprep.subr.mxu1 %v19605_v17  ;;  %17086 = vmatprep.mubr.msk.f32.mxu0 %vm17673_vm0, %v19605_v17  ;;  %v20008_v37 = vpop.f32.mrf.mxu1  ;;  %v6465_v50 = vmul.f32 %v19931_v42, %v6441_v2  ;;  %v5817_v46 = vld [vmem:[#allocation2 + $0x199] sm:$0xff] }
 0x2a8   : > { %17148 = vmatpush3.msra.mxu0 %v19721_v11  ;;  %v20006_v9 = vpop.f32.mrf.mxu0  ;;  %16937 = vmatmul.mubr.f32.gmra.mxu1 %v5306_v23  ;;  %v6392_v13 = vrot.slane %v20001_v49, 1  ;;  %3436 = vst [vmem:[#allocation3 + $0x70] sm:$0xff] %v3420_v55  ;;  %v5307_v11 = vld [vmem:[#allocation2 + $0x122] sm:$0xff] }
 0x2a9   : > { %17087 = vmatmul.mubr.f32.gmra.mxu0 %v5815_v36  ;;  %17009 = vmatpush3.msra.mxu1 %v13940_v20  ;;  %v6489_v29 = vadd.f32 %v19949_v61, %v6465_v50  ;;  %v5310_v50 = vld [vmem:[#allocation2 + $0x13a] sm:$0xff] }
 0x2aa   : > { %17149 = vmatprep.subr.mxu0 %v19605_v17  ;;  %v20016_v59 = vpop.f32.mrf.mxu0  ;;  %16939 = vmatprep.mubr.f32.mxu1 %v5307_v11  ;;  %v6393_v43 = vsel %vm6386_vm1, %v6390_v10, %v6392_v13  ;;  %v5816_v10 = vld [vmem:[#allocation2 + $0x191] sm:$0xff] }
 0x2ab   : > { %17010 = vmatprep.subr.mxu1 %v19605_v17  ;;  %17150 = vmatpush3.msra.mxu0 %v19732_v7  ;;  %v20024_v35 = vpop.f32.mrf.mxu1  ;;  %v6442_v52 = vmax.f32 %v19974_v18, %v6393_v43  ;;  %6507 = vst [vmem:[#allocation4 + $0x8] sm:$0xff] %v6489_v29  ;;  %v14594_v18 = vld [vmem:[%s22433_s5 + $0x20] sm:$0xff]   ;;  %v14593_v43 = vld [vmem:[%s22433_s5 + $0x18] sm:$0xff]  }
 0x2ac   : > { %17011 = vmatpush3.msra.mxu1 %v13939_v32  ;;  %17151 = vmatprep.subr.mxu0 %v19605_v17  ;;  %v13932_v55 = vunpack.c.h.bf16 %v14594_v18 }
 0x2ad   : > { %17012 = vmatprep.subr.mxu1 %v19605_v17  ;;  %17089 = vmatprep.mubr.msk.f32.mxu0 %vm17673_vm0, %v19605_v17  ;;  %v20034_v3 = vpop.f32.mrf.mxu1  ;;  %v6466_v6 = vmul.f32 %v19931_v42, %v6442_v52  ;;  %v5311_v52 = vld [vmem:[#allocation2 + $0x142] sm:$0xff] }
 0x2ae   : > { %17152 = vmatpush3.msra.mxu0 %v19756_v45  ;;  %v20032_v7 = vpop.f32.mrf.mxu0  ;;  %16940 = vmatmul.mubr.f32.gmra.mxu1 %v5308_v56 }
 0x2af   : > { %17090 = vmatmul.mubr.f32.gmra.mxu0 %v5816_v10  ;;  %17013 = vmatpush3.msra.mxu1 %v13936_v60  ;;  %v6233_v45 = vld [vmem:[#allocation3 + $0x60] ss:$3 sm:$0xff]  ;;  %v6269_v1 = vld [vmem:[#allocation3 + $0x61] ss:$3 sm:$0xff]  ;;  %v6490_v25 = vadd.f32 %v19949_v61, %v6466_v6  ;;  %v6323_v23 = vld [vmem:[#allocation3 + $0x62] ss:$3 sm:$0xff]  ;;  %v13928_v10 = vunpack.c.h.bf16 %v14593_v43 }
 0x2b0   : > { %17153 = vmatprep.subr.mxu0 %v19605_v17  ;;  %v20041_v20 = vpop.f32.mrf.mxu0  ;;  %16942 = vmatprep.mubr.f32.mxu1 %v5309_v54  ;;  %v6300_v2 = vmax.f32 %v6233_v45, %v6269_v1  ;;  %v5818_v54 = vld [vmem:[#allocation2 + $0x1a1] sm:$0xf] }
 0x2b1   : > { %17014 = vmatprep.subr.mxu1 %v19605_v17  ;;  %17154 = vmatpush3.msra.mxu0 %v19768_v0  ;;  %v20046_v36 = vpop.f32.mrf.mxu1  ;;  %6508 = vst [vmem:[#allocation4 + $0x10] sm:$0xff] %v6490_v25  ;;  %v13931_v0 = vunpack.c.l.bf16 %v14594_v18  ;;  %v5312_v18 = vld [vmem:[#allocation2 + $0x14a] sm:$0xff] }
 0x2b2   : > { %17015 = vmatpush3.msra.mxu1 %v13935_v4  ;;  %17155 = vmatprep.subr.mxu0 %v19605_v17  ;;  %v20050_v32 = vmax.f32 %v6300_v2, %v6323_v23  ;;  %v20089_v25 = vld [vmem:[#allocation3 + $0x1a0] sm:$0xff] }
 0x2b3   : > { %17016 = vmatprep.subr.mxu1 %v19605_v17  ;;  %17092 = vmatprep.mubr.msk.f32.mxu0 %vm17673_vm0, %v19605_v17  ;;  %v20057_v29 = vpop.f32.mrf.mxu1 }
 0x2b4   : > { %17156 = vmatpush3.msra.mxu0 %v19787_v21  ;;  %v20055_v11 = vpop.f32.mrf.mxu0  ;;  %16943 = vmatmul.mubr.f32.gmra.mxu1 %v5310_v50  ;;  %v22412_v60 = vrot.slane %v20050_v32, 1  ;;  %v5314_v50 = vld [vmem:[#allocation2 + $0x15a] sm:$0xff] }
 0x2b5   : > { %17093 = vmatmul.mubr.f32.gmra.mxu0 %v5817_v46  ;;  %17017 = vmatpush3.msra.mxu1 %v13932_v55 }
 0x2b6   : > { %17157 = vmatprep.subr.mxu0 %v19605_v17  ;;  %v20064_v21 = vpop.f32.mrf.mxu0  ;;  %16945 = vmatprep.mubr.f32.mxu1 %v5311_v52  ;;  %v6395_v56 = vsel %vm6386_vm1, %v6392_v13, %v22412_v60  ;;  %v13927_v13 = vunpack.c.l.bf16 %v14593_v43  ;;  %v5315_v52 = vld [vmem:[#allocation2 + $0x162] sm:$0xff] }
 0x2b7   : > { %17018 = vmatprep.subr.mxu1 %v19605_v17  ;;  %17158 = vmatpush3.msra.mxu0 %v19799_v40  ;;  %v20073_v4 = vpop.f32.mrf.mxu1  ;;  %v6443_v6 = vmax.f32 %v20001_v49, %v6395_v56  ;;  %v14592_v40 = vld [vmem:[%s22433_s5 + $0x10] sm:$0xff]  }
 0x2b8   : > { %17019 = vmatpush3.msra.mxu1 %v13931_v0  ;;  %17159 = vmatprep.subr.mxu0 %v19605_v17  ;;  %v13924_v55 = vunpack.c.h.bf16 %v14592_v40  ;;  %v13923_v46 = vunpack.c.l.bf16 %v14592_v40  ;;  %v14591_v0 = vld [vmem:[%s22433_s5 + $0x8] sm:$0xff]  }
 0x2b9   : > { %17020 = vmatprep.subr.mxu1 %v19605_v17  ;;  %17095 = vmatprep.mubr.msk.f32.mxu0 %vm17673_vm0, %v19605_v17  ;;  %v20086_v1 = vpop.f32.mrf.mxu1  ;;  %v6467_v49 = vmul.f32 %v19931_v42, %v6443_v6  ;;  %v5313_v17 = vld [vmem:[#allocation2 + $0x152] sm:$0xff]  ;;  %v13920_v56 = vunpack.c.h.bf16 %v14591_v0  ;;  %v13919_v6 = vunpack.c.l.bf16 %v14591_v0 }
 0x2ba   : > { %17160 = vmatpush3.msra.mxu0 %v19818_v41  ;;  %v20084_v45 = vpop.f32.mrf.mxu0  ;;  %16946 = vmatmul.mubr.f32.gmra.mxu1 %v5312_v18  ;;  %v13914_v18 = vld [vmem:[%s22433_s5] sm:$0xff]   ;;  %v14620_v0 = vld [vmem:[%s22433_s5 + $0xf0] sm:$0xff]  }
 0x2bb   : > { %17096 = vmatmul.mubr.f32.gmra.mxu0 %v5818_v54  ;;  %17021 = vmatpush3.msra.mxu1 %v13928_v10  ;;  %v6491_v2 = vadd.f32 %v19949_v61, %v6467_v49  ;;  %v13916_v49 = vunpack.c.h.bf16 %v13914_v18 }
 0x2bc   : > { %17161 = vmatprep.subr.mxu0 %v20089_v25  ;;  %v20092_v41 = vpop.f32.mrf.mxu0  ;;  %16948 = vmatprep.mubr.f32.mxu1 %v5313_v17 }
 0x2bd   : > { %17022 = vmatprep.subr.mxu1 %v20089_v25  ;;  %17162 = vmatpush3.msra.mxu0 %v19830_v22  ;;  %v20097_v23 = vpop.f32.mrf.mxu1  ;;  %6509 = vst [vmem:[#allocation4 + $0x18] sm:$0xff] %v6491_v2  ;;  %v13915_v2 = vunpack.c.l.bf16 %v13914_v18  ;;  %v14036_v18 = vunpack.c.h.bf16 %v14620_v0 }
 0x2be   : > { %17023 = vmatpush3.msra.mxu1 %v13927_v13  ;;  %17163 = vmatprep.subr.mxu0 %v20089_v25 }
 0x2bf   : > { %17024 = vmatprep.subr.mxu1 %v20089_v25  ;;  %17164 = vmatpush3.msra.mxu0 %v19849_v30  ;;  %v20107_v22 = vpop.f32.mrf.mxu1  ;;  %v5316_v30 = vld [vmem:[#allocation2 + $0x16a] sm:$0xff] }
 0x2c0   : > { %16949 = vmatmul.mubr.f32.gmra.mxu1 %v5314_v50  ;;  %v20105_v43 = vpop.f32.mrf.mxu0  ;;  %17165 = vmatprep.subr.mxu0 %v20089_v25 }
 0x2c1   : > { %17025 = vmatpush3.msra.mxu1 %v13924_v55  ;;  %16951 = vmatprep.mubr.f32.mxu1 %v5315_v52  ;;  %v14621_v55 = vld [vmem:[%s22433_s5 + $0xf8] sm:$0xff]  }
 0x2c2   : > { %17026 = vmatprep.subr.mxu1 %v20089_v25  ;;  %v20111_v10 = vpop.f32.mrf.mxu0  ;;  %17166 = vmatpush3.msra.mxu0 %v19861_v26  ;;  %v5317_v26 = vld [vmem:[#allocation2 + $0x172] sm:$0xff] }
 0x2c3   : > { %17027 = vmatpush3.msra.mxu1 %v13923_v46  ;;  %17167 = vmatprep.subr.mxu0 %v20089_v25  ;;  %v20119_v54 = vpop.f32.mrf.mxu1 }
 0x2c4   : > { %17028 = vmatprep.subr.mxu1 %v20089_v25  ;;  %17168 = vmatpush3.msra.mxu0 %v19877_v28  ;;  %v5318_v28 = vld [vmem:[#allocation2 + $0x17a] sm:$0xff] }
 0x2c5   : > { %16952 = vmatmul.mubr.f32.gmra.mxu1 %v5316_v30  ;;  %17169 = vmatprep.subr.mxu0 %v20089_v25  ;;  %v20125_v40 = vpop.f32.mrf.mxu1  ;;  %v14039_v30 = vunpack.c.l.bf16 %v14621_v55 }
 0x2c6   : > { %17029 = vmatpush3.msra.mxu1 %v13920_v56  ;;  %v20123_v13 = vpop.f32.mrf.mxu0  ;;  %16954 = vmatprep.mubr.f32.mxu1 %v5317_v26  ;;  %v6078_v56 = vld [vmem:[#allocation2 + $0x182] sm:$0xff] }
 0x2c7   : > { %17030 = vmatprep.subr.mxu1 %v20089_v25  ;;  %17170 = vmatpush3.msra.mxu0 %v19882_v62  ;;  %v22510_v26 = vld [vmem:[#allocation28_spill] sm:$0xff] }
 0x2c8   : > { %17031 = vmatpush3.msra.mxu1 %v13919_v6  ;;  %v20129_v17 = vpop.f32.mrf.mxu0  ;;  %17171 = vmatprep.subr.mxu0 %v20089_v25 }
 0x2c9   : > { %17032 = vmatprep.subr.mxu1 %v20089_v25  ;;  %17172 = vmatpush3.msra.mxu0 %v19907_v14  ;;  %v20137_v50 = vpop.f32.mrf.mxu1  ;;  %v14040_v14 = vunpack.c.h.bf16 %v14621_v55  ;;  %v5561_v55 = vld [vmem:[#allocation2 + $0x188] sm:$0xff] }
 0x2ca   : > { %16955 = vmatmul.mubr.f32.gmra.mxu1 %v5318_v28  ;;  %17173 = vmatprep.subr.mxu0 %v20089_v25 }
 0x2cb   : > { %17033 = vmatpush3.msra.mxu1 %v13916_v49  ;;  %17174 = vmatpush3.msra.mxu0 %v19918_v33  ;;  %v20144_v46 = vpop.f32.mrf.mxu1  ;;  %v5560_v33 = vld [vmem:[#allocation2 + $0x180] sm:$0xff]  ;;  %v3751_v49 = vadd.f32 %v19996_v5, %v22510_v26  ;;  %v6079_v5 = vld [vmem:[#allocation2 + $0x18a] sm:$0xff] }
 0x2cc   : > { %17034 = vmatprep.subr.mxu1 %v20089_v25  ;;  %v20142_v62 = vpop.f32.mrf.mxu0  ;;  %17175 = vmatprep.subr.mxu0 %v20089_v25 }
 0x2cd   : > { %17035 = vmatpush3.msra.mxu1 %v13915_v2  ;;  %17036 = vmatprep.mubr.msk.f32.mxu1 %vm17673_vm0, %v20089_v25  ;;  %v4018_v16 = vadd.f32 %v19745_v8, %v3751_v49 }
 0x2ce   : > { %17098 = vmatprep.subr.mxu1 %v20089_v25  ;;  %v20153_v52 = vpop.f32.mrf.mxu0  ;;  %17176 = vmatpush3.msra.mxu0 %v19937_v57  ;;  %v14619_v57 = vld [vmem:[%s22433_s5 + $0xe8] sm:$0xff]  }
 0x2cf   : > { %22509 = vst [vmem:[#allocation15_spill] sm:$0xff] %v20153_v52  ;;  %17177 = vmatprep.mubr.msk.f32.mxu0 %vm17673_vm0, %v20089_v25  ;;  %17037 = vmatmul.mubr.f32.vlgmr.msra.gmra.mxu1 %v5560_v33  ;;  %v20158_v6 = vpop.f32.mrf.mxu1  ;;  %v22512_v33 = vld [vmem:[#allocation29_spill] sm:$0xff]  ;;  %v14032_v60 = vunpack.c.h.bf16 %v14619_v57 }
 0x2d0   : > { %17178 = vmatmul.mubr.f32.vlgmr.msra.gmra.mxu0 %v6078_v56  ;;  %17099 = vmatpush3.msra.mxu1 %v14040_v14  ;;  %v14035_v14 = vunpack.c.l.bf16 %v14620_v0  ;;  %v3746_v56 = vadd.f32 %v20008_v37, %v22512_v33  ;;  %v14618_v37 = vld [vmem:[%s22433_s5 + $0xe0] sm:$0xff]  }
 0x2d1   : > { %17039 = vmatprep.mubr.msk.f32.mxu1 %vm17673_vm0, %v20089_v25  ;;  %17100 = vmatprep.subr.mxu1 %v20089_v25  ;;  %v20172_v2 = vpop.f32.mrf.mxu1  ;;  %v14028_v27 = vunpack.c.h.bf16 %v14618_v37 }
 0x2d2   : > { %17180 = vmatprep.mubr.msk.f32.mxu0 %vm17673_vm0, %v20089_v25  ;;  %v20170_v28 = vpop.f32.mrf.mxu0  ;;  %17101 = vmatpush3.msra.mxu1 %v14039_v30  ;;  %v5562_v30 = vld [vmem:[#allocation2 + $0x190] sm:$0xff]  ;;  %v4017_v49 = vadd.f32 %v19758_v48, %v3746_v56  ;;  %v20210_v56 = vld [vmem:[%s22478_s6] ss:$0 sm:$0xff] }
 0x2d3   : > { %22511 = vst [vmem:[#allocation17_spill] sm:$0xff] %v20170_v28  ;;  %17102 = vmatprep.subr.mxu1 %v20089_v25  ;;  %17040 = vmatmul.mubr.f32.gmra.mxu1 %v5561_v55  ;;  %v22514_v55 = vld [vmem:[#allocation30_spill] sm:$0xff] }
 0x2d4   : > { %v20177_v26 = vpop.f32.mrf.mxu0  ;;  %17103 = vmatpush3.msra.mxu1 %v14036_v18  ;;  %17181 = vmatmul.mubr.f32.gmra.mxu0 %v6079_v5  ;;  %v14031_v18 = vunpack.c.l.bf16 %v14619_v57  ;;  %v3761_v33 = vadd.f32 %v20024_v35, %v22514_v55  ;;  %v6080_v5 = vld [vmem:[#allocation2 + $0x192] sm:$0xff] }
 0x2d5   : > { %22513 = vst [vmem:[#allocation10_spill] sm:$0xff] %v20177_v26  ;;  %17104 = vmatprep.subr.mxu1 %v20089_v25  ;;  %17042 = vmatprep.mubr.msk.f32.mxu1 %vm17673_vm0, %v20089_v25  ;;  %v16599_v0 = vpop.f32.mrf.mxu1  ;;  %v22515_v26 = vld [vmem:[#allocation31_spill] sm:$0xff] }
 0x2d6   : > { %17105 = vmatpush3.msra.mxu1 %v14035_v14  ;;  %17183 = vmatprep.mubr.msk.f32.mxu0 %vm17673_vm0, %v20089_v25  ;;  %v4227_v8 = vadd.f32 %v16599_v0, %v4018_v16  ;;  %v3756_v28 = vadd.f32 %v20034_v3, %v22515_v26  ;;  %v14617_v35 = vld [vmem:[%s22433_s5 + $0xd8] sm:$0xff]   ;;  %v4020_v0 = vadd.f32 %v19776_v39, %v3761_v33  ;;  %v14616_v39 = vld [vmem:[%s22433_s5 + $0xd0] sm:$0xff]  }
 0x2d7   : > { %17106 = vmatprep.subr.mxu1 %v20089_v25  ;;  %17043 = vmatmul.mubr.f32.gmra.mxu1 %v5562_v30  ;;  %v4147_v14 = vpop.f32.mrf.mxu1  ;;  %v5563_v3 = vld [vmem:[#allocation2 + $0x198] sm:$0xff]  ;;  %v14023_v33 = vunpack.c.l.bf16 %v14617_v35 }
 0x2d8   : > { %v20194_v52 = vpop.f32.mrf.mxu0  ;;  %17107 = vmatpush3.msra.mxu1 %v14032_v60  ;;  %17184 = vmatmul.mubr.f32.gmra.mxu0 %v6080_v5  ;;  %v4436_v16 = vadd.f32 %v20006_v9, %v4227_v8  ;;  %v4226_v48 = vadd.f32 %v4147_v14, %v4017_v49  ;;  %v14027_v60 = vunpack.c.l.bf16 %v14618_v37  ;;  %v6081_v30 = vld [vmem:[#allocation2 + $0x19a] sm:$0xff]  ;;  %v4019_v8 = vadd.f32 %v19789_v12, %v3756_v28  ;;  %v22516_v37 = vld [vmem:[#allocation32_spill] sm:$0xff] }
 0x2d9   : > { %17108 = vmatprep.subr.mxu1 %v20089_v25  ;;  %17045 = vmatprep.mubr.msk.f32.mxu1 %vm17673_vm0, %v20089_v25  ;;  %v3771_v49 = vadd.f32 %v20046_v36, %v22516_v37  ;;  %v5564_v36 = vld [vmem:[#allocation2 + $0x1a0] sm:$0xf] }
 0x2da   : > { %v20203_v57 = vpop.f32.mrf.mxu0  ;;  %17109 = vmatpush3.msra.mxu1 %v14031_v18  ;;  %17186 = vmatprep.mubr.msk.f32.mxu0 %vm17673_vm0, %v20089_v25  ;;  %v4452_v9 = vadd.f32 %v20210_v56, %v4436_v16  ;;  %v4435_v26 = vadd.f32 %v20016_v59, %v4226_v48  ;;  %v14024_v18 = vunpack.c.h.bf16 %v14617_v35  ;;  %v22517_v59 = vld [vmem:[#allocation34_spill] sm:$0xff]  ;;  %v22518_v37 = vld [vmem:[#allocation36_spill] sm:$0xff] }
 0x2db   : > { %17110 = vmatprep.subr.mxu1 %v20089_v25  ;;  %17046 = vmatmul.mubr.f32.gmra.mxu1 %v5563_v3  ;;  %v16602_v55 = vpop.f32.mrf.mxu1  ;;  %v3766_v12 = vadd.f32 %v20057_v29, %v22517_v59  ;;  %v14020_v29 = vunpack.c.h.bf16 %v14616_v39  ;;  %v4022_v35 = vadd.f32 %v19807_v44, %v3771_v49 }
 0x2dc   : > { %17111 = vmatpush3.msra.mxu1 %v14028_v27  ;;  %17187 = vmatmul.mubr.f32.gmra.mxu0 %v6081_v30  ;;  %v4468_v5 = vmax.f32 %v4452_v9, 0.0  ;;  %v4451_v14 = vadd.f32 %v20210_v56, %v4435_v26  ;;  %v4229_v16 = vadd.f32 %v16602_v55, %v4020_v0  ;;  %v6082_v26 = vld [vmem:[#allocation2 + $0x1a2] sm:$0xf]  ;;  %v14615_v55 = vld [vmem:[%s22433_s5 + $0xc8] sm:$0xff]  }
 0x2dd   : > { %17112 = vmatprep.subr.mxu1 %v20089_v25  ;;  %17048 = vmatprep.mubr.msk.f32.mxu1 %vm17673_vm0, %v20089_v25  ;;  %v4157_v28 = vpop.f32.mrf.mxu1 }
 0x2de   : > { %v20228_v27 = vpop.f32.mrf.mxu0  ;;  %17113 = vmatpush3.msra.mxu1 %v14027_v60  ;;  %17189 = vmatprep.mubr.msk.f32.mxu0 %vm17673_vm0, %v20089_v25  ;;  %4484 = vst [vmem:[#allocation3 + $0x88] sm:$0xff] %v4468_v5  ;;  %v4467_v48 = vmax.f32 %v4451_v14, 0.0  ;;  %v4438_v3 = vadd.f32 %v20032_v7, %v4229_v16  ;;  %v4228_v9 = vadd.f32 %v4157_v28, %v4019_v8  ;;  %v14019_v7 = vunpack.c.l.bf16 %v14616_v39  ;;  %v22519_v14 = vld [vmem:[#allocation38_spill] sm:$0xff] }
 0x2df   : > { %17114 = vmatprep.subr.mxu1 %v20089_v25  ;;  %17049 = vmatmul.mubr.f32.gmra.mxu1 %v5564_v36  ;;  %v4021_v8 = vadd.f32 %v19820_v19, %v3766_v12  ;;  %v3781_v5 = vadd.f32 %v20073_v4, %v22518_v37  ;;  %v3776_v16 = vadd.f32 %v20086_v1, %v22519_v14  ;;  %v14016_v28 = vunpack.c.h.bf16 %v14615_v55  ;;  %v14614_v19 = vld [vmem:[%s22433_s5 + $0xc0] sm:$0xff]   ;;  %s12572_s5 = sshll.u32 %s594_s4, 4  ;;  %s12573_s5 = int_to_ptr.vmem [resolvable:$true] %s12572_s5 }
 0x2e0   : > { %v20234_v0 = vpop.f32.mrf.mxu0  ;;  %17115 = vmatpush3.msra.mxu1 %v14024_v18  ;;  %17190 = vmatmul.mubr.f32.gmra.mxu0 %v6082_v26  ;;  %4483 = vst [vmem:[#allocation3 + $0x80] sm:$0xff] %v4467_v48  ;;  %v4454_v60 = vadd.f32 %v20210_v56, %v4438_v3  ;;  %v4437_v30 = vadd.f32 %v20041_v20, %v4228_v9  ;;  %v14015_v1 = vunpack.c.l.bf16 %v14615_v55  ;;  %v14012_v26 = vunpack.c.h.bf16 %v14614_v19 }
 0x2e1   : > { %17116 = vmatprep.subr.mxu1 %v20089_v25  ;;  %17130 = vmatprep.mubr.msk.f32.mxu1 %vm17673_vm0, %v20089_v25  ;;  %v16605_v18 = vpop.f32.mrf.mxu1  ;;  %v4024_v9 = vadd.f32 %v19838_v63, %v3781_v5  ;;  %v14011_v63 = vunpack.c.l.bf16 %v14614_v19 }
 0x2e2   : > { %17117 = vmatpush3.msra.mxu1 %v14023_v33  ;;  %v4470_v20 = vmax.f32 %v4454_v60, 0.0  ;;  %v4453_v44 = vadd.f32 %v20210_v56, %v4437_v30  ;;  %v4231_v49 = vadd.f32 %v16605_v18, %v4022_v35  ;;  %v4023_v18 = vadd.f32 %v19853_v34, %v3776_v16 }
 0x2e3   : > { %17118 = vmatprep.subr.mxu1 %v20089_v25  ;;  %v4167_v59 = vpop.f32.mrf.mxu1 }
 0x2e4   : > { %v20252_v39 = vpop.f32.mrf.mxu0  ;;  %17119 = vmatpush3.msra.mxu1 %v14020_v29  ;;  %4486 = vst [vmem:[#allocation3 + $0x98] sm:$0xff] %v4470_v20  ;;  %v4469_v4 = vmax.f32 %v4453_v44, 0.0  ;;  %v4440_v12 = vadd.f32 %v20055_v11, %v4231_v49  ;;  %v4230_v36 = vadd.f32 %v4167_v59, %v4021_v8  ;;  %v22520_v29 = vld [vmem:[#allocation40_spill] sm:$0xff] }
 0x2e5   : > { %17120 = vmatprep.subr.mxu1 %v20089_v25  ;;  %v3791_v11 = vadd.f32 %v20097_v23, %v22520_v29  ;;  %v22524_v29 = vld [vmem:[#allocation46_spill] sm:$0xff] }
 0x2e6   : > { %v20259_v33 = vpop.f32.mrf.mxu0  ;;  %17121 = vmatpush3.msra.mxu1 %v14019_v7  ;;  %4485 = vst [vmem:[#allocation3 + $0x90] sm:$0xff] %v4469_v4  ;;  %v4456_v48 = vadd.f32 %v20210_v56, %v4440_v12  ;;  %v4439_v3 = vadd.f32 %v20064_v21, %v4230_v36  ;;  %v22521_v21 = vld [vmem:[#allocation42_spill] sm:$0xff]  ;;  %v22522_v12 = vld [vmem:[#allocation44_spill] sm:$0xff] }
 0x2e7   : > { %17122 = vmatprep.subr.mxu1 %v20089_v25  ;;  %v6235_v60 = vld [vmem:[#allocation3 + $0x78] ss:$3 sm:$0xff]  ;;  %v6271_v30 = vld [vmem:[#allocation3 + $0x79] ss:$3 sm:$0xff]  ;;  %v16608_v35 = vpop.f32.mrf.mxu1  ;;  %v3786_v5 = vadd.f32 %v20107_v22, %v22521_v21  ;;  %v6325_v20 = vld [vmem:[#allocation3 + $0x7a] ss:$3 sm:$0xff]  ;;  %v4026_v4 = vadd.f32 %v19873_v47, %v3791_v11  ;;  %v3796_v11 = vadd.f32 %v20125_v40, %v22524_v29 }
 0x2e8   : > { %17123 = vmatpush3.msra.mxu1 %v14016_v28  ;;  %v6301_v7 = vmax.f32 %v6235_v60, %v6271_v30  ;;  %v4472_v55 = vmax.f32 %v4456_v48, 0.0  ;;  %v4455_v8 = vadd.f32 %v20210_v56, %v4439_v3  ;;  %v4233_v37 = vadd.f32 %v16608_v35, %v4024_v9  ;;  %v5946_v48 = vld [vmem:[#allocation2 + $0x329] sm:$0xff] }
 0x2e9   : > { %17124 = vmatprep.subr.mxu1 %v20089_v25  ;;  %v4177_v23 = vpop.f32.mrf.mxu1  ;;  %v20338_v29 = vld [vmem:[%s22526_s9 + $0x30] sm:$0xff]  }
 0x2ea   : > { %v20272_v44 = vpop.f32.mrf.mxu0  ;;  %17125 = vmatpush3.msra.mxu1 %v14015_v1  ;;  %v20274_v49 = vmax.f32 %v6301_v7, %v6325_v20  ;;  %4488 = vst [vmem:[#allocation3 + $0xa8] sm:$0xff] %v4472_v55  ;;  %v4471_v34 = vmax.f32 %v4455_v8, 0.0  ;;  %v4442_v14 = vadd.f32 %v20084_v45, %v4233_v37  ;;  %v4232_v16 = vadd.f32 %v4177_v23, %v4023_v18  ;;  %v5947_v8 = vld [vmem:[#allocation2 + $0x331] sm:$0xff] }
 0x2eb   : > { %17126 = vmatprep.subr.mxu1 %v20089_v25  ;;  %v3801_v45 = vadd.f32 %v20119_v54, %v22522_v12  ;;  %v4025_v1 = vadd.f32 %v19886_v38, %v3786_v5  ;;  %v4027_v23 = vadd.f32 %v19922_v24, %v3796_v11 }
 0x2ec   : > { %v20278_v59 = vpop.f32.mrf.mxu0  ;;  %17127 = vmatpush3.msra.mxu1 %v14012_v26  ;;  %v6396_v28 = vrot.slane %v20274_v49, 1  ;;  %4487 = vst [vmem:[#allocation3 + $0xa0] sm:$0xff] %v4471_v34  ;;  %v4458_v22 = vadd.f32 %v20210_v56, %v4442_v14  ;;  %v4441_v19 = vadd.f32 %v20092_v41, %v4232_v16  ;;  %v22523_v41 = vrot.slane %v20050_v32, 1 }
 0x2ed   : > { %17128 = vmatprep.subr.mxu1 %v20089_v25  ;;  %v16611_v36 = vpop.f32.mrf.mxu1 }
 0x2ee   : > { %17129 = vmatpush3.msra.mxu1 %v14011_v63  ;;  %v4474_v3 = vmax.f32 %v4458_v22, 0.0  ;;  %v4457_v9 = vadd.f32 %v20210_v56, %v4441_v19  ;;  %v4235_v26 = vadd.f32 %v16611_v36, %v4026_v4  ;;  %v6397_v47 = vsel %vm6386_vm1, %v22523_v41, %v6396_v28  ;;  %v22525_v63 = vld [vmem:[#allocation47_spill] sm:$0xff]  ;;  %v22527_v22 = vld [vmem:[#allocation48_spill] sm:$0xff] }
 0x2ef   : > { %17131 = vmatmul.mubr.f32.vlgmr.msra.gmra.mxu1 %v5946_v48  ;;  %v4187_v60 = vpop.f32.mrf.mxu1  ;;  %v6444_v38 = vmax.f32 %v20050_v32, %v6397_v47  ;;  %v4028_v32 = vadd.f32 %v19910_v31, %v3801_v45  ;;  %v3811_v21 = vadd.f32 %v20137_v50, %v22525_v63  ;;  %v14644_v31 = vld [vmem:[%s22526_s9 + $0x78] sm:$0xff]   ;;  %v3806_v24 = vadd.f32 %v20144_v46, %v22527_v22  ;;  %v20333_v47 = vld [vmem:[%s22526_s9 + $0x70] sm:$0xff]  }
 0x2f0   : > { %v20296_v54 = vpop.f32.mrf.mxu0  ;;  %17133 = vmatprep.mubr.msk.f32.mxu1 %vm17673_vm0, %v20089_v25  ;;  %4490 = vst [vmem:[#allocation3 + $0xb8] sm:$0xff] %v4474_v3  ;;  %v4473_v30 = vmax.f32 %v4457_v9, 0.0  ;;  %v4444_v35 = vadd.f32 %v20105_v43, %v4235_v26  ;;  %v4234_v18 = vadd.f32 %v4187_v60, %v4025_v1  ;;  %v14636_v50 = vld [vmem:[%s22526_s9 + $0x38] sm:$0xff]   ;;  %v14136_v12 = vunpack.c.h.bf16 %v14644_v31 }
 0x2f1   : > { %v6468_v55 = vmul.f32 %v19931_v42, %v6444_v38  ;;  %v14104_v45 = vunpack.c.h.bf16 %v14636_v50  ;;  %v5948_v36 = vld [vmem:[#allocation2 + $0x339] sm:$0xff]  ;;  %v14135_v46 = vunpack.c.l.bf16 %v14644_v31  ;;  %v14103_v41 = vunpack.c.l.bf16 %v14636_v50 }
 0x2f2   : > { %v20302_v7 = vpop.f32.mrf.mxu0  ;;  %4489 = vst [vmem:[#allocation3 + $0xb0] sm:$0xff] %v4473_v30  ;;  %v4460_v40 = vadd.f32 %v20210_v56, %v4444_v35  ;;  %v4443_v37 = vadd.f32 %v20111_v10, %v4234_v18  ;;  %17192 = vmatprep.subr.mxu1 %v14136_v12  ;;  %v4030_v38 = vadd.f32 %v19953_v58, %v3811_v21 }
 0x2f3   : > { %17134 = vmatmul.mubr.f32.gmra.mxu1 %v5947_v8  ;;  %v6237_v5 = vld [vmem:[#allocation3 + $0x90] ss:$3 sm:$0xff]  ;;  %v6273_v20 = vld [vmem:[#allocation3 + $0x91] ss:$3 sm:$0xff]  ;;  %v16614_v43 = vpop.f32.mrf.mxu1  ;;  %v6492_v34 = vadd.f32 %v19949_v61, %v6468_v55  ;;  %v6327_v61 = vld [vmem:[#allocation3 + $0x92] ss:$3 sm:$0xff]  ;;  %17230 = vmatprep.subr.mxu0 %v14104_v45  ;;  %v3821_v30 = vadd.f32 %v20158_v6, %v19709_v51  ;;  %v4029_v8 = vadd.f32 %v19964_v53, %v3806_v24 }
 0x2f4   : > { %17136 = vmatprep.mubr.msk.f32.mxu1 %vm17673_vm0, %v20089_v25  ;;  %v6302_v42 = vmax.f32 %v6237_v5, %v6273_v20  ;;  %v4476_v14 = vmax.f32 %v4460_v40, 0.0  ;;  %v4459_v10 = vadd.f32 %v20210_v56, %v4443_v37  ;;  %v4237_v16 = vadd.f32 %v16614_v43, %v4028_v32  ;;  %17193 = vmatpush3.msra.mxu1 %v14136_v12  ;;  %v5949_v32 = vld [vmem:[#allocation2 + $0x341] sm:$0xff] }
 0x2f5   : > { %v4197_v4 = vpop.f32.mrf.mxu1  ;;  %6510 = vst [vmem:[#allocation4 + $0x20] sm:$0xff] %v6492_v34  ;;  %17231 = vmatpush3.msra.mxu0 %v14104_v45  ;;  %v14132_v40 = vunpack.c.h.bf16 %v20333_v47  ;;  %v14100_v37 = vunpack.c.h.bf16 %v20338_v29  ;;  %17194 = vmatprep.subr.mxu1 %v14135_v46  ;;  %v3816_v51 = vadd.f32 %v20172_v2, %v19723_v15  ;;  %v14131_v20 = vunpack.c.l.bf16 %v20333_v47  ;;  %v20360_v43 = vld [vmem:[%s22526_s9 + $0x68] sm:$0xff]  }
 0x2f6   : > { %v20323_v19 = vpop.f32.mrf.mxu0  ;;  %v20325_v1 = vmax.f32 %v6302_v42, %v6327_v61  ;;  %4492 = vst [vmem:[#allocation3 + $0xc8] sm:$0xff] %v4476_v14  ;;  %v4475_v48 = vmax.f32 %v4459_v10, 0.0  ;;  %v4446_v3 = vadd.f32 %v20123_v13, %v4237_v16  ;;  %v4236_v9 = vadd.f32 %v4197_v4, %v4027_v23  ;;  %17232 = vmatprep.subr.mxu0 %v14103_v41  ;;  %v20375_v10 = vld [vmem:[%s22526_s9 + $0x28] sm:$0xff]   ;;  %v22529_v4 = vld [vmem:[#allocation15_spill] sm:$0xff] }
 0x2f7   : > { %17137 = vmatmul.mubr.f32.gmra.mxu1 %v5948_v36  ;;  %17233 = vmatpush3.msra.mxu0 %v14103_v41  ;;  %v14128_v45 = vunpack.c.h.bf16 %v20360_v43 }
 0x2f8   : > { %v20328_v26 = vpop.f32.mrf.mxu0  ;;  %17139 = vmatprep.mubr.msk.f32.mxu1 %vm17673_vm0, %v20089_v25  ;;  %v6398_v13 = vrot.slane %v20325_v1, 1  ;;  %4491 = vst [vmem:[#allocation3 + $0xc0] sm:$0xff] %v4475_v48  ;;  %v4462_v11 = vadd.f32 %v20210_v56, %v4446_v3  ;;  %v4445_v60 = vadd.f32 %v20129_v17, %v4236_v9  ;;  %17195 = vmatpush3.msra.mxu1 %v14135_v46  ;;  %v22530_v48 = vld [vmem:[#allocation33_spill] sm:$0xff]  ;;  %v14096_v9 = vunpack.c.h.bf16 %v20375_v10  ;;  %v20396_v46 = vld [vmem:[%s22498_s7] ss:$0 sm:$0xff] }
 0x2f9   : > { %v6239_v35 = vld [vmem:[#allocation3 + $0xa8] ss:$3 sm:$0xff]  ;;  %v6275_v18 = vld [vmem:[#allocation3 + $0xa9] ss:$3 sm:$0xff]  ;;  %v16617_v55 = vpop.f32.mrf.mxu1  ;;  %v6329_v6 = vld [vmem:[#allocation3 + $0xaa] ss:$3 sm:$0xff]  ;;  %17196 = vmatprep.subr.mxu1 %v14132_v40  ;;  %17234 = vmatprep.subr.mxu0 %v14100_v37  ;;  %v4031_v3 = vadd.f32 %v22530_v48, %v3816_v51 }
 0x2fa   : > { %v6303_v63 = vmax.f32 %v6239_v35, %v6275_v18  ;;  %v4478_v17 = vmax.f32 %v4462_v11, 0.0  ;;  %v4461_v58 = vadd.f32 %v20210_v56, %v4445_v60  ;;  %v4239_v21 = vadd.f32 %v16617_v55, %v4030_v38  ;;  %17197 = vmatpush3.msra.mxu1 %v14132_v40  ;;  %17235 = vmatpush3.msra.mxu0 %v14100_v37  ;;  %v20404_v38 = vld [vmem:[%s22526_s9 + $0x20] sm:$0xff]   ;;  %v20428_v51 = vld [vmem:[%s22526_s9 + $0x58] sm:$0xff]  }
 0x2fb   : > { %17140 = vmatmul.mubr.f32.gmra.mxu1 %v5949_v32  ;;  %v4207_v5 = vpop.f32.mrf.mxu1  ;;  %v6399_v23 = vsel %vm6386_vm1, %v6396_v28, %v6398_v13  ;;  %v22528_v28 = vld [vmem:[#allocation9_spill] sm:$0xff]  ;;  %17198 = vmatprep.subr.mxu1 %v14131_v20  ;;  %v14127_v60 = vunpack.c.l.bf16 %v20360_v43  ;;  %v14095_v18 = vunpack.c.l.bf16 %v20375_v10 }
 0x2fc   : > { %v20354_v53 = vpop.f32.mrf.mxu0  ;;  %17142 = vmatprep.mubr.msk.f32.mxu1 %vm17673_vm0, %v20089_v25  ;;  %v20369_v15 = vmax.f32 %v6303_v63, %v6329_v6  ;;  %4494 = vst [vmem:[#allocation3 + $0xd8] sm:$0xff] %v4478_v17  ;;  %v4477_v2 = vmax.f32 %v4461_v58, 0.0  ;;  %v4448_v34 = vadd.f32 %v20142_v62, %v4239_v21  ;;  %v4238_v42 = vadd.f32 %v4207_v5, %v4029_v8  ;;  %v6524_v14 = vld [vmem:[#allocation4] ss:$5 sm:$0xff]  ;;  %v6564_v50 = vld [vmem:[#allocation4 + $0x1] ss:$5 sm:$0xff] }
 0x2fd   : > { %v4032_v31 = vadd.f32 %v22528_v28, %v3821_v30  ;;  %17262 = vmatprep.mubr.f32.mxu0 %v6524_v14  ;;  %v14099_v25 = vunpack.c.l.bf16 %v20338_v29  ;;  %v6445_v22 = vmax.f32 %v20274_v49, %v6399_v23  ;;  %v5950_v62 = vld [vmem:[#allocation2 + $0x349] sm:$0xf]  ;;  %v20391_v49 = vld [vmem:[%s22526_s9 + $0x60] sm:$0xff]   ;;  %17199 = vmatpush3.msra.mxu1 %v14131_v20  ;;  %v22532_v20 = vld [vmem:[#allocation10_spill] sm:$0xff] }
 0x2fe   : > { %v20377_v16 = vpop.f32.mrf.mxu0  ;;  %v6400_v24 = vrot.slane %v20369_v15, 1  ;;  %4493 = vst [vmem:[#allocation3 + $0xd0] sm:$0xff] %v4477_v2  ;;  %v4464_v61 = vadd.f32 %v20210_v56, %v4448_v34  ;;  %v4447_v12 = vadd.f32 %v22529_v4, %v4238_v42  ;;  %v20417_v8 = vld [vmem:[%s22503_s8] ss:$0 sm:$0xff]  ;;  %v22531_v32 = vld [vmem:[#allocation17_spill] sm:$0xff]  ;;  %17200 = vmatprep.subr.mxu1 %v14128_v45  ;;  %v14124_v58 = vunpack.c.h.bf16 %v20391_v49  ;;  %v14632_v2 = vld [vmem:[%s22526_s9 + $0x18] sm:$0xff]  }
 0x2ff   : > { %17143 = vmatmul.mubr.f32.gmra.mxu1 %v5950_v62  ;;  %v16620_v36 = vpop.f32.mrf.mxu1  ;;  %v6469_v41 = vmul.f32 %v20396_v46, %v6445_v22  ;;  %17236 = vmatprep.subr.mxu0 %v14099_v25  ;;  %v14123_v23 = vunpack.c.l.bf16 %v20391_v49  ;;  %v14088_v4 = vunpack.c.h.bf16 %v14632_v2 }
 0x300   : > { %v4480_v47 = vmax.f32 %v4464_v61, 0.0  ;;  %v4463_v29 = vadd.f32 %v20210_v56, %v4447_v12  ;;  %v4241_v11 = vadd.f32 %v16620_v36, %v4032_v31  ;;  %17224 = vmatprep.mubr.f32.mxu1 %v6564_v50  ;;  %v6401_v55 = vsel %vm6386_vm1, %v6398_v13, %v6400_v24  ;;  %17237 = vmatpush3.msra.mxu0 %v14099_v25  ;;  %v14639_v12 = vld [vmem:[%s22526_s9 + $0x50] sm:$0xff]  }
 0x301   : > { %v4217_v35 = vpop.f32.mrf.mxu1  ;;  %v6493_v40 = vadd.f32 %v20417_v8, %v6469_v41  ;;  %17238 = vmatprep.subr.mxu0 %v14096_v9  ;;  %17201 = vmatpush3.msra.mxu1 %v14128_v45  ;;  %v14092_v13 = vunpack.c.h.bf16 %v20404_v38  ;;  %v6446_v6 = vmax.f32 %v20325_v1, %v6401_v55  ;;  %v14091_v1 = vunpack.c.l.bf16 %v20404_v38 }
 0x302   : > { %v20406_v30 = vpop.f32.mrf.mxu0  ;;  %4496 = vst [vmem:[#allocation3 + $0xe8] sm:$0xff] %v4480_v47  ;;  %v4479_v37 = vmax.f32 %v4463_v29, 0.0  ;;  %v4450_v63 = vadd.f32 %v22531_v32, %v4241_v11  ;;  %v4240_v17 = vadd.f32 %v4217_v35, %v4031_v3  ;;  %17239 = vmatpush3.msra.mxu0 %v14096_v9  ;;  %17202 = vmatprep.subr.mxu1 %v14127_v60  ;;  %v14120_v25 = vunpack.c.h.bf16 %v20428_v51  ;;  %v14631_v9 = vld [vmem:[%s22526_s9 + $0x10] sm:$0xff]  }
 0x303   : > { %6511 = vst [vmem:[#allocation4 + $0x28] sm:$0xff] %v6493_v40  ;;  %17240 = vmatprep.subr.mxu0 %v14095_v18  ;;  %17203 = vmatpush3.msra.mxu1 %v14127_v60  ;;  %v6470_v10 = vmul.f32 %v20396_v46, %v6446_v6  ;;  %v14119_v3 = vunpack.c.l.bf16 %v20428_v51  ;;  %v14087_v41 = vunpack.c.l.bf16 %v14632_v2  ;;  %v14116_v29 = vunpack.c.h.bf16 %v14639_v12  ;;  %v14638_v40 = vld [vmem:[%s22526_s9 + $0x48] sm:$0xff]  }
 0x304   : > { %v20422_v21 = vpop.f32.mrf.mxu0  ;;  %4495 = vst [vmem:[#allocation3 + $0xe0] sm:$0xff] %v4479_v37  ;;  %v4466_v5 = vadd.f32 %v20210_v56, %v4450_v63  ;;  %v4449_v43 = vadd.f32 %v22532_v20, %v4240_v17  ;;  %17241 = vmatpush3.msra.mxu0 %v14095_v18  ;;  %17204 = vmatprep.subr.mxu1 %v14124_v58  ;;  %v14084_v35 = vunpack.c.h.bf16 %v14631_v9  ;;  %v14115_v55 = vunpack.c.l.bf16 %v14639_v12  ;;  %v14630_v37 = vld [vmem:[%s22526_s9 + $0x8] sm:$0xff]  }
 0x305   : > { %v6241_v34 = vld [vmem:[#allocation3 + $0xc0] ss:$3 sm:$0xff]  ;;  %v6277_v42 = vld [vmem:[#allocation3 + $0xc1] ss:$3 sm:$0xff]  ;;  %v20437_v14 = vpop.f32.mrf.mxu1  ;;  %v6331_v22 = vld [vmem:[#allocation3 + $0xc2] ss:$3 sm:$0xff]  ;;  %17242 = vmatprep.subr.mxu0 %v14092_v13  ;;  %17205 = vmatpush3.msra.mxu1 %v14124_v58  ;;  %v6494_v45 = vadd.f32 %v20417_v8, %v6470_v10 }
 0x306   : > { %v6304_v28 = vmax.f32 %v6241_v34, %v6277_v42  ;;  %v4482_v31 = vmax.f32 %v4466_v5, 0.0  ;;  %v4465_v50 = vadd.f32 %v20210_v56, %v4449_v43  ;;  %17243 = vmatpush3.msra.mxu0 %v14092_v13  ;;  %17206 = vmatprep.subr.mxu1 %v14123_v23  ;;  %v14083_v13 = vunpack.c.l.bf16 %v14631_v9  ;;  %v14637_v43 = vld [vmem:[%s22526_s9 + $0x40] sm:$0xff]  }
 0x307   : > { %v20445_v61 = vpop.f32.mrf.mxu1  ;;  %17244 = vmatprep.subr.mxu0 %v14091_v1  ;;  %17207 = vmatpush3.msra.mxu1 %v14123_v23  ;;  %6512 = vst [vmem:[#allocation4 + $0x30] sm:$0xff] %v6494_v45  ;;  %v14112_v5 = vunpack.c.h.bf16 %v14638_v40  ;;  %v14074_v34 = vld [vmem:[%s22526_s9] sm:$0xff]   ;;  %v14107_v12 = vunpack.c.l.bf16 %v14637_v43 }
 0x308   : > { %v20443_v62 = vpop.f32.mrf.mxu0  ;;  %v20451_v36 = vmax.f32 %v6304_v28, %v6331_v22  ;;  %4498 = vst [vmem:[#allocation3 + $0xf8] sm:$0xff] %v4482_v31  ;;  %v4481_v48 = vmax.f32 %v4465_v50, 0.0  ;;  %17245 = vmatpush3.msra.mxu0 %v14091_v1  ;;  %17208 = vmatprep.subr.mxu1 %v14120_v25  ;;  %v14079_v1 = vunpack.c.l.bf16 %v14630_v37  ;;  %v14108_v28 = vunpack.c.h.bf16 %v14637_v43 }
 0x309   : > { %17246 = vmatprep.subr.mxu0 %v14088_v4  ;;  %17209 = vmatpush3.msra.mxu1 %v14120_v25  ;;  %v14076_v22 = vunpack.c.h.bf16 %v14074_v34 }
 0x30a   : > { %v20457_v49 = vpop.f32.mrf.mxu0  ;;  %v6402_v47 = vrot.slane %v20451_v36, 1  ;;  %4497 = vst [vmem:[#allocation3 + $0xf0] sm:$0xff] %v4481_v48  ;;  %17247 = vmatpush3.msra.mxu0 %v14088_v4  ;;  %17210 = vmatprep.subr.mxu1 %v14119_v3  ;;  %v14075_v48 = vunpack.c.l.bf16 %v14074_v34 }
 0x30b   : > { %v6243_v11 = vld [vmem:[#allocation3 + $0xd8] ss:$3 sm:$0xff]  ;;  %v6279_v60 = vld [vmem:[#allocation3 + $0xd9] ss:$3 sm:$0xff]  ;;  %v20460_v38 = vpop.f32.mrf.mxu1  ;;  %v6333_v63 = vld [vmem:[#allocation3 + $0xda] ss:$3 sm:$0xff]  ;;  %17248 = vmatprep.subr.mxu0 %v14087_v41  ;;  %17211 = vmatpush3.msra.mxu1 %v14119_v3 }
 0x30c   : > { %v6305_v18 = vmax.f32 %v6243_v11, %v6279_v60  ;;  %v6403_v32 = vsel %vm6386_vm1, %v6400_v24, %v6402_v47  ;;  %17249 = vmatpush3.msra.mxu0 %v14087_v41  ;;  %17212 = vmatprep.subr.mxu1 %v14116_v29  ;;  %v14080_v24 = vunpack.c.h.bf16 %v14630_v37 }
 0x30d   : > { %v20473_v58 = vpop.f32.mrf.mxu1  ;;  %v6447_v51 = vmax.f32 %v20369_v15, %v6403_v32  ;;  %17250 = vmatprep.subr.mxu0 %v14084_v35  ;;  %17213 = vmatpush3.msra.mxu1 %v14116_v29  ;;  %v14111_v15 = vunpack.c.l.bf16 %v14638_v40 }
 0x30e   : > { %v20471_v17 = vpop.f32.mrf.mxu0  ;;  %v20476_v6 = vmax.f32 %v6305_v18, %v6333_v63  ;;  %17251 = vmatpush3.msra.mxu0 %v14084_v35  ;;  %17214 = vmatprep.subr.mxu1 %v14115_v55 }
 0x30f   : > { %v6471_v23 = vmul.f32 %v20396_v46, %v6447_v51  ;;  %17252 = vmatprep.subr.mxu0 %v14083_v13  ;;  %17215 = vmatpush3.msra.mxu1 %v14115_v55 }
 0x310   : > { %v20478_v20 = vpop.f32.mrf.mxu0  ;;  %v22414_v2 = vrot.slane %v20476_v6, 1  ;;  %17253 = vmatpush3.msra.mxu0 %v14083_v13  ;;  %17216 = vmatprep.subr.mxu1 %v14112_v5 }
 0x311   : > { %v20488_v42 = vpop.f32.mrf.mxu1  ;;  %v6495_v10 = vadd.f32 %v20417_v8, %v6471_v23  ;;  %17254 = vmatprep.subr.mxu0 %v14080_v24  ;;  %17217 = vmatpush3.msra.mxu1 %v14112_v5 }
 0x312   : > { %v6405_v31 = vsel %vm6386_vm1, %v6402_v47, %v22414_v2  ;;  %17255 = vmatpush3.msra.mxu0 %v14080_v24  ;;  %17218 = vmatprep.subr.mxu1 %v14111_v15 }
 0x313   : > { %v20496_v25 = vpop.f32.mrf.mxu1  ;;  %v6448_v4 = vmax.f32 %v20451_v36, %v6405_v31  ;;  %6513 = vst [vmem:[#allocation4 + $0x38] sm:$0xff] %v6495_v10  ;;  %17256 = vmatprep.subr.mxu0 %v14079_v1  ;;  %17219 = vmatpush3.msra.mxu1 %v14111_v15  ;;  %v4812_v10 = vadd.f32 %v20194_v52, %v20437_v14 }
 0x314   : > { %v20494_v50 = vpop.f32.mrf.mxu0  ;;  %17257 = vmatpush3.msra.mxu0 %v14079_v1  ;;  %17220 = vmatprep.subr.mxu1 %v14108_v28  ;;  %v4832_v52 = vadd.f32 %v20252_v39, %v20488_v42  ;;  %v20549_v39 = vld [vmem:[%s22526_s9 + $0xf8] sm:$0xff]  }
 0x315   : > { %v6472_v3 = vmul.f32 %v20396_v46, %v6448_v4  ;;  %17258 = vmatprep.subr.mxu0 %v14076_v22  ;;  %17221 = vmatpush3.msra.mxu1 %v14108_v28 }
 0x316   : > { %v20499_v45 = vpop.f32.mrf.mxu0  ;;  %17259 = vmatpush3.msra.mxu0 %v14076_v22  ;;  %17222 = vmatprep.subr.mxu1 %v14107_v12 }
 0x317   : > { %v16720_v9 = vpop.f32.mrf.mxu1  ;;  %v6496_v41 = vadd.f32 %v20417_v8, %v6472_v3  ;;  %17260 = vmatprep.subr.mxu0 %v14075_v48  ;;  %17223 = vmatpush3.msra.mxu1 %v14107_v12 }
 0x318   : > { %v4842_v36 = vadd.f32 %v20272_v44, %v16720_v9  ;;  %17261 = vmatpush3.msra.mxu0 %v14075_v48 }
 0x319   : > { %v20504_v29 = vpop.f32.mrf.mxu1  ;;  %6514 = vst [vmem:[#allocation4 + $0x40] sm:$0xff] %v6496_v41 }
 0x31a   : > { %v16888_v47 = vpop.f32.mrf.mxu0 }
 0x31c   : > { %v20506_v11 = vpop.f32.mrf.mxu0 }
 0x31d   : > { %v16723_v60 = vpop.f32.mrf.mxu1 }
 0x31e   : > { %v4852_v35 = vadd.f32 %v20296_v54, %v16723_v60 }
 0x31f   : > { %v20509_v55 = vpop.f32.mrf.mxu1 }
 0x320   : > { %v16891_v18 = vpop.f32.mrf.mxu0 }
 0x322   : > { %v20511_v40 = vpop.f32.mrf.mxu0 }
 0x323   : > { %v16726_v44 = vpop.f32.mrf.mxu1 }
 0x324   : > { %v4862_v37 = vadd.f32 %v20323_v19, %v16726_v44 }
 0x325   : > { %v20514_v63 = vpop.f32.mrf.mxu1 }
 0x326   : > { %v16894_v32 = vpop.f32.mrf.mxu0 }
 0x328   : > { %v20516_v13 = vpop.f32.mrf.mxu0 }
 0x329   : > { %v16729_v51 = vpop.f32.mrf.mxu1 }
 0x32a   : > { %v4872_v5 = vadd.f32 %v20354_v53, %v16729_v51  ;;  %v4822_v53 = vadd.f32 %v20228_v27, %v20460_v38 }
 0x32b   : > { %v4721_v43 = vpop.f32.mrf.mxu1 }
 0x32c   : > { %v16897_v24 = vpop.f32.mrf.mxu0  ;;  %v4867_v2 = vadd.f32 %v20377_v16, %v4721_v43 }
 0x32e   : > { %v5268_v23 = vpop.f32.mrf.mxu0 }
 0x32f   : > { %v16732_v54 = vpop.f32.mrf.mxu1 }
 0x330   : > { %v4882_v15 = vadd.f32 %v20406_v30, %v16732_v54 }
 0x331   : > { %v4731_v1 = vpop.f32.mrf.mxu1 }
 0x332   : > { %v16900_v34 = vpop.f32.mrf.mxu0 }
 0x334   : > { %v5278_v19 = vpop.f32.mrf.mxu0  ;;  %v16823_v28 = vpop.f32.mrf.mxu1 }
 0x335   : > { %v5079_v31 = vadd.f32 %v16823_v28, %v4812_v10 }
 0x336   : > { %v4999_v22 = vpop.f32.mrf.mxu1 }
 0x337   : > { %v5288_v12 = vadd.f32 %v20443_v62, %v5079_v31  ;;  %v22415_v31 = vunpack.c.h.bf16 %v20549_v39 }
 0x338   : > { %v20522_v4 = vpop.f32.mrf.mxu0 }
 0x339   : > { %17306 = vmatprep.subr.mxu0 %v22415_v31 }
 0x33a   : > { %v16991_v48 = vpop.f32.mrf.mxu0  ;;  %v16826_v3 = vpop.f32.mrf.mxu1 }
 0x33b   : > { %v5081_v9 = vadd.f32 %v16826_v3, %v4822_v53 }
 0x33c   : > { %v5009_v30 = vpop.f32.mrf.mxu1 }
 0x33d   : > { %v20530_v60 = vadd.f32 %v20471_v17, %v5081_v9  ;;  %v20544_v17 = vld [vmem:[%s22526_s9 + $0xb8] sm:$0xff]  }
 0x33e   : > { %v20527_v41 = vpop.f32.mrf.mxu0  ;;  %v22413_v28 = vunpack.c.h.bf16 %v20544_v17 }
 0x340   : > { %v16994_v14 = vpop.f32.mrf.mxu0  ;;  %v16829_v44 = vpop.f32.mrf.mxu1  ;;  %17268 = vmatprep.subr.mxu1 %v22413_v28 }
 0x341   : > { %v5083_v51 = vadd.f32 %v16829_v44, %v4832_v52 }
 0x342   : > { %v20534_v54 = vpop.f32.mrf.mxu1 }
 0x343   : > { %v20539_v27 = vadd.f32 %v20494_v50, %v5083_v51 }
 0x344   : > { %v20536_v62 = vpop.f32.mrf.mxu0 }
 0x345   : > { %22533 = vst [vmem:[#allocation16_spill] sm:$0xff] %v20536_v62 }
 0x346   : > { %v16997_v38 = vpop.f32.mrf.mxu0  ;;  %v16832_v10 = vpop.f32.mrf.mxu1 }
 0x347   : > { %v5085_v42 = vadd.f32 %v16832_v10, %v4842_v36 }
 0x348   : > { %v20553_v53 = vpop.f32.mrf.mxu1 }
 0x349   : > { %v20557_v48 = vadd.f32 %v16888_v47, %v5085_v42 }
 0x34a   : > { %v20555_v50 = vpop.f32.mrf.mxu0 }
 0x34b   : > { %22534 = vst [vmem:[#allocation35_spill] sm:$0xff] %v20555_v50 }
 0x34c   : > { %v17000_v3 = vpop.f32.mrf.mxu0  ;;  %v16835_v9 = vpop.f32.mrf.mxu1 }
 0x34d   : > { %v5087_v52 = vadd.f32 %v16835_v9, %v4852_v35 }
 0x34e   : > { %v20563_v36 = vpop.f32.mrf.mxu1 }
 0x34f   : > { %v20567_v44 = vadd.f32 %v16891_v18, %v5087_v52  ;;  %v4807_v18 = vadd.f32 %v20203_v57, %v20445_v61 }
 0x350   : > { %v20565_v14 = vpop.f32.mrf.mxu0 }
 0x352   : > { %v17003_v51 = vpop.f32.mrf.mxu0  ;;  %v16838_v38 = vpop.f32.mrf.mxu1 }
 0x353   : > { %v5089_v10 = vadd.f32 %v16838_v38, %v4862_v37  ;;  %v4877_v37 = vadd.f32 %v20422_v21, %v4731_v1 }
 0x354   : > { %v20569_v47 = vpop.f32.mrf.mxu1 }
 0x355   : > { %v20571_v42 = vadd.f32 %v16894_v32, %v5089_v10  ;;  %v5078_v32 = vadd.f32 %v4999_v22, %v4807_v18 }
 0x358   : > { %v16841_v28 = vpop.f32.mrf.mxu1 }
 0x359   : > { %v5091_v31 = vadd.f32 %v16841_v28, %v4872_v5 }
 0x35a   : > { %v5059_v3 = vpop.f32.mrf.mxu1 }
 0x35b   : > { %v5090_v50 = vadd.f32 %v5059_v3, %v4867_v2  ;;  %v20574_v35 = vadd.f32 %v16897_v24, %v5091_v31  ;;  %v4817_v24 = vadd.f32 %v20234_v0, %v20473_v58  ;;  %v4827_v31 = vadd.f32 %v20259_v33, %v20496_v25 }
 0x35c   : > { %v4837_v33 = vadd.f32 %v20278_v59, %v20504_v29  ;;  %v4847_v29 = vadd.f32 %v20302_v7, %v20509_v55 }
 0x35d   : > { %v16844_v9 = vpop.f32.mrf.mxu1  ;;  %v20576_v62 = vadd.f32 %v5268_v23, %v5090_v50  ;;  %v5287_v23 = vadd.f32 %v20457_v49, %v5078_v32  ;;  %v5080_v21 = vadd.f32 %v5009_v30, %v4817_v24  ;;  %v5082_v50 = vadd.f32 %v20534_v54, %v4827_v31 }
 0x35e   : > { %v5093_v52 = vadd.f32 %v16844_v9, %v4882_v15  ;;  %v5086_v31 = vadd.f32 %v20563_v36, %v4847_v29 }
 0x35f   : > { %v5069_v51 = vpop.f32.mrf.mxu1  ;;  %v5289_v49 = vadd.f32 %v20478_v20, %v5080_v21 }
 0x360   : > { %v5092_v38 = vadd.f32 %v5069_v51, %v4877_v37  ;;  %v20581_v10 = vadd.f32 %v16900_v34, %v5093_v52 }
 0x362   : > { %v20583_v16 = vadd.f32 %v5278_v19, %v5092_v38  ;;  %v16935_v5 = vpop.f32.mrf.mxu1  ;;  %v5084_v38 = vadd.f32 %v20553_v53, %v4837_v33 }
 0x363   : > { %v20585_v2 = vpop.f32.mrf.mxu0  ;;  %v5497_v43 = vadd.f32 %v16935_v5, %v5288_v12 }
 0x364   : > { %v5417_v57 = vpop.f32.mrf.mxu1 }
 0x365   : > { %v17085_v61 = vpop.f32.mrf.mxu0  ;;  %v5513_v15 = vadd.f32 %v20210_v56, %v5497_v43  ;;  %v5496_v1 = vadd.f32 %v5417_v57, %v5287_v23 }
 0x367   : > { %v5529_v22 = vmax.f32 %v5513_v15, 0.0  ;;  %v5512_v34 = vadd.f32 %v20210_v56, %v5496_v1 }
 0x368   : > { %v16938_v19 = vpop.f32.mrf.mxu1 }
 0x369   : > { %v20592_v28 = vpop.f32.mrf.mxu0  ;;  %5545 = vst [vmem:[#allocation3 + $0x108] sm:$0xff] %v5529_v22  ;;  %v5528_v0 = vmax.f32 %v5512_v34, 0.0  ;;  %v5499_v58 = vadd.f32 %v16938_v19, %v20530_v60  ;;  %v5291_v60 = vadd.f32 %v20499_v45, %v5082_v50  ;;  %v5293_v22 = vadd.f32 %v20506_v11, %v5084_v38 }
 0x36a   : > { %v5427_v12 = vpop.f32.mrf.mxu1  ;;  %v4857_v50 = vadd.f32 %v20328_v26, %v20514_v63 }
 0x36b   : > { %v17088_v30 = vpop.f32.mrf.mxu0  ;;  %5544 = vst [vmem:[#allocation3 + $0x100] sm:$0xff] %v5528_v0  ;;  %v5515_v3 = vadd.f32 %v20210_v56, %v5499_v58  ;;  %v5498_v9 = vadd.f32 %v5427_v12, %v5289_v49 }
 0x36d   : > { %v5531_v18 = vmax.f32 %v5515_v3, 0.0  ;;  %v5514_v37 = vadd.f32 %v20210_v56, %v5498_v9 }
 0x36e   : > { %v16941_v52 = vpop.f32.mrf.mxu1 }
 0x36f   : > { %v20601_v51 = vpop.f32.mrf.mxu0  ;;  %5547 = vst [vmem:[#allocation3 + $0x118] sm:$0xff] %v5531_v18  ;;  %v5530_v25 = vmax.f32 %v5514_v37, 0.0  ;;  %v5501_v20 = vadd.f32 %v16941_v52, %v20539_v27 }
 0x370   : > { %v5437_v54 = vpop.f32.mrf.mxu1 }
 0x371   : > { %v17091_v32 = vpop.f32.mrf.mxu0  ;;  %5546 = vst [vmem:[#allocation3 + $0x110] sm:$0xff] %v5530_v25  ;;  %v5517_v5 = vadd.f32 %v20210_v56, %v5501_v20  ;;  %v5500_v24 = vadd.f32 %v5437_v54, %v5291_v60  ;;  %v5295_v20 = vadd.f32 %v20511_v40, %v5086_v31  ;;  %v5088_v60 = vadd.f32 %v20569_v47, %v4857_v50  ;;  %v20655_v31 = vld [vmem:[%s22526_s9 + $0xb0] sm:$0xff]  }
 0x372   : > { %v6245_v43 = vld [vmem:[#allocation3 + $0xf0] ss:$3 sm:$0xff]  ;;  %v6281_v23 = vld [vmem:[#allocation3 + $0xf1] ss:$3 sm:$0xff]  ;;  %v6335_v27 = vld [vmem:[#allocation3 + $0xf2] ss:$3 sm:$0xff]  ;;  %v14164_v50 = vunpack.c.h.bf16 %v20655_v31 }
 0x373   : > { %v6306_v57 = vmax.f32 %v6245_v43, %v6281_v23  ;;  %v5533_v61 = vmax.f32 %v5517_v5, 0.0  ;;  %v5516_v59 = vadd.f32 %v20210_v56, %v5500_v24  ;;  %v20620_v56 = vld [vmem:[%s22478_s6] ss:$0 sm:$0xff]  ;;  %v5297_v23 = vadd.f32 %v20516_v13, %v5088_v60 }
 0x374   : > { %v16944_v21 = vpop.f32.mrf.mxu1  ;;  %v22537_v60 = vunpack.c.h.bf16 %v20549_v39 }
 0x375   : > { %v20612_v45 = vpop.f32.mrf.mxu0  ;;  %v6360_v15 = vmax.f32 %v6306_v57, %v6335_v27  ;;  %5549 = vst [vmem:[#allocation3 + $0x128] sm:$0xff] %v5533_v61  ;;  %v5532_v53 = vmax.f32 %v5516_v59, 0.0  ;;  %v5503_v1 = vadd.f32 %v16944_v21, %v20557_v48  ;;  %v22535_v48 = vrot.slane %v20476_v6, 1 }
 0x376   : > { %v5447_v34 = vpop.f32.mrf.mxu1 }
 0x377   : > { %v17094_v19 = vpop.f32.mrf.mxu0  ;;  %v6406_v0 = vrot.slane %v6360_v15, 1  ;;  %5548 = vst [vmem:[#allocation3 + $0x120] sm:$0xff] %v5532_v53  ;;  %v5519_v7 = vadd.f32 %v20620_v56, %v5503_v1  ;;  %v5502_v55 = vadd.f32 %v5447_v34, %v5293_v22 }
 0x378   : > { %v6247_v58 = vld [vmem:[#allocation3 + $0x108] ss:$3 sm:$0xff]  ;;  %v6283_v49 = vld [vmem:[#allocation3 + $0x109] ss:$3 sm:$0xff]  ;;  %v6337_v9 = vld [vmem:[#allocation3 + $0x10a] ss:$3 sm:$0xff] }
 0x379   : > { %v6407_v11 = vsel %vm6386_vm1, %v22535_v48, %v6406_v0  ;;  %v6307_v12 = vmax.f32 %v6247_v58, %v6283_v49  ;;  %v5535_v30 = vmax.f32 %v5519_v7, 0.0  ;;  %v5518_v36 = vadd.f32 %v20620_v56, %v5502_v55 }
 0x37a   : > { %v6449_v3 = vmax.f32 %v20476_v6, %v6407_v11  ;;  %v16947_v18 = vpop.f32.mrf.mxu1  ;;  %v14167_v49 = vunpack.c.l.bf16 %v20544_v17  ;;  %v14199_v48 = vunpack.c.l.bf16 %v20549_v39 }
 0x37b   : > { %v20630_v37 = vpop.f32.mrf.mxu0  ;;  %v20632_v52 = vmax.f32 %v6307_v12, %v6337_v9  ;;  %5551 = vst [vmem:[#allocation3 + $0x138] sm:$0xff] %v5535_v30  ;;  %v5534_v33 = vmax.f32 %v5518_v36, 0.0  ;;  %v5505_v25 = vadd.f32 %v16947_v18, %v20567_v44  ;;  %v20673_v9 = vld [vmem:[%s22526_s9 + $0xa8] sm:$0xff]  }
 0x37c   : > { %v5457_v54 = vpop.f32.mrf.mxu1  ;;  %v6473_v26 = vmul.f32 %v20396_v46, %v6449_v3 }
 0x37d   : > { %v17097_v32 = vpop.f32.mrf.mxu0  ;;  %v6408_v6 = vrot.slane %v20632_v52, 1  ;;  %5550 = vst [vmem:[#allocation3 + $0x130] sm:$0xff] %v5534_v33  ;;  %v5521_v63 = vadd.f32 %v20620_v56, %v5505_v25  ;;  %v5504_v38 = vadd.f32 %v5457_v54, %v5295_v20  ;;  %v22536_v20 = vunpack.c.h.bf16 %v20544_v17  ;;  %v20684_v54 = vld [vmem:[%s22526_s9 + $0xe8] sm:$0xff]  }
 0x37e   : > { %v6497_v5 = vadd.f32 %v20417_v8, %v6473_v26 }
 0x37f   : > { %v5537_v24 = vmax.f32 %v5521_v63, 0.0  ;;  %v5520_v43 = vadd.f32 %v20620_v56, %v5504_v38  ;;  %v6409_v40 = vsel %vm6386_vm1, %v6406_v0, %v6408_v6  ;;  %v20660_v0 = vld [vmem:[%s22526_s9 + $0xf0] sm:$0xff]   ;;  %v14163_v38 = vunpack.c.l.bf16 %v20655_v31 }
 0x380   : > { %v16950_v44 = vpop.f32.mrf.mxu1  ;;  %6515 = vst [vmem:[#allocation4 + $0x48] sm:$0xff] %v6497_v5  ;;  %v6450_v57 = vmax.f32 %v6360_v15, %v6409_v40  ;;  %v14196_v3 = vunpack.c.h.bf16 %v20660_v0  ;;  %v14195_v5 = vunpack.c.l.bf16 %v20660_v0 }
 0x381   : > { %v5507_v47 = vadd.f32 %v16950_v44, %v20571_v42  ;;  %5553 = vst [vmem:[#allocation3 + $0x148] sm:$0xff] %v5537_v24  ;;  %v5536_v61 = vmax.f32 %v5520_v43, 0.0  ;;  %v14160_v44 = vunpack.c.h.bf16 %v20673_v9 }
 0x382   : > { %v5467_v59 = vpop.f32.mrf.mxu1  ;;  %v6474_v21 = vmul.f32 %v20396_v46, %v6450_v57  ;;  %v14192_v57 = vunpack.c.h.bf16 %v20684_v54 }
 0x383   : > { %v5523_v29 = vadd.f32 %v20620_v56, %v5507_v47  ;;  %v5506_v27 = vadd.f32 %v5467_v59, %v5297_v23  ;;  %5552 = vst [vmem:[#allocation3 + $0x140] sm:$0xff] %v5536_v61  ;;  %v14649_v59 = vld [vmem:[%s22526_s9 + $0xa0] sm:$0xff]  }
 0x384   : > { %v6249_v53 = vld [vmem:[#allocation3 + $0x120] ss:$3 sm:$0xff]  ;;  %v6285_v1 = vld [vmem:[#allocation3 + $0x121] ss:$3 sm:$0xff]  ;;  %v6498_v42 = vadd.f32 %v20417_v8, %v6474_v21  ;;  %v6339_v7 = vld [vmem:[#allocation3 + $0x122] ss:$3 sm:$0xff]  ;;  %v14191_v21 = vunpack.c.l.bf16 %v20684_v54 }
 0x385   : > { %v5522_v22 = vadd.f32 %v20620_v56, %v5506_v27  ;;  %v16953_v34 = vpop.f32.mrf.mxu1  ;;  %v6308_v19 = vmax.f32 %v6249_v53, %v6285_v1  ;;  %v5539_v13 = vmax.f32 %v5523_v29, 0.0 }
 0x386   : > { %v5509_v15 = vadd.f32 %v16953_v34, %v20574_v35  ;;  %6516 = vst [vmem:[#allocation4 + $0x50] sm:$0xff] %v6498_v42 }
 0x387   : > { %v5538_v55 = vmax.f32 %v5522_v22, 0.0  ;;  %v5477_v58 = vpop.f32.mrf.mxu1  ;;  %v20664_v11 = vmax.f32 %v6308_v19, %v6339_v7  ;;  %5555 = vst [vmem:[#allocation3 + $0x158] sm:$0xff] %v5539_v13  ;;  %v6566_v30 = vld [vmem:[#allocation4 + $0x29] ss:$5 sm:$0xff]  ;;  %v6526_v36 = vld [vmem:[#allocation4 + $0x28] ss:$5 sm:$0xff]  ;;  %v14156_v19 = vunpack.c.h.bf16 %v14649_v59 }
 0x388   : > { %v5525_v35 = vadd.f32 %v20620_v56, %v5509_v15  ;;  %v5508_v12 = vadd.f32 %v5477_v58, %v20576_v62  ;;  %17225 = vmatmul.mubr.f32.vlgmr.msra.gmra.mxu1 %v6566_v30  ;;  %17263 = vmatmul.mubr.f32.vlgmr.msra.gmra.mxu0 %v6526_v36  ;;  %v14648_v7 = vld [vmem:[%s22526_s9 + $0x98] sm:$0xff]  }
 0x389   : > { %5554 = vst [vmem:[#allocation3 + $0x150] sm:$0xff] %v5538_v55  ;;  %v6410_v18 = vrot.slane %v20664_v11, 1  ;;  %17269 = vmatpush3.msra.mxu1 %v22536_v20  ;;  %17307 = vmatpush3.msra.mxu0 %v22537_v60  ;;  %v14656_v55 = vld [vmem:[%s22526_s9 + $0xd8] sm:$0xff]   ;;  %v14151_v54 = vunpack.c.l.bf16 %v14648_v7 }
 0x38a   : > { %v5541_v33 = vmax.f32 %v5525_v35, 0.0  ;;  %v5524_v25 = vadd.f32 %v20620_v56, %v5508_v12  ;;  %v16956_v62 = vpop.f32.mrf.mxu1  ;;  %v6251_v32 = vld [vmem:[#allocation3 + $0x138] ss:$3 sm:$0xff]  ;;  %v6287_v26 = vld [vmem:[#allocation3 + $0x139] ss:$3 sm:$0xff]  ;;  %17270 = vmatprep.subr.mxu1 %v14167_v49  ;;  %17308 = vmatprep.subr.mxu0 %v14199_v48 }
 0x38b   : > { %v5511_v63 = vadd.f32 %v16956_v62, %v20581_v10  ;;  %v6309_v17 = vmax.f32 %v6251_v32, %v6287_v26  ;;  %v6411_v43 = vsel %vm6386_vm1, %v6408_v6, %v6410_v18  ;;  %17271 = vmatpush3.msra.mxu1 %v14167_v49  ;;  %17309 = vmatpush3.msra.mxu0 %v14199_v48  ;;  %v6341_v40 = vld [vmem:[#allocation3 + $0x13a] ss:$3 sm:$0xff]  ;;  %v14159_v6 = vunpack.c.l.bf16 %v20673_v9 }
 0x38c   : > { %5557 = vst [vmem:[#allocation3 + $0x168] sm:$0xff] %v5541_v33  ;;  %v5540_v24 = vmax.f32 %v5524_v25, 0.0  ;;  %v5487_v39 = vpop.f32.mrf.mxu1  ;;  %v6451_v23 = vmax.f32 %v20632_v52, %v6411_v43  ;;  %17272 = vmatprep.subr.mxu1 %v14164_v50  ;;  %17310 = vmatprep.subr.mxu0 %v14196_v3  ;;  %v14155_v49 = vunpack.c.l.bf16 %v14649_v59  ;;  %v14184_v9 = vunpack.c.h.bf16 %v14656_v55  ;;  %v14647_v33 = vld [vmem:[%s22526_s9 + $0x90] sm:$0xff]  }
 0x38d   : > { %v5527_v10 = vadd.f32 %v20620_v56, %v5511_v63  ;;  %v5510_v47 = vadd.f32 %v5487_v39, %v20583_v16  ;;  %v20697_v61 = vmax.f32 %v6309_v17, %v6341_v40  ;;  %17273 = vmatpush3.msra.mxu1 %v14164_v50  ;;  %17311 = vmatpush3.msra.mxu0 %v14196_v3  ;;  %v14657_v16 = vld [vmem:[%s22526_s9 + $0xe0] sm:$0xff]   ;;  %v14152_v3 = vunpack.c.h.bf16 %v14648_v7  ;;  %v14655_v25 = vld [vmem:[%s22526_s9 + $0xd0] sm:$0xff]  }
 0x38e   : > { %5556 = vst [vmem:[#allocation3 + $0x160] sm:$0xff] %v5540_v24  ;;  %v6475_v27 = vmul.f32 %v20396_v46, %v6451_v23  ;;  %17274 = vmatprep.subr.mxu1 %v14163_v38  ;;  %17312 = vmatprep.subr.mxu0 %v14195_v5  ;;  %v14188_v13 = vunpack.c.h.bf16 %v14657_v16  ;;  %v14187_v48 = vunpack.c.l.bf16 %v14657_v16  ;;  %v14183_v32 = vunpack.c.l.bf16 %v14656_v55  ;;  %v14646_v24 = vld [vmem:[%s22526_s9 + $0x88] sm:$0xff]  }
 0x38f   : > { %v5543_v52 = vmax.f32 %v5527_v10, 0.0  ;;  %v5526_v29 = vadd.f32 %v20620_v56, %v5510_v47  ;;  %v6412_v53 = vrot.slane %v20697_v61, 1  ;;  %v20710_v1 = vpop.f32.mrf.mxu1  ;;  %17275 = vmatpush3.msra.mxu1 %v14163_v38  ;;  %17313 = vmatpush3.msra.mxu0 %v14195_v5  ;;  %v14148_v5 = vunpack.c.h.bf16 %v14647_v33  ;;  %v14654_v10 = vld [vmem:[%s22526_s9 + $0xc8] sm:$0xff]  }
 0x390   : > { %v20712_v22 = vpop.f32.mrf.mxu0  ;;  %v6499_v42 = vadd.f32 %v20417_v8, %v6475_v27  ;;  %17276 = vmatprep.subr.mxu1 %v14160_v44  ;;  %17314 = vmatprep.subr.mxu0 %v14192_v57  ;;  %v14180_v17 = vunpack.c.h.bf16 %v14655_v25  ;;  %v14175_v7 = vunpack.c.l.bf16 %v14654_v10 }
 0x391   : > { %5559 = vst [vmem:[#allocation3 + $0x178] sm:$0xff] %v5543_v52  ;;  %v5542_v34 = vmax.f32 %v5526_v29, 0.0  ;;  %v17038_v15 = vpop.f32.mrf.mxu1  ;;  %v6413_v0 = vsel %vm6386_vm1, %v6410_v18, %v6412_v53  ;;  %17277 = vmatpush3.msra.mxu1 %v14160_v44  ;;  %17315 = vmatpush3.msra.mxu0 %v14192_v57  ;;  %v14147_v57 = vunpack.c.l.bf16 %v14647_v33  ;;  %v20790_v33 = vld [vmem:[%s22498_s7] ss:$0 sm:$0xff] }
 0x392   : > { %v17179_v31 = vpop.f32.mrf.mxu0  ;;  %v6452_v58 = vmax.f32 %v20664_v11, %v6413_v0  ;;  %6517 = vst [vmem:[#allocation4 + $0x58] sm:$0xff] %v6499_v42  ;;  %17278 = vmatprep.subr.mxu1 %v14159_v6  ;;  %17316 = vmatprep.subr.mxu0 %v14191_v21  ;;  %v14176_v42 = vunpack.c.h.bf16 %v14654_v10  ;;  %v14143_v0 = vunpack.c.l.bf16 %v14646_v24 }
 0x393   : > { %5558 = vst [vmem:[#allocation3 + $0x170] sm:$0xff] %v5542_v34  ;;  %v20725_v35 = vpop.f32.mrf.mxu1  ;;  %17279 = vmatpush3.msra.mxu1 %v14159_v6  ;;  %17317 = vmatpush3.msra.mxu0 %v14191_v21  ;;  %v14179_v6 = vunpack.c.l.bf16 %v14655_v25  ;;  %v14144_v34 = vunpack.c.h.bf16 %v14646_v24 }
 0x394   : > { %v20727_v36 = vpop.f32.mrf.mxu0  ;;  %v6476_v50 = vmul.f32 %v20396_v46, %v6452_v58  ;;  %17280 = vmatprep.subr.mxu1 %v14156_v19  ;;  %17318 = vmatprep.subr.mxu0 %v14188_v13 }
 0x395   : > { %v6253_v12 = vld [vmem:[#allocation3 + $0x150] ss:$3 sm:$0xff]  ;;  %v6289_v30 = vld [vmem:[#allocation3 + $0x151] ss:$3 sm:$0xff]  ;;  %v17041_v18 = vpop.f32.mrf.mxu1  ;;  %17281 = vmatpush3.msra.mxu1 %v14156_v19  ;;  %17319 = vmatpush3.msra.mxu0 %v14188_v13  ;;  %v6343_v62 = vld [vmem:[#allocation3 + $0x152] ss:$3 sm:$0xff] }
 0x396   : > { %v6310_v11 = vmax.f32 %v6253_v12, %v6289_v30  ;;  %v17182_v20 = vpop.f32.mrf.mxu0  ;;  %v6500_v60 = vadd.f32 %v20417_v8, %v6476_v50  ;;  %17282 = vmatprep.subr.mxu1 %v14155_v49  ;;  %17320 = vmatprep.subr.mxu0 %v14187_v48  ;;  %v14645_v13 = vld [vmem:[%s22526_s9 + $0x80] sm:$0xff]  }
 0x397   : > { %v20739_v63 = vpop.f32.mrf.mxu1  ;;  %17283 = vmatpush3.msra.mxu1 %v14155_v49  ;;  %17321 = vmatpush3.msra.mxu0 %v14187_v48  ;;  %v14140_v12 = vunpack.c.h.bf16 %v14645_v13 }
 0x398   : > { %v20737_v26 = vmax.f32 %v6310_v11, %v6343_v62  ;;  %v20741_v38 = vpop.f32.mrf.mxu0  ;;  %6518 = vst [vmem:[#allocation4 + $0x60] sm:$0xff] %v6500_v60  ;;  %17284 = vmatprep.subr.mxu1 %v14152_v3  ;;  %17322 = vmatprep.subr.mxu0 %v14184_v9  ;;  %v14139_v11 = vunpack.c.l.bf16 %v14645_v13  ;;  %v20798_v60 = vld [vmem:[%s22503_s8] ss:$0 sm:$0xff]  ;;  %s17610_s8 = scalar_lea.vmem %s12573_s5, 16 }
 0x399   : > { %v17044_v40 = vpop.f32.mrf.mxu1  ;;  %17285 = vmatpush3.msra.mxu1 %v14152_v3  ;;  %17323 = vmatpush3.msra.mxu0 %v14184_v9  ;;  %v20780_v3 = vld [vmem:[%s22526_s9 + $0x138] sm:$0xff]   ;;  %p17611_p11 = scmp.ne.s32.totalorder %s12573_s5, %s17610_s8 }
 0x39a   : > { %v6414_v39 = vrot.slane %v20737_v26, 1  ;;  %v6255_v43 = vld [vmem:[#allocation3 + $0x168] ss:$3 sm:$0xff]  ;;  %v6291_v44 = vld [vmem:[#allocation3 + $0x169] ss:$3 sm:$0xff]  ;;  %v17185_v23 = vpop.f32.mrf.mxu0  ;;  %17286 = vmatprep.subr.mxu1 %v14151_v54  ;;  %17324 = vmatprep.subr.mxu0 %v14183_v32  ;;  %v14232_v62 = vunpack.c.h.bf16 %v20780_v3 }
 0x39b   : > { %v6311_v47 = vmax.f32 %v6255_v43, %v6291_v44  ;;  %v6345_v59 = vld [vmem:[#allocation3 + $0x16a] ss:$3 sm:$0xff]  ;;  %v20750_v16 = vpop.f32.mrf.mxu1  ;;  %17287 = vmatpush3.msra.mxu1 %v14151_v54  ;;  %17325 = vmatpush3.msra.mxu0 %v14183_v32  ;;  %v5791_v32 = vadd.f32 %v20710_v1, %v20522_v4  ;;  %p17612_p12 = pnand %p17611_p11, %p17814_p5 }
 0x39c   : > { %v6415_v52 = vsel %vm6386_vm1, %v6412_v53, %v6414_v39  ;;  %v20757_v27 = vpop.f32.mrf.mxu0  ;;  %17288 = vmatprep.subr.mxu1 %v14148_v5  ;;  %17326 = vmatprep.subr.mxu0 %v14180_v17  ;;  %v14653_v53 = vld [vmem:[%s22526_s9 + $0xc0] sm:$0xff]   ;;  %v20785_v9 = vld [vmem:[%s22526_s9 + $0x178] sm:$0xff]  }
 0x39d   : > { %v20755_v29 = vmax.f32 %v6311_v47, %v6345_v59  ;;  %v6453_v21 = vmax.f32 %v20697_v61, %v6415_v52  ;;  %v17047_v19 = vpop.f32.mrf.mxu1  ;;  %17289 = vmatpush3.msra.mxu1 %v14148_v5  ;;  %17327 = vmatpush3.msra.mxu0 %v14180_v17  ;;  %v14171_v18 = vunpack.c.l.bf16 %v14653_v53  ;;  %v14264_v20 = vunpack.c.h.bf16 %v20785_v9  ;;  %v22538_v40 = vld [vmem:[#allocation16_spill] sm:$0xff]  ;;  %p17613_p13 = pneg %p17612_p12 }
 0x39e   : > { %v17188_v31 = vpop.f32.mrf.mxu0  ;;  %17290 = vmatprep.subr.mxu1 %v14147_v57  ;;  %17328 = vmatprep.subr.mxu0 %v14179_v6  ;;  %v5941_v5 = vadd.f32 %v20585_v2, %v5791_v32  ;;  %v5801_v10 = vadd.f32 %v20739_v63, %v22538_v40  ;;  %v22539_v2 = vld [vmem:[#allocation35_spill] sm:$0xff] }
 0x39f   : > { %v6416_v15 = vrot.slane %v20755_v29, 1  ;;  %v6477_v61 = vmul.f32 %v20396_v46, %v6453_v21  ;;  %v20768_v55 = vpop.f32.mrf.mxu1  ;;  %17291 = vmatpush3.msra.mxu1 %v14147_v57  ;;  %17329 = vmatpush3.msra.mxu0 %v14179_v6  ;;  %v14172_v46 = vunpack.c.h.bf16 %v14653_v53  ;;  %v5806_v57 = vadd.f32 %v20750_v16, %v22539_v2 }
 0x3a0   : > { %v20770_v58 = vpop.f32.mrf.mxu0  ;;  %17292 = vmatprep.subr.mxu1 %v14144_v34  ;;  %17330 = vmatprep.subr.mxu0 %v14176_v42  ;;  %v5943_v52 = vadd.f32 %v20601_v51, %v5801_v10  ;;  %v14263_v2 = vunpack.c.l.bf16 %v20785_v9 }
 0x3a1   : > { %v6417_v49 = vsel %vm6386_vm1, %v6414_v39, %v6416_v15  ;;  %v6501_v48 = vadd.f32 %v20417_v8, %v6477_v61  ;;  %v17050_v30 = vpop.f32.mrf.mxu1  ;;  %17293 = vmatpush3.msra.mxu1 %v14144_v34  ;;  %17331 = vmatpush3.msra.mxu0 %v14176_v42  ;;  %v5944_v13 = vadd.f32 %v20612_v45, %v5806_v57 }
 0x3a2   : > { %v6454_v50 = vmax.f32 %v20737_v26, %v6417_v49  ;;  %v17191_v8 = vpop.f32.mrf.mxu0  ;;  %17294 = vmatprep.subr.mxu1 %v14143_v0  ;;  %17332 = vmatprep.subr.mxu0 %v14175_v7  ;;  %v5796_v26 = vadd.f32 %v20725_v35, %v20527_v41 }
 0x3a3   : > { %6519 = vst [vmem:[#allocation4 + $0x68] sm:$0xff] %v6501_v48  ;;  %17295 = vmatpush3.msra.mxu1 %v14143_v0  ;;  %17333 = vmatpush3.msra.mxu0 %v14175_v7 }
 0x3a4   : > { %v6478_v25 = vmul.f32 %v20790_v33, %v6454_v50  ;;  %17296 = vmatprep.subr.mxu1 %v14140_v12  ;;  %17334 = vmatprep.subr.mxu0 %v14172_v46  ;;  %v5942_v23 = vadd.f32 %v20592_v28, %v5796_v26  ;;  %v5811_v28 = vadd.f32 %v20768_v55, %v20565_v14 }
 0x3a5   : > { %17297 = vmatpush3.msra.mxu1 %v14140_v12  ;;  %17335 = vmatpush3.msra.mxu0 %v14172_v46 }
 0x3a6   : > { %v6502_v54 = vadd.f32 %v20798_v60, %v6478_v25  ;;  %17298 = vmatprep.subr.mxu1 %v14139_v11  ;;  %17336 = vmatprep.subr.mxu0 %v14171_v18  ;;  %v5945_v0 = vadd.f32 %v20630_v37, %v5811_v28 }
 0x3a7   : > { %17299 = vmatpush3.msra.mxu1 %v14139_v11  ;;  %17337 = vmatpush3.msra.mxu0 %v14171_v18 }
 0x3a8   : > { %6520 = vst [vmem:[#allocation4 + $0x70] sm:$0xff] %v6502_v54  ;;  %17344 = vmatprep.subr.mxu1 %v14232_v62  ;;  %17382 = vmatprep.subr.mxu0 %v14264_v20 }
 0x3af   : > { %v6568_v17 = vld [vmem:[#allocation4 + $0x51] ss:$5 sm:$0xff]  ;;  %v6528_v24 = vld [vmem:[#allocation4 + $0x50] ss:$5 sm:$0xff]  ;;  %v6049_v39 = vpop.f32.mrf.mxu1 }
 0x3b0   : > { %17227 = vmatprep.mubr.f32.mxu1 %v6568_v17  ;;  %17265 = vmatprep.mubr.f32.mxu0 %v6528_v24  ;;  %v6073_v43 = vadd.f32 %v6049_v39, %v5941_v5  ;;  %v6779_v57 = vld [vmem:[#allocation4 + $0x52] ss:$5 sm:$0xff] }
 0x3b1   : > { %v17132_v44 = vpop.f32.mrf.mxu1 }
 0x3b2   : > { %v6205_v47 = vadd.f32 %v20712_v22, %v6073_v43 }
 0x3b3   : > { %v6054_v4 = vpop.f32.mrf.mxu1 }
 0x3b4   : > { %v6210_v1 = vadd.f32 %v20620_v56, %v6205_v47  ;;  %v6074_v41 = vadd.f32 %v6054_v4, %v5942_v23  ;;  %v6775_v23 = vld [vmem:[#allocation4 + $0x2] ss:$5 sm:$0xff]  ;;  %v6905_v4 = vld [vmem:[#allocation4 + $0x3] ss:$5 sm:$0xff] }
 0x3b5   : > { %v17135_v35 = vpop.f32.mrf.mxu1 }
 0x3b6   : > { %v6215_v6 = vmax.f32 %v6210_v1, 0.0  ;;  %v6206_v59 = vadd.f32 %v20727_v36, %v6074_v41  ;;  %v14667_v1 = vld [vmem:[%s22526_s9 + $0x130] sm:$0xff]   ;;  %v14231_v35 = vunpack.c.l.bf16 %v20780_v3  ;;  %v14674_v3 = vld [vmem:[%s22526_s9 + $0x168] sm:$0xff]  }
 0x3b7   : > { %v6059_v21 = vpop.f32.mrf.mxu1  ;;  %v6777_v41 = vld [vmem:[#allocation4 + $0x2a] ss:$5 sm:$0xff]  ;;  %v14256_v28 = vunpack.c.h.bf16 %v14674_v3 }
 0x3b8   : > { %6220 = vst [vmem:[#allocation3 + $0x180] sm:$0xff] %v6215_v6  ;;  %v6211_v63 = vadd.f32 %v20620_v56, %v6206_v59  ;;  %v6075_v22 = vadd.f32 %v6059_v21, %v5943_v52  ;;  %v6909_v6 = vld [vmem:[#allocation4 + $0x53] ss:$5 sm:$0xff]  ;;  %v14228_v59 = vunpack.c.h.bf16 %v14667_v1  ;;  %v14227_v21 = vunpack.c.l.bf16 %v14667_v1 }
 0x3b9   : > { %v17138_v34 = vpop.f32.mrf.mxu1 }
 0x3ba   : > { %v6216_v42 = vmax.f32 %v6211_v63, 0.0  ;;  %v6207_v19 = vadd.f32 %v20741_v38, %v6075_v22  ;;  %v14666_v63 = vld [vmem:[%s22526_s9 + $0x128] sm:$0xff]  }
 0x3bb   : > { %v6064_v16 = vpop.f32.mrf.mxu1  ;;  %v7035_v22 = vld [vmem:[#allocation4 + $0x4] ss:$5 sm:$0xff]  ;;  %v14224_v34 = vunpack.c.h.bf16 %v14666_v63 }
 0x3bc   : > { %6221 = vst [vmem:[#allocation3 + $0x188] sm:$0xff] %v6216_v42  ;;  %v6212_v36 = vadd.f32 %v20620_v56, %v6207_v19  ;;  %v6076_v53 = vadd.f32 %v6064_v16, %v5944_v13  ;;  %v7165_v42 = vld [vmem:[#allocation4 + $0x5] ss:$5 sm:$0xff]  ;;  %v14223_v16 = vunpack.c.l.bf16 %v14666_v63 }
 0x3bd   : > { %v17141_v51 = vpop.f32.mrf.mxu1  ;;  %v14665_v19 = vld [vmem:[%s22526_s9 + $0x120] sm:$0xff]  }
 0x3be   : > { %v6217_v31 = vmax.f32 %v6212_v36, 0.0  ;;  %v6208_v61 = vadd.f32 %v20757_v27, %v6076_v53  ;;  %v14673_v13 = vld [vmem:[%s22526_s9 + $0x160] sm:$0xff]   ;;  %v14255_v36 = vunpack.c.l.bf16 %v14674_v3  ;;  %v14220_v53 = vunpack.c.h.bf16 %v14665_v19 }
 0x3bf   : > { %v6069_v7 = vpop.f32.mrf.mxu1  ;;  %v14252_v51 = vunpack.c.h.bf16 %v14673_v13  ;;  %v14681_v3 = vld [vmem:[%s22526_s9 + $0x1a0] sm:$0xff]  }
 0x3c0   : > { %6222 = vst [vmem:[#allocation3 + $0x190] sm:$0xff] %v6217_v31  ;;  %v6213_v14 = vadd.f32 %v20620_v56, %v6208_v61  ;;  %v6077_v55 = vadd.f32 %v6069_v7, %v5945_v0  ;;  %v14664_v31 = vld [vmem:[%s22526_s9 + $0x118] sm:$0xff]   ;;  %v14219_v0 = vunpack.c.l.bf16 %v14665_v19  ;;  %v14251_v7 = vunpack.c.l.bf16 %v14673_v13 }
 0x3c1   : > { %v17144_v49 = vpop.f32.mrf.mxu1  ;;  %v14672_v61 = vld [vmem:[%s22526_s9 + $0x158] sm:$0xff]   ;;  %v14283_v19 = vunpack.c.l.bf16 %v14681_v3 }
 0x3c2   : > { %v6218_v38 = vmax.f32 %v6213_v14, 0.0  ;;  %v6209_v45 = vadd.f32 %v20770_v58, %v6077_v55  ;;  %v14216_v14 = vunpack.c.h.bf16 %v14664_v31  ;;  %v14248_v55 = vunpack.c.h.bf16 %v14672_v61  ;;  %v14663_v49 = vld [vmem:[%s22526_s9 + $0x110] sm:$0xff]  }
 0x3c4   : > { %6223 = vst [vmem:[#allocation3 + $0x198] sm:$0xff] %v6218_v38  ;;  %v6214_v48 = vadd.f32 %v20620_v56, %v6209_v45  ;;  %v14671_v38 = vld [vmem:[%s22526_s9 + $0x150] sm:$0xff]   ;;  %v14215_v45 = vunpack.c.l.bf16 %v14664_v31 }
 0x3c6   : > { %v6219_v12 = vmax.f32 %v6214_v48, 0.0  ;;  %v14247_v48 = vunpack.c.l.bf16 %v14672_v61 }
 0x3c7   : > { %v6257_v46 = vld [vmem:[#allocation3 + $0x180] ss:$3 sm:$0xff]  ;;  %v6293_v30 = vld [vmem:[#allocation3 + $0x181] ss:$3 sm:$0xff]  ;;  %v6347_v27 = vld [vmem:[#allocation3 + $0x182] ss:$3 sm:$0xff] }
 0x3c8   : > { %v6312_v50 = vmax.f32 %v6257_v46, %v6293_v30  ;;  %6224 = vst [vmem:[#allocation3 + $0x1a0] sm:$0xf] %v6219_v12  ;;  %v14212_v12 = vunpack.c.h.bf16 %v14663_v49  ;;  %v14244_v46 = vunpack.c.h.bf16 %v14671_v38  ;;  %v14662_v30 = vld [vmem:[%s22526_s9 + $0x108] sm:$0xff]  }
 0x3ca   : > { %v6366_v8 = vmax.f32 %v6312_v50, %v6347_v27  ;;  %v14670_v50 = vld [vmem:[%s22526_s9 + $0x148] sm:$0xff]   ;;  %v14211_v27 = vunpack.c.l.bf16 %v14663_v49 }
 0x3cc   : > { %v6418_v37 = vrot.slane %v6366_v8, 1 }
 0x3ce   : > { %v6419_v11 = vsel %vm6386_vm1, %v6416_v15, %v6418_v37 }
 0x3cf   : > { %v6259_v18 = vld [vmem:[#allocation3 + $0x198] ss:$3 sm:$0xf]  ;;  %v6295_v25 = vld [vmem:[#allocation3 + $0x199] ss:$3 sm:$0xf]  ;;  %v6455_v54 = vmax.f32 %v20755_v29, %v6419_v11  ;;  %v14240_v11 = vunpack.c.h.bf16 %v14670_v50 }
 0x3d0   : > { %v6313_v58 = vmax.f32 %v6259_v18, %v6295_v25  ;;  %v6349_v32 = vld [vmem:[#allocation3 + $0x19a] ss:$3 sm:$0xf]  ;;  %v14661_v18 = vld [vmem:[%s22526_s9 + $0x100] sm:$0xff]  }
 0x3d1   : > { %v6479_v56 = vmul.f32 %v20790_v33, %v6455_v54  ;;  %v14669_v25 = vld [vmem:[%s22526_s9 + $0x140] sm:$0xff]   ;;  %v14207_v54 = vunpack.c.l.bf16 %v14662_v30 }
 0x3d2   : > { %v6367_v26 = vmax.f32 %v6313_v58, %v6349_v32  ;;  %v14239_v58 = vunpack.c.l.bf16 %v14670_v50  ;;  %v14204_v32 = vunpack.c.h.bf16 %v14661_v18 }
 0x3d3   : > { %v6503_v5 = vadd.f32 %v20798_v60, %v6479_v56  ;;  %v14236_v56 = vunpack.c.h.bf16 %v14669_v25 }
 0x3d4   : > { %v6420_v17 = vrot.slane %v6367_v26, 1 }
 0x3d5   : > { %6521 = vst [vmem:[#allocation4 + $0x78] sm:$0xff] %v6503_v5  ;;  %v14235_v5 = vunpack.c.l.bf16 %v14669_v25 }
 0x3d6   : > { %v6421_v24 = vsel %vm6386_vm1, %v6418_v37, %v6420_v17  ;;  %v6457_v39 = vmax.f32 %v6367_v26, %v6420_v17  ;;  %v14208_v37 = vunpack.c.h.bf16 %v14662_v30  ;;  %v14203_v26 = vunpack.c.l.bf16 %v14661_v18  ;;  %v14684_v17 = vld [vmem:[%s22526_s9 + $0x1b8] sm:$0xff]  }
 0x3d7   : > { %v6456_v43 = vmax.f32 %v6366_v8, %v6421_v24  ;;  %v14243_v8 = vunpack.c.l.bf16 %v14671_v38  ;;  %v14692_v24 = vld [vmem:[%s22526_s9 + $0x1f8] sm:$0xff]  }
 0x3d8   : > { %v6481_v44 = vmul.f32 %v20790_v33, %v6457_v39  ;;  %v14296_v39 = vunpack.c.h.bf16 %v14684_v17  ;;  %v14700_v18 = vld [vmem:[%s22526_s9 + $0x238] sm:$0xff]  }
 0x3d9   : > { %v6480_v15 = vmul.f32 %v20790_v33, %v6456_v43  ;;  %v14675_v33 = vld [vmem:[%s22526_s9 + $0x170] sm:$0xff]   ;;  %v14328_v43 = vunpack.c.h.bf16 %v14692_v24  ;;  %v14360_v25 = vunpack.c.h.bf16 %v14700_v18 }
 0x3da   : > { %v6505_v40 = vadd.f32 %v20798_v60, %v6481_v44  ;;  %v14260_v52 = vunpack.c.h.bf16 %v14675_v33  ;;  %v7037_v44 = vld [vmem:[#allocation4 + $0x2c] ss:$5 sm:$0xff] }
 0x3db   : > { %v6504_v29 = vadd.f32 %v20798_v60, %v6480_v15  ;;  %v6907_v60 = vld [vmem:[#allocation4 + $0x2b] ss:$5 sm:$0xff] }
 0x3dc   : > { %6523 = vst [vmem:[#allocation4 + $0x88] sm:$0x7] %v6505_v40  ;;  %v7167_v15 = vld [vmem:[#allocation4 + $0x2d] ss:$5 sm:$0xff]  ;;  %v14295_v40 = vunpack.c.l.bf16 %v14684_v17 }
 0x3dd   : > { %6522 = vst [vmem:[#allocation4 + $0x80] sm:$0xff] %v6504_v29  ;;  %v14327_v29 = vunpack.c.l.bf16 %v14692_v24  ;;  %v14698_v24 = vld [vmem:[%s22526_s9 + $0x228] sm:$0xff]  }
 0x3e4   : > { %v6570_v10 = vld [vmem:[#allocation4 + $0x79] ss:$5 sm:$0x7]  ;;  %v6530_v47 = vld [vmem:[#allocation4 + $0x78] ss:$5 sm:$0x7] }
 0x3e5   : > { %17228 = vmatmul.mubr.f32.gmra.mxu1 %v6570_v10  ;;  %17266 = vmatmul.mubr.f32.gmra.mxu0 %v6530_v47  ;;  %v6781_v9 = vld [vmem:[#allocation4 + $0x7a] ss:$5 sm:$0x7] }
 0x3e6   : > { %17300 = vmatprep.mubr.f32.mxu1 %v6775_v23  ;;  %17338 = vmatprep.mubr.f32.mxu0 %v6905_v4  ;;  %v14683_v10 = vld [vmem:[%s22526_s9 + $0x1b0] sm:$0xff]  }
 0x3e7   : > { %v14691_v47 = vld [vmem:[%s22526_s9 + $0x1f0] sm:$0xff]   ;;  %v14292_v1 = vunpack.c.h.bf16 %v14683_v10 }
 0x3e8   : > { %v7039_v23 = vld [vmem:[#allocation4 + $0x54] ss:$5 sm:$0xff]  ;;  %v7169_v4 = vld [vmem:[#allocation4 + $0x55] ss:$5 sm:$0xff] }
 0x3e9   : > { %17301 = vmatmul.mubr.f32.vlgmr.msra.gmra.mxu1 %v6777_v41  ;;  %17339 = vmatmul.mubr.f32.vlgmr.msra.gmra.mxu0 %v6907_v60  ;;  %v14682_v41 = vld [vmem:[%s22526_s9 + $0x1a8] sm:$0xff]  }
 0x3ea   : > { %17345 = vmatpush3.msra.mxu1 %v14232_v62  ;;  %17383 = vmatpush3.msra.mxu0 %v14264_v20  ;;  %v6911_v62 = vld [vmem:[#allocation4 + $0x7b] ss:$5 sm:$0x7]  ;;  %v14259_v20 = vunpack.c.l.bf16 %v14675_v33  ;;  %v14324_v33 = vunpack.c.h.bf16 %v14691_v47  ;;  %v14690_v60 = vld [vmem:[%s22526_s9 + $0x1e8] sm:$0xff]  }
 0x3eb   : > { %17303 = vmatprep.mubr.f32.mxu1 %v6779_v57  ;;  %17341 = vmatprep.mubr.f32.mxu0 %v6909_v6  ;;  %v14291_v57 = vunpack.c.l.bf16 %v14683_v10  ;;  %v14323_v6 = vunpack.c.l.bf16 %v14691_v47  ;;  %v14320_v63 = vunpack.c.h.bf16 %v14690_v60  ;;  %v14351_v10 = vunpack.c.l.bf16 %v14698_v24  ;;  %v20949_v47 = vld [vmem:[#allocation5 + $0x18] sm:$0xff] }
 0x3ec   : > { %17346 = vmatprep.subr.mxu1 %v14231_v35  ;;  %17384 = vmatprep.subr.mxu0 %v14263_v2 }
 0x3ed   : > { %17347 = vmatpush3.msra.mxu1 %v14231_v35  ;;  %17385 = vmatpush3.msra.mxu0 %v14263_v2  ;;  %v7041_v35 = vld [vmem:[#allocation4 + $0x7c] ss:$5 sm:$0x7]  ;;  %v7171_v2 = vld [vmem:[#allocation4 + $0x7d] ss:$5 sm:$0x7] }
 0x3ee   : > { %17348 = vmatprep.subr.mxu1 %v14228_v59  ;;  %17386 = vmatprep.subr.mxu0 %v14260_v52 }
 0x3ef   : > { %17304 = vmatmul.mubr.f32.gmra.mxu1 %v6781_v9  ;;  %17342 = vmatmul.mubr.f32.gmra.mxu0 %v6911_v62  ;;  %v14689_v9 = vld [vmem:[%s22526_s9 + $0x1e0] sm:$0xff]   ;;  %v14287_v62 = vunpack.c.l.bf16 %v14682_v41 }
 0x3f0   : > { %17349 = vmatpush3.msra.mxu1 %v14228_v59  ;;  %17387 = vmatpush3.msra.mxu0 %v14260_v52  ;;  %v7295_v59 = vld [vmem:[#allocation4 + $0x6] ss:$5 sm:$0xff]  ;;  %v7425_v52 = vld [vmem:[#allocation4 + $0x7] ss:$5 sm:$0xff]  ;;  %v14315_v13 = vunpack.c.l.bf16 %v14689_v9 }
 0x3f1   : > { %17350 = vmatprep.subr.mxu1 %v14227_v21  ;;  %17376 = vmatprep.mubr.f32.mxu1 %v7035_v22  ;;  %v14284_v22 = vunpack.c.h.bf16 %v14681_v3  ;;  %v7557_v3 = vld [vmem:[#allocation4 + $0x30] ss:$5 sm:$0xff] }
 0x3f2   : > { %17388 = vmatprep.subr.mxu0 %v14259_v20  ;;  %17414 = vmatprep.mubr.f32.mxu0 %v7165_v42  ;;  %v14688_v42 = vld [vmem:[%s22526_s9 + $0x1d8] sm:$0xff]  }
 0x3f3   : > { %17351 = vmatpush3.msra.mxu1 %v14227_v21  ;;  %17389 = vmatpush3.msra.mxu0 %v14259_v20  ;;  %v14288_v21 = vunpack.c.h.bf16 %v14682_v41  ;;  %v14319_v20 = vunpack.c.l.bf16 %v14690_v60  ;;  %v14311_v61 = vunpack.c.l.bf16 %v14688_v42  ;;  %v14695_v41 = vld [vmem:[%s22526_s9 + $0x210] sm:$0xff]  }
 0x3f4   : > { %17352 = vmatprep.subr.mxu1 %v14224_v34  ;;  %17390 = vmatprep.subr.mxu0 %v14256_v28 }
 0x3f5   : > { %17353 = vmatpush3.msra.mxu1 %v14224_v34  ;;  %17391 = vmatpush3.msra.mxu0 %v14256_v28  ;;  %v14316_v34 = vunpack.c.h.bf16 %v14689_v9  ;;  %v14680_v28 = vld [vmem:[%s22526_s9 + $0x198] sm:$0xff]  }
 0x3f6   : > { %17354 = vmatprep.subr.mxu1 %v14223_v16  ;;  %17392 = vmatprep.subr.mxu0 %v14255_v36  ;;  %v14279_v31 = vunpack.c.l.bf16 %v14680_v28  ;;  %v7559_v9 = vld [vmem:[#allocation4 + $0x58] ss:$5 sm:$0xff] }
 0x3f7   : > { %17355 = vmatpush3.msra.mxu1 %v14223_v16  ;;  %17393 = vmatpush3.msra.mxu0 %v14255_v36  ;;  %v14280_v16 = vunpack.c.h.bf16 %v14680_v28  ;;  %v14312_v36 = vunpack.c.h.bf16 %v14688_v42 }
 0x3f8   : > { %17356 = vmatprep.subr.mxu1 %v14220_v53  ;;  %17394 = vmatprep.subr.mxu0 %v14252_v51 }
 0x3f9   : > { %17357 = vmatpush3.msra.mxu1 %v14220_v53  ;;  %17395 = vmatpush3.msra.mxu0 %v14252_v51  ;;  %v14679_v53 = vld [vmem:[%s22526_s9 + $0x190] sm:$0xff]  }
 0x3fa   : > { %17358 = vmatprep.subr.mxu1 %v14219_v0  ;;  %17396 = vmatprep.subr.mxu0 %v14251_v7  ;;  %v14687_v51 = vld [vmem:[%s22526_s9 + $0x1d0] sm:$0xff]   ;;  %v14275_v49 = vunpack.c.l.bf16 %v14679_v53 }
 0x3fb   : > { %17359 = vmatpush3.msra.mxu1 %v14219_v0  ;;  %17397 = vmatpush3.msra.mxu0 %v14251_v7  ;;  %v14276_v0 = vunpack.c.h.bf16 %v14679_v53  ;;  %v14308_v7 = vunpack.c.h.bf16 %v14687_v51  ;;  %v14307_v38 = vunpack.c.l.bf16 %v14687_v51 }
 0x3fc   : > { %17360 = vmatprep.subr.mxu1 %v14216_v14  ;;  %17398 = vmatprep.subr.mxu0 %v14248_v55 }
 0x3fd   : > { %17361 = vmatpush3.msra.mxu1 %v14216_v14  ;;  %17399 = vmatpush3.msra.mxu0 %v14248_v55  ;;  %v14678_v14 = vld [vmem:[%s22526_s9 + $0x188] sm:$0xff]  }
 0x3fe   : > { %17362 = vmatprep.subr.mxu1 %v14215_v45  ;;  %17400 = vmatprep.subr.mxu0 %v14247_v48  ;;  %v14686_v55 = vld [vmem:[%s22526_s9 + $0x1c8] sm:$0xff]   ;;  %v14271_v30 = vunpack.c.l.bf16 %v14678_v14 }
 0x3ff   : > { %17363 = vmatpush3.msra.mxu1 %v14215_v45  ;;  %17401 = vmatpush3.msra.mxu0 %v14247_v48  ;;  %v14272_v45 = vunpack.c.h.bf16 %v14678_v14  ;;  %v14304_v48 = vunpack.c.h.bf16 %v14686_v55  ;;  %v14303_v50 = vunpack.c.l.bf16 %v14686_v55 }
 0x400   : > { %17364 = vmatprep.subr.mxu1 %v14212_v12  ;;  %17402 = vmatprep.subr.mxu0 %v14244_v46 }
 0x401   : > { %17365 = vmatpush3.msra.mxu1 %v14212_v12  ;;  %17403 = vmatpush3.msra.mxu0 %v14244_v46  ;;  %v14677_v12 = vld [vmem:[%s22526_s9 + $0x180] sm:$0xff]  }
 0x402   : > { %17366 = vmatprep.subr.mxu1 %v14211_v27  ;;  %17404 = vmatprep.subr.mxu0 %v14243_v8  ;;  %v14685_v46 = vld [vmem:[%s22526_s9 + $0x1c0] sm:$0xff]  }
 0x403   : > { %17367 = vmatpush3.msra.mxu1 %v14211_v27  ;;  %17405 = vmatpush3.msra.mxu0 %v14243_v8  ;;  %v14268_v27 = vunpack.c.h.bf16 %v14677_v12  ;;  %v14300_v8 = vunpack.c.h.bf16 %v14685_v46 }
 0x404   : > { %17368 = vmatprep.subr.mxu1 %v14208_v37  ;;  %17406 = vmatprep.subr.mxu0 %v14240_v11 }
 0x405   : > { %17369 = vmatpush3.msra.mxu1 %v14208_v37  ;;  %17407 = vmatpush3.msra.mxu0 %v14240_v11  ;;  %v14267_v37 = vunpack.c.l.bf16 %v14677_v12  ;;  %v14299_v11 = vunpack.c.l.bf16 %v14685_v46  ;;  %v20997_v12 = vld [vmem:[%s22540_s11 + $0xb8] sm:$0xff] }
 0x406   : > { %17370 = vmatprep.subr.mxu1 %v14207_v54  ;;  %17408 = vmatprep.subr.mxu0 %v14239_v58 }
 0x407   : > { %17371 = vmatpush3.msra.mxu1 %v14207_v54  ;;  %17409 = vmatpush3.msra.mxu0 %v14239_v58  ;;  %v14699_v54 = vld [vmem:[%s22526_s9 + $0x230] sm:$0xff]  }
 0x408   : > { %17372 = vmatprep.subr.mxu1 %v14204_v32  ;;  %17410 = vmatprep.subr.mxu0 %v14236_v56  ;;  %v7297_v58 = vld [vmem:[#allocation4 + $0x2e] ss:$5 sm:$0xff]  ;;  %v14356_v17 = vunpack.c.h.bf16 %v14699_v54 }
 0x409   : > { %17373 = vmatpush3.msra.mxu1 %v14204_v32  ;;  %17411 = vmatpush3.msra.mxu0 %v14236_v56  ;;  %v7427_v32 = vld [vmem:[#allocation4 + $0x2f] ss:$5 sm:$0xff]  ;;  %v14359_v56 = vunpack.c.l.bf16 %v14700_v18 }
 0x40a   : > { %17374 = vmatprep.subr.mxu1 %v14203_v26  ;;  %17412 = vmatprep.subr.mxu0 %v14235_v5 }
 0x40b   : > { %17375 = vmatpush3.msra.mxu1 %v14203_v26  ;;  %17413 = vmatpush3.msra.mxu0 %v14235_v5  ;;  %v7299_v26 = vld [vmem:[#allocation4 + $0x56] ss:$5 sm:$0xff]  ;;  %v7429_v5 = vld [vmem:[#allocation4 + $0x57] ss:$5 sm:$0xff] }
 0x40c   : > { %17377 = vmatmul.mubr.f32.vlgmr.msra.gmra.mxu1 %v7037_v44  ;;  %17415 = vmatmul.mubr.f32.vlgmr.msra.gmra.mxu0 %v7167_v15  ;;  %v7301_v44 = vld [vmem:[#allocation4 + $0x7e] ss:$5 sm:$0x7] }
 0x40d   : > { %17420 = vmatprep.subr.mxu1 %v14296_v39  ;;  %17458 = vmatprep.subr.mxu0 %v14328_v43  ;;  %v7555_v15 = vld [vmem:[#allocation4 + $0x8] ss:$5 sm:$0xff] }
 0x40e   : > { %17379 = vmatprep.mubr.f32.mxu1 %v7039_v23  ;;  %17417 = vmatprep.mubr.f32.mxu0 %v7169_v4  ;;  %v14696_v4 = vld [vmem:[%s22526_s9 + $0x218] sm:$0xff]  }
 0x40f   : > { %17421 = vmatpush3.msra.mxu1 %v14296_v39  ;;  %17459 = vmatpush3.msra.mxu0 %v14328_v43  ;;  %v7431_v39 = vld [vmem:[#allocation4 + $0x7f] ss:$5 sm:$0x7]  ;;  %v14355_v43 = vunpack.c.l.bf16 %v14699_v54  ;;  %v14343_v60 = vunpack.c.l.bf16 %v14696_v4 }
 0x410   : > { %17422 = vmatprep.subr.mxu1 %v14295_v40  ;;  %17460 = vmatprep.subr.mxu0 %v14327_v29 }
 0x411   : > { %17423 = vmatpush3.msra.mxu1 %v14295_v40  ;;  %17461 = vmatpush3.msra.mxu0 %v14327_v29  ;;  %v14352_v40 = vunpack.c.h.bf16 %v14698_v24  ;;  %v14697_v29 = vld [vmem:[%s22526_s9 + $0x220] sm:$0xff]  }
 0x412   : > { %17380 = vmatmul.mubr.f32.gmra.mxu1 %v7041_v35  ;;  %17418 = vmatmul.mubr.f32.gmra.mxu0 %v7171_v2  ;;  %v14348_v23 = vunpack.c.h.bf16 %v14697_v29  ;;  %v14340_v35 = vunpack.c.h.bf16 %v14695_v41  ;;  %v14694_v2 = vld [vmem:[%s22526_s9 + $0x208] sm:$0xff]  }
 0x413   : > { %17424 = vmatprep.subr.mxu1 %v14292_v1  ;;  %17462 = vmatprep.subr.mxu0 %v14324_v33 }
 0x414   : > { %17425 = vmatpush3.msra.mxu1 %v14292_v1  ;;  %17452 = vmatprep.mubr.f32.mxu1 %v7295_v59  ;;  %v14347_v1 = vunpack.c.l.bf16 %v14697_v29  ;;  %v14693_v59 = vld [vmem:[%s22526_s9 + $0x200] sm:$0xff]   ;;  %s17675_s9 = smov [#allocation6]  }
 0x415   : > { %17463 = vmatpush3.msra.mxu0 %v14324_v33  ;;  %17490 = vmatprep.mubr.f32.mxu0 %v7425_v52  ;;  %v14344_v33 = vunpack.c.h.bf16 %v14696_v4  ;;  %v14335_v52 = vunpack.c.l.bf16 %v14694_v2 }
 0x416   : > { %17426 = vmatprep.subr.mxu1 %v14291_v57  ;;  %17464 = vmatprep.subr.mxu0 %v14323_v6 }
 0x417   : > { %17427 = vmatpush3.msra.mxu1 %v14291_v57  ;;  %17465 = vmatpush3.msra.mxu0 %v14323_v6  ;;  %v14339_v57 = vunpack.c.l.bf16 %v14695_v41  ;;  %v14336_v6 = vunpack.c.h.bf16 %v14694_v2 }
 0x418   : > { %17428 = vmatprep.subr.mxu1 %v14288_v21  ;;  %17466 = vmatprep.subr.mxu0 %v14320_v63 }
 0x419   : > { %17429 = vmatpush3.msra.mxu1 %v14288_v21  ;;  %17467 = vmatpush3.msra.mxu0 %v14320_v63  ;;  %v14332_v21 = vunpack.c.h.bf16 %v14693_v59  ;;  %v14331_v63 = vunpack.c.l.bf16 %v14693_v59 }
 0x41a   : > { %17430 = vmatprep.subr.mxu1 %v14287_v62  ;;  %17468 = vmatprep.subr.mxu0 %v14319_v20 }
 0x41b   : > { %17431 = vmatpush3.msra.mxu1 %v14287_v62  ;;  %17469 = vmatpush3.msra.mxu0 %v14319_v20  ;;  %v7561_v62 = vld [vmem:[#allocation4 + $0x80] ss:$5 sm:$0x7]  ;;  %v7717_v20 = vld [vmem:[%s22540_s11 + $0x48] sm:$0xff] }
 0x41c   : > { %17432 = vmatprep.subr.mxu1 %v14284_v22  ;;  %17470 = vmatprep.subr.mxu0 %v14316_v34  ;;  %v7738_v42 = vunpack.c.l.bf16 %v7717_v20 }
 0x41d   : > { %17433 = vmatpush3.msra.mxu1 %v14284_v22  ;;  %17471 = vmatpush3.msra.mxu0 %v14316_v34  ;;  %v13035_v22 = vld [vmem:[%s22540_s11 + $0xa8] sm:$0xff]  ;;  %v7739_v34 = vunpack.c.h.bf16 %v7717_v20 }
 0x41e   : > { %17434 = vmatprep.subr.mxu1 %v14283_v19  ;;  %17472 = vmatprep.subr.mxu0 %v14315_v13  ;;  %v8045_v28 = vunpack.c.h.bf16 %v13035_v22 }
 0x41f   : > { %17435 = vmatpush3.msra.mxu1 %v14283_v19  ;;  %17473 = vmatpush3.msra.mxu0 %v14315_v13  ;;  %v8044_v19 = vunpack.c.l.bf16 %v13035_v22  ;;  %v7714_v13 = vld [vmem:[%s22540_s11 + $0x30] sm:$0xff] }
 0x420   : > { %17436 = vmatprep.subr.mxu1 %v14280_v16  ;;  %17474 = vmatprep.subr.mxu0 %v14312_v36  ;;  %v7732_v51 = vunpack.c.l.bf16 %v7714_v13 }
 0x421   : > { %17437 = vmatpush3.msra.mxu1 %v14280_v16  ;;  %17475 = vmatpush3.msra.mxu0 %v14312_v36  ;;  %v13032_v16 = vld [vmem:[%s22540_s11 + $0x90] sm:$0xff]  ;;  %v7733_v36 = vunpack.c.h.bf16 %v7714_v13 }
 0x422   : > { %17438 = vmatprep.subr.mxu1 %v14279_v31  ;;  %17476 = vmatprep.subr.mxu0 %v14311_v61  ;;  %v8039_v53 = vunpack.c.h.bf16 %v13032_v16 }
 0x423   : > { %17439 = vmatpush3.msra.mxu1 %v14279_v31  ;;  %17477 = vmatpush3.msra.mxu0 %v14311_v61  ;;  %v8038_v31 = vunpack.c.l.bf16 %v13032_v16  ;;  %v7711_v61 = vld [vmem:[%s22540_s11 + $0x18] sm:$0xff] }
 0x424   : > { %17440 = vmatprep.subr.mxu1 %v14276_v0  ;;  %17478 = vmatprep.subr.mxu0 %v14308_v7  ;;  %v7726_v14 = vunpack.c.l.bf16 %v7711_v61  ;;  %v7727_v55 = vunpack.c.h.bf16 %v7711_v61 }
 0x425   : > { %17441 = vmatpush3.msra.mxu1 %v14276_v0  ;;  %17479 = vmatpush3.msra.mxu0 %v14308_v7  ;;  %v13029_v0 = vld [vmem:[%s22540_s11 + $0x78] sm:$0xff]  ;;  %v7708_v7 = vld [vmem:[%s22540_s11] sm:$0xff] }
 0x426   : > { %17442 = vmatprep.subr.mxu1 %v14275_v49  ;;  %17480 = vmatprep.subr.mxu0 %v14307_v38  ;;  %v7720_v46 = vunpack.c.l.bf16 %v7708_v7 }
 0x427   : > { %17443 = vmatpush3.msra.mxu1 %v14275_v49  ;;  %17481 = vmatpush3.msra.mxu0 %v14307_v38  ;;  %v8032_v49 = vunpack.c.l.bf16 %v13029_v0  ;;  %v8033_v38 = vunpack.c.h.bf16 %v13029_v0 }
 0x428   : > { %17444 = vmatprep.subr.mxu1 %v14272_v45  ;;  %17482 = vmatprep.subr.mxu0 %v14304_v48 }
 0x429   : > { %17445 = vmatpush3.msra.mxu1 %v14272_v45  ;;  %17483 = vmatpush3.msra.mxu0 %v14304_v48  ;;  %v13026_v45 = vld [vmem:[%s22540_s11 + $0x60] sm:$0xff]  ;;  %v20992_v48 = vld [vmem:[%s22540_s11 + $0x50] sm:$0xff] }
 0x42a   : > { %17446 = vmatprep.subr.mxu1 %v14271_v30  ;;  %17484 = vmatprep.subr.mxu0 %v14303_v50 }
 0x42b   : > { %17447 = vmatpush3.msra.mxu1 %v14271_v30  ;;  %17485 = vmatpush3.msra.mxu0 %v14303_v50  ;;  %v7721_v30 = vunpack.c.h.bf16 %v7708_v7  ;;  %v8026_v50 = vunpack.c.l.bf16 %v13026_v45 }
 0x42c   : > { %17448 = vmatprep.subr.mxu1 %v14268_v27  ;;  %17486 = vmatprep.subr.mxu0 %v14300_v8 }
 0x42d   : > { %17449 = vmatpush3.msra.mxu1 %v14268_v27  ;;  %17487 = vmatpush3.msra.mxu0 %v14300_v8  ;;  %v8027_v27 = vunpack.c.h.bf16 %v13026_v45  ;;  %v7741_v8 = vunpack.c.h.bf16 %v20992_v48 }
 0x42e   : > { %17450 = vmatprep.subr.mxu1 %v14267_v37  ;;  %17488 = vmatprep.subr.mxu0 %v14299_v11 }
 0x42f   : > { %17451 = vmatpush3.msra.mxu1 %v14267_v37  ;;  %17489 = vmatpush3.msra.mxu0 %v14299_v11  ;;  %v8049_v37 = vunpack.c.h.bf16 %v20997_v12 }
 0x430   : > { %17453 = vmatmul.mubr.f32.vlgmr.msra.gmra.mxu1 %v7297_v58  ;;  %17491 = vmatmul.mubr.f32.vlgmr.msra.gmra.mxu0 %v7427_v32 }
 0x431   : > { %17496 = vmatprep.subr.mxu1 %v14360_v25  ;;  %17455 = vmatprep.mubr.f32.mxu1 %v7299_v26 }
 0x432   : > { %17493 = vmatprep.mubr.f32.mxu0 %v7429_v5  ;;  %17497 = vmatpush3.msra.mxu1 %v14360_v25 }
 0x433   : > { %17498 = vmatprep.subr.mxu1 %v14359_v56  ;;  %7772 = vmatprep.subr.mxu0 %v7739_v34 }
 0x434   : > { %17499 = vmatpush3.msra.mxu1 %v14359_v56  ;;  %17494 = vmatmul.mubr.f32.gmra.mxu0 %v7431_v39 }
 0x435   : > { %17456 = vmatmul.mubr.f32.gmra.mxu1 %v7301_v44  ;;  %17500 = vmatprep.subr.mxu1 %v14356_v17 }
 0x436   : > { %17501 = vmatpush3.msra.mxu1 %v14356_v17  ;;  %17528 = vmatprep.mubr.f32.mxu1 %v7555_v15 }
 0x437   : > { %17502 = vmatprep.subr.mxu1 %v14355_v43  ;;  %7812 = vmatprep.mubr.f32.mxu0 %v20949_v47 }
 0x438   : > { %17503 = vmatpush3.msra.mxu1 %v14355_v43  ;;  %7773 = vmatpush1.msra.mxu0 %v7738_v42 }
 0x439   : > { %17504 = vmatprep.subr.mxu1 %v14352_v40  ;;  %7774 = vmatprep.subr.mxu0 %v7733_v36 }
 0x43a   : > { %17505 = vmatpush3.msra.mxu1 %v14352_v40  ;;  %7775 = vmatpush1.msra.mxu0 %v7732_v51 }
 0x43b   : > { %17506 = vmatprep.subr.mxu1 %v14351_v10  ;;  %7776 = vmatprep.subr.mxu0 %v7727_v55 }
 0x43c   : > { %17507 = vmatpush3.msra.mxu1 %v14351_v10  ;;  %7777 = vmatpush1.msra.mxu0 %v7726_v14 }
 0x43d   : > { %17508 = vmatprep.subr.mxu1 %v14348_v23  ;;  %7778 = vmatprep.subr.mxu0 %v7721_v30 }
 0x43e   : > { %17509 = vmatpush3.msra.mxu1 %v14348_v23  ;;  %7779 = vmatpush1.msra.mxu0 %v7720_v46  ;;  %v13022_v46 = vld [vmem:[%s22541_s10] ss:$0 sm:$0xff]  ;;  %s17614_s10 = sshll.u32 %s17675_s9, 4  ;;  %s17615_s10 = int_to_ptr.vmem [resolvable:$false] %s17614_s10 }
 0x43f   : > { %17510 = vmatprep.subr.mxu1 %v14347_v1  ;;  %7843 = vmatprep.subr.mxu0 %v7741_v8  ;;  %s17616_s1 = scalar_lea.vmem %s17615_s10, 32  ;;  %p17617_p0 = scmp.lt.s32.totalorder %s12573_s5, %s17615_s10 }
 0x440   : > { %17511 = vmatpush3.msra.mxu1 %v14347_v1  ;;  %p17618_p1 = scmp.lt.s32.totalorder %s17616_s1, %s17610_s8 }
 0x441   : > { %17512 = vmatprep.subr.mxu1 %v14344_v33 }
 0x442   : > { %17513 = vmatpush3.msra.mxu1 %v14344_v33  ;;  %p17619_p2 = por %p17618_p1, %p17617_p0 }
 0x443   : > { %17514 = vmatprep.subr.mxu1 %v14343_v60 }
 0x444   : > { %17515 = vmatpush3.msra.mxu1 %v14343_v60  ;;  %p17620_p3 = pnand %p17619_p2, %p17613_p13 }
 0x445   : > { %17516 = vmatprep.subr.mxu1 %v14340_v35 }
 0x446   : > { %17517 = vmatpush3.msra.mxu1 %v14340_v35 }
 0x447   : > { %17518 = vmatprep.subr.mxu1 %v14339_v57 }
 0x448   : > { %17519 = vmatpush3.msra.mxu1 %v14339_v57  ;;  %v17226_v11 = vpop.f32.mrf.mxu1  ;;  %v17264_v25 = vpop.f32.mrf.mxu0 }
 0x449   : > { %17520 = vmatprep.subr.mxu1 %v14336_v6  ;;  %v6761_v1 = vadd.f32 %v17264_v25, %v17226_v11 }
 0x44a   : > { %17521 = vmatpush3.msra.mxu1 %v14336_v6  ;;  %v6670_v18 = vpop.f32.mrf.mxu1  ;;  %v6755_v58 = vpop.f32.mrf.mxu0 }
 0x44b   : > { %17522 = vmatprep.subr.mxu1 %v14335_v52  ;;  %v6756_v41 = vadd.f32 %v6755_v58, %v6670_v18 }
 0x44c   : > { %17523 = vmatpush3.msra.mxu1 %v14335_v52 }
 0x44d   : > { %17524 = vmatprep.subr.mxu1 %v14332_v21 }
 0x44e   : > { %17525 = vmatpush3.msra.mxu1 %v14332_v21 }
 0x44f   : > { %17526 = vmatprep.subr.mxu1 %v14331_v63 }
 0x450   : > { %17527 = vmatpush3.msra.mxu1 %v14331_v63 }
 0x451   : > { %17529 = vmatmul.mubr.f32.vlgmr.msra.gmra.mxu1 %v7557_v3  ;;  %8077 = vmatprep.subr.mxu1 %v8045_v28 }
 0x452   : > { %17531 = vmatprep.mubr.f32.mxu1 %v7559_v9  ;;  %8078 = vmatpush1.msra.mxu1 %v8044_v19 }
 0x453   : > { %8079 = vmatprep.subr.mxu1 %v8039_v53 }
 0x454   : > { %8080 = vmatpush1.msra.mxu1 %v8038_v31 }
 0x455   : > { %17532 = vmatmul.mubr.f32.gmra.mxu1 %v7561_v62  ;;  %8081 = vmatprep.subr.mxu1 %v8033_v38 }
 0x456   : > { %8117 = vmatprep.mubr.f32.mxu1 %v20949_v47  ;;  %8082 = vmatpush1.msra.mxu1 %v8032_v49 }
 0x457   : > { %8083 = vmatprep.subr.mxu1 %v8027_v27 }
 0x458   : > { %8084 = vmatpush1.msra.mxu1 %v8026_v50 }
 0x459   : > { %8219 = vmatprep.subr.mxu1 %v8049_v37 }
 0x4a5   : > { %v17229_v54 = vpop.f32.mrf.mxu1  ;;  %v17267_v56 = vpop.f32.mrf.mxu0 }
 0x4a6   : > { %v6771_v2 = vadd.f32 %v17267_v56, %v17229_v54 }
 0x4a7   : > { %v6680_v32 = vpop.f32.mrf.mxu1  ;;  %v6765_v5 = vpop.f32.mrf.mxu0 }
 0x4a8   : > { %v6766_v52 = vadd.f32 %v6765_v5, %v6680_v32 }
 0x4a9   : > { %v17302_v26 = vpop.f32.mrf.mxu1  ;;  %v17340_v24 = vpop.f32.mrf.mxu0 }
 0x4aa   : > { %v6901_v60 = vadd.f32 %v17302_v26, %v6761_v1 }
 0x4ab   : > { %v6881_v17 = vpop.f32.mrf.mxu1  ;;  %v7011_v43 = vpop.f32.mrf.mxu0 }
 0x4ac   : > { %v6900_v57 = vadd.f32 %v6881_v17, %v6756_v41  ;;  %v7031_v21 = vadd.f32 %v17340_v24, %v6901_v60  ;;  %v13034_v41 = vld [vmem:[%s22540_s11 + $0xa0] sm:$0xff]  ;;  %v7740_v60 = vunpack.c.l.bf16 %v20992_v48 }
 0x4ae   : > { %v7030_v3 = vadd.f32 %v7011_v43, %v6900_v57  ;;  %v8048_v57 = vunpack.c.l.bf16 %v20997_v12  ;;  %v8042_v12 = vunpack.c.l.bf16 %v13034_v41 }
 0x4af   : > { %v17305_v39 = vpop.f32.mrf.mxu1  ;;  %v17343_v15 = vpop.f32.mrf.mxu0 }
 0x4b0   : > { %v6903_v63 = vadd.f32 %v17305_v39, %v6771_v2  ;;  %v7712_v2 = vld [vmem:[%s22540_s11 + $0x20] sm:$0xff] }
 0x4b1   : > { %v6891_v44 = vpop.f32.mrf.mxu1  ;;  %v7021_v29 = vpop.f32.mrf.mxu0 }
 0x4b2   : > { %v6902_v9 = vadd.f32 %v6891_v44, %v6766_v52  ;;  %v7033_v34 = vadd.f32 %v17343_v15, %v6903_v63 }
 0x4b4   : > { %v7032_v19 = vadd.f32 %v7021_v29, %v6902_v9  ;;  %v7715_v29 = vld [vmem:[%s22540_s11 + $0x38] sm:$0xff]  ;;  %v7709_v9 = vld [vmem:[%s22540_s11 + $0x8] sm:$0xff] }
 0x4b5   : > { %v7735_v52 = vunpack.c.h.bf16 %v7715_v29  ;;  %v7734_v48 = vunpack.c.l.bf16 %v7715_v29  ;;  %v13030_v29 = vld [vmem:[%s22540_s11 + $0x80] sm:$0xff] }
 0x4cc   : > { %v17378_v40 = vpop.f32.mrf.mxu1  ;;  %v17416_v23 = vpop.f32.mrf.mxu0 }
 0x4cd   : > { %v7161_v62 = vadd.f32 %v17378_v40, %v7031_v21  ;;  %v13031_v21 = vld [vmem:[%s22540_s11 + $0x88] sm:$0xff] }
 0x4ce   : > { %v7141_v10 = vpop.f32.mrf.mxu1  ;;  %v7271_v33 = vpop.f32.mrf.mxu0 }
 0x4cf   : > { %v7160_v28 = vadd.f32 %v7141_v10, %v7030_v3  ;;  %v7291_v13 = vadd.f32 %v17416_v23, %v7161_v62  ;;  %v8043_v3 = vunpack.c.h.bf16 %v13034_v41  ;;  %v7729_v62 = vunpack.c.h.bf16 %v7712_v2 }
 0x4d1   : > { %v7290_v53 = vadd.f32 %v7271_v33, %v7160_v28  ;;  %v8036_v28 = vunpack.c.l.bf16 %v13031_v21 }
 0x4d2   : > { %v17381_v4 = vpop.f32.mrf.mxu1  ;;  %v17419_v6 = vpop.f32.mrf.mxu0 }
 0x4d3   : > { %v7163_v16 = vadd.f32 %v17381_v4, %v7033_v34  ;;  %v8037_v34 = vunpack.c.h.bf16 %v13031_v21 }
 0x4d4   : > { %v7151_v35 = vpop.f32.mrf.mxu1  ;;  %v7281_v20 = vpop.f32.mrf.mxu0 }
 0x4d5   : > { %v7162_v51 = vadd.f32 %v7151_v35, %v7032_v19  ;;  %v7293_v0 = vadd.f32 %v17419_v6, %v7163_v16  ;;  %v7722_v19 = vunpack.c.l.bf16 %v7709_v9  ;;  %v7719_v16 = vld [vmem:[%s22540_s11 + $0x58] sm:$0xff] }
 0x4d7   : > { %v7292_v55 = vadd.f32 %v7281_v20, %v7162_v51  ;;  %v13028_v20 = vld [vmem:[%s22540_s11 + $0x70] sm:$0xff]  ;;  %v7716_v51 = vld [vmem:[%s22540_s11 + $0x40] sm:$0xff] }
 0x4f0   : > { %v17454_v59 = vpop.f32.mrf.mxu1  ;;  %v17492_v42 = vpop.f32.mrf.mxu0 }
 0x4f1   : > { %v7421_v31 = vadd.f32 %v17454_v59, %v7291_v13  ;;  %v8031_v13 = vunpack.c.h.bf16 %v13028_v20 }
 0x4f2   : > { %v7401_v22 = vpop.f32.mrf.mxu1  ;;  %v7531_v61 = vpop.f32.mrf.mxu0 }
 0x4f3   : > { %v7420_v7 = vadd.f32 %v7401_v22, %v7290_v53  ;;  %v7551_v49 = vadd.f32 %v17492_v42, %v7421_v31  ;;  %v7728_v22 = vunpack.c.l.bf16 %v7712_v2  ;;  %v7723_v42 = vunpack.c.h.bf16 %v7709_v9  ;;  %v13051_v53 = vld [vmem:[%s22540_s11 + $0x110] sm:$0xff] }
 0x4f4   : > { %v17495_v45 = vpop.f32.mrf.mxu0  ;;  %v7743_v31 = vunpack.c.h.bf16 %v7719_v16  ;;  %v8035_v2 = vunpack.c.h.bf16 %v13030_v29 }
 0x4f5   : > { %v17457_v36 = vpop.f32.mrf.mxu1  ;;  %v7550_v50 = vadd.f32 %v7531_v61, %v7420_v7  ;;  %v13048_v61 = vld [vmem:[%s22540_s11 + $0xf8] sm:$0xff]  ;;  %v8352_v7 = vunpack.c.h.bf16 %v13051_v53 }
 0x4f6   : > { %v7423_v38 = vadd.f32 %v17457_v36, %v7293_v0  ;;  %v7541_v54 = vpop.f32.mrf.mxu0  ;;  %v8030_v36 = vunpack.c.l.bf16 %v13028_v20  ;;  %v7742_v0 = vunpack.c.l.bf16 %v7719_v16 }
 0x4f7   : > { %v7411_v14 = vpop.f32.mrf.mxu1 }
 0x4f8   : > { %v7422_v27 = vadd.f32 %v7411_v14, %v7292_v55  ;;  %v7553_v11 = vadd.f32 %v17495_v45, %v7423_v38  ;;  %v7713_v14 = vld [vmem:[%s22540_s11 + $0x28] sm:$0xff]  ;;  %v8351_v55 = vunpack.c.l.bf16 %v13051_v53  ;;  %v13045_v38 = vld [vmem:[%s22540_s11 + $0xe0] sm:$0xff]  ;;  %v7736_v45 = vunpack.c.l.bf16 %v7716_v51 }
 0x4fa   : > { %v7552_v32 = vadd.f32 %v7541_v54, %v7422_v27  ;;  %v7731_v27 = vunpack.c.h.bf16 %v7713_v14 }
 0x511   : > { %v17530_v30 = vpop.f32.mrf.mxu1 }
 0x512   : > { %v7681_v8 = vadd.f32 %v17530_v30, %v7551_v49  ;;  %v7737_v49 = vunpack.c.h.bf16 %v7716_v51  ;;  %v7710_v30 = vld [vmem:[%s22540_s11 + $0x10] sm:$0xff] }
 0x513   : > { %v7661_v37 = vpop.f32.mrf.mxu1  ;;  %v7725_v54 = vunpack.c.h.bf16 %v7710_v30 }
 0x514   : > { %v7691_v18 = vadd.f32 %v13022_v46, %v7681_v8  ;;  %v7680_v25 = vadd.f32 %v7661_v37, %v7550_v50  ;;  %v8345_v50 = vunpack.c.l.bf16 %v13048_v61  ;;  %v13042_v8 = vld [vmem:[%s22540_s11 + $0xc8] sm:$0xff]  ;;  %v7730_v37 = vunpack.c.l.bf16 %v7713_v14  ;;  %v13041_v14 = vld [vmem:[%s22540_s11 + $0xc0] sm:$0xff] }
 0x515   : > { %v17533_v58 = vpop.f32.mrf.mxu1 }
 0x516   : > { %v7695_v56 = vmax.f32 %v7691_v18, 0.0  ;;  %v7690_v26 = vadd.f32 %v13022_v46, %v7680_v25  ;;  %v7683_v5 = vadd.f32 %v17533_v58, %v7553_v11  ;;  %v8340_v11 = vunpack.c.h.bf16 %v13045_v38 }
 0x517   : > { %v7671_v17 = vpop.f32.mrf.mxu1  ;;  %v8339_v25 = vunpack.c.l.bf16 %v13045_v38  ;;  %v7724_v58 = vunpack.c.l.bf16 %v7710_v30  ;;  %v13058_v38 = vld [vmem:[%s22540_s11 + $0x130] sm:$0xff]  ;;  %v8332_v30 = vunpack.c.h.bf16 %v13041_v14 }
 0x518   : > { %7699 = vst [vmem:[#allocation5 + $0x8] sm:$0xff] %v7695_v56  ;;  %v7694_v24 = vmax.f32 %v7690_v26, 0.0  ;;  %v7693_v39 = vadd.f32 %v13022_v46, %v7683_v5  ;;  %v7682_v43 = vadd.f32 %v7671_v17, %v7552_v32  ;;  %v8334_v32 = vunpack.c.h.bf16 %v13042_v8  ;;  %v13036_v56 = vld [vmem:[%s22540_s11 + $0xb0] sm:$0xff]  ;;  %v13065_v17 = vld [vmem:[%s22540_s11 + $0x168] sm:$0xff] }
 0x519   : > { %v8333_v26 = vunpack.c.l.bf16 %v13042_v8  ;;  %v13052_v8 = vld [vmem:[%s22540_s11 + $0x118] sm:$0xff] }
 0x51a   : > { %7698 = vst [vmem:[#allocation5] sm:$0xff] %v7694_v24  ;;  %v7697_v44 = vmax.f32 %v7693_v39, 0.0  ;;  %v7692_v15 = vadd.f32 %v13022_v46, %v7682_v43  ;;  %v8346_v46 = vunpack.c.h.bf16 %v13048_v61  ;;  %v13033_v24 = vld [vmem:[%s22540_s11 + $0x98] sm:$0xff]  ;;  %v8047_v39 = vunpack.c.h.bf16 %v13036_v56  ;;  %v13062_v43 = vld [vmem:[%s22540_s11 + $0x150] sm:$0xff]  ;;  %v13061_v61 = vld [vmem:[%s22540_s11 + $0x148] sm:$0xff] }
 0x51b   : > { %v8649_v41 = vunpack.c.h.bf16 %v13062_v43 }
 0x51c   : > { %7701 = vst [vmem:[#allocation5 + $0x18] sm:$0x7] %v7697_v44  ;;  %v7696_v40 = vmax.f32 %v7692_v15, 0.0  ;;  %v8046_v44 = vunpack.c.l.bf16 %v13036_v56  ;;  %v13046_v56 = vld [vmem:[%s22540_s11 + $0xe8] sm:$0xff] }
 0x51e   : > { %7700 = vst [vmem:[#allocation5 + $0x10] sm:$0xff] %v7696_v40  ;;  %v8655_v40 = vunpack.c.h.bf16 %v13065_v17 }
 0x521   : > { %v7703_v10 = vld [vmem:[#allocation5] sm:$0x1]  ;;  %v7704_v23 = vld [vmem:[#allocation5 + $0x1] sm:$0x1]  ;;  %v7706_v4 = vld [vmem:[#allocation5 + $0x2] sm:$0x1] }
 0x522   : > { %v7705_v1 = vmax.f32 %v7703_v10, %v7704_v23  ;;  %v8009_v33 = vld [vmem:[#allocation5 + $0x3] sm:$0x1]  ;;  %v21017_v59 = vld [vmem:[#allocation5 + $0x4] sm:$0x1]  ;;  %v8314_v18 = vld [vmem:[#allocation5 + $0x5] sm:$0x1]  ;;  %v8654_v23 = vunpack.c.l.bf16 %v13065_v17 }
 0x523   : > { %v8010_v35 = vmax.f32 %v7706_v4, %v8009_v33  ;;  %v8315_v5 = vmax.f32 %v21017_v59, %v8314_v18  ;;  %v8316_v15 = vld [vmem:[#allocation5 + $0x6] sm:$0x1]  ;;  %v8040_v33 = vunpack.c.l.bf16 %v13033_v24  ;;  %v13049_v18 = vld [vmem:[%s22540_s11 + $0x100] sm:$0xff] }
 0x524   : > { %v21015_v6 = vmax.f32 %v7705_v1, %v7706_v4  ;;  %v8041_v4 = vunpack.c.h.bf16 %v13033_v24  ;;  %v13059_v1 = vld [vmem:[%s22540_s11 + $0x138] sm:$0xff]  ;;  %v13075_v17 = vld [vmem:[%s22540_s11 + $0x1a0] sm:$0xff]  ;;  %v8347_v24 = vunpack.c.l.bf16 %v13049_v18 }
 0x525   : > { %v21023_v63 = vmax.f32 %v8010_v35, %v21017_v59  ;;  %v21082_v10 = vmax.f32 %v8315_v5, %v8316_v15  ;;  %v8648_v35 = vunpack.c.l.bf16 %v13062_v43  ;;  %v8034_v59 = vunpack.c.l.bf16 %v13030_v29  ;;  %v13043_v43 = vld [vmem:[%s22540_s11 + $0xd0] sm:$0xff] }
 0x526   : > { %13023 = vmatmul.mubr.msk.f32.vlgmr.msra.gmra.mxu0 %vm7744_vm2, %v21015_v6  ;;  %v8642_v21 = vunpack.c.l.bf16 %v13059_v1  ;;  %v8348_v5 = vunpack.c.h.bf16 %v13049_v18  ;;  %v8341_v29 = vunpack.c.l.bf16 %v13046_v56 }
 0x527   : > { %7844 = vmatpush1.msra.mxu0 %v7740_v60  ;;  %13038 = vmatmul.mubr.msk.f32.vlgmr.msra.gmra.mxu1 %vm7744_vm2, %v21023_v63  ;;  %v13027_v60 = vld [vmem:[%s22540_s11 + $0x68] sm:$0xff] }
 0x528   : > { %8220 = vmatpush1.msra.mxu1 %v8048_v57  ;;  %7845 = vmatprep.subr.mxu0 %v7735_v52  ;;  %v13056_v57 = vld [vmem:[%s22540_s11 + $0x120] sm:$0xff]  ;;  %v8619_v52 = vld [vmem:[#allocation5 + $0x7] sm:$0x1] }
 0x529   : > { %8221 = vmatprep.subr.mxu1 %v8043_v3  ;;  %7846 = vmatpush1.msra.mxu0 %v7734_v48  ;;  %v8029_v48 = vunpack.c.h.bf16 %v13027_v60  ;;  %v8028_v3 = vunpack.c.l.bf16 %v13027_v60  ;;  %v8637_v9 = vunpack.c.h.bf16 %v13056_v57  ;;  %v8620_v20 = vmax.f32 %v8316_v15, %v8619_v52 }
 0x52a   : > { %8222 = vmatpush1.msra.mxu1 %v8042_v12  ;;  %7847 = vmatprep.subr.mxu0 %v7729_v62  ;;  %v13050_v12 = vld [vmem:[%s22540_s11 + $0x108] sm:$0xff]  ;;  %v8636_v62 = vunpack.c.l.bf16 %v13056_v57  ;;  %v8342_v15 = vunpack.c.h.bf16 %v13046_v56  ;;  %v13071_v56 = vld [vmem:[%s22540_s11 + $0x180] sm:$0xff] }
 0x52b   : > { %8223 = vmatprep.subr.mxu1 %v8037_v34  ;;  %7848 = vmatpush1.msra.mxu0 %v7728_v22  ;;  %v13067_v22 = vld [vmem:[%s22540_s11 + $0x178] sm:$0xff]  ;;  %v13047_v34 = vld [vmem:[%s22540_s11 + $0xf0] sm:$0xff] }
 0x52c   : > { %8224 = vmatpush1.msra.mxu1 %v8036_v28  ;;  %7849 = vmatprep.subr.mxu0 %v7723_v42  ;;  %v8350_v28 = vunpack.c.h.bf16 %v13050_v12  ;;  %v13064_v42 = vld [vmem:[%s22540_s11 + $0x160] sm:$0xff]  ;;  %v8659_v16 = vunpack.c.h.bf16 %v13067_v22  ;;  %v8658_v51 = vunpack.c.l.bf16 %v13067_v22 }
 0x52d   : > { %8225 = vmatprep.subr.mxu1 %v8031_v13  ;;  %7850 = vmatpush1.msra.mxu0 %v7722_v19  ;;  %v8349_v19 = vunpack.c.l.bf16 %v13050_v12  ;;  %v21110_v13 = vld [vmem:[#allocation5 + $0x8] sm:$0x1]  ;;  %v13060_v12 = vld [vmem:[%s22540_s11 + $0x140] sm:$0xff] }
 0x52e   : > { %7883 = vmatprep.mubr.f32.mxu0 %v20949_v47  ;;  %8226 = vmatpush1.msra.mxu1 %v8030_v36  ;;  %v13044_v36 = vld [vmem:[%s22540_s11 + $0xd8] sm:$0xff]  ;;  %v21117_v53 = vmax.f32 %v8620_v20, %v21110_v13 }
 0x52f   : > { %8259 = vmatprep.mubr.f32.mxu1 %v20949_v47  ;;  %13024 = vmatmul.mubr.msk.f32.vlgmr.msra.gmra.mxu0 %vm7744_vm2, %v21015_v6 }
 0x530   : > { %7914 = vmatprep.subr.mxu0 %v7743_v31  ;;  %13040 = vmatmul.mubr.msk.f32.vlgmr.msra.gmra.mxu1 %vm7744_vm2, %v21023_v63  ;;  %v8344_v31 = vunpack.c.h.bf16 %v13047_v34 }
 0x531   : > { %8453 = vmatprep.subr.mxu1 %v8352_v7  ;;  %7915 = vmatpush1.msra.mxu0 %v7742_v0  ;;  %v8343_v0 = vunpack.c.l.bf16 %v13047_v34  ;;  %v8653_v7 = vunpack.c.h.bf16 %v13064_v42  ;;  %v13089_v34 = vld [vmem:[%s22540_s11 + $0x1f8] sm:$0xff] }
 0x532   : > { %8454 = vmatpush1.msra.mxu1 %v8351_v55  ;;  %7916 = vmatprep.subr.mxu0 %v7737_v49  ;;  %v8652_v55 = vunpack.c.l.bf16 %v13064_v42  ;;  %v8338_v49 = vunpack.c.h.bf16 %v13044_v36 }
 0x533   : > { %8455 = vmatprep.subr.mxu1 %v8346_v46  ;;  %7917 = vmatpush1.msra.mxu0 %v7736_v45  ;;  %v8337_v45 = vunpack.c.l.bf16 %v13044_v36  ;;  %v8646_v46 = vunpack.c.l.bf16 %v13061_v61  ;;  %v13086_v36 = vld [vmem:[%s22540_s11 + $0x1e0] sm:$0xff] }
 0x534   : > { %8456 = vmatpush1.msra.mxu1 %v8345_v50  ;;  %7918 = vmatprep.subr.mxu0 %v7731_v27  ;;  %v8331_v50 = vunpack.c.l.bf16 %v13041_v14  ;;  %v8641_v27 = vunpack.c.h.bf16 %v13058_v38  ;;  %v9247_v14 = vunpack.c.h.bf16 %v13086_v36 }
 0x535   : > { %8457 = vmatprep.subr.mxu1 %v8340_v11  ;;  %7919 = vmatpush1.msra.mxu0 %v7730_v37  ;;  %v8640_v37 = vunpack.c.l.bf16 %v13058_v38  ;;  %v13081_v11 = vld [vmem:[%s22540_s11 + $0x1d0] sm:$0xff] }
 0x536   : > { %8458 = vmatpush1.msra.mxu1 %v8339_v25  ;;  %7920 = vmatprep.subr.mxu0 %v7725_v54  ;;  %v8354_v25 = vunpack.c.h.bf16 %v13052_v8  ;;  %v13078_v54 = vld [vmem:[%s22540_s11 + $0x1b8] sm:$0xff] }
 0x537   : > { %8459 = vmatprep.subr.mxu1 %v8334_v32  ;;  %7921 = vmatpush1.msra.mxu0 %v7724_v58  ;;  %v8353_v58 = vunpack.c.l.bf16 %v13052_v8  ;;  %v8962_v32 = vunpack.c.h.bf16 %v13081_v11 }
 0x538   : > { %7954 = vmatprep.mubr.f32.mxu0 %v20949_v47  ;;  %8460 = vmatpush1.msra.mxu1 %v8333_v26  ;;  %v8961_v26 = vunpack.c.l.bf16 %v13081_v11 }
 0x539   : > { %8493 = vmatprep.mubr.f32.mxu1 %v20949_v47  ;;  %13025 = vmatmul.mubr.msk.f32.vlgmr.msra.gmra.mxu0 %vm7744_vm2, %v21015_v6  ;;  %v8643_v6 = vunpack.c.h.bf16 %v13059_v1  ;;  %v8949_v1 = vunpack.c.l.bf16 %v13075_v17 }
 0x53a   : > { %8148 = vmatprep.subr.mxu0 %v8047_v39  ;;  %13054 = vmatmul.mubr.msk.f32.vlgmr.msra.gmra.mxu1 %vm7744_vm2, %v21082_v10  ;;  %v8956_v39 = vunpack.c.h.bf16 %v13078_v54 }
 0x53b   : > { %8687 = vmatprep.subr.mxu1 %v8655_v40  ;;  %8149 = vmatpush1.msra.mxu0 %v8046_v44  ;;  %v8955_v44 = vunpack.c.l.bf16 %v13078_v54  ;;  %v13072_v40 = vld [vmem:[%s22540_s11 + $0x188] sm:$0xff] }
 0x53c   : > { %8688 = vmatpush1.msra.mxu1 %v8654_v23  ;;  %8150 = vmatprep.subr.mxu0 %v8041_v4  ;;  %v8950_v23 = vunpack.c.h.bf16 %v13075_v17  ;;  %v8924_v4 = vld [vmem:[#allocation5 + $0x9] sm:$0x1]  ;;  %v8944_v60 = vunpack.c.h.bf16 %v13072_v40  ;;  %v13091_v54 = vld [vmem:[%s22540_s11 + $0x208] sm:$0xff] }
 0x53d   : > { %8689 = vmatprep.subr.mxu1 %v8649_v41  ;;  %8151 = vmatpush1.msra.mxu0 %v8040_v33  ;;  %v8336_v33 = vunpack.c.h.bf16 %v13043_v43  ;;  %v8335_v41 = vunpack.c.l.bf16 %v13043_v43  ;;  %v8925_v57 = vmax.f32 %v21110_v13, %v8924_v4  ;;  %v13088_v17 = vld [vmem:[%s22540_s11 + $0x1f0] sm:$0xff]  ;;  %v8942_v43 = vunpack.c.h.bf16 %v13071_v56  ;;  %v13079_v4 = vld [vmem:[%s22540_s11 + $0x1c0] sm:$0xff] }
 0x53e   : > { %8690 = vmatpush1.msra.mxu1 %v8648_v35  ;;  %8152 = vmatprep.subr.mxu0 %v8035_v2  ;;  %v13066_v35 = vld [vmem:[%s22540_s11 + $0x170] sm:$0xff]  ;;  %v8943_v2 = vunpack.c.l.bf16 %v13072_v40  ;;  %v13082_v40 = vld [vmem:[%s22540_s11 + $0x1d8] sm:$0xff] }
 0x53f   : > { %8691 = vmatprep.subr.mxu1 %v8643_v6  ;;  %8153 = vmatpush1.msra.mxu0 %v8034_v59  ;;  %v13095_v59 = vld [vmem:[%s22540_s11 + $0x228] sm:$0xff]  ;;  %v13063_v6 = vld [vmem:[%s22540_s11 + $0x158] sm:$0xff]  ;;  %v8657_v52 = vunpack.c.h.bf16 %v13066_v35 }
 0x540   : > { %8692 = vmatpush1.msra.mxu1 %v8642_v21  ;;  %8154 = vmatprep.subr.mxu0 %v8029_v48  ;;  %v13092_v21 = vld [vmem:[%s22540_s11 + $0x210] sm:$0xff]  ;;  %v8656_v48 = vunpack.c.l.bf16 %v13066_v35  ;;  %v9264_v20 = vunpack.c.l.bf16 %v13095_v59  ;;  %v8651_v22 = vunpack.c.h.bf16 %v13063_v6  ;;  %v13076_v35 = vld [vmem:[%s22540_s11 + $0x1a8] sm:$0xff] }
 0x541   : > { %8693 = vmatprep.subr.mxu1 %v8637_v9  ;;  %8155 = vmatpush1.msra.mxu0 %v8028_v3  ;;  %v8926_v3 = vld [vmem:[#allocation5 + $0xa] sm:$0x1]  ;;  %v9265_v9 = vunpack.c.h.bf16 %v13095_v59  ;;  %v9259_v42 = vunpack.c.h.bf16 %v13092_v21  ;;  %v9258_v13 = vunpack.c.l.bf16 %v13092_v21  ;;  %v13105_v59 = vld [vmem:[%s22540_s11 + $0x260] sm:$0xff] }
 0x542   : > { %8188 = vmatprep.mubr.f32.mxu0 %v20949_v47  ;;  %8694 = vmatpush1.msra.mxu1 %v8636_v62  ;;  %v21180_v62 = vmax.f32 %v8925_v57, %v8926_v3  ;;  %v8958_v57 = vunpack.c.h.bf16 %v13079_v4  ;;  %v13073_v21 = vld [vmem:[%s22540_s11 + $0x190] sm:$0xff] }
 0x543   : > { %8727 = vmatprep.mubr.f32.mxu1 %v20949_v47  ;;  %13039 = vmatmul.mubr.msk.f32.vlgmr.msra.gmra.mxu0 %vm7744_vm2, %v21023_v63  ;;  %v8647_v63 = vunpack.c.h.bf16 %v13061_v61  ;;  %v9252_v61 = vunpack.c.l.bf16 %v13089_v34 }
 0x544   : > { %8382 = vmatprep.subr.mxu0 %v8350_v28  ;;  %13068 = vmatmul.mubr.msk.f32.vlgmr.msra.gmra.mxu1 %vm7744_vm2, %v21117_v53  ;;  %v8650_v28 = vunpack.c.l.bf16 %v13063_v6  ;;  %v8957_v6 = vunpack.c.l.bf16 %v13079_v4 }
 0x545   : > { %8829 = vmatprep.subr.mxu1 %v8659_v16  ;;  %8383 = vmatpush1.msra.mxu0 %v8349_v19  ;;  %v13057_v19 = vld [vmem:[%s22540_s11 + $0x128] sm:$0xff]  ;;  %v8645_v16 = vunpack.c.h.bf16 %v13060_v12 }
 0x546   : > { %8830 = vmatpush1.msra.mxu1 %v8658_v51  ;;  %8384 = vmatprep.subr.mxu0 %v8344_v31  ;;  %v8644_v51 = vunpack.c.l.bf16 %v13060_v12  ;;  %v9229_v31 = vld [vmem:[#allocation5 + $0xb] sm:$0x1]  ;;  %v8951_v12 = vunpack.c.l.bf16 %v13076_v35 }
 0x547   : > { %8831 = vmatprep.subr.mxu1 %v8653_v7  ;;  %8385 = vmatpush1.msra.mxu0 %v8343_v0  ;;  %v8639_v0 = vunpack.c.h.bf16 %v13057_v19  ;;  %v8638_v7 = vunpack.c.l.bf16 %v13057_v19  ;;  %v9230_v38 = vmax.f32 %v8926_v3, %v9229_v31  ;;  %v8952_v3 = vunpack.c.h.bf16 %v13076_v35  ;;  %v13101_v35 = vld [vmem:[%s22540_s11 + $0x240] sm:$0xff] }
 0x548   : > { %8832 = vmatpush1.msra.mxu1 %v8652_v55  ;;  %8386 = vmatprep.subr.mxu0 %v8338_v49  ;;  %v13080_v55 = vld [vmem:[%s22540_s11 + $0x1c8] sm:$0xff]  ;;  %v9246_v49 = vunpack.c.l.bf16 %v13086_v36 }
 0x549   : > { %8833 = vmatprep.subr.mxu1 %v8647_v63  ;;  %8387 = vmatpush1.msra.mxu0 %v8337_v45  ;;  %v13097_v45 = vld [vmem:[%s22540_s11 + $0x238] sm:$0xff]  ;;  %v13077_v63 = vld [vmem:[%s22540_s11 + $0x1b0] sm:$0xff] }
 0x54a   : > { %8834 = vmatpush1.msra.mxu1 %v8646_v46  ;;  %8388 = vmatprep.subr.mxu0 %v8332_v30  ;;  %v8960_v46 = vunpack.c.h.bf16 %v13080_v55  ;;  %v13094_v30 = vld [vmem:[%s22540_s11 + $0x220] sm:$0xff]  ;;  %v9269_v8 = vunpack.c.h.bf16 %v13097_v45  ;;  %v9268_v18 = vunpack.c.l.bf16 %v13097_v45 }
 0x54b   : > { %8835 = vmatprep.subr.mxu1 %v8641_v27  ;;  %8389 = vmatpush1.msra.mxu0 %v8331_v50  ;;  %v8959_v50 = vunpack.c.l.bf16 %v13080_v55  ;;  %v21208_v27 = vld [vmem:[#allocation5 + $0xc] sm:$0x1]  ;;  %v13090_v55 = vld [vmem:[%s22540_s11 + $0x200] sm:$0xff] }
 0x54c   : > { %8422 = vmatprep.mubr.f32.mxu0 %v20949_v47  ;;  %8836 = vmatpush1.msra.mxu1 %v8640_v37  ;;  %v13074_v37 = vld [vmem:[%s22540_s11 + $0x198] sm:$0xff]  ;;  %v21215_v11 = vmax.f32 %v9230_v38, %v21208_v27 }
 0x54d   : > { %8869 = vmatprep.mubr.f32.mxu1 %v20949_v47  ;;  %13053 = vmatmul.mubr.msk.f32.vlgmr.msra.gmra.mxu0 %vm7744_vm2, %v21082_v10 }
 0x54e   : > { %8524 = vmatprep.subr.mxu0 %v8354_v25  ;;  %13070 = vmatmul.mubr.msk.f32.vlgmr.msra.gmra.mxu1 %vm7744_vm2, %v21117_v53  ;;  %v8954_v25 = vunpack.c.h.bf16 %v13077_v63 }
 0x54f   : > { %9063 = vmatprep.subr.mxu1 %v8962_v32  ;;  %8525 = vmatpush1.msra.mxu0 %v8353_v58  ;;  %v8953_v58 = vunpack.c.l.bf16 %v13077_v63  ;;  %v9263_v32 = vunpack.c.h.bf16 %v13094_v30  ;;  %v13119_v63 = vld [vmem:[%s22540_s11 + $0x2b8] sm:$0xff] }
 0x550   : > { %9064 = vmatpush1.msra.mxu1 %v8961_v26  ;;  %8526 = vmatprep.subr.mxu0 %v8348_v5  ;;  %v9262_v26 = vunpack.c.l.bf16 %v13094_v30  ;;  %v8948_v5 = vunpack.c.h.bf16 %v13074_v37 }
 0x551   : > { %9065 = vmatprep.subr.mxu1 %v8956_v39  ;;  %8527 = vmatpush1.msra.mxu0 %v8347_v24  ;;  %v8947_v24 = vunpack.c.l.bf16 %v13074_v37  ;;  %v9256_v39 = vunpack.c.l.bf16 %v13091_v54  ;;  %v13116_v37 = vld [vmem:[%s22540_s11 + $0x2a0] sm:$0xff] }
 0x552   : > { %9066 = vmatpush1.msra.mxu1 %v8955_v44  ;;  %8528 = vmatprep.subr.mxu0 %v8342_v15  ;;  %v8941_v44 = vunpack.c.l.bf16 %v13071_v56  ;;  %v9251_v15 = vunpack.c.h.bf16 %v13088_v17  ;;  %v13110_v56 = vld [vmem:[%s22540_s11 + $0x288] sm:$0xff] }
 0x553   : > { %9067 = vmatprep.subr.mxu1 %v8950_v23  ;;  %8529 = vmatpush1.msra.mxu0 %v8341_v29  ;;  %v9250_v29 = vunpack.c.l.bf16 %v13088_v17  ;;  %v13111_v23 = vld [vmem:[%s22540_s11 + $0x290] sm:$0xff]  ;;  %v13127_v17 = vld [vmem:[%s22540_s11 + $0x2f8] sm:$0xff] }
 0x554   : > { %9068 = vmatpush1.msra.mxu1 %v8949_v1  ;;  %8530 = vmatprep.subr.mxu0 %v8336_v33  ;;  %v8964_v1 = vunpack.c.h.bf16 %v13082_v40  ;;  %v13108_v33 = vld [vmem:[%s22540_s11 + $0x278] sm:$0xff]  ;;  %v9878_v4 = vunpack.c.l.bf16 %v13127_v17 }
 0x555   : > { %9069 = vmatprep.subr.mxu1 %v8944_v60  ;;  %8531 = vmatpush1.msra.mxu0 %v8335_v41  ;;  %v8963_v41 = vunpack.c.l.bf16 %v13082_v40  ;;  %v9572_v60 = vunpack.c.h.bf16 %v13111_v23  ;;  %v9879_v40 = vunpack.c.h.bf16 %v13127_v17 }
 0x556   : > { %8564 = vmatprep.mubr.f32.mxu0 %v20949_v47  ;;  %9070 = vmatpush1.msra.mxu1 %v8943_v2  ;;  %v9571_v2 = vunpack.c.l.bf16 %v13111_v23 }
 0x557   : > { %9103 = vmatprep.mubr.f32.mxu1 %v20949_v47  ;;  %13055 = vmatmul.mubr.msk.f32.vlgmr.msra.gmra.mxu0 %vm7744_vm2, %v21082_v10  ;;  %v9253_v10 = vunpack.c.h.bf16 %v13089_v34  ;;  %v9559_v34 = vunpack.c.l.bf16 %v13105_v59 }
 0x558   : > { %8758 = vmatprep.subr.mxu0 %v8657_v52  ;;  %13084 = vmatmul.mubr.msk.f32.vlgmr.msra.gmra.mxu1 %vm7744_vm2, %v21180_v62  ;;  %v9566_v52 = vunpack.c.h.bf16 %v13108_v33 }
 0x559   : > { %9297 = vmatprep.subr.mxu1 %v9265_v9  ;;  %8759 = vmatpush1.msra.mxu0 %v8656_v48  ;;  %v9565_v48 = vunpack.c.l.bf16 %v13108_v33  ;;  %v13102_v9 = vld [vmem:[%s22540_s11 + $0x248] sm:$0xff] }
 0x55a   : > { %9298 = vmatpush1.msra.mxu1 %v9264_v20  ;;  %8760 = vmatprep.subr.mxu0 %v8651_v22  ;;  %v9560_v20 = vunpack.c.h.bf16 %v13105_v59  ;;  %v9534_v22 = vld [vmem:[#allocation5 + $0xd] sm:$0x1]  ;;  %v9554_v19 = vunpack.c.h.bf16 %v13102_v9  ;;  %v13121_v33 = vld [vmem:[%s22540_s11 + $0x2c8] sm:$0xff] }
 0x55b   : > { %9299 = vmatprep.subr.mxu1 %v9259_v42  ;;  %8761 = vmatpush1.msra.mxu0 %v8650_v28  ;;  %v8946_v28 = vunpack.c.h.bf16 %v13073_v21  ;;  %v8945_v42 = vunpack.c.l.bf16 %v13073_v21  ;;  %v9535_v36 = vmax.f32 %v21208_v27, %v9534_v22  ;;  %v13118_v59 = vld [vmem:[%s22540_s11 + $0x2b0] sm:$0xff]  ;;  %v9552_v21 = vunpack.c.h.bf16 %v13101_v35  ;;  %v13109_v22 = vld [vmem:[%s22540_s11 + $0x280] sm:$0xff] }
 0x55c   : > { %9300 = vmatpush1.msra.mxu1 %v9258_v13  ;;  %8762 = vmatprep.subr.mxu0 %v8645_v16  ;;  %v13096_v13 = vld [vmem:[%s22540_s11 + $0x230] sm:$0xff]  ;;  %v9553_v16 = vunpack.c.l.bf16 %v13102_v9  ;;  %v13112_v9 = vld [vmem:[%s22540_s11 + $0x298] sm:$0xff] }
 0x55d   : > { %9301 = vmatprep.subr.mxu1 %v9253_v10  ;;  %8763 = vmatpush1.msra.mxu0 %v8644_v51  ;;  %v13125_v51 = vld [vmem:[%s22540_s11 + $0x2e8] sm:$0xff]  ;;  %v13093_v10 = vld [vmem:[%s22540_s11 + $0x218] sm:$0xff]  ;;  %v9267_v31 = vunpack.c.h.bf16 %v13096_v13 }
 0x55e   : > { %9302 = vmatpush1.msra.mxu1 %v9252_v61  ;;  %8764 = vmatprep.subr.mxu0 %v8639_v0  ;;  %v13122_v61 = vld [vmem:[%s22540_s11 + $0x2d0] sm:$0xff]  ;;  %v9266_v0 = vunpack.c.l.bf16 %v13096_v13  ;;  %v9874_v38 = vunpack.c.l.bf16 %v13125_v51  ;;  %v9261_v45 = vunpack.c.h.bf16 %v13093_v10  ;;  %v13106_v13 = vld [vmem:[%s22540_s11 + $0x268] sm:$0xff] }
 0x55f   : > { %9303 = vmatprep.subr.mxu1 %v9247_v14  ;;  %8765 = vmatpush1.msra.mxu0 %v8638_v7  ;;  %v9536_v7 = vld [vmem:[#allocation5 + $0xe] sm:$0x1]  ;;  %v9875_v14 = vunpack.c.h.bf16 %v13125_v51  ;;  %v9869_v30 = vunpack.c.h.bf16 %v13122_v61  ;;  %v9868_v27 = vunpack.c.l.bf16 %v13122_v61  ;;  %v13135_v51 = vld [vmem:[%s22540_s11 + $0x320] sm:$0xff] }
 0x560   : > { %8798 = vmatprep.mubr.f32.mxu0 %v20949_v47  ;;  %9304 = vmatpush1.msra.mxu1 %v9246_v49  ;;  %v21278_v49 = vmax.f32 %v9535_v36, %v9536_v7  ;;  %v9568_v36 = vunpack.c.h.bf16 %v13109_v22  ;;  %v13103_v61 = vld [vmem:[%s22540_s11 + $0x250] sm:$0xff] }
 0x561   : > { %9337 = vmatprep.mubr.f32.mxu1 %v20949_v47  ;;  %13069 = vmatmul.mubr.msk.f32.vlgmr.msra.gmra.mxu0 %vm7744_vm2, %v21117_v53  ;;  %v9257_v53 = vunpack.c.h.bf16 %v13091_v54 }
 0x562   : > { %8992 = vmatprep.subr.mxu0 %v8960_v46  ;;  %13098 = vmatmul.mubr.msk.f32.vlgmr.msra.gmra.mxu1 %vm7744_vm2, %v21215_v11  ;;  %v9260_v46 = vunpack.c.l.bf16 %v13093_v10  ;;  %v9567_v10 = vunpack.c.l.bf16 %v13109_v22 }
 0x563   : > { %9439 = vmatprep.subr.mxu1 %v9269_v8  ;;  %8993 = vmatpush1.msra.mxu0 %v8959_v50  ;;  %v13087_v50 = vld [vmem:[%s22540_s11 + $0x1e8] sm:$0xff]  ;;  %v9255_v8 = vunpack.c.h.bf16 %v13090_v55 }
 0x564   : > { %9440 = vmatpush1.msra.mxu1 %v9268_v18  ;;  %8994 = vmatprep.subr.mxu0 %v8954_v25  ;;  %v9254_v18 = vunpack.c.l.bf16 %v13090_v55  ;;  %v9862_v25 = vunpack.c.l.bf16 %v13119_v63  ;;  %v9249_v54 = vunpack.c.h.bf16 %v13087_v50  ;;  %v9561_v55 = vunpack.c.l.bf16 %v13106_v13 }
 0x565   : > { %9441 = vmatprep.subr.mxu1 %v9263_v32  ;;  %8995 = vmatpush1.msra.mxu0 %v8953_v58  ;;  %v9248_v58 = vunpack.c.l.bf16 %v13087_v50  ;;  %v9857_v32 = vunpack.c.h.bf16 %v13116_v37 }
 0x566   : > { %9442 = vmatpush1.msra.mxu1 %v9262_v26  ;;  %8996 = vmatprep.subr.mxu0 %v8948_v5  ;;  %v9839_v26 = vld [vmem:[#allocation5 + $0xf] sm:$0x1]  ;;  %v9856_v5 = vunpack.c.l.bf16 %v13116_v37 }
 0x567   : > { %9443 = vmatprep.subr.mxu1 %v9257_v53  ;;  %8997 = vmatpush1.msra.mxu0 %v8947_v24  ;;  %v21300_v24 = vld [vmem:[#allocation5 + $0x10] sm:$0x1]  ;;  %v13107_v53 = vld [vmem:[%s22540_s11 + $0x270] sm:$0xff] }
 0x568   : > { %9444 = vmatpush1.msra.mxu1 %v9256_v39  ;;  %8998 = vmatprep.subr.mxu0 %v8942_v43  ;;  %v9570_v39 = vunpack.c.h.bf16 %v13110_v56  ;;  %v9840_v43 = vmax.f32 %v9536_v7, %v9839_v26  ;;  %v9562_v7 = vunpack.c.h.bf16 %v13106_v13  ;;  %v13120_v26 = vld [vmem:[%s22540_s11 + $0x2c0] sm:$0xff] }
 0x569   : > { %9445 = vmatprep.subr.mxu1 %v9251_v15  ;;  %8999 = vmatpush1.msra.mxu0 %v8941_v44  ;;  %v13124_v44 = vld [vmem:[%s22540_s11 + $0x2e0] sm:$0xff]  ;;  %v9569_v15 = vunpack.c.l.bf16 %v13110_v56 }
 0x56a   : > { %9032 = vmatprep.mubr.f32.mxu0 %v20949_v47  ;;  %9446 = vmatpush1.msra.mxu1 %v9250_v29  ;;  %v13104_v29 = vld [vmem:[%s22540_s11 + $0x258] sm:$0xff]  ;;  %v21313_v23 = vmax.f32 %v9840_v43, %v21300_v24  ;;  %v13131_v13 = vld [vmem:[%s22540_s11 + $0x300] sm:$0xff] }
 0x56b   : > { %9479 = vmatprep.mubr.f32.mxu1 %v20949_v47  ;;  %13083 = vmatmul.mubr.msk.f32.vlgmr.msra.gmra.mxu0 %vm7744_vm2, %v21180_v62 }
 0x56c   : > { %9134 = vmatprep.subr.mxu0 %v8964_v1  ;;  %13100 = vmatmul.mubr.msk.f32.vlgmr.msra.gmra.mxu1 %vm7744_vm2, %v21215_v11  ;;  %v9564_v1 = vunpack.c.h.bf16 %v13107_v53 }
 0x56d   : > { %9673 = vmatprep.subr.mxu1 %v9572_v60  ;;  %9135 = vmatpush1.msra.mxu0 %v8963_v41  ;;  %v9563_v41 = vunpack.c.l.bf16 %v13107_v53  ;;  %v9873_v60 = vunpack.c.h.bf16 %v13124_v44  ;;  %v13149_v53 = vld [vmem:[%s22540_s11 + $0x378] sm:$0xff] }
 0x56e   : > { %9674 = vmatpush1.msra.mxu1 %v9571_v2  ;;  %9136 = vmatprep.subr.mxu0 %v8958_v57  ;;  %v9872_v2 = vunpack.c.l.bf16 %v13124_v44  ;;  %v9558_v57 = vunpack.c.h.bf16 %v13104_v29  ;;  %v13117_v44 = vld [vmem:[%s22540_s11 + $0x2a8] sm:$0xff] }
 0x56f   : > { %9675 = vmatprep.subr.mxu1 %v9566_v52  ;;  %9137 = vmatpush1.msra.mxu0 %v8957_v6  ;;  %v9557_v6 = vunpack.c.l.bf16 %v13104_v29  ;;  %v9866_v52 = vunpack.c.l.bf16 %v13121_v33  ;;  %v13146_v29 = vld [vmem:[%s22540_s11 + $0x360] sm:$0xff] }
 0x570   : > { %9676 = vmatpush1.msra.mxu1 %v9565_v48  ;;  %9138 = vmatprep.subr.mxu0 %v8952_v3  ;;  %v9551_v48 = vunpack.c.l.bf16 %v13101_v35  ;;  %v9861_v3 = vunpack.c.h.bf16 %v13118_v59  ;;  %v10467_v35 = vunpack.c.h.bf16 %v13146_v29 }
 0x571   : > { %9677 = vmatprep.subr.mxu1 %v9560_v20  ;;  %9139 = vmatpush1.msra.mxu0 %v8951_v12  ;;  %v9860_v12 = vunpack.c.l.bf16 %v13118_v59  ;;  %v13141_v20 = vld [vmem:[%s22540_s11 + $0x350] sm:$0xff] }
 0x572   : > { %9678 = vmatpush1.msra.mxu1 %v9559_v34  ;;  %9140 = vmatprep.subr.mxu0 %v8946_v28  ;;  %v9574_v34 = vunpack.c.h.bf16 %v13112_v9  ;;  %v13138_v28 = vld [vmem:[%s22540_s11 + $0x338] sm:$0xff] }
 0x573   : > { %9679 = vmatprep.subr.mxu1 %v9554_v19  ;;  %9141 = vmatpush1.msra.mxu0 %v8945_v42  ;;  %v9573_v42 = vunpack.c.l.bf16 %v13112_v9  ;;  %v10182_v19 = vunpack.c.h.bf16 %v13141_v20 }
 0x574   : > { %9174 = vmatprep.mubr.f32.mxu0 %v20949_v47  ;;  %9680 = vmatpush1.msra.mxu1 %v9553_v16  ;;  %v10181_v16 = vunpack.c.l.bf16 %v13141_v20 }
 0x575   : > { %9713 = vmatprep.mubr.f32.mxu1 %v20949_v47  ;;  %13085 = vmatmul.mubr.msk.f32.vlgmr.msra.gmra.mxu0 %vm7744_vm2, %v21180_v62  ;;  %v9863_v62 = vunpack.c.h.bf16 %v13119_v63  ;;  %v10169_v63 = vunpack.c.l.bf16 %v13135_v51 }
 0x576   : > { %9368 = vmatprep.subr.mxu0 %v9267_v31  ;;  %13114 = vmatmul.mubr.msk.f32.vlgmr.msra.gmra.mxu1 %vm7744_vm2, %v21278_v49  ;;  %v10176_v31 = vunpack.c.h.bf16 %v13138_v28 }
 0x577   : > { %9907 = vmatprep.subr.mxu1 %v9875_v14  ;;  %9369 = vmatpush1.msra.mxu0 %v9266_v0  ;;  %v10175_v0 = vunpack.c.l.bf16 %v13138_v28  ;;  %v13132_v14 = vld [vmem:[%s22540_s11 + $0x308] sm:$0xff] }
 0x578   : > { %9908 = vmatpush1.msra.mxu1 %v9874_v38  ;;  %9370 = vmatprep.subr.mxu0 %v9261_v45  ;;  %v10170_v38 = vunpack.c.h.bf16 %v13135_v51  ;;  %v10144_v45 = vld [vmem:[#allocation5 + $0x11] sm:$0x1]  ;;  %v10164_v50 = vunpack.c.h.bf16 %v13132_v14  ;;  %v13151_v28 = vld [vmem:[%s22540_s11 + $0x388] sm:$0xff]  ;;  %v13148_v51 = vld [vmem:[%s22540_s11 + $0x370] sm:$0xff] }
 0x579   : > { %9909 = vmatprep.subr.mxu1 %v9869_v30  ;;  %9371 = vmatpush1.msra.mxu0 %v9260_v46  ;;  %v9556_v46 = vunpack.c.h.bf16 %v13103_v61  ;;  %v9555_v30 = vunpack.c.l.bf16 %v13103_v61  ;;  %v10145_v37 = vmax.f32 %v21300_v24, %v10144_v45  ;;  %v10162_v61 = vunpack.c.h.bf16 %v13131_v13  ;;  %v13139_v45 = vld [vmem:[%s22540_s11 + $0x340] sm:$0xff] }
 0x57a   : > { %9910 = vmatpush1.msra.mxu1 %v9868_v27  ;;  %9372 = vmatprep.subr.mxu0 %v9255_v8  ;;  %v13126_v27 = vld [vmem:[%s22540_s11 + $0x2f0] sm:$0xff]  ;;  %v10163_v8 = vunpack.c.l.bf16 %v13132_v14  ;;  %v13142_v14 = vld [vmem:[%s22540_s11 + $0x358] sm:$0xff] }
 0x57b   : > { %9911 = vmatprep.subr.mxu1 %v9863_v62  ;;  %9373 = vmatpush1.msra.mxu0 %v9254_v18  ;;  %v13155_v18 = vld [vmem:[%s22540_s11 + $0x3a8] sm:$0xff]  ;;  %v13123_v62 = vld [vmem:[%s22540_s11 + $0x2d8] sm:$0xff] }
 0x57c   : > { %9912 = vmatpush1.msra.mxu1 %v9862_v25  ;;  %9374 = vmatprep.subr.mxu0 %v9249_v54  ;;  %v9877_v25 = vunpack.c.h.bf16 %v13126_v27  ;;  %v13152_v54 = vld [vmem:[%s22540_s11 + $0x390] sm:$0xff]  ;;  %v10485_v56 = vunpack.c.h.bf16 %v13155_v18  ;;  %v10484_v17 = vunpack.c.l.bf16 %v13155_v18  ;;  %v9871_v24 = vunpack.c.h.bf16 %v13123_v62  ;;  %v13165_v18 = vld [vmem:[%s22540_s11 + $0x3e0] sm:$0xff] }
 0x57d   : > { %9913 = vmatprep.subr.mxu1 %v9857_v32  ;;  %9375 = vmatpush1.msra.mxu0 %v9248_v58  ;;  %v9876_v58 = vunpack.c.l.bf16 %v13126_v27  ;;  %v10146_v32 = vld [vmem:[#allocation5 + $0x12] sm:$0x1]  ;;  %v10479_v43 = vunpack.c.h.bf16 %v13152_v54  ;;  %v13136_v27 = vld [vmem:[%s22540_s11 + $0x328] sm:$0xff] }
 0x57e   : > { %9408 = vmatprep.mubr.f32.mxu0 %v20949_v47  ;;  %9914 = vmatpush1.msra.mxu1 %v9856_v5  ;;  %v21376_v5 = vmax.f32 %v10145_v37, %v10146_v32  ;;  %v10178_v37 = vunpack.c.h.bf16 %v13139_v45 }
 0x57f   : > { %9947 = vmatprep.mubr.f32.mxu1 %v20949_v47  ;;  %13099 = vmatmul.mubr.msk.f32.vlgmr.msra.gmra.mxu0 %vm7744_vm2, %v21215_v11  ;;  %v9867_v11 = vunpack.c.h.bf16 %v13121_v33  ;;  %v10472_v33 = vunpack.c.l.bf16 %v13149_v53 }
 0x580   : > { %9602 = vmatprep.subr.mxu0 %v9570_v39  ;;  %13128 = vmatmul.mubr.msk.f32.vlgmr.msra.gmra.mxu1 %vm7744_vm2, %v21313_v23  ;;  %v9870_v39 = vunpack.c.l.bf16 %v13123_v62  ;;  %v10177_v62 = vunpack.c.l.bf16 %v13139_v45 }
 0x581   : > { %10049 = vmatprep.subr.mxu1 %v9879_v40  ;;  %9603 = vmatpush1.msra.mxu0 %v9569_v15  ;;  %v10478_v15 = vunpack.c.l.bf16 %v13152_v54  ;;  %v9865_v40 = vunpack.c.h.bf16 %v13120_v26  ;;  %v13133_v54 = vld [vmem:[%s22540_s11 + $0x310] sm:$0xff] }
 0x582   : > { %10050 = vmatpush1.msra.mxu1 %v9878_v4  ;;  %9604 = vmatprep.subr.mxu0 %v9564_v1  ;;  %v9864_v4 = vunpack.c.l.bf16 %v13120_v26  ;;  %v10449_v1 = vld [vmem:[#allocation5 + $0x13] sm:$0x1]  ;;  %v10171_v26 = vunpack.c.l.bf16 %v13136_v27 }
 0x583   : > { %10051 = vmatprep.subr.mxu1 %v9873_v60  ;;  %9605 = vmatpush1.msra.mxu0 %v9563_v41  ;;  %v9859_v41 = vunpack.c.h.bf16 %v13117_v44  ;;  %v9858_v60 = vunpack.c.l.bf16 %v13117_v44  ;;  %v10450_v59 = vmax.f32 %v10146_v32, %v10449_v1  ;;  %v10172_v32 = vunpack.c.h.bf16 %v13136_v27  ;;  %v13161_v27 = vld [vmem:[%s22540_s11 + $0x3c0] sm:$0xff] }
 0x584   : > { %10052 = vmatpush1.msra.mxu1 %v9872_v2  ;;  %9606 = vmatprep.subr.mxu0 %v9558_v57  ;;  %v13140_v2 = vld [vmem:[%s22540_s11 + $0x348] sm:$0xff]  ;;  %v10466_v57 = vunpack.c.l.bf16 %v13146_v29 }
 0x585   : > { %10053 = vmatprep.subr.mxu1 %v9867_v11  ;;  %9607 = vmatpush1.msra.mxu0 %v9557_v6  ;;  %v13157_v6 = vld [vmem:[%s22540_s11 + $0x3b8] sm:$0xff]  ;;  %v13137_v11 = vld [vmem:[%s22540_s11 + $0x330] sm:$0xff] }
 0x586   : > { %10054 = vmatpush1.msra.mxu1 %v9866_v52  ;;  %9608 = vmatprep.subr.mxu0 %v9552_v21  ;;  %v10180_v52 = vunpack.c.h.bf16 %v13140_v2  ;;  %v13154_v21 = vld [vmem:[%s22540_s11 + $0x3a0] sm:$0xff]  ;;  %v10489_v9 = vunpack.c.h.bf16 %v13157_v6  ;;  %v10488_v22 = vunpack.c.l.bf16 %v13157_v6 }
 0x587   : > { %10055 = vmatprep.subr.mxu1 %v9861_v3  ;;  %9609 = vmatpush1.msra.mxu0 %v9551_v48  ;;  %v10179_v48 = vunpack.c.l.bf16 %v13140_v2  ;;  %v21404_v3 = vld [vmem:[#allocation5 + $0x14] sm:$0x1]  ;;  %v13150_v2 = vld [vmem:[%s22540_s11 + $0x380] sm:$0xff] }
 0x588   : > { %9642 = vmatprep.mubr.f32.mxu0 %v20949_v47  ;;  %10056 = vmatpush1.msra.mxu1 %v9860_v12  ;;  %v13134_v12 = vld [vmem:[%s22540_s11 + $0x318] sm:$0xff]  ;;  %v21411_v20 = vmax.f32 %v10450_v59, %v21404_v3 }
 0x589   : > { %10089 = vmatprep.mubr.f32.mxu1 %v20949_v47  ;;  %13113 = vmatmul.mubr.msk.f32.vlgmr.msra.gmra.mxu0 %vm7744_vm2, %v21278_v49 }
 0x58a   : > { %9744 = vmatprep.subr.mxu0 %v9574_v34  ;;  %13130 = vmatmul.mubr.msk.f32.vlgmr.msra.gmra.mxu1 %vm7744_vm2, %v21313_v23  ;;  %v10174_v34 = vunpack.c.h.bf16 %v13137_v11 }
 0x58b   : > { %10283 = vmatprep.subr.mxu1 %v10182_v19  ;;  %9745 = vmatpush1.msra.mxu0 %v9573_v42  ;;  %v10173_v42 = vunpack.c.l.bf16 %v13137_v11  ;;  %v10483_v19 = vunpack.c.h.bf16 %v13154_v21  ;;  %v13179_v11 = vld [vmem:[%s22540_s11 + $0x438] sm:$0xff] }
 0x58c   : > { %10284 = vmatpush1.msra.mxu1 %v10181_v16  ;;  %9746 = vmatprep.subr.mxu0 %v9568_v36  ;;  %v10482_v16 = vunpack.c.l.bf16 %v13154_v21  ;;  %v10168_v36 = vunpack.c.h.bf16 %v13134_v12 }
 0x58d   : > { %10285 = vmatprep.subr.mxu1 %v10176_v31  ;;  %9747 = vmatpush1.msra.mxu0 %v9567_v10  ;;  %v10167_v10 = vunpack.c.l.bf16 %v13134_v12  ;;  %v10476_v31 = vunpack.c.l.bf16 %v13151_v28  ;;  %v13176_v12 = vld [vmem:[%s22540_s11 + $0x420] sm:$0xff] }
 0x58e   : > { %10286 = vmatpush1.msra.mxu1 %v10175_v0  ;;  %9748 = vmatprep.subr.mxu0 %v9562_v7  ;;  %v10161_v0 = vunpack.c.l.bf16 %v13131_v13  ;;  %v10471_v7 = vunpack.c.h.bf16 %v13148_v51  ;;  %v11077_v13 = vunpack.c.h.bf16 %v13176_v12 }
 0x58f   : > { %10287 = vmatprep.subr.mxu1 %v10170_v38  ;;  %9749 = vmatpush1.msra.mxu0 %v9561_v55  ;;  %v10470_v55 = vunpack.c.l.bf16 %v13148_v51  ;;  %v13171_v38 = vld [vmem:[%s22540_s11 + $0x410] sm:$0xff] }
 0x590   : > { %10288 = vmatpush1.msra.mxu1 %v10169_v63  ;;  %9750 = vmatprep.subr.mxu0 %v9556_v46  ;;  %v10184_v63 = vunpack.c.h.bf16 %v13142_v14  ;;  %v13168_v46 = vld [vmem:[%s22540_s11 + $0x3f8] sm:$0xff] }
 0x591   : > { %10289 = vmatprep.subr.mxu1 %v10164_v50  ;;  %9751 = vmatpush1.msra.mxu0 %v9555_v30  ;;  %v10183_v30 = vunpack.c.l.bf16 %v13142_v14  ;;  %v10792_v50 = vunpack.c.h.bf16 %v13171_v38 }
 0x592   : > { %9784 = vmatprep.mubr.f32.mxu0 %v20949_v47  ;;  %10290 = vmatpush1.msra.mxu1 %v10163_v8  ;;  %v10791_v8 = vunpack.c.l.bf16 %v13171_v38 }
 0x593   : > { %10323 = vmatprep.mubr.f32.mxu1 %v20949_v47  ;;  %13115 = vmatmul.mubr.msk.f32.vlgmr.msra.gmra.mxu0 %vm7744_vm2, %v21278_v49  ;;  %v10473_v49 = vunpack.c.h.bf16 %v13149_v53  ;;  %v10779_v53 = vunpack.c.l.bf16 %v13165_v18 }
 0x594   : > { %9978 = vmatprep.subr.mxu0 %v9877_v25  ;;  %13144 = vmatmul.mubr.msk.f32.vlgmr.msra.gmra.mxu1 %vm7744_vm2, %v21376_v5  ;;  %v10786_v25 = vunpack.c.h.bf16 %v13168_v46 }
 0x595   : > { %10517 = vmatprep.subr.mxu1 %v10485_v56  ;;  %9979 = vmatpush1.msra.mxu0 %v9876_v58  ;;  %v10785_v58 = vunpack.c.l.bf16 %v13168_v46  ;;  %v13162_v56 = vld [vmem:[%s22540_s11 + $0x3c8] sm:$0xff] }
 0x596   : > { %10518 = vmatpush1.msra.mxu1 %v10484_v17  ;;  %9980 = vmatprep.subr.mxu0 %v9871_v24  ;;  %v10780_v17 = vunpack.c.h.bf16 %v13165_v18  ;;  %v10754_v24 = vld [vmem:[#allocation5 + $0x15] sm:$0x1]  ;;  %v10774_v44 = vunpack.c.h.bf16 %v13162_v56  ;;  %v13181_v46 = vld [vmem:[%s22540_s11 + $0x448] sm:$0xff]  ;;  %v13178_v18 = vld [vmem:[%s22540_s11 + $0x430] sm:$0xff] }
 0x597   : > { %10519 = vmatprep.subr.mxu1 %v10479_v43  ;;  %9981 = vmatpush1.msra.mxu0 %v9870_v39  ;;  %v10166_v39 = vunpack.c.h.bf16 %v13133_v54  ;;  %v10165_v43 = vunpack.c.l.bf16 %v13133_v54  ;;  %v10755_v29 = vmax.f32 %v21404_v3, %v10754_v24  ;;  %v10772_v54 = vunpack.c.h.bf16 %v13161_v27  ;;  %v13169_v24 = vld [vmem:[%s22540_s11 + $0x400] sm:$0xff] }
 0x598   : > { %10520 = vmatpush1.msra.mxu1 %v10478_v15  ;;  %9982 = vmatprep.subr.mxu0 %v9865_v40  ;;  %v13156_v15 = vld [vmem:[%s22540_s11 + $0x3b0] sm:$0xff]  ;;  %v10773_v40 = vunpack.c.l.bf16 %v13162_v56  ;;  %v13172_v56 = vld [vmem:[%s22540_s11 + $0x418] sm:$0xff] }
 0x599   : > { %10521 = vmatprep.subr.mxu1 %v10473_v49  ;;  %9983 = vmatpush1.msra.mxu0 %v9864_v4  ;;  %v13185_v4 = vld [vmem:[%s22540_s11 + $0x468] sm:$0xff]  ;;  %v13153_v49 = vld [vmem:[%s22540_s11 + $0x398] sm:$0xff]  ;;  %v10487_v1 = vunpack.c.h.bf16 %v13156_v15 }
 0x59a   : > { %10522 = vmatpush1.msra.mxu1 %v10472_v33  ;;  %9984 = vmatprep.subr.mxu0 %v9859_v41  ;;  %v13182_v33 = vld [vmem:[%s22540_s11 + $0x450] sm:$0xff]  ;;  %v10486_v41 = vunpack.c.l.bf16 %v13156_v15  ;;  %v11094_v59 = vunpack.c.l.bf16 %v13185_v4  ;;  %v10481_v6 = vunpack.c.h.bf16 %v13153_v49  ;;  %v13166_v15 = vld [vmem:[%s22540_s11 + $0x3e8] sm:$0xff] }
 0x59b   : > { %10523 = vmatprep.subr.mxu1 %v10467_v35  ;;  %9985 = vmatpush1.msra.mxu0 %v9858_v60  ;;  %v10756_v60 = vld [vmem:[#allocation5 + $0x16] sm:$0x1]  ;;  %v11095_v35 = vunpack.c.h.bf16 %v13185_v4  ;;  %v11089_v21 = vunpack.c.h.bf16 %v13182_v33  ;;  %v11088_v3 = vunpack.c.l.bf16 %v13182_v33  ;;  %v13195_v4 = vld [vmem:[%s22540_s11 + $0x4a0] sm:$0xff]  ;;  %v13163_v33 = vld [vmem:[%s22540_s11 + $0x3d0] sm:$0xff] }
 0x59c   : > { %10018 = vmatprep.mubr.f32.mxu0 %v20949_v47  ;;  %10524 = vmatpush1.msra.mxu1 %v10466_v57  ;;  %v21474_v57 = vmax.f32 %v10755_v29, %v10756_v60  ;;  %v10788_v29 = vunpack.c.h.bf16 %v13169_v24 }
 0x59d   : > { %10557 = vmatprep.mubr.f32.mxu1 %v20949_v47  ;;  %13129 = vmatmul.mubr.msk.f32.vlgmr.msra.gmra.mxu0 %vm7744_vm2, %v21313_v23  ;;  %v10477_v23 = vunpack.c.h.bf16 %v13151_v28  ;;  %v11082_v28 = vunpack.c.l.bf16 %v13179_v11 }
 0x59e   : > { %10212 = vmatprep.subr.mxu0 %v10180_v52  ;;  %13158 = vmatmul.mubr.msk.f32.vlgmr.msra.gmra.mxu1 %vm7744_vm2, %v21411_v20  ;;  %v10480_v52 = vunpack.c.l.bf16 %v13153_v49  ;;  %v10787_v49 = vunpack.c.l.bf16 %v13169_v24 }
 0x59f   : > { %10659 = vmatprep.subr.mxu1 %v10489_v9  ;;  %10213 = vmatpush1.msra.mxu0 %v10179_v48  ;;  %v13147_v48 = vld [vmem:[%s22540_s11 + $0x368] sm:$0xff]  ;;  %v10475_v9 = vunpack.c.h.bf16 %v13150_v2 }
 0x5a0   : > { %10660 = vmatpush1.msra.mxu1 %v10488_v22  ;;  %10214 = vmatprep.subr.mxu0 %v10174_v34  ;;  %v10474_v22 = vunpack.c.l.bf16 %v13150_v2  ;;  %v11059_v34 = vld [vmem:[#allocation5 + $0x17] sm:$0x1]  ;;  %v10781_v2 = vunpack.c.l.bf16 %v13166_v15 }
 0x5a1   : > { %10661 = vmatprep.subr.mxu1 %v10483_v19  ;;  %10215 = vmatpush1.msra.mxu0 %v10173_v42  ;;  %v10469_v42 = vunpack.c.h.bf16 %v13147_v48  ;;  %v10468_v19 = vunpack.c.l.bf16 %v13147_v48  ;;  %v11060_v51 = vmax.f32 %v10756_v60, %v11059_v34  ;;  %v10782_v60 = vunpack.c.h.bf16 %v13166_v15 }
 0x5a2   : > { %10662 = vmatpush1.msra.mxu1 %v10482_v16  ;;  %10216 = vmatprep.subr.mxu0 %v10168_v36  ;;  %v13170_v16 = vld [vmem:[%s22540_s11 + $0x408] sm:$0xff]  ;;  %v11076_v36 = vunpack.c.l.bf16 %v13176_v12 }
 0x5a3   : > { %10663 = vmatprep.subr.mxu1 %v10477_v23  ;;  %10217 = vmatpush1.msra.mxu0 %v10167_v10  ;;  %v13187_v10 = vld [vmem:[%s22540_s11 + $0x478] sm:$0xff]  ;;  %v13167_v23 = vld [vmem:[%s22540_s11 + $0x3f0] sm:$0xff] }
 0x5a4   : > { %10664 = vmatpush1.msra.mxu1 %v10476_v31  ;;  %10218 = vmatprep.subr.mxu0 %v10162_v61  ;;  %v10790_v31 = vunpack.c.h.bf16 %v13170_v16  ;;  %v13184_v61 = vld [vmem:[%s22540_s11 + $0x460] sm:$0xff]  ;;  %v11099_v14 = vunpack.c.h.bf16 %v13187_v10  ;;  %v11098_v45 = vunpack.c.l.bf16 %v13187_v10 }
 0x5a5   : > { %10665 = vmatprep.subr.mxu1 %v10471_v7  ;;  %10219 = vmatpush1.msra.mxu0 %v10161_v0  ;;  %v10789_v0 = vunpack.c.l.bf16 %v13170_v16  ;;  %v21502_v7 = vld [vmem:[#allocation5 + $0x18] sm:$0x1] }
 0x5a6   : > { %10252 = vmatprep.mubr.f32.mxu0 %v20949_v47  ;;  %10666 = vmatpush1.msra.mxu1 %v10470_v55  ;;  %v13164_v55 = vld [vmem:[%s22540_s11 + $0x3d8] sm:$0xff]  ;;  %v21509_v38 = vmax.f32 %v11060_v51, %v21502_v7 }
 0x5a7   : > { %10699 = vmatprep.mubr.f32.mxu1 %v20949_v47  ;;  %13143 = vmatmul.mubr.msk.f32.vlgmr.msra.gmra.mxu0 %vm7744_vm2, %v21376_v5 }
 0x5a8   : > { %10354 = vmatprep.subr.mxu0 %v10184_v63  ;;  %13160 = vmatmul.mubr.msk.f32.vlgmr.msra.gmra.mxu1 %vm7744_vm2, %v21411_v20  ;;  %v10784_v63 = vunpack.c.h.bf16 %v13167_v23 }
 0x5a9   : > { %10893 = vmatprep.subr.mxu1 %v10792_v50  ;;  %10355 = vmatpush1.msra.mxu0 %v10183_v30  ;;  %v10783_v30 = vunpack.c.l.bf16 %v13167_v23  ;;  %v11093_v50 = vunpack.c.h.bf16 %v13184_v61  ;;  %v13200_v23 = vld [vmem:[%s22540_s11 + $0x4c8] sm:$0xff] }
 0x5aa   : > { %10894 = vmatpush1.msra.mxu1 %v10791_v8  ;;  %10356 = vmatprep.subr.mxu0 %v10178_v37  ;;  %v11092_v8 = vunpack.c.l.bf16 %v13184_v61  ;;  %v10778_v37 = vunpack.c.h.bf16 %v13164_v55  ;;  %v13197_v61 = vld [vmem:[%s22540_s11 + $0x4b0] sm:$0xff] }
 0x5ab   : > { %10895 = vmatprep.subr.mxu1 %v10786_v25  ;;  %10357 = vmatpush1.msra.mxu0 %v10177_v62  ;;  %v10777_v62 = vunpack.c.l.bf16 %v13164_v55  ;;  %v11086_v25 = vunpack.c.l.bf16 %v13181_v46  ;;  %v11394_v55 = vunpack.c.h.bf16 %v13197_v61 }
 0x5ac   : > { %10896 = vmatpush1.msra.mxu1 %v10785_v58  ;;  %10358 = vmatprep.subr.mxu0 %v10172_v32  ;;  %v10771_v58 = vunpack.c.l.bf16 %v13161_v27  ;;  %v11081_v32 = vunpack.c.h.bf16 %v13178_v18 }
 0x5ad   : > { %10897 = vmatprep.subr.mxu1 %v10780_v17  ;;  %10359 = vmatpush1.msra.mxu0 %v10171_v26  ;;  %v11080_v26 = vunpack.c.l.bf16 %v13178_v18  ;;  %v13201_v17 = vld [vmem:[%s22540_s11 + $0x4d0] sm:$0xff] }
 0x5ae   : > { %10898 = vmatpush1.msra.mxu1 %v10779_v53  ;;  %10360 = vmatprep.subr.mxu0 %v10166_v39  ;;  %v10794_v53 = vunpack.c.h.bf16 %v13172_v56  ;;  %v13198_v39 = vld [vmem:[%s22540_s11 + $0x4b8] sm:$0xff] }
 0x5af   : > { %10899 = vmatprep.subr.mxu1 %v10774_v44  ;;  %10361 = vmatpush1.msra.mxu0 %v10165_v43  ;;  %v10793_v43 = vunpack.c.l.bf16 %v13172_v56  ;;  %v11402_v44 = vunpack.c.h.bf16 %v13201_v17 }
 0x5b0   : > { %10394 = vmatprep.mubr.f32.mxu0 %v20949_v47  ;;  %10900 = vmatpush1.msra.mxu1 %v10773_v40  ;;  %v11401_v40 = vunpack.c.l.bf16 %v13201_v17  ;;  %v11687_v17 = vld [vmem:[%s22392_s13 + $0x78] sm:$0xff] }
 0x5b1   : > { %10933 = vmatprep.mubr.f32.mxu1 %v20949_v47  ;;  %13145 = vmatmul.mubr.msk.f32.vlgmr.msra.gmra.mxu0 %vm7744_vm2, %v21376_v5  ;;  %v11083_v5 = vunpack.c.h.bf16 %v13179_v11  ;;  %v11389_v11 = vunpack.c.l.bf16 %v13195_v4  ;;  %v11799_v24 = vunpack.c.h.bf16 %v11687_v17 }
 0x5b2   : > { %10588 = vmatprep.subr.mxu0 %v10487_v1  ;;  %13174 = vmatmul.mubr.msk.f32.vlgmr.msra.gmra.mxu1 %vm7744_vm2, %v21474_v57  ;;  %v11396_v1 = vunpack.c.h.bf16 %v13198_v39 }
 0x5b3   : > { %11127 = vmatprep.subr.mxu1 %v11095_v35  ;;  %10589 = vmatpush1.msra.mxu0 %v10486_v41  ;;  %v11395_v41 = vunpack.c.l.bf16 %v13198_v39  ;;  %v13192_v35 = vld [vmem:[%s22540_s11 + $0x488] sm:$0xff] }
 0x5b4   : > { %11128 = vmatpush1.msra.mxu1 %v11094_v59  ;;  %10590 = vmatprep.subr.mxu0 %v10481_v6  ;;  %v11390_v59 = vunpack.c.h.bf16 %v13195_v4  ;;  %v11364_v6 = vld [vmem:[#allocation5 + $0x19] sm:$0x1]  ;;  %v11384_v48 = vunpack.c.h.bf16 %v13192_v35 }
 0x5b5   : > { %11129 = vmatprep.subr.mxu1 %v11089_v21  ;;  %10591 = vmatpush1.msra.mxu0 %v10480_v52  ;;  %v10776_v52 = vunpack.c.h.bf16 %v13163_v33  ;;  %v10775_v21 = vunpack.c.l.bf16 %v13163_v33  ;;  %v11365_v12 = vmax.f32 %v21502_v7, %v11364_v6  ;;  %v11399_v7 = vunpack.c.l.bf16 %v13200_v23 }
 0x5b6   : > { %11130 = vmatpush1.msra.mxu1 %v11088_v3  ;;  %10592 = vmatprep.subr.mxu0 %v10475_v9  ;;  %v13186_v3 = vld [vmem:[%s22540_s11 + $0x470] sm:$0xff]  ;;  %v11383_v9 = vunpack.c.l.bf16 %v13192_v35  ;;  %v11684_v35 = vld [vmem:[%s22392_s13 + $0x60] sm:$0xff] }
 0x5b7   : > { %11131 = vmatprep.subr.mxu1 %v11083_v5  ;;  %10593 = vmatpush1.msra.mxu0 %v10474_v22  ;;  %v13183_v22 = vld [vmem:[%s22540_s11 + $0x458] sm:$0xff]  ;;  %v11097_v5 = vunpack.c.h.bf16 %v13186_v3  ;;  %v11096_v34 = vunpack.c.l.bf16 %v13186_v3 }
 0x5b8   : > { %11132 = vmatpush1.msra.mxu1 %v11082_v28  ;;  %10594 = vmatprep.subr.mxu0 %v10469_v42  ;;  %v11366_v28 = vld [vmem:[#allocation5 + $0x1a] sm:$0x1]  ;;  %v11090_v16 = vunpack.c.l.bf16 %v13183_v22  ;;  %v11683_v3 = vld [vmem:[%s22392_s13 + $0x58] sm:$0xff] }
 0x5b9   : > { %11133 = vmatprep.subr.mxu1 %v11077_v13  ;;  %10595 = vmatpush1.msra.mxu0 %v10468_v19  ;;  %v13180_v42 = vld [vmem:[%s22540_s11 + $0x440] sm:$0xff]  ;;  %v21566_v19 = vmax.f32 %v11365_v12, %v11366_v28  ;;  %v11091_v13 = vunpack.c.h.bf16 %v13183_v22  ;;  %v11715_v12 = vld [vmem:[%s22392_s13 + $0x158] sm:$0xff]  ;;  %v11790_v22 = vunpack.c.l.bf16 %v11683_v3 }
 0x5ba   : > { %10628 = vmatprep.mubr.f32.mxu0 %v20949_v47  ;;  %11134 = vmatpush1.msra.mxu1 %v11076_v36  ;;  %v13177_v36 = vld [vmem:[%s22540_s11 + $0x428] sm:$0xff]  ;;  %v11085_v51 = vunpack.c.h.bf16 %v13180_v42  ;;  %v11084_v10 = vunpack.c.l.bf16 %v13180_v42  ;;  %v11854_v28 = vunpack.c.l.bf16 %v11715_v12 }
 0x5bb   : > { %11167 = vmatprep.mubr.f32.mxu1 %v20949_v47  ;;  %13159 = vmatmul.mubr.msk.f32.vlgmr.msra.gmra.mxu0 %vm7744_vm2, %v21411_v20  ;;  %v11087_v20 = vunpack.c.h.bf16 %v13181_v46 }
 0x5bc   : > { %10822 = vmatprep.subr.mxu0 %v10790_v31  ;;  %13188 = vmatmul.mubr.msk.f32.vlgmr.msra.gmra.mxu1 %vm7744_vm2, %v21509_v38  ;;  %v11078_v31 = vunpack.c.l.bf16 %v13177_v36 }
 0x5bd   : > { %11269 = vmatprep.subr.mxu1 %v11099_v14  ;;  %10823 = vmatpush1.msra.mxu0 %v10789_v0  ;;  %v11400_v0 = vunpack.c.h.bf16 %v13200_v23  ;;  %v13194_v14 = vld [vmem:[%s22540_s11 + $0x498] sm:$0xff]  ;;  %v11713_v23 = vld [vmem:[%s22392_s13 + $0x148] sm:$0xff] }
 0x5be   : > { %11270 = vmatpush1.msra.mxu1 %v11098_v45  ;;  %10824 = vmatprep.subr.mxu0 %v10784_v63  ;;  %v11393_v45 = vunpack.c.l.bf16 %v13197_v61  ;;  %v13191_v63 = vld [vmem:[%s22540_s11 + $0x480] sm:$0xff]  ;;  %v11388_v46 = vunpack.c.h.bf16 %v13194_v14 }
 0x5bf   : > { %11271 = vmatprep.subr.mxu1 %v11093_v50  ;;  %10825 = vmatpush1.msra.mxu0 %v10783_v30  ;;  %v11387_v30 = vunpack.c.l.bf16 %v13194_v14  ;;  %v13202_v50 = vld [vmem:[%s22540_s11 + $0x4d8] sm:$0xff]  ;;  %v11382_v27 = vunpack.c.h.bf16 %v13191_v63  ;;  %v11680_v61 = vld [vmem:[%s22392_s13 + $0x40] sm:$0xff] }
 0x5c0   : > { %11272 = vmatpush1.msra.mxu1 %v11092_v8  ;;  %10826 = vmatprep.subr.mxu0 %v10778_v37  ;;  %v11381_v8 = vunpack.c.l.bf16 %v13191_v63  ;;  %v13199_v37 = vld [vmem:[%s22540_s11 + $0x4c0] sm:$0xff]  ;;  %v11403_v18 = vunpack.c.l.bf16 %v13202_v50  ;;  %v11785_v14 = vunpack.c.h.bf16 %v11680_v61 }
 0x5c1   : > { %11273 = vmatprep.subr.mxu1 %v11087_v20  ;;  %10827 = vmatpush1.msra.mxu0 %v10777_v62  ;;  %v13196_v62 = vld [vmem:[%s22540_s11 + $0x4a8] sm:$0xff]  ;;  %v11398_v20 = vunpack.c.h.bf16 %v13199_v37 }
 0x5c2   : > { %11274 = vmatpush1.msra.mxu1 %v11086_v25  ;;  %10828 = vmatprep.subr.mxu0 %v10772_v54  ;;  %v11397_v25 = vunpack.c.l.bf16 %v13199_v37  ;;  %v13193_v54 = vld [vmem:[%s22540_s11 + $0x490] sm:$0xff] }
 0x5c3   : > { %11275 = vmatprep.subr.mxu1 %v11081_v32  ;;  %10829 = vmatpush1.msra.mxu0 %v10771_v58  ;;  %v11392_v58 = vunpack.c.h.bf16 %v13196_v62  ;;  %v11391_v32 = vunpack.c.l.bf16 %v13196_v62  ;;  %v11386_v56 = vunpack.c.h.bf16 %v13193_v54  ;;  %v11678_v37 = vld [vmem:[%s22392_s13 + $0x30] sm:$0xff] }
 0x5c4   : > { %10862 = vmatprep.mubr.f32.mxu0 %v20949_v47  ;;  %11276 = vmatpush1.msra.mxu1 %v11080_v26  ;;  %v11385_v26 = vunpack.c.l.bf16 %v13193_v54  ;;  %v11710_v62 = vld [vmem:[%s22392_s13 + $0x130] sm:$0xff]  ;;  %v11677_v54 = vld [vmem:[%s22392_s13 + $0x28] sm:$0xff] }
 0x5c5   : > { %11309 = vmatprep.mubr.f32.mxu1 %v20949_v47  ;;  %13173 = vmatmul.mubr.msk.f32.vlgmr.msra.gmra.mxu0 %vm7744_vm2, %v21474_v57 }
 0x5c6   : > { %10964 = vmatprep.subr.mxu0 %v10794_v53  ;;  %13190 = vmatmul.mubr.msk.f32.vlgmr.msra.gmra.mxu1 %vm7744_vm2, %v21509_v38  ;;  %v11798_v53 = vunpack.c.l.bf16 %v11687_v17 }
 0x5c7   : > { %11503 = vmatprep.subr.mxu1 %v11402_v44  ;;  %10965 = vmatpush1.msra.mxu0 %v10793_v43  ;;  %v11686_v43 = vld [vmem:[%s22392_s13 + $0x70] sm:$0xff] }
 0x5c8   : > { %11504 = vmatpush1.msra.mxu1 %v11401_v40  ;;  %10966 = vmatprep.subr.mxu0 %v10788_v29  ;;  %v11797_v15 = vunpack.c.h.bf16 %v11686_v43  ;;  %v11718_v40 = vld [vmem:[%s22392_s13 + $0x170] sm:$0xff]  ;;  %v11796_v29 = vunpack.c.l.bf16 %v11686_v43 }
 0x5c9   : > { %11505 = vmatprep.subr.mxu1 %v11396_v1  ;;  %10967 = vmatpush1.msra.mxu0 %v10787_v49  ;;  %v11861_v4 = vunpack.c.h.bf16 %v11718_v40  ;;  %v11685_v49 = vld [vmem:[%s22392_s13 + $0x68] sm:$0xff]  ;;  %v11860_v1 = vunpack.c.l.bf16 %v11718_v40 }
 0x5ca   : > { %11506 = vmatpush1.msra.mxu1 %v11395_v41  ;;  %10968 = vmatprep.subr.mxu0 %v10782_v60  ;;  %v11794_v33 = vunpack.c.l.bf16 %v11685_v49  ;;  %v11795_v41 = vunpack.c.h.bf16 %v11685_v49  ;;  %v11717_v60 = vld [vmem:[%s22392_s13 + $0x168] sm:$0xff] }
 0x5cb   : > { %11507 = vmatprep.subr.mxu1 %v11390_v59  ;;  %10969 = vmatpush1.msra.mxu0 %v10781_v2  ;;  %v11716_v2 = vld [vmem:[%s22392_s13 + $0x160] sm:$0xff]  ;;  %v11858_v59 = vunpack.c.l.bf16 %v11717_v60  ;;  %v11859_v6 = vunpack.c.h.bf16 %v11717_v60 }
 0x5cc   : > { %11508 = vmatpush1.msra.mxu1 %v11389_v11  ;;  %10970 = vmatprep.subr.mxu0 %v10776_v52  ;;  %v11792_v11 = vunpack.c.l.bf16 %v11684_v35  ;;  %v11793_v52 = vunpack.c.h.bf16 %v11684_v35  ;;  %v11706_v35 = vld [vmem:[%s22392_s13 + $0x110] sm:$0xff] }
 0x5cd   : > { %11509 = vmatprep.subr.mxu1 %v11384_v48  ;;  %10971 = vmatpush1.msra.mxu0 %v10775_v21  ;;  %v11856_v21 = vunpack.c.l.bf16 %v11716_v2  ;;  %v11857_v48 = vunpack.c.h.bf16 %v11716_v2 }
 0x5ce   : > { %11004 = vmatprep.mubr.f32.mxu0 %v20949_v47  ;;  %11510 = vmatpush1.msra.mxu1 %v11383_v9  ;;  %v11791_v9 = vunpack.c.h.bf16 %v11683_v3 }
 0x5cf   : > { %11543 = vmatprep.mubr.f32.mxu1 %v20949_v47  ;;  %13175 = vmatmul.mubr.msk.f32.vlgmr.msra.gmra.mxu0 %vm7744_vm2, %v21474_v57  ;;  %v11079_v57 = vunpack.c.h.bf16 %v13177_v36  ;;  %v11681_v36 = vld [vmem:[%s22392_s13 + $0x48] sm:$0xff] }
 0x5d0   : > { %11198 = vmatprep.subr.mxu0 %v11097_v5  ;;  %13204 = vmatmul.mubr.msk.f32.vlgmr.msra.gmra.mxu1 %vm7744_vm2, %v21566_v19  ;;  %v11855_v5 = vunpack.c.h.bf16 %v11715_v12 }
 0x5d1   : > { %11199 = vmatpush1.msra.mxu0 %v11096_v34  ;;  %11238 = vmatprep.mubr.f32.mxu0 %v20949_v47  ;;  %v11682_v34 = vld [vmem:[%s22392_s13 + $0x50] sm:$0xff] }
 0x5d2   : > { %11200 = vmatprep.subr.mxu0 %v11091_v13  ;;  %12003 = vmatprep.subr.mxu1 %v11799_v24  ;;  %v11789_v42 = vunpack.c.h.bf16 %v11682_v34  ;;  %v11788_v13 = vunpack.c.l.bf16 %v11682_v34  ;;  %v11676_v24 = vld [vmem:[%s22392_s13 + $0x20] sm:$0xff] }
 0x5d3   : > { %11201 = vmatpush1.msra.mxu0 %v11090_v16  ;;  %12004 = vmatpush1.msra.mxu1 %v11798_v53  ;;  %v11777_v53 = vunpack.c.h.bf16 %v11676_v24  ;;  %v11776_v43 = vunpack.c.l.bf16 %v11676_v24 }
 0x5d4   : > { %11202 = vmatprep.subr.mxu0 %v11085_v51  ;;  %12005 = vmatprep.subr.mxu1 %v11797_v15  ;;  %v11675_v15 = vld [vmem:[%s22392_s13 + $0x18] sm:$0xff] }
 0x5d5   : > { %11203 = vmatpush1.msra.mxu0 %v11084_v10  ;;  %12006 = vmatpush1.msra.mxu1 %v11796_v29  ;;  %v11787_v10 = vunpack.c.h.bf16 %v11681_v36  ;;  %v11775_v29 = vunpack.c.h.bf16 %v11675_v15  ;;  %v11774_v49 = vunpack.c.l.bf16 %v11675_v15 }
 0x5d6   : > { %11204 = vmatprep.subr.mxu0 %v11079_v57  ;;  %12007 = vmatprep.subr.mxu1 %v11795_v41  ;;  %v11786_v57 = vunpack.c.l.bf16 %v11681_v36 }
 0x5d7   : > { %11205 = vmatpush1.msra.mxu0 %v11078_v31  ;;  %12008 = vmatpush1.msra.mxu1 %v11794_v33  ;;  %v11851_v31 = vunpack.c.h.bf16 %v11713_v23  ;;  %v11674_v33 = vld [vmem:[%s22392_s13 + $0x10] sm:$0xff] }
 0x5d8   : > { %13189 = vmatmul.mubr.msk.f32.vlgmr.msra.gmra.mxu0 %vm7744_vm2, %v21509_v38  ;;  %11432 = vmatprep.subr.mxu0 %v11400_v0  ;;  %v11404_v38 = vunpack.c.h.bf16 %v13202_v50  ;;  %v11850_v0 = vunpack.c.l.bf16 %v11713_v23  ;;  %v11711_v50 = vld [vmem:[%s22392_s13 + $0x138] sm:$0xff]  ;;  %v11773_v60 = vunpack.c.h.bf16 %v11674_v33  ;;  %v11772_v2 = vunpack.c.l.bf16 %v11674_v33 }
 0x5d9   : > { %11433 = vmatpush1.msra.mxu0 %v11399_v7  ;;  %11472 = vmatprep.mubr.f32.mxu0 %v20949_v47  ;;  %v11784_v7 = vunpack.c.l.bf16 %v11680_v61 }
 0x5da   : > { %11434 = vmatprep.subr.mxu0 %v11394_v55  ;;  %12009 = vmatprep.subr.mxu1 %v11793_v52  ;;  %v11712_v55 = vld [vmem:[%s22392_s13 + $0x140] sm:$0xff] }
 0x5db   : > { %11435 = vmatpush1.msra.mxu0 %v11393_v45  ;;  %12010 = vmatpush1.msra.mxu1 %v11792_v11  ;;  %v11848_v45 = vunpack.c.l.bf16 %v11712_v55  ;;  %v11849_v63 = vunpack.c.h.bf16 %v11712_v55  ;;  %v11836_v11 = vunpack.c.l.bf16 %v11706_v35 }
 0x5dc   : > { %11436 = vmatprep.subr.mxu0 %v11388_v46  ;;  %12011 = vmatprep.subr.mxu1 %v11791_v9  ;;  %v11679_v46 = vld [vmem:[%s22392_s13 + $0x38] sm:$0xff]  ;;  %v11672_v9 = vld [vmem:[%s22392_s13] sm:$0xff] }
 0x5dd   : > { %11437 = vmatpush1.msra.mxu0 %v11387_v30  ;;  %12012 = vmatpush1.msra.mxu1 %v11790_v22  ;;  %v11783_v30 = vunpack.c.h.bf16 %v11679_v46  ;;  %v11769_v22 = vunpack.c.h.bf16 %v11672_v9  ;;  %v11768_v34 = vunpack.c.l.bf16 %v11672_v9 }
 0x5de   : > { %11438 = vmatprep.subr.mxu0 %v11382_v27  ;;  %12013 = vmatprep.subr.mxu1 %v11789_v42  ;;  %v11782_v27 = vunpack.c.l.bf16 %v11679_v46  ;;  %v11703_v42 = vld [vmem:[%s22392_s13 + $0xf8] sm:$0xff] }
 0x5df   : > { %11439 = vmatpush1.msra.mxu0 %v11381_v8  ;;  %12014 = vmatpush1.msra.mxu1 %v11788_v13  ;;  %v11847_v8 = vunpack.c.h.bf16 %v11711_v50  ;;  %v11831_v13 = vunpack.c.h.bf16 %v11703_v42  ;;  %v11830_v36 = vunpack.c.l.bf16 %v11703_v42  ;;  %v11725_v42 = vld [vmem:[%s22392_s13 + $0x1a8] sm:$0xff] }
 0x5e0   : > { %13203 = vmatmul.mubr.msk.f32.vlgmr.msra.gmra.mxu0 %vm7744_vm2, %v21566_v19  ;;  %11574 = vmatprep.subr.mxu0 %v11404_v38  ;;  %v11846_v38 = vunpack.c.l.bf16 %v11711_v50 }
 0x5e1   : > { %11575 = vmatpush1.msra.mxu0 %v11403_v18  ;;  %11614 = vmatprep.mubr.f32.mxu0 %v20949_v47  ;;  %v11719_v47 = vld [vmem:[%s22392_s13 + $0x178] sm:$0xff]  ;;  %v11781_v18 = vunpack.c.h.bf16 %v11678_v37 }
 0x5e2   : > { %11576 = vmatprep.subr.mxu0 %v11398_v20  ;;  %v11863_v39 = vunpack.c.h.bf16 %v11719_v47  ;;  %v11862_v44 = vunpack.c.l.bf16 %v11719_v47  ;;  %12015 = vmatprep.subr.mxu1 %v11787_v10  ;;  %v11780_v20 = vunpack.c.l.bf16 %v11678_v37  ;;  %v11702_v10 = vld [vmem:[%s22392_s13 + $0xf0] sm:$0xff] }
 0x5e3   : > { %11577 = vmatpush1.msra.mxu0 %v11397_v25  ;;  %12016 = vmatpush1.msra.mxu1 %v11786_v57  ;;  %v11845_v25 = vunpack.c.h.bf16 %v11710_v62  ;;  %v11829_v57 = vunpack.c.h.bf16 %v11702_v10  ;;  %v11828_v61 = vunpack.c.l.bf16 %v11702_v10  ;;  %v11724_v10 = vld [vmem:[%s22392_s13 + $0x1a0] sm:$0xff] }
 0x5e4   : > { %11578 = vmatprep.subr.mxu0 %v11392_v58  ;;  %12017 = vmatprep.subr.mxu1 %v11785_v14  ;;  %v11844_v58 = vunpack.c.l.bf16 %v11710_v62 }
 0x5e5   : > { %11579 = vmatpush1.msra.mxu0 %v11391_v32  ;;  %12018 = vmatpush1.msra.mxu1 %v11784_v7  ;;  %v11779_v32 = vunpack.c.h.bf16 %v11677_v54  ;;  %v11701_v7 = vld [vmem:[%s22392_s13 + $0xe8] sm:$0xff] }
 0x5e6   : > { %11580 = vmatprep.subr.mxu0 %v11386_v56  ;;  %12019 = vmatprep.subr.mxu1 %v11783_v30  ;;  %v11709_v56 = vld [vmem:[%s22392_s13 + $0x128] sm:$0xff]  ;;  %v11827_v55 = vunpack.c.h.bf16 %v11701_v7  ;;  %v11700_v30 = vld [vmem:[%s22392_s13 + $0xe0] sm:$0xff] }
 0x5e7   : > { %11581 = vmatpush1.msra.mxu0 %v11385_v26  ;;  %12020 = vmatpush1.msra.mxu1 %v11782_v27  ;;  %v11778_v26 = vunpack.c.l.bf16 %v11677_v54  ;;  %v11843_v17 = vunpack.c.h.bf16 %v11709_v56  ;;  %v11842_v47 = vunpack.c.l.bf16 %v11709_v56  ;;  %v11825_v27 = vunpack.c.h.bf16 %v11700_v30 }
 0x5e8   : > { %13205 = vmatmul.mubr.msk.f32.vlgmr.msra.gmra.mxu0 %vm7744_vm2, %v21566_v19  ;;  %12074 = vmatprep.subr.mxu0 %v11863_v39  ;;  %v11714_v19 = vld [vmem:[%s22392_s13 + $0x150] sm:$0xff]  ;;  %v11708_v39 = vld [vmem:[%s22392_s13 + $0x120] sm:$0xff]  ;;  %v11824_v37 = vunpack.c.l.bf16 %v11700_v30 }
 0x5e9   : > { %12075 = vmatpush1.msra.mxu0 %v11862_v44  ;;  %v11853_v16 = vunpack.c.h.bf16 %v11714_v19  ;;  %v11852_v51 = vunpack.c.l.bf16 %v11714_v19  ;;  %12021 = vmatprep.subr.mxu1 %v11781_v18  ;;  %v11841_v44 = vunpack.c.h.bf16 %v11708_v39  ;;  %v11840_v40 = vunpack.c.l.bf16 %v11708_v39  ;;  %v11699_v18 = vld [vmem:[%s22392_s13 + $0xd8] sm:$0xff] }
 0x5ea   : > { %12076 = vmatprep.subr.mxu0 %v11861_v4  ;;  %12022 = vmatpush1.msra.mxu1 %v11780_v20  ;;  %v11707_v4 = vld [vmem:[%s22392_s13 + $0x118] sm:$0xff]  ;;  %v11823_v20 = vunpack.c.h.bf16 %v11699_v18  ;;  %v11822_v54 = vunpack.c.l.bf16 %v11699_v18 }
 0x5eb   : > { %12077 = vmatpush1.msra.mxu0 %v11860_v1  ;;  %12023 = vmatprep.subr.mxu1 %v11779_v32  ;;  %v11839_v1 = vunpack.c.h.bf16 %v11707_v4  ;;  %v11838_v41 = vunpack.c.l.bf16 %v11707_v4  ;;  %v11698_v32 = vld [vmem:[%s22392_s13 + $0xd0] sm:$0xff] }
 0x5ec   : > { %12078 = vmatprep.subr.mxu0 %v11859_v6  ;;  %12024 = vmatpush1.msra.mxu1 %v11778_v26  ;;  %v11673_v6 = vld [vmem:[%s22392_s13 + $0x8] sm:$0xff]  ;;  %v11821_v26 = vunpack.c.h.bf16 %v11698_v32  ;;  %v11820_v24 = vunpack.c.l.bf16 %v11698_v32  ;;  %v11688_v32 = vld [vmem:[%s22392_s13 + $0x80] sm:$0xff] }
 0x5ed   : > { %12079 = vmatpush1.msra.mxu0 %v11858_v59  ;;  %12025 = vmatprep.subr.mxu1 %v11777_v53  ;;  %v11837_v59 = vunpack.c.h.bf16 %v11706_v35  ;;  %v11771_v52 = vunpack.c.h.bf16 %v11673_v6  ;;  %v11697_v53 = vld [vmem:[%s22392_s13 + $0xc8] sm:$0xff] }
 0x5ee   : > { %12080 = vmatprep.subr.mxu0 %v11857_v48  ;;  %12026 = vmatpush1.msra.mxu1 %v11776_v43  ;;  %v11770_v48 = vunpack.c.l.bf16 %v11673_v6  ;;  %v11819_v43 = vunpack.c.h.bf16 %v11697_v53  ;;  %v11818_v15 = vunpack.c.l.bf16 %v11697_v53 }
 0x5ef   : > { %12081 = vmatpush1.msra.mxu0 %v11856_v21  ;;  %12027 = vmatprep.subr.mxu1 %v11775_v29  ;;  %v11705_v21 = vld [vmem:[%s22392_s13 + $0x108] sm:$0xff]  ;;  %v11696_v29 = vld [vmem:[%s22392_s13 + $0xc0] sm:$0xff] }
 0x5f0   : > { %12082 = vmatprep.subr.mxu0 %v11855_v5  ;;  %12028 = vmatpush1.msra.mxu1 %v11774_v49  ;;  %v11835_v3 = vunpack.c.h.bf16 %v11705_v21  ;;  %v11834_v12 = vunpack.c.l.bf16 %v11705_v21  ;;  %v11704_v5 = vld [vmem:[%s22392_s13 + $0x100] sm:$0xff]  ;;  %v11817_v49 = vunpack.c.h.bf16 %v11696_v29  ;;  %v11816_v33 = vunpack.c.l.bf16 %v11696_v29 }
 0x5f1   : > { %12083 = vmatpush1.msra.mxu0 %v11854_v28  ;;  %12029 = vmatprep.subr.mxu1 %v11773_v60  ;;  %v11833_v28 = vunpack.c.h.bf16 %v11704_v5  ;;  %v11832_v19 = vunpack.c.l.bf16 %v11704_v5  ;;  %v11695_v60 = vld [vmem:[%s22392_s13 + $0xb8] sm:$0xff]  ;;  %v21768_v5 = vpop.f32.mrf.mxu0 }
 0x5f2   : > { %12084 = vmatprep.subr.mxu0 %v11853_v16  ;;  %12030 = vmatpush1.msra.mxu1 %v11772_v2  ;;  %v11735_v16 = vld [vmem:[%s22392_s13 + $0x1f8] sm:$0xff]  ;;  %v11815_v2 = vunpack.c.h.bf16 %v11695_v60  ;;  %v11814_v6 = vunpack.c.l.bf16 %v11695_v60 }
 0x5f3   : > { %12085 = vmatpush1.msra.mxu0 %v11852_v51  ;;  %12031 = vmatprep.subr.mxu1 %v11771_v52  ;;  %v11895_v51 = vunpack.c.h.bf16 %v11735_v16  ;;  %v11894_v23 = vunpack.c.l.bf16 %v11735_v16  ;;  %v11694_v52 = vld [vmem:[%s22392_s13 + $0xb0] sm:$0xff]  ;;  %v11692_v16 = vld [vmem:[%s22392_s13 + $0xa0] sm:$0xff] }
 0x5f4   : > { %12086 = vmatprep.subr.mxu0 %v11851_v31  ;;  %12032 = vmatpush1.msra.mxu1 %v11770_v48  ;;  %v11734_v31 = vld [vmem:[%s22392_s13 + $0x1f0] sm:$0xff]  ;;  %v11813_v48 = vunpack.c.h.bf16 %v11694_v52  ;;  %v11812_v9 = vunpack.c.l.bf16 %v11694_v52 }
 0x5f5   : > { %12087 = vmatpush1.msra.mxu0 %v11850_v0  ;;  %12033 = vmatprep.subr.mxu1 %v11769_v22  ;;  %v11893_v0 = vunpack.c.h.bf16 %v11734_v31  ;;  %v11892_v14 = vunpack.c.l.bf16 %v11734_v31  ;;  %v11693_v22 = vld [vmem:[%s22392_s13 + $0xa8] sm:$0xff]  ;;  %v11691_v31 = vld [vmem:[%s22392_s13 + $0x98] sm:$0xff] }
 0x5f6   : > { %12088 = vmatprep.subr.mxu0 %v11849_v63  ;;  %12034 = vmatpush1.msra.mxu1 %v11768_v34  ;;  %v11826_v63 = vunpack.c.l.bf16 %v11701_v7  ;;  %v11807_v7 = vunpack.c.h.bf16 %v11691_v31 }
 0x5f7   : > { %12089 = vmatpush1.msra.mxu0 %v11848_v45  ;;  %12035 = vmatprep.subr.mxu1 %v11831_v13  ;;  %v11733_v45 = vld [vmem:[%s22392_s13 + $0x1e8] sm:$0xff]  ;;  %v11875_v13 = vunpack.c.h.bf16 %v11725_v42 }
 0x5f8   : > { %12090 = vmatprep.subr.mxu0 %v11847_v8  ;;  %12036 = vmatpush2.msra.mxu1 %v11830_v36  ;;  %v11891_v46 = vunpack.c.h.bf16 %v11733_v45  ;;  %v11890_v50 = vunpack.c.l.bf16 %v11733_v45  ;;  %v11732_v8 = vld [vmem:[%s22392_s13 + $0x1e0] sm:$0xff]  ;;  %v11874_v36 = vunpack.c.l.bf16 %v11725_v42 }
 0x5f9   : > { %12091 = vmatpush1.msra.mxu0 %v11846_v38  ;;  %12037 = vmatprep.subr.mxu1 %v11829_v57  ;;  %v11889_v38 = vunpack.c.h.bf16 %v11732_v8  ;;  %v11888_v62 = vunpack.c.l.bf16 %v11732_v8  ;;  %v11873_v57 = vunpack.c.h.bf16 %v11724_v10 }
 0x5fa   : > { %12092 = vmatprep.subr.mxu0 %v11845_v25  ;;  %12038 = vmatpush2.msra.mxu1 %v11828_v61  ;;  %v11731_v25 = vld [vmem:[%s22392_s13 + $0x1d8] sm:$0xff]  ;;  %v21782_v61 = vpop.f32.mrf.mxu0 }
 0x5fb   : > { %12093 = vmatpush1.msra.mxu0 %v11844_v58  ;;  %12039 = vmatprep.subr.mxu1 %v11827_v55  ;;  %v11887_v58 = vunpack.c.h.bf16 %v11731_v25  ;;  %v11886_v56 = vunpack.c.l.bf16 %v11731_v25  ;;  %v11806_v55 = vunpack.c.l.bf16 %v11691_v31 }
 0x5fc   : > { %12094 = vmatprep.subr.mxu0 %v11843_v17  ;;  %12040 = vmatpush2.msra.mxu1 %v11826_v63  ;;  %v11730_v17 = vld [vmem:[%s22392_s13 + $0x1d0] sm:$0xff] }
 0x5fd   : > { %12095 = vmatpush1.msra.mxu0 %v11842_v47  ;;  %12041 = vmatprep.subr.mxu1 %v11825_v27  ;;  %v11885_v47 = vunpack.c.h.bf16 %v11730_v17  ;;  %v11884_v39 = vunpack.c.l.bf16 %v11730_v17  ;;  %v11690_v63 = vld [vmem:[%s22392_s13 + $0x90] sm:$0xff]  ;;  %v11800_v17 = vunpack.c.l.bf16 %v11688_v32 }
 0x5fe   : > { %12096 = vmatprep.subr.mxu0 %v11841_v44  ;;  %12042 = vmatpush2.msra.mxu1 %v11824_v37  ;;  %v11729_v44 = vld [vmem:[%s22392_s13 + $0x1c8] sm:$0xff]  ;;  %v11722_v27 = vld [vmem:[%s22392_s13 + $0x190] sm:$0xff]  ;;  %v11804_v8 = vunpack.c.l.bf16 %v11690_v63 }
 0x5ff   : > { %12097 = vmatpush1.msra.mxu0 %v11840_v40  ;;  %12043 = vmatprep.subr.mxu1 %v11823_v20  ;;  %v11883_v40 = vunpack.c.h.bf16 %v11729_v44  ;;  %v11882_v4 = vunpack.c.l.bf16 %v11729_v44  ;;  %v11869_v37 = vunpack.c.h.bf16 %v11722_v27  ;;  %v11868_v18 = vunpack.c.l.bf16 %v11722_v27  ;;  %v11721_v20 = vld [vmem:[%s22392_s13 + $0x188] sm:$0xff] }
 0x600   : > { %12098 = vmatprep.subr.mxu0 %v11839_v1  ;;  %12044 = vmatpush2.msra.mxu1 %v11822_v54  ;;  %v11728_v1 = vld [vmem:[%s22392_s13 + $0x1c0] sm:$0xff]  ;;  %v11866_v54 = vunpack.c.l.bf16 %v11721_v20 }
 0x601   : > { %12099 = vmatpush1.msra.mxu0 %v11838_v41  ;;  %12045 = vmatprep.subr.mxu1 %v11821_v26  ;;  %v11881_v41 = vunpack.c.h.bf16 %v11728_v1  ;;  %v11880_v35 = vunpack.c.l.bf16 %v11728_v1 }
 0x602   : > { %12100 = vmatprep.subr.mxu0 %v11837_v59  ;;  %12046 = vmatpush2.msra.mxu1 %v11820_v24  ;;  %v11727_v59 = vld [vmem:[%s22392_s13 + $0x1b8] sm:$0xff]  ;;  %v11801_v24 = vunpack.c.h.bf16 %v11688_v32 }
 0x603   : > { %12101 = vmatpush1.msra.mxu0 %v11836_v11  ;;  %12047 = vmatprep.subr.mxu1 %v11819_v43  ;;  %v11879_v11 = vunpack.c.h.bf16 %v11727_v59  ;;  %v11878_v21 = vunpack.c.l.bf16 %v11727_v59  ;;  %v21814_v43 = vpop.f32.mrf.mxu1 }
 0x604   : > { %12102 = vmatprep.subr.mxu0 %v11835_v3  ;;  %12048 = vmatpush2.msra.mxu1 %v11818_v15  ;;  %v11726_v3 = vld [vmem:[%s22392_s13 + $0x1b0] sm:$0xff] }
 0x605   : > { %12103 = vmatpush1.msra.mxu0 %v11834_v12  ;;  %12049 = vmatprep.subr.mxu1 %v11817_v49  ;;  %v11877_v12 = vunpack.c.h.bf16 %v11726_v3  ;;  %v11876_v34 = vunpack.c.l.bf16 %v11726_v3 }
 0x606   : > { %12104 = vmatprep.subr.mxu0 %v11833_v28  ;;  %12050 = vmatpush2.msra.mxu1 %v11816_v33  ;;  %v11811_v28 = vunpack.c.h.bf16 %v11693_v22 }
 0x607   : > { %12105 = vmatpush1.msra.mxu0 %v11832_v19  ;;  %12051 = vmatprep.subr.mxu1 %v11815_v2  ;;  %v11810_v19 = vunpack.c.l.bf16 %v11693_v22 }
 0x608   : > { %12106 = vmatprep.subr.mxu0 %v11895_v51  ;;  %12052 = vmatpush2.msra.mxu1 %v11814_v6  ;;  %v11809_v51 = vunpack.c.h.bf16 %v11692_v16 }
 0x609   : > { %12107 = vmatpush2.msra.mxu0 %v11894_v23  ;;  %12053 = vmatprep.subr.mxu1 %v11813_v48  ;;  %v11808_v23 = vunpack.c.l.bf16 %v11692_v16 }
 0x60a   : > { %12108 = vmatprep.subr.mxu0 %v11893_v0  ;;  %12054 = vmatpush2.msra.mxu1 %v11812_v9  ;;  %v11872_v0 = vunpack.c.l.bf16 %v11724_v10 }
 0x60b   : > { %12109 = vmatpush2.msra.mxu0 %v11892_v14  ;;  %12055 = vmatprep.subr.mxu1 %v11811_v28  ;;  %v11723_v14 = vld [vmem:[%s22392_s13 + $0x198] sm:$0xff] }
 0x60c   : > { %12110 = vmatprep.subr.mxu0 %v11891_v46  ;;  %12056 = vmatpush2.msra.mxu1 %v11810_v19  ;;  %v11871_v45 = vunpack.c.h.bf16 %v11723_v14  ;;  %v21790_v46 = vpop.f32.mrf.mxu0  ;;  %v11870_v30 = vunpack.c.l.bf16 %v11723_v14 }
 0x60d   : > { %12111 = vmatpush2.msra.mxu0 %v11890_v50  ;;  %12057 = vmatprep.subr.mxu1 %v11809_v51  ;;  %v11805_v50 = vunpack.c.h.bf16 %v11690_v63 }
 0x60e   : > { %12112 = vmatprep.subr.mxu0 %v11889_v38  ;;  %12058 = vmatpush2.msra.mxu1 %v11808_v23  ;;  %v11689_v38 = vld [vmem:[%s22392_s13 + $0x88] sm:$0xff]  ;;  %v21807_v26 = vpop.f32.mrf.mxu0 }
 0x60f   : > { %12113 = vmatpush2.msra.mxu0 %v11888_v62  ;;  %12059 = vmatprep.subr.mxu1 %v11807_v7  ;;  %v11803_v62 = vunpack.c.h.bf16 %v11689_v38  ;;  %v11802_v25 = vunpack.c.l.bf16 %v11689_v38 }
 0x610   : > { %12114 = vmatprep.subr.mxu0 %v11887_v58  ;;  %12060 = vmatpush2.msra.mxu1 %v11806_v55  ;;  %v11867_v58 = vunpack.c.h.bf16 %v11721_v20  ;;  %v21816_v44 = vpop.f32.mrf.mxu0 }
 0x611   : > { %12115 = vmatpush2.msra.mxu0 %v11886_v56  ;;  %12061 = vmatprep.subr.mxu1 %v11805_v50  ;;  %v11720_v56 = vld [vmem:[%s22392_s13 + $0x180] sm:$0xff] }
 0x612   : > { %12116 = vmatprep.subr.mxu0 %v11885_v47  ;;  %12062 = vmatpush2.msra.mxu1 %v11804_v8  ;;  %v11864_v47 = vunpack.c.l.bf16 %v11720_v56  ;;  %v11865_v53 = vunpack.c.h.bf16 %v11720_v56  ;;  %v21821_v29 = vpop.f32.mrf.mxu0  ;;  %v7968_v56 = vcombine.low %v21790_v46, %v21807_v26 }
 0x613   : > { %12117 = vmatpush2.msra.mxu0 %v11884_v39  ;;  %12063 = vmatprep.subr.mxu1 %v11803_v62  ;;  %v21812_v39 = vld [vmem:[%s22392_s13 + $0x278] sm:$0xff] }
 0x614   : > { %12118 = vmatprep.subr.mxu0 %v11883_v40  ;;  %12064 = vmatpush2.msra.mxu1 %v11802_v25  ;;  %v11927_v15 = vunpack.c.h.bf16 %v21812_v39  ;;  %v21819_v40 = vpop.f32.mrf.mxu1  ;;  %v8190_v49 = vpop.f32.mrf.mxu0 }
 0x615   : > { %12119 = vmatpush2.msra.mxu0 %v11882_v4  ;;  %12065 = vmatprep.subr.mxu1 %v11801_v24 }
 0x616   : > { %12120 = vmatprep.subr.mxu0 %v11881_v41  ;;  %12066 = vmatpush2.msra.mxu1 %v11800_v17  ;;  %v21823_v4 = vpop.f32.mrf.mxu1  ;;  %v8192_v33 = vpop.f32.mrf.mxu0 }
 0x617   : > { %12121 = vmatpush2.msra.mxu0 %v11880_v35  ;;  %12145 = vmatprep.subr.mxu1 %v11927_v15  ;;  %v8273_v17 = vcombine.low %v8190_v49, %v8192_v33 }
 0x618   : > { %12122 = vmatprep.subr.mxu0 %v11879_v11  ;;  %v21825_v1 = vpop.f32.mrf.mxu1  ;;  %v21829_v60 = vpop.f32.mrf.mxu0 }
 0x619   : > { %12123 = vmatpush2.msra.mxu0 %v11878_v21 }
 0x61a   : > { %12124 = vmatprep.subr.mxu0 %v11877_v12  ;;  %v21827_v41 = vpop.f32.mrf.mxu1  ;;  %v21833_v2 = vpop.f32.mrf.mxu0 }
 0x61b   : > { %12125 = vmatpush2.msra.mxu0 %v11876_v34 }
 0x61c   : > { %12126 = vmatprep.subr.mxu0 %v11875_v13  ;;  %v21831_v35 = vpop.f32.mrf.mxu1  ;;  %v21837_v6 = vpop.f32.mrf.mxu0 }
 0x61d   : > { %12127 = vmatpush2.msra.mxu0 %v11874_v36 }
 0x61e   : > { %12128 = vmatprep.subr.mxu0 %v11873_v57  ;;  %v21835_v59 = vpop.f32.mrf.mxu1  ;;  %v21841_v52 = vpop.f32.mrf.mxu0 }
 0x61f   : > { %12129 = vmatpush2.msra.mxu0 %v11872_v0 }
 0x620   : > { %12130 = vmatprep.subr.mxu0 %v11871_v45  ;;  %v21839_v11 = vpop.f32.mrf.mxu1 }
 0x621   : > { %12131 = vmatpush2.msra.mxu0 %v11870_v30  ;;  %v21845_v48 = vpop.f32.mrf.mxu0 }
 0x622   : > { %12132 = vmatprep.subr.mxu0 %v11869_v37  ;;  %v21843_v21 = vpop.f32.mrf.mxu1  ;;  %v17674_v37 = vmov 1966171168  }
 0x623   : > { %12133 = vmatpush2.msra.mxu0 %v11868_v18  ;;  %v8802_v9 = vpop.f32.mrf.mxu0  ;;  %v7971_v38 = vunpack.c.l.s4 %v17674_v37  ;;  %v22416_v18 = vlaneseq  ;;  %v8272_v37 = vcombine.low %v21814_v43, %v21819_v40 }
 0x624   : > { %12134 = vmatprep.subr.mxu0 %v11867_v58  ;;  %v21847_v3 = vpop.f32.mrf.mxu1 }
 0x625   : > { %12135 = vmatpush2.msra.mxu0 %v11866_v54  ;;  %v7972_v25 = vunpack.c.0.s8 %v7971_v38  ;;  %v21902_v54 = vshrl.u32 %v22416_v18, 7  ;;  %v7969_v38 = vcombine.low %v21816_v44, %v21821_v29  ;;  %v8274_v44 = vcombine.low %v21823_v4, %v21825_v1 }
 0x626   : > { %12136 = vmatprep.subr.mxu0 %v11865_v53  ;;  %v21849_v12 = vpop.f32.mrf.mxu1  ;;  %v7967_v53 = vcombine.low %v21768_v5, %v21782_v61  ;;  %v8577_v5 = vcombine.low %v21829_v60, %v21833_v2  ;;  %v8883_v61 = vcombine.low %v21845_v48, %v8802_v9  ;;  %v8882_v60 = vcombine.low %v21835_v59, %v21839_v11 }
 0x627   : > { %12137 = vmatpush2.msra.mxu0 %v11864_v47  ;;  %v21917_v15 = vsub.s32 %v7972_v25, %v21902_v54  ;;  %v8579_v2 = vcombine.low %v21837_v6, %v21841_v52 }
 0x628   : > { %v21853_v34 = vpop.f32.mrf.mxu1 }
 0x629   : > { %v7983_v18 = vrot.slane %v7968_v56, %v21917_v15  ;;  %v8288_v46 = vrot.slane %v8273_v17, %v21917_v15  ;;  %v7976_v33 = vrot.slane %v7967_v53, %v21917_v15  ;;  %v8281_v43 = vrot.slane %v8272_v37, %v21917_v15 }
 0x62a   : > { %v21857_v42 = vpop.f32.mrf.mxu1  ;;  %v7990_v40 = vrot.slane %v7969_v38, %v21917_v15  ;;  %v8578_v56 = vcombine.low %v21827_v41, %v21831_v35  ;;  %v8586_v17 = vrot.slane %v8577_v5, %v21917_v15  ;;  %v8898_v4 = vrot.slane %v8883_v61, %v21917_v15 }
 0x62b   : > { %v21851_v22 = vpop.f32.mrf.mxu0  ;;  %v7991_v48 = vcombine.low %v7976_v33, %v7983_v18  ;;  %v8296_v9 = vcombine.low %v8281_v43, %v8288_v46  ;;  %v8295_v1 = vrot.slane %v8274_v44, %v21917_v15  ;;  %v8884_v37 = vcombine.low %v21843_v21, %v21847_v3 }
 0x62c   : > { %v21861_v13 = vpop.f32.mrf.mxu1  ;;  %v8005_v53 = vrot.slane %v7990_v40, %v21917_v15  ;;  %v8593_v59 = vrot.slane %v8578_v56, %v21917_v15  ;;  %v8891_v6 = vrot.slane %v8882_v60, %v21917_v15  ;;  %v8600_v11 = vrot.slane %v8579_v2, %v21917_v15  ;;  %v7702_v40 = vld [vmem:[%s22391_s12] sm:$0x3f] }
 0x62d   : > { %v21855_v28 = vpop.f32.mrf.mxu0  ;;  %v7998_v52 = vrot.slane %v7991_v48, %v21917_v15  ;;  %v8303_v18 = vrot.slane %v8296_v9, %v21917_v15  ;;  %v8310_v61 = vrot.slane %v8295_v1, %v21917_v15  ;;  %v8905_v43 = vrot.slane %v8884_v37, %v21917_v15 }
 0x62e   : > { %v21865_v36 = vpop.f32.mrf.mxu1  ;;  %v8601_v5 = vcombine.low %v8586_v17, %v8593_v59  ;;  %v8906_v21 = vcombine.low %v8891_v6, %v8898_v4  ;;  %v9187_v3 = vcombine.low %v21851_v22, %v21855_v28  ;;  %v9188_v44 = vcombine.low %v21849_v12, %v21853_v34 }
 0x62f   : > { %v8006_v33 = vcombine.low %v7998_v52, %v8005_v53  ;;  %v8615_v56 = vrot.slane %v8600_v11, %v21917_v15  ;;  %v8311_v28 = vcombine.low %v8303_v18, %v8310_v61  ;;  %v9492_v34 = vcombine.low %v21857_v42, %v21861_v13 }
 0x630   : > { %v21869_v10 = vpop.f32.mrf.mxu1  ;;  %v8608_v9 = vrot.slane %v8601_v5, %v21917_v15  ;;  %v8913_v12 = vrot.slane %v8906_v21, %v21917_v15  ;;  %v9196_v17 = vrot.slane %v9187_v3, %v21917_v15 }
 0x631   : > { %v8008_v4 = vadd.f32 %v8006_v33, %v7702_v40  ;;  %v9494_v53 = vcombine.low %v21865_v36, %v21869_v10  ;;  %v9501_v52 = vrot.slane %v9492_v34, %v21917_v15 }
 0x632   : > { %v8616_v1 = vcombine.low %v8608_v9, %v8615_v56 }
 0x633   : > { %v8313_v6 = vadd.f32 %v8311_v28, %v8008_v4 }
 0x635   : > { %v21859_v19 = vpop.f32.mrf.mxu0 }
 0x636   : > { %v21873_v57 = vpop.f32.mrf.mxu1 }
 0x637   : > { %v21863_v16 = vpop.f32.mrf.mxu0 }
 0x638   : > { %v21877_v0 = vpop.f32.mrf.mxu1  ;;  %v9189_v60 = vcombine.low %v21859_v19, %v21863_v16  ;;  %v8920_v19 = vrot.slane %v8905_v43, %v21917_v15  ;;  %v9203_v16 = vrot.slane %v9188_v44, %v21917_v15 }
 0x639   : > { %v9798_v5 = vcombine.low %v21873_v57, %v21877_v0 }
 0x63a   : > { %v9210_v37 = vrot.slane %v9189_v60, %v21917_v15  ;;  %v8921_v11 = vcombine.low %v8913_v12, %v8920_v19  ;;  %v9211_v18 = vcombine.low %v9196_v17, %v9203_v16 }
 0x63b   : > { %v9813_v40 = vrot.slane %v9798_v5, %v21917_v15 }
 0x63f   : > { %v21867_v51 = vpop.f32.mrf.mxu0 }
 0x640   : > { %v21881_v14 = vpop.f32.mrf.mxu1 }
 0x641   : > { %v21871_v23 = vpop.f32.mrf.mxu0 }
 0x642   : > { %v21885_v45 = vpop.f32.mrf.mxu1  ;;  %v9493_v22 = vcombine.low %v21867_v51, %v21871_v23 }
 0x643   : > { %v10102_v36 = vcombine.low %v21881_v14, %v21885_v45  ;;  %v9218_v45 = vrot.slane %v9211_v18, %v21917_v15 }
 0x644   : > { %v9508_v59 = vrot.slane %v9493_v22, %v21917_v15 }
 0x649   : > { %v21875_v31 = vpop.f32.mrf.mxu0 }
 0x64a   : > { %v21889_v30 = vpop.f32.mrf.mxu1 }
 0x64b   : > { %v21879_v7 = vpop.f32.mrf.mxu0 }
 0x64c   : > { %v21893_v27 = vpop.f32.mrf.mxu1  ;;  %v9797_v42 = vcombine.low %v21875_v31, %v21879_v7  ;;  %v8618_v31 = vadd.f32 %v8616_v1, %v8313_v6  ;;  %v9515_v7 = vrot.slane %v9494_v53, %v21917_v15 }
 0x64d   : > { %v10104_v33 = vcombine.low %v21889_v30, %v21893_v27  ;;  %v10111_v30 = vrot.slane %v10102_v36, %v21917_v15 }
 0x64e   : > { %v9806_v61 = vrot.slane %v9797_v42, %v21917_v15  ;;  %v9530_v56 = vrot.slane %v9515_v7, %v21917_v15 }
 0x653   : > { %v21883_v55 = vpop.f32.mrf.mxu0 }
 0x654   : > { %v21897_v62 = vpop.f32.mrf.mxu1 }
 0x655   : > { %v21887_v63 = vpop.f32.mrf.mxu0 }
 0x656   : > { %v21904_v58 = vpop.f32.mrf.mxu1  ;;  %v9799_v10 = vcombine.low %v21883_v55, %v21887_v63  ;;  %v8923_v63 = vadd.f32 %v8921_v11, %v8618_v31 }
 0x657   : > { %v10408_v43 = vcombine.low %v21897_v62, %v21904_v58  ;;  %v9821_v58 = vcombine.low %v9806_v61, %v9813_v40 }
 0x658   : > { %v9820_v27 = vrot.slane %v9799_v10, %v21917_v15 }
 0x659   : > { %v10423_v12 = vrot.slane %v10408_v43, %v21917_v15 }
 0x65a   : > { %v9835_v17 = vrot.slane %v9820_v27, %v21917_v15 }
 0x65d   : > { %v21891_v50 = vpop.f32.mrf.mxu0 }
 0x65e   : > { %v21910_v24 = vpop.f32.mrf.mxu1 }
 0x65f   : > { %v21895_v8 = vpop.f32.mrf.mxu0 }
 0x660   : > { %v21925_v26 = vpop.f32.mrf.mxu1  ;;  %v10103_v13 = vcombine.low %v21891_v50, %v21895_v8  ;;  %v9225_v50 = vrot.slane %v9210_v37, %v21917_v15  ;;  %v9516_v8 = vcombine.low %v9501_v52, %v9508_v59 }
 0x661   : > { %v10712_v62 = vcombine.low %v21910_v24, %v21925_v26 }
 0x662   : > { %v10118_v57 = vrot.slane %v10103_v13, %v21917_v15  ;;  %v9226_v60 = vcombine.low %v9218_v45, %v9225_v50  ;;  %v9523_v22 = vrot.slane %v9516_v8, %v21917_v15 }
 0x663   : > { %v10721_v1 = vrot.slane %v10712_v62, %v21917_v15 }
 0x664   : > { %v9228_v16 = vadd.f32 %v9226_v60, %v8923_v63 }
 0x667   : > { %v21899_v20 = vpop.f32.mrf.mxu0 }
 0x668   : > { %v21937_v29 = vpop.f32.mrf.mxu1 }
 0x669   : > { %v21906_v32 = vpop.f32.mrf.mxu0 }
 0x66a   : > { %v21953_v41 = vpop.f32.mrf.mxu1  ;;  %v10407_v0 = vcombine.low %v21899_v20, %v21906_v32 }
 0x66b   : > { %v10714_v24 = vcombine.low %v21937_v29, %v21953_v41 }
 0x66c   : > { %v10416_v28 = vrot.slane %v10407_v0, %v21917_v15 }
 0x66d   : > { %v10735_v11 = vrot.slane %v10714_v24, %v21917_v15  ;;  %v22074_v24 = vsub.s32 1, %v21902_v54 }
 0x66e   : > { %v10431_v42 = vcombine.low %v10416_v28, %v10423_v12 }
 0x670   : > { %v10438_v7 = vrot.slane %v10431_v42, %v21917_v15 }
 0x671   : > { %v21912_v47 = vpop.f32.mrf.mxu0 }
 0x672   : > { %v21962_v38 = vpop.f32.mrf.mxu1 }
 0x673   : > { %v21927_v49 = vpop.f32.mrf.mxu0 }
 0x674   : > { %v21980_v2 = vpop.f32.mrf.mxu1  ;;  %v10409_v20 = vcombine.low %v21912_v47, %v21927_v49 }
 0x675   : > { %v11018_v4 = vcombine.low %v21962_v38, %v21980_v2 }
 0x676   : > { %v10430_v26 = vrot.slane %v10409_v20, %v21917_v15 }
 0x67b   : > { %v21939_v25 = vpop.f32.mrf.mxu0 }
 0x67c   : > { %v21991_v51 = vpop.f32.mrf.mxu1 }
 0x67d   : > { %v21955_v35 = vpop.f32.mrf.mxu0 }
 0x67e   : > { %v11171_v21 = vpop.f32.mrf.mxu1  ;;  %v10713_v44 = vcombine.low %v21939_v25, %v21955_v35  ;;  %v10125_v25 = vrot.slane %v10104_v33, %v21917_v15  ;;  %v10126_v35 = vcombine.low %v10111_v30, %v10118_v57 }
 0x67f   : > { %v11322_v53 = vcombine.low %v21991_v51, %v11171_v21  ;;  %v10445_v51 = vrot.slane %v10430_v26, %v21917_v15  ;;  %v11976_v26 = vsub.s32 3, %v21902_v54 }
 0x680   : > { %v10728_v47 = vrot.slane %v10713_v44, %v21917_v15  ;;  %v10133_v59 = vrot.slane %v10126_v35, %v21917_v15  ;;  %v10140_v41 = vrot.slane %v10125_v25, %v21917_v15 }
 0x681   : > { %v11331_v5 = vrot.slane %v11322_v53, %v21917_v15  ;;  %v10446_v0 = vcombine.low %v10438_v7, %v10445_v51 }
 0x682   : > { %v10736_v13 = vcombine.low %v10721_v1, %v10728_v47  ;;  %v10141_v31 = vcombine.low %v10133_v59, %v10140_v41  ;;  %v11750_v1 = vld [vmem:[%s22392_s13 + $0x270] sm:$0xff] }
 0x683   : > { %v11925_v41 = vunpack.c.h.bf16 %v11750_v1 }
 0x684   : > { %v10743_v50 = vrot.slane %v10736_v13, %v21917_v15  ;;  %v11924_v13 = vunpack.c.l.bf16 %v11750_v1 }
 0x685   : > { %v21964_v46 = vpop.f32.mrf.mxu0 }
 0x686   : > { %v22018_v14 = vpop.f32.mrf.mxu1 }
 0x687   : > { %v21982_v48 = vpop.f32.mrf.mxu0 }
 0x688   : > { %v11313_v9 = vpop.f32.mrf.mxu1  ;;  %v11017_v49 = vcombine.low %v21964_v46, %v21982_v48  ;;  %v9531_v46 = vcombine.low %v9523_v22, %v9530_v56  ;;  %v9828_v48 = vrot.slane %v9821_v58, %v21917_v15 }
 0x689   : > { %v11324_v36 = vcombine.low %v22018_v14, %v11313_v9 }
 0x68a   : > { %v11026_v38 = vrot.slane %v11017_v49, %v21917_v15  ;;  %v9836_v6 = vcombine.low %v9828_v48, %v9835_v17 }
 0x68b   : > { %v11345_v45 = vrot.slane %v11324_v36, %v21917_v15  ;;  %v11745_v36 = vld [vmem:[%s22392_s13 + $0x248] sm:$0xff] }
 0x68c   : > { %v11914_v7 = vunpack.c.l.bf16 %v11745_v36 }
 0x68d   : > { %v11360_v60 = vrot.slane %v11345_v45, %v21917_v15 }
 0x68f   : > { %v21993_v23 = vpop.f32.mrf.mxu0 }
 0x690   : > { %v11545_v19 = vpop.f32.mrf.mxu1 }
 0x691   : > { %v11008_v3 = vpop.f32.mrf.mxu0 }
 0x692   : > { %v11019_v37 = vcombine.low %v21993_v23, %v11008_v3  ;;  %v11033_v23 = vrot.slane %v11018_v4, %v21917_v15  ;;  %v11547_v52 = vpop.f32.mrf.mxu1  ;;  %v9533_v3 = vadd.f32 %v9531_v46, %v9228_v16  ;;  %v22078_v4 = vsub.s32 0, %v21902_v54 }
 0x693   : > { %v11628_v61 = vcombine.low %v11545_v19, %v11547_v52  ;;  %v11972_v19 = vsub.s32 2, %v21902_v54  ;;  %v11746_v52 = vld [vmem:[%s22392_s13 + $0x250] sm:$0xff] }
 0x694   : > { %v11040_v10 = vrot.slane %v11019_v37, %v21917_v15  ;;  %v11041_v8 = vcombine.low %v11026_v38, %v11033_v23  ;;  %v9838_v57 = vadd.f32 %v9836_v6, %v9533_v3  ;;  %v11926_v37 = vunpack.c.l.bf16 %v21812_v39  ;;  %v11748_v38 = vld [vmem:[%s22392_s13 + $0x260] sm:$0xff] }
 0x695   : > { %v11643_v27 = vrot.slane %v11628_v61, %v21917_v15  ;;  %v11921_v51 = vunpack.c.h.bf16 %v11748_v38  ;;  %v11920_v23 = vunpack.c.l.bf16 %v11748_v38  ;;  %v11744_v3 = vld [vmem:[%s22392_s13 + $0x240] sm:$0xff] }
 0x696   : > { %v11055_v14 = vrot.slane %v11040_v10, %v21917_v15  ;;  %v10143_v43 = vadd.f32 %v10141_v31, %v9838_v57  ;;  %v11048_v30 = vrot.slane %v11041_v8, %v21917_v15  ;;  %v11917_v10 = vunpack.c.h.bf16 %v11746_v52  ;;  %v11760_v38 = vld [vmem:[%s22392_s13 + $0x2c0] sm:$0xff] }
 0x697   : > { %v11915_v31 = vunpack.c.h.bf16 %v11745_v36  ;;  %v11913_v8 = vunpack.c.h.bf16 %v11744_v3  ;;  %v11912_v61 = vunpack.c.l.bf16 %v11744_v3  ;;  %v11757_v36 = vld [vmem:[%s22392_s13 + $0x2a8] sm:$0xff]  ;;  %v11756_v3 = vld [vmem:[%s22392_s13 + $0x2a0] sm:$0xff] }
 0x698   : > { %v11240_v55 = vpop.f32.mrf.mxu0  ;;  %v11056_v22 = vcombine.low %v11048_v30, %v11055_v14 }
 0x69a   : > { %v11242_v32 = vpop.f32.mrf.mxu0 }
 0x69b   : > { %v11323_v34 = vcombine.low %v11240_v55, %v11242_v32  ;;  %v10750_v55 = vrot.slane %v10735_v11, %v21917_v15  ;;  %v10448_v32 = vadd.f32 %v10446_v0, %v10143_v43  ;;  %v11747_v11 = vld [vmem:[%s22392_s13 + $0x258] sm:$0xff] }
 0x69d   : > { %v11338_v2 = vrot.slane %v11323_v34, %v21917_v15  ;;  %v10751_v40 = vcombine.low %v10743_v50, %v10750_v55  ;;  %v11743_v50 = vld [vmem:[%s22392_s13 + $0x238] sm:$0xff]  ;;  %v11741_v55 = vld [vmem:[%s22392_s13 + $0x228] sm:$0xff] }
 0x69e   : > { %v11911_v57 = vunpack.c.h.bf16 %v11743_v50  ;;  %v11910_v0 = vunpack.c.l.bf16 %v11743_v50  ;;  %v11907_v43 = vunpack.c.h.bf16 %v11741_v55  ;;  %v11755_v50 = vld [vmem:[%s22392_s13 + $0x298] sm:$0xff] }
 0x69f   : > { %v11346_v33 = vcombine.low %v11331_v5, %v11338_v2  ;;  %v10753_v25 = vadd.f32 %v10751_v40, %v10448_v32  ;;  %v11918_v5 = vunpack.c.l.bf16 %v11747_v11  ;;  %v11739_v40 = vld [vmem:[%s22392_s13 + $0x218] sm:$0xff] }
 0x6a0   : > { %v11474_v29 = vpop.f32.mrf.mxu0  ;;  %v11903_v32 = vunpack.c.h.bf16 %v11739_v40 }
 0x6a1   : > { %v11353_v20 = vrot.slane %v11346_v33, %v21917_v15  ;;  %v11058_v9 = vadd.f32 %v11056_v22, %v10753_v25  ;;  %v11742_v33 = vld [vmem:[%s22392_s13 + $0x230] sm:$0xff] }
 0x6a2   : > { %v11476_v18 = vpop.f32.mrf.mxu0  ;;  %v11909_v45 = vunpack.c.h.bf16 %v11742_v33  ;;  %v11908_v14 = vunpack.c.l.bf16 %v11742_v33  ;;  %v11754_v33 = vld [vmem:[%s22392_s13 + $0x290] sm:$0xff] }
 0x6a3   : > { %v11627_v21 = vcombine.low %v11474_v29, %v11476_v18  ;;  %v11361_v35 = vcombine.low %v11353_v20, %v11360_v60  ;;  %v11749_v29 = vld [vmem:[%s22392_s13 + $0x268] sm:$0xff]  ;;  %v11919_v18 = vunpack.c.h.bf16 %v11747_v11  ;;  %v11738_v20 = vld [vmem:[%s22392_s13 + $0x210] sm:$0xff]  ;;  %v11759_v11 = vld [vmem:[%s22392_s13 + $0x2b8] sm:$0xff] }
 0x6a4   : > { %v11923_v2 = vunpack.c.h.bf16 %v11749_v29  ;;  %v11922_v6 = vunpack.c.l.bf16 %v11749_v29  ;;  %v11737_v60 = vld [vmem:[%s22392_s13 + $0x208] sm:$0xff]  ;;  %v11901_v22 = vunpack.c.h.bf16 %v11738_v20 }
 0x6a5   : > { %v11636_v63 = vrot.slane %v11627_v21, %v21917_v15  ;;  %v11363_v49 = vadd.f32 %v11361_v35, %v11058_v9  ;;  %v11916_v21 = vunpack.c.l.bf16 %v11746_v52  ;;  %v11899_v25 = vunpack.c.h.bf16 %v11737_v60  ;;  %v11758_v52 = vld [vmem:[%s22392_s13 + $0x2b0] sm:$0xff] }
 0x6a6   : > { %v11898_v35 = vunpack.c.l.bf16 %v11737_v60 }
 0x6a7   : > { %v11651_v62 = vcombine.low %v11636_v63, %v11643_v27  ;;  %v11740_v63 = vld [vmem:[%s22392_s13 + $0x220] sm:$0xff] }
 0x6a8   : > { %v11616_v44 = vpop.f32.mrf.mxu0  ;;  %v11905_v30 = vunpack.c.h.bf16 %v11740_v63  ;;  %v11904_v27 = vunpack.c.l.bf16 %v11740_v63  ;;  %v11752_v63 = vld [vmem:[%s22392_s13 + $0x280] sm:$0xff] }
 0x6a9   : > { %v11658_v12 = vrot.slane %v11651_v62, %v21917_v15  ;;  %v11900_v62 = vunpack.c.l.bf16 %v11738_v20 }
 0x6aa   : > { %v11618_v56 = vpop.f32.mrf.mxu0 }
 0x6ab   : > { %v11629_v58 = vcombine.low %v11616_v44, %v11618_v56  ;;  %v11906_v44 = vunpack.c.l.bf16 %v11741_v55  ;;  %v11902_v56 = vunpack.c.l.bf16 %v11739_v40  ;;  %v11753_v55 = vld [vmem:[%s22392_s13 + $0x288] sm:$0xff]  ;;  %v11929_v40 = vunpack.c.h.bf16 %v11752_v63 }
 0x6ad   : > { %v11650_v28 = vrot.slane %v11629_v58, %v21917_v15  ;;  %v11736_v58 = vld [vmem:[%s22392_s13 + $0x200] sm:$0xff] }
 0x6ae   : > { %v11897_v9 = vunpack.c.h.bf16 %v11736_v58 }
 0x6af   : > { %v11665_v47 = vrot.slane %v11650_v28, %v21917_v15  ;;  %v11984_v15 = vsub.s32 5, %v21902_v54  ;;  %v11767_v28 = vld [vmem:[%s22392_s13 + $0x2f8] sm:$0xff] }
 0x6b1   : > { %v11666_v34 = vcombine.low %v11658_v12, %v11665_v47  ;;  %v11896_v12 = vunpack.c.l.bf16 %v11736_v58  ;;  %v11766_v47 = vld [vmem:[%s22392_s13 + $0x2f0] sm:$0xff] }
 0x6b3   : > { %v11668_v17 = vadd.f32 %v11666_v34, %v11363_v49  ;;  %v11959_v49 = vunpack.c.h.bf16 %v11767_v28  ;;  %v11958_v34 = vunpack.c.l.bf16 %v11767_v28  ;;  %v12233_v28 = vld [vmem:[%s22394_s15 + $0x58] sm:$0xff] }
 0x6b5   : > { %vm11669_vm3 = vcmp.gt.f32.partialorder %v11668_v17, 0.0  ;;  %v11670_v16 = vmul.f32 0.01, %v11668_v17 }
 0x6b7   : > { %v22085_v53 = vsel %vm11669_vm3, %v11668_v17, %v11670_v16  ;;  %v11765_v17 = vld [vmem:[%s22392_s13 + $0x2e8] sm:$0xff]  ;;  %v11764_v16 = vld [vmem:[%s22392_s13 + $0x2e0] sm:$0xff] }
 0x6b8   : > { %v11969_v46 = vrot.slane %v22085_v53, %v22074_v24  ;;  %v11977_v48 = vrot.slane %v22085_v53, %v11976_v26  ;;  %v11965_v59 = vrot.slane %v22085_v53, %v22078_v4  ;;  %v11973_v42 = vrot.slane %v22085_v53, %v11972_v19 }
 0x6b9   : > { %v11985_v39 = vrot.slane %v22085_v53, %v11984_v15  ;;  %v11957_v26 = vunpack.c.h.bf16 %v11766_v47  ;;  %v11956_v19 = vunpack.c.l.bf16 %v11766_v47  ;;  %v11955_v1 = vunpack.c.h.bf16 %v11765_v17  ;;  %v12232_v47 = vld [vmem:[%s22394_s15 + $0x50] sm:$0xff] }
 0x6ba   : > { %12067 = vmatprep.mubr.f32.mxu1 %v11969_v46  ;;  %12138 = vmatprep.mubr.f32.mxu0 %v11977_v48  ;;  %v11954_v15 = vunpack.c.l.bf16 %v11765_v17  ;;  %v11953_v46 = vunpack.c.h.bf16 %v11764_v16  ;;  %v11952_v48 = vunpack.c.l.bf16 %v11764_v16  ;;  %v12231_v17 = vld [vmem:[%s22394_s15 + $0x48] sm:$0xff]  ;;  %v12230_v16 = vld [vmem:[%s22394_s15 + $0x40] sm:$0xff] }
 0x6bb   : > { %12068 = vmatmul.mubr.f32.vlgmr.msra.gmra.mxu1 %v11965_v59  ;;  %12139 = vmatmul.mubr.f32.vlgmr.msra.gmra.mxu0 %v11973_v42  ;;  %v11762_v59 = vld [vmem:[%s22392_s13 + $0x2d0] sm:$0xff] }
 0x6bc   : > { %12146 = vmatpush1.msra.mxu1 %v11926_v37  ;;  %12209 = vmatprep.mubr.f32.mxu1 %v11985_v39  ;;  %v11763_v37 = vld [vmem:[%s22392_s13 + $0x2d8] sm:$0xff]  ;;  %v11948_v39 = vunpack.c.l.bf16 %v11762_v59 }
 0x6bd   : > { %12147 = vmatprep.subr.mxu1 %v11925_v41  ;;  %v11951_v42 = vunpack.c.h.bf16 %v11763_v37  ;;  %v11950_v29 = vunpack.c.l.bf16 %v11763_v37  ;;  %v11761_v41 = vld [vmem:[%s22392_s13 + $0x2c8] sm:$0xff]  ;;  %v12229_v37 = vld [vmem:[%s22394_s15 + $0x38] sm:$0xff] }
 0x6be   : > { %12148 = vmatpush1.msra.mxu1 %v11924_v13  ;;  %v11949_v13 = vunpack.c.h.bf16 %v11762_v59  ;;  %v12228_v59 = vld [vmem:[%s22394_s15 + $0x30] sm:$0xff] }
 0x6bf   : > { %12149 = vmatprep.subr.mxu1 %v11923_v2  ;;  %v11947_v2 = vunpack.c.h.bf16 %v11761_v41 }
 0x6c0   : > { %12150 = vmatpush1.msra.mxu1 %v11922_v6  ;;  %v11946_v6 = vunpack.c.l.bf16 %v11761_v41  ;;  %v12227_v41 = vld [vmem:[%s22394_s15 + $0x28] sm:$0xff] }
 0x6c1   : > { %12151 = vmatprep.subr.mxu1 %v11921_v51  ;;  %v11945_v51 = vunpack.c.h.bf16 %v11760_v38 }
 0x6c2   : > { %12152 = vmatpush1.msra.mxu1 %v11920_v23  ;;  %v11944_v23 = vunpack.c.l.bf16 %v11760_v38  ;;  %v12226_v38 = vld [vmem:[%s22394_s15 + $0x20] sm:$0xff] }
 0x6c3   : > { %12153 = vmatprep.subr.mxu1 %v11919_v18  ;;  %v11943_v18 = vunpack.c.h.bf16 %v11759_v11 }
 0x6c4   : > { %12154 = vmatpush1.msra.mxu1 %v11918_v5  ;;  %v11942_v5 = vunpack.c.l.bf16 %v11759_v11  ;;  %v12225_v11 = vld [vmem:[%s22394_s15 + $0x18] sm:$0xff] }
 0x6c5   : > { %12155 = vmatprep.subr.mxu1 %v11917_v10  ;;  %v11941_v10 = vunpack.c.h.bf16 %v11758_v52 }
 0x6c6   : > { %12156 = vmatpush1.msra.mxu1 %v11916_v21  ;;  %v11940_v21 = vunpack.c.l.bf16 %v11758_v52  ;;  %v12224_v52 = vld [vmem:[%s22394_s15 + $0x10] sm:$0xff] }
 0x6c7   : > { %12157 = vmatprep.subr.mxu1 %v11915_v31  ;;  %v11939_v31 = vunpack.c.h.bf16 %v11757_v36 }
 0x6c8   : > { %12158 = vmatpush1.msra.mxu1 %v11914_v7  ;;  %v11938_v7 = vunpack.c.l.bf16 %v11757_v36  ;;  %v12223_v36 = vld [vmem:[%s22394_s15 + $0x8] sm:$0xff] }
 0x6c9   : > { %12159 = vmatprep.subr.mxu1 %v11913_v8  ;;  %v11937_v8 = vunpack.c.h.bf16 %v11756_v3 }
 0x6ca   : > { %12160 = vmatpush1.msra.mxu1 %v11912_v61  ;;  %v11936_v61 = vunpack.c.l.bf16 %v11756_v3  ;;  %v12222_v3 = vld [vmem:[%s22394_s15] sm:$0xff] }
 0x6cb   : > { %12161 = vmatprep.subr.mxu1 %v11911_v57  ;;  %v11935_v57 = vunpack.c.h.bf16 %v11755_v50 }
 0x6cc   : > { %12162 = vmatpush1.msra.mxu1 %v11910_v0  ;;  %v11934_v0 = vunpack.c.l.bf16 %v11755_v50  ;;  %v12253_v50 = vld [vmem:[%s22394_s15 + $0xf8] sm:$0xff] }
 0x6cd   : > { %12163 = vmatprep.subr.mxu1 %v11909_v45  ;;  %v11933_v45 = vunpack.c.h.bf16 %v11754_v33 }
 0x6ce   : > { %12164 = vmatpush1.msra.mxu1 %v11908_v14  ;;  %v11932_v14 = vunpack.c.l.bf16 %v11754_v33  ;;  %v12252_v33 = vld [vmem:[%s22394_s15 + $0xf0] sm:$0xff] }
 0x6cf   : > { %12165 = vmatprep.subr.mxu1 %v11907_v43  ;;  %v11931_v43 = vunpack.c.h.bf16 %v11753_v55 }
 0x6d0   : > { %12166 = vmatpush1.msra.mxu1 %v11906_v44  ;;  %v11930_v44 = vunpack.c.l.bf16 %v11753_v55  ;;  %v12251_v55 = vld [vmem:[%s22394_s15 + $0xe8] sm:$0xff] }
 0x6d1   : > { %12167 = vmatprep.subr.mxu1 %v11905_v30  ;;  %v11980_v30 = vsub.s32 4, %v21902_v54  ;;  %v12235_v54 = vld [vmem:[%s22394_s15 + $0x68] sm:$0xff] }
 0x6d2   : > { %12168 = vmatpush1.msra.mxu1 %v11904_v27  ;;  %v11928_v27 = vunpack.c.l.bf16 %v11752_v63  ;;  %v12250_v63 = vld [vmem:[%s22394_s15 + $0xe0] sm:$0xff] }
 0x6d3   : > { %12169 = vmatprep.subr.mxu1 %v11903_v32  ;;  %v11981_v20 = vrot.slane %v22085_v53, %v11980_v30  ;;  %v12237_v32 = vld [vmem:[%s22394_s15 + $0x78] sm:$0xff]  ;;  %v12234_v53 = vld [vmem:[%s22394_s15 + $0x60] sm:$0xff]  ;;  %v12311_v30 = vunpack.c.h.bf16 %v12250_v63 }
 0x6d4   : > { %12170 = vmatpush1.msra.mxu1 %v11902_v56  ;;  %v12236_v56 = vld [vmem:[%s22394_s15 + $0x70] sm:$0xff]  ;;  %v12284_v60 = vunpack.c.l.bf16 %v12237_v32 }
 0x6d5   : > { %12171 = vmatprep.subr.mxu1 %v11901_v22  ;;  %v12285_v22 = vunpack.c.h.bf16 %v12237_v32  ;;  %v12282_v58 = vunpack.c.l.bf16 %v12236_v56 }
 0x6d6   : > { %12172 = vmatpush1.msra.mxu1 %v11900_v62  ;;  %v12283_v62 = vunpack.c.h.bf16 %v12236_v56 }
 0x6d7   : > { %12173 = vmatprep.subr.mxu1 %v11899_v25  ;;  %12330 = vmatprep.subr.mxu0 %v12285_v22  ;;  %v12281_v25 = vunpack.c.h.bf16 %v12235_v54 }
 0x6d8   : > { %12174 = vmatpush1.msra.mxu1 %v11898_v35  ;;  %12331 = vmatpush1.msra.mxu0 %v12284_v60  ;;  %v12280_v35 = vunpack.c.l.bf16 %v12235_v54  ;;  %v12247_v54 = vld [vmem:[%s22394_s15 + $0xc8] sm:$0xff] }
 0x6d9   : > { %12175 = vmatprep.subr.mxu1 %v11897_v9  ;;  %12332 = vmatprep.subr.mxu0 %v12283_v62  ;;  %v12279_v9 = vunpack.c.h.bf16 %v12234_v53  ;;  %v12246_v62 = vld [vmem:[%s22394_s15 + $0xc0] sm:$0xff] }
 0x6da   : > { %12176 = vmatpush1.msra.mxu1 %v11896_v12  ;;  %12333 = vmatpush1.msra.mxu0 %v12282_v58  ;;  %v12278_v12 = vunpack.c.l.bf16 %v12234_v53  ;;  %v12305_v58 = vunpack.c.h.bf16 %v12247_v54  ;;  %v12304_v53 = vunpack.c.l.bf16 %v12247_v54  ;;  %v14702_v54 = vld [vmem:[%s22396_s17 + $0x10] sm:$0xff]  }
 0x6db   : > { %12177 = vmatprep.subr.mxu1 %v11959_v49  ;;  %12334 = vmatprep.subr.mxu0 %v12281_v25  ;;  %v12277_v49 = vunpack.c.h.bf16 %v12233_v28  ;;  %v12245_v25 = vld [vmem:[%s22394_s15 + $0xb8] sm:$0xff] }
 0x6dc   : > { %12178 = vmatpush2.msra.mxu1 %v11958_v34  ;;  %12335 = vmatpush1.msra.mxu0 %v12280_v35  ;;  %v12276_v34 = vunpack.c.l.bf16 %v12233_v28  ;;  %v12303_v35 = vunpack.c.h.bf16 %v12246_v62  ;;  %v12302_v28 = vunpack.c.l.bf16 %v12246_v62  ;;  %v14372_v62 = vunpack.c.h.bf16 %v14702_v54 }
 0x6dd   : > { %12179 = vmatprep.subr.mxu1 %v11957_v26  ;;  %12336 = vmatprep.subr.mxu0 %v12279_v9  ;;  %v12275_v26 = vunpack.c.h.bf16 %v12232_v47  ;;  %v12244_v9 = vld [vmem:[%s22394_s15 + $0xb0] sm:$0xff] }
 0x6de   : > { %12180 = vmatpush2.msra.mxu1 %v11956_v19  ;;  %12337 = vmatpush1.msra.mxu0 %v12278_v12  ;;  %v12274_v19 = vunpack.c.l.bf16 %v12232_v47  ;;  %v12301_v12 = vunpack.c.h.bf16 %v12245_v25  ;;  %v12300_v47 = vunpack.c.l.bf16 %v12245_v25 }
 0x6df   : > { %12181 = vmatprep.subr.mxu1 %v11955_v1  ;;  %12338 = vmatprep.subr.mxu0 %v12277_v49  ;;  %v12273_v1 = vunpack.c.h.bf16 %v12231_v17  ;;  %v12243_v49 = vld [vmem:[%s22394_s15 + $0xa8] sm:$0xff] }
 0x6e0   : > { %12182 = vmatpush2.msra.mxu1 %v11954_v15  ;;  %12339 = vmatpush1.msra.mxu0 %v12276_v34  ;;  %v12272_v15 = vunpack.c.l.bf16 %v12231_v17  ;;  %v12299_v34 = vunpack.c.h.bf16 %v12244_v9  ;;  %v12298_v17 = vunpack.c.l.bf16 %v12244_v9 }
 0x6e1   : > { %12183 = vmatprep.subr.mxu1 %v11953_v46  ;;  %12340 = vmatprep.subr.mxu0 %v12275_v26  ;;  %v12271_v46 = vunpack.c.h.bf16 %v12230_v16  ;;  %v12242_v26 = vld [vmem:[%s22394_s15 + $0xa0] sm:$0xff] }
 0x6e2   : > { %12184 = vmatpush2.msra.mxu1 %v11952_v48  ;;  %12341 = vmatpush1.msra.mxu0 %v12274_v19  ;;  %v12270_v48 = vunpack.c.l.bf16 %v12230_v16  ;;  %v12297_v19 = vunpack.c.h.bf16 %v12243_v49  ;;  %v12296_v16 = vunpack.c.l.bf16 %v12243_v49 }
 0x6e3   : > { %12185 = vmatprep.subr.mxu1 %v11951_v42  ;;  %12342 = vmatprep.subr.mxu0 %v12273_v1  ;;  %v12269_v42 = vunpack.c.h.bf16 %v12229_v37  ;;  %v12295_v1 = vunpack.c.h.bf16 %v12242_v26 }
 0x6e4   : > { %12186 = vmatpush2.msra.mxu1 %v11950_v29  ;;  %12343 = vmatpush1.msra.mxu0 %v12272_v15  ;;  %v12268_v29 = vunpack.c.l.bf16 %v12229_v37  ;;  %v12294_v15 = vunpack.c.l.bf16 %v12242_v26  ;;  %v12241_v37 = vld [vmem:[%s22394_s15 + $0x98] sm:$0xff] }
 0x6e5   : > { %12187 = vmatprep.subr.mxu1 %v11949_v13  ;;  %12344 = vmatprep.subr.mxu0 %v12271_v46  ;;  %v12267_v13 = vunpack.c.h.bf16 %v12228_v59  ;;  %v12293_v46 = vunpack.c.h.bf16 %v12241_v37 }
 0x6e6   : > { %12188 = vmatpush2.msra.mxu1 %v11948_v39  ;;  %12345 = vmatpush1.msra.mxu0 %v12270_v48  ;;  %v12266_v39 = vunpack.c.l.bf16 %v12228_v59  ;;  %v12292_v48 = vunpack.c.l.bf16 %v12241_v37  ;;  %v12240_v59 = vld [vmem:[%s22394_s15 + $0x90] sm:$0xff] }
 0x6e7   : > { %12189 = vmatprep.subr.mxu1 %v11947_v2  ;;  %12346 = vmatprep.subr.mxu0 %v12269_v42  ;;  %v12265_v2 = vunpack.c.h.bf16 %v12227_v41  ;;  %v12291_v42 = vunpack.c.h.bf16 %v12240_v59 }
 0x6e8   : > { %12190 = vmatpush2.msra.mxu1 %v11946_v6  ;;  %12347 = vmatpush1.msra.mxu0 %v12268_v29  ;;  %v12264_v6 = vunpack.c.l.bf16 %v12227_v41  ;;  %v12290_v29 = vunpack.c.l.bf16 %v12240_v59  ;;  %v12239_v41 = vld [vmem:[%s22394_s15 + $0x88] sm:$0xff] }
 0x6e9   : > { %12191 = vmatprep.subr.mxu1 %v11945_v51  ;;  %12348 = vmatprep.subr.mxu0 %v12267_v13  ;;  %v12263_v51 = vunpack.c.h.bf16 %v12226_v38  ;;  %v12289_v13 = vunpack.c.h.bf16 %v12239_v41 }
 0x6ea   : > { %12192 = vmatpush2.msra.mxu1 %v11944_v23  ;;  %12349 = vmatpush1.msra.mxu0 %v12266_v39  ;;  %v12262_v23 = vunpack.c.l.bf16 %v12226_v38  ;;  %v12288_v39 = vunpack.c.l.bf16 %v12239_v41  ;;  %v12238_v38 = vld [vmem:[%s22394_s15 + $0x80] sm:$0xff] }
 0x6eb   : > { %12193 = vmatprep.subr.mxu1 %v11943_v18  ;;  %12350 = vmatprep.subr.mxu0 %v12265_v2  ;;  %v12261_v18 = vunpack.c.h.bf16 %v12225_v11  ;;  %v12286_v2 = vunpack.c.l.bf16 %v12238_v38 }
 0x6ec   : > { %12194 = vmatpush2.msra.mxu1 %v11942_v5  ;;  %12351 = vmatpush1.msra.mxu0 %v12264_v6  ;;  %v12260_v5 = vunpack.c.l.bf16 %v12225_v11  ;;  %v12287_v6 = vunpack.c.h.bf16 %v12238_v38  ;;  %v14715_v11 = vld [vmem:[%s22396_s17 + $0x78] sm:$0xff]  }
 0x6ed   : > { %12195 = vmatprep.subr.mxu1 %v11941_v10  ;;  %12352 = vmatprep.subr.mxu0 %v12263_v51  ;;  %v12259_v10 = vunpack.c.h.bf16 %v12224_v52  ;;  %v14707_v51 = vld [vmem:[%s22396_s17 + $0x38] sm:$0xff]  }
 0x6ee   : > { %12196 = vmatpush2.msra.mxu1 %v11940_v21  ;;  %12353 = vmatpush1.msra.mxu0 %v12262_v23  ;;  %v12258_v21 = vunpack.c.l.bf16 %v12224_v52  ;;  %v14714_v23 = vld [vmem:[%s22396_s17 + $0x70] sm:$0xff]   ;;  %v14424_v52 = vunpack.c.h.bf16 %v14715_v11 }
 0x6ef   : > { %12197 = vmatprep.subr.mxu1 %v11939_v31  ;;  %12354 = vmatprep.subr.mxu0 %v12261_v18  ;;  %v12257_v31 = vunpack.c.h.bf16 %v12223_v36  ;;  %v14392_v18 = vunpack.c.h.bf16 %v14707_v51 }
 0x6f0   : > { %12198 = vmatpush2.msra.mxu1 %v11938_v7  ;;  %12355 = vmatpush1.msra.mxu0 %v12260_v5  ;;  %v12256_v7 = vunpack.c.l.bf16 %v12223_v36  ;;  %v14423_v5 = vunpack.c.l.bf16 %v14715_v11  ;;  %v14706_v36 = vld [vmem:[%s22396_s17 + $0x30] sm:$0xff]  }
 0x6f1   : > { %12199 = vmatprep.subr.mxu1 %v11937_v8  ;;  %12356 = vmatprep.subr.mxu0 %v12259_v10  ;;  %v12255_v8 = vunpack.c.h.bf16 %v12222_v3  ;;  %v14391_v10 = vunpack.c.l.bf16 %v14707_v51  ;;  %v14362_v51 = vld [vmem:[%s22396_s17] sm:$0xff]  }
 0x6f2   : > { %12200 = vmatpush2.msra.mxu1 %v11936_v61  ;;  %12357 = vmatpush1.msra.mxu0 %v12258_v21  ;;  %v12254_v61 = vunpack.c.l.bf16 %v12222_v3  ;;  %v14420_v21 = vunpack.c.h.bf16 %v14714_v23  ;;  %v14388_v3 = vunpack.c.h.bf16 %v14706_v36 }
 0x6f3   : > { %12201 = vmatprep.subr.mxu1 %v11935_v57  ;;  %12358 = vmatprep.subr.mxu0 %v12257_v31  ;;  %v12317_v57 = vunpack.c.h.bf16 %v12253_v50  ;;  %v14713_v31 = vld [vmem:[%s22396_s17 + $0x68] sm:$0xff]  }
 0x6f4   : > { %12202 = vmatpush2.msra.mxu1 %v11934_v0  ;;  %12359 = vmatpush1.msra.mxu0 %v12256_v7  ;;  %v12316_v0 = vunpack.c.l.bf16 %v12253_v50  ;;  %v14419_v7 = vunpack.c.l.bf16 %v14714_v23  ;;  %v14705_v50 = vld [vmem:[%s22396_s17 + $0x28] sm:$0xff]   ;;  %v14364_v23 = vunpack.c.h.bf16 %v14362_v51 }
 0x6f5   : > { %12203 = vmatprep.subr.mxu1 %v11933_v45  ;;  %12360 = vmatprep.subr.mxu0 %v12255_v8  ;;  %v12315_v45 = vunpack.c.h.bf16 %v12252_v33  ;;  %v14387_v8 = vunpack.c.l.bf16 %v14706_v36 }
 0x6f6   : > { %12204 = vmatpush2.msra.mxu1 %v11932_v14  ;;  %12361 = vmatpush1.msra.mxu0 %v12254_v61  ;;  %v12314_v14 = vunpack.c.l.bf16 %v12252_v33  ;;  %v14416_v61 = vunpack.c.h.bf16 %v14713_v31  ;;  %v14384_v33 = vunpack.c.h.bf16 %v14705_v50 }
 0x6f7   : > { %12205 = vmatprep.subr.mxu1 %v11931_v43  ;;  %12362 = vmatprep.subr.mxu0 %v12317_v57  ;;  %v12313_v43 = vunpack.c.h.bf16 %v12251_v55  ;;  %v14712_v57 = vld [vmem:[%s22396_s17 + $0x60] sm:$0xff]  }
 0x6f8   : > { %12206 = vmatpush2.msra.mxu1 %v11930_v44  ;;  %12363 = vmatpush2.msra.mxu0 %v12316_v0  ;;  %v12312_v44 = vunpack.c.l.bf16 %v12251_v55  ;;  %v14415_v0 = vunpack.c.l.bf16 %v14713_v31  ;;  %v14704_v55 = vld [vmem:[%s22396_s17 + $0x20] sm:$0xff]  }
 0x6f9   : > { %12207 = vmatprep.subr.mxu1 %v11929_v40  ;;  %v12249_v40 = vld [vmem:[%s22394_s15 + $0xd8] sm:$0xff]  ;;  %12364 = vmatprep.subr.mxu0 %v12315_v45  ;;  %v14383_v45 = vunpack.c.l.bf16 %v14705_v50 }
 0x6fa   : > { %12208 = vmatpush2.msra.mxu1 %v11928_v27  ;;  %12365 = vmatpush2.msra.mxu0 %v12314_v14  ;;  %v12310_v27 = vunpack.c.l.bf16 %v12250_v63  ;;  %v12309_v32 = vunpack.c.h.bf16 %v12249_v40  ;;  %v12308_v56 = vunpack.c.l.bf16 %v12249_v40  ;;  %v14412_v14 = vunpack.c.h.bf16 %v14712_v57  ;;  %v14703_v40 = vld [vmem:[%s22396_s17 + $0x18] sm:$0xff]  }
 0x6fb   : > { %12210 = vmatmul.mubr.f32.vlgmr.msra.gmra.mxu1 %v11981_v20  ;;  %v12248_v20 = vld [vmem:[%s22394_s15 + $0xd0] sm:$0xff]  ;;  %12366 = vmatprep.subr.mxu0 %v12313_v43  ;;  %v14380_v63 = vunpack.c.h.bf16 %v14704_v55  ;;  %v14711_v43 = vld [vmem:[%s22396_s17 + $0x58] sm:$0xff]  }
 0x6fc   : > { %12367 = vmatpush2.msra.mxu0 %v12312_v44  ;;  %v12307_v60 = vunpack.c.h.bf16 %v12248_v20  ;;  %v12306_v22 = vunpack.c.l.bf16 %v12248_v20  ;;  %15699 = vmatprep.subr.mxu1 %v14424_v52  ;;  %v14411_v44 = vunpack.c.l.bf16 %v14712_v57  ;;  %v14376_v20 = vunpack.c.h.bf16 %v14703_v40 }
 0x6fd   : > { %12368 = vmatprep.subr.mxu0 %v12311_v30  ;;  %15700 = vmatpush3.msra.mxu1 %v14392_v18  ;;  %v14379_v30 = vunpack.c.l.bf16 %v14704_v55  ;;  %v14363_v18 = vunpack.c.l.bf16 %v14362_v51 }
 0x6fe   : > { %12369 = vmatpush2.msra.mxu0 %v12310_v27  ;;  %15701 = vmatprep.subr.mxu1 %v14423_v5  ;;  %v14408_v27 = vunpack.c.h.bf16 %v14711_v43  ;;  %v12318_v5 = vld [vmem:[%s22395_s16] sm:$0x3] }
 0x6ff   : > { %12370 = vmatprep.subr.mxu0 %v12309_v32  ;;  %15702 = vmatpush3.msra.mxu1 %v14391_v10  ;;  %v14710_v32 = vld [vmem:[%s22396_s17 + $0x50] sm:$0xff]   ;;  %v12323_v36 = vrot.slane %v12318_v5, %v22078_v4  ;;  %v12327_v10 = vrot.slane %v12318_v5, %v22074_v24 }
 0x700   : > { %12371 = vmatpush2.msra.mxu0 %v12308_v56  ;;  %15703 = vmatprep.subr.mxu1 %v14420_v21  ;;  %v14407_v56 = vunpack.c.l.bf16 %v14711_v43 }
 0x701   : > { %12372 = vmatprep.subr.mxu0 %v12307_v60  ;;  %15704 = vmatpush3.msra.mxu1 %v14388_v3  ;;  %v14375_v60 = vunpack.c.l.bf16 %v14703_v40 }
 0x702   : > { %12373 = vmatpush2.msra.mxu0 %v12306_v22  ;;  %15705 = vmatprep.subr.mxu1 %v14419_v7  ;;  %v14404_v22 = vunpack.c.h.bf16 %v14710_v32 }
 0x703   : > { %12374 = vmatprep.subr.mxu0 %v12305_v58  ;;  %15706 = vmatpush3.msra.mxu1 %v14387_v8  ;;  %v14403_v58 = vunpack.c.l.bf16 %v14710_v32 }
 0x704   : > { %12375 = vmatpush2.msra.mxu0 %v12304_v53  ;;  %15707 = vmatprep.subr.mxu1 %v14416_v61  ;;  %v11960_v53 = vld [vmem:[%s22393_s14] sm:$0x3] }
 0x705   : > { %12376 = vmatprep.subr.mxu0 %v12303_v35  ;;  %15708 = vmatpush3.msra.mxu1 %v14384_v33  ;;  %v11996_v35 = vrot.slane %v11960_v53, %v22078_v4  ;;  %v12471_v4 = vld [vmem:[%s22397_s18] sm:$0x1] }
 0x706   : > { %12377 = vmatpush2.msra.mxu0 %v12302_v28  ;;  %15709 = vmatprep.subr.mxu1 %v14415_v0  ;;  %v12000_v28 = vrot.slane %v11960_v53, %v22074_v24  ;;  %v22542_v0 = vlaneseq }
 0x707   : > { %12378 = vmatprep.subr.mxu0 %v12301_v12  ;;  %15710 = vmatpush3.msra.mxu1 %v14383_v45 }
 0x708   : > { %12379 = vmatpush2.msra.mxu0 %v12300_v47  ;;  %15711 = vmatprep.subr.mxu1 %v14412_v14  ;;  %v12543_v55 = vand.u32 127, %v22542_v0 }
 0x709   : > { %12380 = vmatprep.subr.mxu0 %v12299_v34  ;;  %15712 = vmatpush3.msra.mxu1 %v14380_v63 }
 0x70a   : > { %12381 = vmatpush2.msra.mxu0 %v12298_v17  ;;  %15713 = vmatprep.subr.mxu1 %v14411_v44  ;;  %vm12544_vm8 = vcmp.lt.s32.totalorder %v12543_v55, 3 }
 0x70b   : > { %12382 = vmatprep.subr.mxu0 %v12297_v19  ;;  %15714 = vmatpush3.msra.mxu1 %v14379_v30 }
 0x70c   : > { %12383 = vmatpush2.msra.mxu0 %v12296_v16  ;;  %15715 = vmatprep.subr.mxu1 %v14408_v27 }
 0x70d   : > { %12384 = vmatprep.subr.mxu0 %v12295_v1  ;;  %15716 = vmatpush3.msra.mxu1 %v14376_v20 }
 0x70e   : > { %12385 = vmatpush2.msra.mxu0 %v12294_v15  ;;  %15717 = vmatprep.subr.mxu1 %v14407_v56 }
 0x70f   : > { %12386 = vmatprep.subr.mxu0 %v12293_v46  ;;  %15718 = vmatpush3.msra.mxu1 %v14375_v60 }
 0x710   : > { %12387 = vmatpush2.msra.mxu0 %v12292_v48  ;;  %15719 = vmatprep.subr.mxu1 %v14404_v22 }
 0x711   : > { %12388 = vmatprep.subr.mxu0 %v12291_v42  ;;  %15720 = vmatpush3.msra.mxu1 %v14372_v62  ;;  %v14371_v42 = vunpack.c.l.bf16 %v14702_v54 }
 0x712   : > { %12389 = vmatpush2.msra.mxu0 %v12290_v29  ;;  %15721 = vmatprep.subr.mxu1 %v14403_v58  ;;  %v14709_v29 = vld [vmem:[%s22396_s17 + $0x48] sm:$0xff]  }
 0x713   : > { %12390 = vmatprep.subr.mxu0 %v12289_v13  ;;  %v14400_v41 = vunpack.c.h.bf16 %v14709_v29  ;;  %v14701_v13 = vld [vmem:[%s22396_s17 + $0x8] sm:$0xff]   ;;  %15722 = vmatpush3.msra.mxu1 %v14371_v42  ;;  %v14399_v38 = vunpack.c.l.bf16 %v14709_v29 }
 0x714   : > { %12391 = vmatpush2.msra.mxu0 %v12288_v39  ;;  %v14368_v39 = vunpack.c.h.bf16 %v14701_v13 }
 0x715   : > { %12392 = vmatprep.subr.mxu0 %v12287_v6  ;;  %15723 = vmatprep.subr.mxu1 %v14400_v41  ;;  %v14708_v6 = vld [vmem:[%s22396_s17 + $0x40] sm:$0xff]  }
 0x716   : > { %12393 = vmatpush2.msra.mxu0 %v12286_v2  ;;  %15724 = vmatpush3.msra.mxu1 %v14368_v39  ;;  %v14367_v2 = vunpack.c.l.bf16 %v14701_v13  ;;  %v14396_v11 = vunpack.c.h.bf16 %v14708_v6  ;;  %v14395_v52 = vunpack.c.l.bf16 %v14708_v6 }
 0x717   : > { %15725 = vmatprep.subr.mxu1 %v14399_v38 }
 0x718   : > { %15726 = vmatpush3.msra.mxu1 %v14367_v2 }
 0x719   : > { %15727 = vmatprep.subr.mxu1 %v14396_v11 }
 0x71a   : > { %15728 = vmatpush3.msra.mxu1 %v14364_v23 }
 0x71b   : > { %15729 = vmatprep.subr.mxu1 %v14395_v52 }
 0x71c   : > { %15730 = vmatpush3.msra.mxu1 %v14363_v18 }
 0x77b   : > { %v12069_v25 = vpop.f32.mrf.mxu1  ;;  %v12140_v47 = vpop.f32.mrf.mxu0 }
 0x77c   : > { %v12070_v12 = vadd.f32 %v12069_v25, %v11996_v35 }
 0x77d   : > { %v12071_v9 = vpop.f32.mrf.mxu1  ;;  %v12142_v17 = vpop.f32.mrf.mxu0 }
 0x77e   : > { %v12072_v49 = vadd.f32 %v12071_v9, %v12000_v28  ;;  %v12141_v34 = vadd.f32 %v12140_v47, %v12070_v12 }
 0x780   : > { %v12143_v19 = vadd.f32 %v12142_v17, %v12072_v49 }
 0x7bb   : > { %v12211_v26 = vpop.f32.mrf.mxu1 }
 0x7bc   : > { %v12212_v16 = vadd.f32 %v12211_v26, %v12141_v34 }
 0x7bd   : > { %v12213_v1 = vpop.f32.mrf.mxu1 }
 0x7be   : > { %v12214_v15 = vadd.f32 %v12213_v1, %v12143_v19  ;;  %v12218_v37 = vmul.f32 0.01, %v12212_v16  ;;  %vm12216_vm4 = vcmp.gt.f32.partialorder %v12212_v16, 0.0 }
 0x7c0   : > { %v12219_v46 = vmul.f32 0.01, %v12214_v15  ;;  %vm12217_vm5 = vcmp.gt.f32.partialorder %v12214_v15, 0.0  ;;  %v12220_v59 = vsel %vm12216_vm4, %v12212_v16, %v12218_v37 }
 0x7c2   : > { %v12221_v48 = vsel %vm12217_vm5, %v12214_v15, %v12219_v46 }
 0x7c3   : > { %12394 = vmatprep.mubr.f32.mxu0 %v12221_v48 }
 0x7c4   : > { %12395 = vmatmul.mubr.f32.vlgmr.msra.gmra.mxu0 %v12220_v59 }
 0x884   : > { %v12396_v21 = vpop.f32.mrf.mxu0 }
 0x885   : > { %v12397_v3 = vadd.f32 %v12396_v21, %v12323_v36 }
 0x886   : > { %v12398_v31 = vpop.f32.mrf.mxu0 }
 0x887   : > { %v12399_v7 = vadd.f32 %v12398_v31, %v12327_v10  ;;  %v12403_v50 = vmul.f32 0.01, %v12397_v3  ;;  %vm12401_vm6 = vcmp.gt.f32.partialorder %v12397_v3, 0.0 }
 0x889   : > { %v12404_v8 = vmul.f32 0.01, %v12399_v7  ;;  %vm12402_vm7 = vcmp.gt.f32.partialorder %v12399_v7, 0.0  ;;  %v12405_v33 = vsel %vm12401_vm6, %v12397_v3, %v12403_v50 }
 0x88b   : > { %v12406_v61 = vsel %vm12402_vm7, %v12399_v7, %v12404_v8 }
 0x88c   : > { %12536 = vmatprep.mubr.f32.mxu1 %v12406_v61 }
 0x88d   : > { %12537 = vmatmul.mubr.f32.vlgmr.msra.gmra.mxu1 %v12405_v33 }
 0x94d   : > { %v15731_v57 = vpop.f32.mrf.mxu1 }
 0x94f   : > { %v15732_v24 = vpop.f32.mrf.mxu1 }
 0x950   : > { %v15733_v45 = vadd.f32 %v15732_v24, %v15731_v57 }
 0x952   : > { %v12539_v14 = vadd.f32 %v15733_v45, %v12471_v4 }
 0x954   : > { %v12545_v63 = vsel %vm12544_vm8, %v12539_v14, -1e+30 }
 0x955   : > { %v12547_v43 = vsel %vm12546_vm9, %v12545_v63, -inf }
 0x956   : > { %12548 = vmax.xlane.f32.xlu0 %v12547_v43 }
 0x9df   : > { %v12549_v44 = vpop.xlane.xlu0 %12548 }
 0x9e0   : > { %v12550_v40 = vsub.f32 %v12545_v63, %v12549_v44 }
 0x9e2   : > { %v12551_v30 = vmul.f32 1.442695, %v12550_v40 }
 0x9e4   : > { %17577 = vpow2.f32 %v12551_v30 }
 0x9f1   : > { %v17578_v27 = vpop.eup %17577 }
 0x9f2   : > { %v12553_v20 = vsel %vm12546_vm9, %v17578_v27, 0.0 }
 0x9f3   : > { %12554 = vadd.xlane.f32.xlu0 %v12553_v20 }
 0xa7c   : > { %v12555_v32 = vpop.xlane.xlu0 %12554 }
 0xa7d   : > { %17579 = vrcp.f32 %v12555_v32 }
 0xa8a   : > { %v17580_v56 = vpop.eup %17579 }
 0xa8b   : > { %v12557_v54 = vmul.f32 %v17580_v56, %v17578_v27 }
 0xa8d   : > { %12558 = vst [vmem:[%s594_s4] sm:$0x1] %v12557_v54 }
 0xa8e   : > { %17623 = shalt.err (!%p17620_p3)
}
 0xa8f   : > { %s17624_s11 = scalar_lea.hbm %s12570_s22, 16  ;;  %s17628_s4 = scalar_lea.hbm %s22398_s19, 32 }
 0xa90   : > { %p17625_p4 = scmp.ne.s32.totalorder %s12570_s22, %s17624_s11  ;;  %p17629_p9 = scmp.lt.s32.totalorder %s12570_s22, %s22398_s19 }
 0xa91   : > { %p17630_p10 = scmp.lt.s32.totalorder %s17628_s4, %s17624_s11 }
 0xa92   : > { %p17626_p7 = pnand %p17625_p4, %p17814_p5 }
 0xa93   : > { %p17631_p11 = por %p17630_p10, %p17629_p9 }
 0xa94   : > { %p17627_p8 = pneg %p17626_p7 }
 0xa96   : > { %p17632_p12 = pnand %p17631_p11, %p17627_p8 }
 0xa98   : > { %17635 = shalt.err (!%p17632_p12)
}
 0xa99   : > { %17535 = dma.vmem_to_hbm [thread:$0]  (%p17814_p5), %s12573_s5, 16, %s12570_s22, %s12560_s23  }
 0xa9a PF: > { %p17541_p13 = scmp.ge.s32.totalorder %s17670_s21, 2  ;;  %s12584_s8 = sand.u32 1, %s17658_s0  }
 0xa9b   : > { %s12585_s9 = scalar_lea.sflag [#allocation7], %s12584_s8 }
 0xa9c   : > { %p17538_p0 = pnand %p17541_p13, %p17818_p6 }
 0xa9e   : > { %p17539_p1 = pneg %p17538_p0 }
 0xaa0   : > { %17653 = dma.done.wait (%p17539_p1), %s12585_s9, 16  }
 0xaa1   : > { %17655 = vsyncadd (%p17539_p1), %s12585_s9, 4294967280  ;;  %p29_p2 = scmp.ge.s32.totalorder %s17801_s2, 4   ;;  %s22543_s0 = smov %s17662_s30 }
 0xaa2   : > { %s22544_s30 = smov %s17666_s20  ;;  %s22545_s20 = smov %s17812_s25 }
 0xaa3   : > { %s22546_s21 = smov %s17801_s2  ;;  %31 = sbr.rel (!%p29_p2) target bundleno = 16 (0x10), region = 243 }
 0xaa8   :  { %12589 = vsyncpa [#allocation7], 1 }
 0xaa9   :  { %12591 = vsyncpa [#allocation7 + $0x1], 1 }

</bundles_post_ra>
